<compile_context>
chip_gen: v5e
topology: v5e:2x2
jax: 0.10.0
libtpu: 0.0.40
codegen_flags: <defaults>
</compile_context>

<pallas_src>
import functools

import jax
import jax.numpy as jnp
import numpy as np
from jax.experimental import pallas as pl
from jax.experimental.pallas import tpu as pltpu

# Module hyper-parameters (from the PyTorch script).
VOCAB_SIZE = 1000
EMBEDDING_DIM = 128
NUM_FILTERS = 100
F_PAD = 128                       # lane-dense padded filter count
FILTER_SIZES = (3, 4, 5)
MAX_FS = max(FILTER_SIZES)
N_FS = len(FILTER_SIZES)
OUTPUT_SIZE = 3
OUT_PAD = 128                     # lane-dense padded logit width
DROPOUT_PROB = 0.5                # TODO(synk): dropout applied as identity (eval semantics).
_PAD_ROWS = 8                     # extra scratch rows so shifted windows stay in-bounds


# ---------------------------------------------------------------------------
# Fused kernel: embedding gather + fused conv+ReLU+maxpool/argmax + fc + softmax
# ---------------------------------------------------------------------------
def _emotion_cnn_kernel(tok_ref,                        # (B, L) int32  SMEM (scalar prefetch)
                        emb_tbl_ref,                    # (V, E) f32    VMEM (resident)
                        w_all_ref,                      # (5*E, 3*F_PAD) f32 fused conv weight
                        b_all_ref,                      # (1, 3*F_PAD)   f32 fused conv bias
                        fcw_ref, fcb_ref,               # (3*F_PAD, OUT_PAD), (1, OUT_PAD)
                        out_ref,                        # (BT, OUT_PAD) f32
                        idx3_ref, idx4_ref, idx5_ref,   # (BT, F_PAD)   i32
                        emb_ref,                        # scratch (BT, L+8, E) f32
                        *, seq_len, batch_tile):
    L = seq_len
    BT = batch_tile
    E = emb_ref.shape[-1]
    NC = N_FS * F_PAD                                   # 384 fused conv lanes

    b0 = pl.program_id(0) * BT

    # Zero the padding rows every step (cheap, and safe even if the "parallel"
    # batch axis is split across TensorCores with per-core scratch).
    zero_pad = jnp.zeros((_PAD_ROWS, E), jnp.float32)
    for bt in range(BT):
        emb_ref[bt, pl.ds(L, _PAD_ROWS), :] = zero_pad

    # --- fused nn.Embedding gather: dynamic sublane reads from the resident table ---
    for bt in range(BT):
        for l in range(L):
            tok = tok_ref[b0 + bt, l]
            emb_ref[bt, pl.ds(l, 1), :] = emb_tbl_ref[pl.ds(tok, 1), :]

    # --- im2col: rows = batch-tile x positions, cols = 5 shifted taps x E ---
    rows = []
    for bt in range(BT):
        cols = [emb_ref[bt, pl.ds(k, L), :] for k in range(MAX_FS)]
        rows.append(jnp.concatenate(cols, axis=1))      # (L, 5*E)
    x = jnp.concatenate(rows, axis=0)                   # (BT*L, 5*E)

    # --- single fused conv matmul for all three filter sizes + ReLU ---
    conv = jnp.dot(x, w_all_ref[...],
                   preferred_element_type=jnp.float32) + b_all_ref[...]
    conv = jnp.maximum(conv, 0.0)                       # (BT*L, 3*F_PAD)

    # valid-position limits per fused lane block (T = L - fs + 1)
    limits = jnp.concatenate(
        [jnp.full((1, F_PAD), L - fs + 1, jnp.int32) for fs in FILTER_SIZES],
        axis=1)                                         # (1, 3*F_PAD)
    pos_big = jax.lax.broadcasted_iota(jnp.int32, (BT * L, NC), 0) % L
    masked = jnp.where(pos_big < limits, conv, -1.0)    # ReLU output >= 0 > -1

    # --- per-sequence global max-pool + first-occurrence argmax ---
    pos_loc = jax.lax.broadcasted_iota(jnp.int32, (L, NC), 0)
    feat_rows, idx_rows = [], []
    for bt in range(BT):
        slab = masked[bt * L:(bt + 1) * L, :]           # (L, 3*F_PAD)
        mx = jnp.max(slab, axis=0, keepdims=True)       # (1, 3*F_PAD)
        idx = jnp.min(jnp.where(slab == mx, pos_loc, L),
                      axis=0, keepdims=True)            # (1, 3*F_PAD)
        feat_rows.append(mx)
        idx_rows.append(idx)
    feat = jnp.concatenate(feat_rows, axis=0)           # (BT, 3*F_PAD)
    idx_all = jnp.concatenate(idx_rows, axis=0)         # (BT, 3*F_PAD) int32

    idx3_ref[...] = idx_all[:, 0:F_PAD]
    idx4_ref[...] = idx_all[:, F_PAD:2 * F_PAD]
    idx5_ref[...] = idx_all[:, 2 * F_PAD:3 * F_PAD]

    # --- fc + masked softmax on the lane-dense feature slab ---
    # TODO(synk): nn.Dropout(p=0.5) skipped — identity in eval mode.
    logits = jnp.dot(feat, fcw_ref[...],
                     preferred_element_type=jnp.float32) + fcb_ref[...]
    lane = jax.lax.broadcasted_iota(jnp.int32, logits.shape, 1)
    logits = jnp.where(lane < OUTPUT_SIZE, logits, -1e30)   # padded lanes -> ~0 prob
    m = jnp.max(logits, axis=1, keepdims=True)
    e = jnp.exp(logits - m)
    out_ref[...] = e / jnp.sum(e, axis=1, keepdims=True)


# ---------------------------------------------------------------------------
# Forward pass wrapper (weight layout prep + single pallas_call)
# ---------------------------------------------------------------------------
def emotion_cnn_forward(params, tokens, *, batch_tile=8):
    B, L = tokens.shape
    E, F, FP = EMBEDDING_DIM, NUM_FILTERS, F_PAD
    assert L >= MAX_FS, "sequence length must be >= max filter size"

    # Pad batch to a multiple of the batch tile (token 0 for padded rows).
    B_pad = ((B + batch_tile - 1) // batch_tile) * batch_tile
    tokens_p = jnp.pad(tokens.astype(jnp.int32), ((0, B_pad - B), (0, 0)))

    # Fused conv weight (5*E, 3*F_PAD): im2col layout, zero-padded K rows for
    # taps beyond each filter size and zero filter lanes 100..127.
    w_blocks, b_blocks = [], []
    for fs, (w, b) in zip(FILTER_SIZES, params["convs"]):
        wk = jnp.transpose(w, (1, 2, 0)).reshape(fs * E, F)      # [k*E+e, f] = w[f, k, e]
        wk = jnp.pad(wk, ((0, (MAX_FS - fs) * E), (0, FP - F)))  # (5*E, F_PAD)
        w_blocks.append(wk)
        b_blocks.append(jnp.pad(b.reshape(1, F), ((0, 0), (0, FP - F))))
    w_all = jnp.concatenate(w_blocks, axis=1)                    # (5*E, 3*F_PAD)
    b_all = jnp.concatenate(b_blocks, axis=1)                    # (1, 3*F_PAD)

    # fc weight -> (3*F_PAD, OUT_PAD), zero rows for padded filter lanes and
    # zero columns for padded output lanes.
    fcw = params["fc_w"]                                         # (OUT, 3*F)
    fcw_blocks = [jnp.pad(fcw[:, j * F:(j + 1) * F].T,
                          ((0, FP - F), (0, OUT_PAD - OUTPUT_SIZE)))
                  for j in range(N_FS)]
    fcw_pad = jnp.concatenate(fcw_blocks, axis=0)                # (3*F_PAD, OUT_PAD)
    fcb_pad = jnp.pad(params["fc_b"].reshape(1, OUTPUT_SIZE),
                      ((0, 0), (0, OUT_PAD - OUTPUT_SIZE)))      # (1, OUT_PAD)

    kernel = functools.partial(_emotion_cnn_kernel, seq_len=L, batch_tile=batch_tile)

    grid_spec = pltpu.PrefetchScalarGridSpec(
        num_scalar_prefetch=1,
        grid=(B_pad // batch_tile,),
        in_specs=[
            pl.BlockSpec((VOCAB_SIZE, E), lambda i, tok: (0, 0)),   # resident table
            pl.BlockSpec((MAX_FS * E, N_FS * FP), lambda i, tok: (0, 0)),
            pl.BlockSpec((1, N_FS * FP), lambda i, tok: (0, 0)),
            pl.BlockSpec((N_FS * FP, OUT_PAD), lambda i, tok: (0, 0)),
            pl.BlockSpec((1, OUT_PAD), lambda i, tok: (0, 0)),
        ],
        out_specs=(
            pl.BlockSpec((batch_tile, OUT_PAD), lambda i, tok: (i, 0)),
            pl.BlockSpec((batch_tile, FP), lambda i, tok: (i, 0)),
            pl.BlockSpec((batch_tile, FP), lambda i, tok: (i, 0)),
            pl.BlockSpec((batch_tile, FP), lambda i, tok: (i, 0)),
        ),
        scratch_shapes=[
            pltpu.VMEM((batch_tile, L + _PAD_ROWS, E), jnp.float32),
        ],
    )

    out, i3, i4, i5 = pl.pallas_call(
        kernel,
        out_shape=(jax.ShapeDtypeStruct((B_pad, OUT_PAD), jnp.float32),
                   jax.ShapeDtypeStruct((B_pad, FP), jnp.int32),
                   jax.ShapeDtypeStruct((B_pad, FP), jnp.int32),
                   jax.ShapeDtypeStruct((B_pad, FP), jnp.int32)),
        grid_spec=grid_spec,
        compiler_params=pltpu.CompilerParams(
            dimension_semantics=("parallel",)),
    )(tokens_p, params["embedding"], w_all, b_all, fcw_pad, fcb_pad)

    output = out[:B, :OUTPUT_SIZE]                               # (B, OUTPUT_SIZE)
    max_indices = [i[:B, :F] for i in (i3, i4, i5)]              # (B, NUM_FILTERS) each
    return output, max_indices


# ---------------------------------------------------------------------------
# Parameter init (deterministic, mimics torch default shapes)
# ---------------------------------------------------------------------------
def init_params(key):
    keys = jax.random.split(key, 2 + 2 * len(FILTER_SIZES) + 2)
    params = {}
    params["embedding"] = jax.random.normal(
        keys[0], (VOCAB_SIZE, EMBEDDING_DIM), jnp.float32)

    params["convs"] = []
    for i, fs in enumerate(FILTER_SIZES):
        fan_in = 1 * fs * EMBEDDING_DIM
        bound = 1.0 / float(np.sqrt(fan_in))
        w = jax.random.uniform(keys[1 + 2 * i], (NUM_FILTERS, fs, EMBEDDING_DIM),
                               jnp.float32, -bound, bound)
        b = jax.random.uniform(keys[2 + 2 * i], (NUM_FILTERS,), jnp.float32,
                               -bound, bound)
        params["convs"].append((w, b))

    fc_in = NUM_FILTERS * len(FILTER_SIZES)
    bound = 1.0 / float(np.sqrt(fc_in))
    params["fc_w"] = jax.random.uniform(keys[-2], (OUTPUT_SIZE, fc_in),
                                        jnp.float32, -bound, bound)
    params["fc_b"] = jax.random.uniform(keys[-1], (OUTPUT_SIZE,), jnp.float32,
                                        -bound, bound)
    return params


# Pure-JAX reference for correctness checking.
def reference_forward(params, tokens):
    emb = params["embedding"][tokens.astype(jnp.int32)]
    B, L, _ = emb.shape
    feats, idxs = [], []
    for fs, (w, b) in zip(FILTER_SIZES, params["convs"]):
        T = L - fs + 1
        windows = jnp.stack([emb[:, k:k + T, :] for k in range(fs)], axis=2)
        conv = jnp.einsum("btke,fke->btf", windows, w) + b
        conv = jnp.maximum(conv, 0.0)
        feats.append(jnp.max(conv, axis=1))
        idxs.append(jnp.argmax(conv, axis=1).astype(jnp.int32))
    x = jnp.concatenate(feats, axis=1)
    logits = x @ params["fc_w"].T + params["fc_b"]
    return jax.nn.softmax(logits, axis=1), idxs


if __name__ == "__main__":
    key = jax.random.PRNGKey(0)
    pkey, tkey = jax.random.split(key)
    params = init_params(pkey)

    B, L = 16, 16  # small batch / sequence length (2 grid steps of 8 sequences)
    tokens = jax.random.randint(tkey, (B, L), 0, VOCAB_SIZE, dtype=jnp.int32)

    fwd = jax.jit(emotion_cnn_forward)
    out, max_indices = fwd(params, tokens)
    out = jax.block_until_ready(out)
    max_indices = [jax.block_until_ready(m) for m in max_indices]

    ref_out, ref_idx = reference_forward(params, tokens)
    np.testing.assert_allclose(np.asarray(out), np.asarray(ref_out),
                               rtol=1e-4, atol=1e-5)
    for a, r in zip(max_indices, ref_idx):
        np.testing.assert_array_equal(np.asarray(a), np.asarray(r))

    print("KERNEL_OK")
</pallas_src>

<mosaic_0001>
module attributes {stable_mosaic.version = 11 : i64} {
  func.func @_emotion_cnn_kernel(%arg0: i32, %arg1: memref<16x16xi32, #tpu.memory_space<smem>>, %arg2: memref<1000x128xf32, #tpu.memory_space<vmem>>, %arg3: memref<640x384xf32, #tpu.memory_space<vmem>>, %arg4: memref<1x384xf32, #tpu.memory_space<vmem>>, %arg5: memref<384x128xf32, #tpu.memory_space<vmem>>, %arg6: memref<1x128xf32, #tpu.memory_space<vmem>>, %arg7: memref<8x128xf32, #tpu.memory_space<vmem>>, %arg8: memref<8x128xi32, #tpu.memory_space<vmem>>, %arg9: memref<8x128xi32, #tpu.memory_space<vmem>>, %arg10: memref<8x128xi32, #tpu.memory_space<vmem>>, %arg11: memref<8x24x128xf32, #tpu.memory_space<vmem>>) attributes {dimension_semantics = [#tpu.dimension_semantics<parallel>], iteration_bounds = array<i64: 2>, scalar_prefetch = 1 : i64, scratch_operands = 1 : i64, tpu.core_type = #tpu.core_type<tc>, window_params = [{pipeline_mode = #tpu.pipeline_mode<synchronous>, transform_indices = @transform_0, window_bounds = array<i64: 1000, 128>}, {pipeline_mode = #tpu.pipeline_mode<synchronous>, transform_indices = @transform_1, window_bounds = array<i64: 640, 384>}, {pipeline_mode = #tpu.pipeline_mode<synchronous>, transform_indices = @transform_2, window_bounds = array<i64: 1, 384>}, {pipeline_mode = #tpu.pipeline_mode<synchronous>, transform_indices = @transform_3, window_bounds = array<i64: 384, 128>}, {pipeline_mode = #tpu.pipeline_mode<synchronous>, transform_indices = @transform_4, window_bounds = array<i64: 1, 128>}, {transform_indices = @transform_5, window_bounds = array<i64: 8, 128>}, {transform_indices = @transform_6, window_bounds = array<i64: 8, 128>}, {transform_indices = @transform_7, window_bounds = array<i64: 8, 128>}, {transform_indices = @transform_8, window_bounds = array<i64: 8, 128>}]} {
    %c8_i32 = arith.constant 8 : i32
    %0 = arith.muli %arg0, %c8_i32 : i32
    %cst = arith.constant 0.000000e+00 : f32
    %1 = vector.broadcast %cst : f32 to vector<8x128xf32>
    %c0 = arith.constant 0 : index
    %c16 = arith.constant 16 : index
    %c0_0 = arith.constant 0 : index
    %2 = vector.load %arg11[%c0, %c16, %c0_0] : memref<8x24x128xf32, #tpu.memory_space<vmem>>, vector<1x8x128xf32>
    %3 = vector.shape_cast %2 : vector<1x8x128xf32> to vector<8x128xf32>
    %4 = vector.shape_cast %1 : vector<8x128xf32> to vector<1x8x128xf32>
    tpu.vector_store %arg11[%c0, %c16, %c0_0], %4 {strides = array<i32>} : memref<8x24x128xf32, #tpu.memory_space<vmem>>, vector<1x8x128xf32>,
    %c1 = arith.constant 1 : index
    %c16_1 = arith.constant 16 : index
    %c0_2 = arith.constant 0 : index
    %5 = vector.load %arg11[%c1, %c16_1, %c0_2] : memref<8x24x128xf32, #tpu.memory_space<vmem>>, vector<1x8x128xf32>
    %6 = vector.shape_cast %5 : vector<1x8x128xf32> to vector<8x128xf32>
    %7 = vector.shape_cast %1 : vector<8x128xf32> to vector<1x8x128xf32>
    tpu.vector_store %arg11[%c1, %c16_1, %c0_2], %7 {strides = array<i32>} : memref<8x24x128xf32, #tpu.memory_space<vmem>>, vector<1x8x128xf32>,
    %c2 = arith.constant 2 : index
    %c16_3 = arith.constant 16 : index
    %c0_4 = arith.constant 0 : index
    %8 = vector.load %arg11[%c2, %c16_3, %c0_4] : memref<8x24x128xf32, #tpu.memory_space<vmem>>, vector<1x8x128xf32>
    %9 = vector.shape_cast %8 : vector<1x8x128xf32> to vector<8x128xf32>
    %10 = vector.shape_cast %1 : vector<8x128xf32> to vector<1x8x128xf32>
    tpu.vector_store %arg11[%c2, %c16_3, %c0_4], %10 {strides = array<i32>} : memref<8x24x128xf32, #tpu.memory_space<vmem>>, vector<1x8x128xf32>,
    %c3 = arith.constant 3 : index
    %c16_5 = arith.constant 16 : index
    %c0_6 = arith.constant 0 : index
    %11 = vector.load %arg11[%c3, %c16_5, %c0_6] : memref<8x24x128xf32, #tpu.memory_space<vmem>>, vector<1x8x128xf32>
    %12 = vector.shape_cast %11 : vector<1x8x128xf32> to vector<8x128xf32>
    %13 = vector.shape_cast %1 : vector<8x128xf32> to vector<1x8x128xf32>
    tpu.vector_store %arg11[%c3, %c16_5, %c0_6], %13 {strides = array<i32>} : memref<8x24x128xf32, #tpu.memory_space<vmem>>, vector<1x8x128xf32>,
    %c4 = arith.constant 4 : index
    %c16_7 = arith.constant 16 : index
    %c0_8 = arith.constant 0 : index
    %14 = vector.load %arg11[%c4, %c16_7, %c0_8] : memref<8x24x128xf32, #tpu.memory_space<vmem>>, vector<1x8x128xf32>
    %15 = vector.shape_cast %14 : vector<1x8x128xf32> to vector<8x128xf32>
    %16 = vector.shape_cast %1 : vector<8x128xf32> to vector<1x8x128xf32>
    tpu.vector_store %arg11[%c4, %c16_7, %c0_8], %16 {strides = array<i32>} : memref<8x24x128xf32, #tpu.memory_space<vmem>>, vector<1x8x128xf32>,
    %c5 = arith.constant 5 : index
    %c16_9 = arith.constant 16 : index
    %c0_10 = arith.constant 0 : index
    %17 = vector.load %arg11[%c5, %c16_9, %c0_10] : memref<8x24x128xf32, #tpu.memory_space<vmem>>, vector<1x8x128xf32>
    %18 = vector.shape_cast %17 : vector<1x8x128xf32> to vector<8x128xf32>
    %19 = vector.shape_cast %1 : vector<8x128xf32> to vector<1x8x128xf32>
    tpu.vector_store %arg11[%c5, %c16_9, %c0_10], %19 {strides = array<i32>} : memref<8x24x128xf32, #tpu.memory_space<vmem>>, vector<1x8x128xf32>,
    %c6 = arith.constant 6 : index
    %c16_11 = arith.constant 16 : index
    %c0_12 = arith.constant 0 : index
    %20 = vector.load %arg11[%c6, %c16_11, %c0_12] : memref<8x24x128xf32, #tpu.memory_space<vmem>>, vector<1x8x128xf32>
    %21 = vector.shape_cast %20 : vector<1x8x128xf32> to vector<8x128xf32>
    %22 = vector.shape_cast %1 : vector<8x128xf32> to vector<1x8x128xf32>
    tpu.vector_store %arg11[%c6, %c16_11, %c0_12], %22 {strides = array<i32>} : memref<8x24x128xf32, #tpu.memory_space<vmem>>, vector<1x8x128xf32>,
    %c7 = arith.constant 7 : index
    %c16_13 = arith.constant 16 : index
    %c0_14 = arith.constant 0 : index
    %23 = vector.load %arg11[%c7, %c16_13, %c0_14] : memref<8x24x128xf32, #tpu.memory_space<vmem>>, vector<1x8x128xf32>
    %24 = vector.shape_cast %23 : vector<1x8x128xf32> to vector<8x128xf32>
    %25 = vector.shape_cast %1 : vector<8x128xf32> to vector<1x8x128xf32>
    tpu.vector_store %arg11[%c7, %c16_13, %c0_14], %25 {strides = array<i32>} : memref<8x24x128xf32, #tpu.memory_space<vmem>>, vector<1x8x128xf32>,
    %c0_i32 = arith.constant 0 : i32
    %26 = arith.addi %0, %c0_i32 : i32
    %27 = arith.index_cast %26 : i32 to index
    %c0_15 = arith.constant 0 : index
    %28 = memref.load %arg1[%27, %c0_15] : memref<16x16xi32, #tpu.memory_space<smem>>
    %29 = arith.index_cast %28 : i32 to index
    %c0_16 = arith.constant 0 : index
    %30 = vector.load %arg2[%29, %c0_16] : memref<1000x128xf32, #tpu.memory_space<vmem>>, vector<1x128xf32>
    %c0_17 = arith.constant 0 : index
    %c0_18 = arith.constant 0 : index
    %c0_19 = arith.constant 0 : index
    %31 = vector.load %arg11[%c0_17, %c0_18, %c0_19] : memref<8x24x128xf32, #tpu.memory_space<vmem>>, vector<1x1x128xf32>
    %32 = vector.shape_cast %31 : vector<1x1x128xf32> to vector<1x128xf32>
    %33 = vector.shape_cast %30 : vector<1x128xf32> to vector<1x1x128xf32>
    tpu.vector_store %arg11[%c0_17, %c0_18, %c0_19], %33 {strides = array<i32>} : memref<8x24x128xf32, #tpu.memory_space<vmem>>, vector<1x1x128xf32>,
    %c0_i32_20 = arith.constant 0 : i32
    %34 = arith.addi %0, %c0_i32_20 : i32
    %35 = arith.index_cast %34 : i32 to index
    %c1_21 = arith.constant 1 : index
    %36 = memref.load %arg1[%35, %c1_21] : memref<16x16xi32, #tpu.memory_space<smem>>
    %37 = arith.index_cast %36 : i32 to index
    %c0_22 = arith.constant 0 : index
    %38 = vector.load %arg2[%37, %c0_22] : memref<1000x128xf32, #tpu.memory_space<vmem>>, vector<1x128xf32>
    %c0_23 = arith.constant 0 : index
    %c1_24 = arith.constant 1 : index
    %c0_25 = arith.constant 0 : index
    %39 = vector.load %arg11[%c0_23, %c1_24, %c0_25] : memref<8x24x128xf32, #tpu.memory_space<vmem>>, vector<1x1x128xf32>
    %40 = vector.shape_cast %39 : vector<1x1x128xf32> to vector<1x128xf32>
    %41 = vector.shape_cast %38 : vector<1x128xf32> to vector<1x1x128xf32>
    tpu.vector_store %arg11[%c0_23, %c1_24, %c0_25], %41 {strides = array<i32>} : memref<8x24x128xf32, #tpu.memory_space<vmem>>, vector<1x1x128xf32>,
    %c0_i32_26 = arith.constant 0 : i32
    %42 = arith.addi %0, %c0_i32_26 : i32
    %43 = arith.index_cast %42 : i32 to index
    %c2_27 = arith.constant 2 : index
    %44 = memref.load %arg1[%43, %c2_27] : memref<16x16xi32, #tpu.memory_space<smem>>
    %45 = arith.index_cast %44 : i32 to index
    %c0_28 = arith.constant 0 : index
    %46 = vector.load %arg2[%45, %c0_28] : memref<1000x128xf32, #tpu.memory_space<vmem>>, vector<1x128xf32>
    %c0_29 = arith.constant 0 : index
    %c2_30 = arith.constant 2 : index
    %c0_31 = arith.constant 0 : index
    %47 = vector.load %arg11[%c0_29, %c2_30, %c0_31] : memref<8x24x128xf32, #tpu.memory_space<vmem>>, vector<1x1x128xf32>
    %48 = vector.shape_cast %47 : vector<1x1x128xf32> to vector<1x128xf32>
    %49 = vector.shape_cast %46 : vector<1x128xf32> to vector<1x1x128xf32>
    tpu.vector_store %arg11[%c0_29, %c2_30, %c0_31], %49 {strides = array<i32>} : memref<8x24x128xf32, #tpu.memory_space<vmem>>, vector<1x1x128xf32>,
    %c0_i32_32 = arith.constant 0 : i32
    %50 = arith.addi %0, %c0_i32_32 : i32
    %51 = arith.index_cast %50 : i32 to index
    %c3_33 = arith.constant 3 : index
    %52 = memref.load %arg1[%51, %c3_33] : memref<16x16xi32, #tpu.memory_space<smem>>
    %53 = arith.index_cast %52 : i32 to index
    %c0_34 = arith.constant 0 : index
    %54 = vector.load %arg2[%53, %c0_34] : memref<1000x128xf32, #tpu.memory_space<vmem>>, vector<1x128xf32>
    %c0_35 = arith.constant 0 : index
    %c3_36 = arith.constant 3 : index
    %c0_37 = arith.constant 0 : index
    %55 = vector.load %arg11[%c0_35, %c3_36, %c0_37] : memref<8x24x128xf32, #tpu.memory_space<vmem>>, vector<1x1x128xf32>
    %56 = vector.shape_cast %55 : vector<1x1x128xf32> to vector<1x128xf32>
    %57 = vector.shape_cast %54 : vector<1x128xf32> to vector<1x1x128xf32>
    tpu.vector_store %arg11[%c0_35, %c3_36, %c0_37], %57 {strides = array<i32>} : memref<8x24x128xf32, #tpu.memory_space<vmem>>, vector<1x1x128xf32>,
    %c0_i32_38 = arith.constant 0 : i32
    %58 = arith.addi %0, %c0_i32_38 : i32
    %59 = arith.index_cast %58 : i32 to index
    %c4_39 = arith.constant 4 : index
    %60 = memref.load %arg1[%59, %c4_39] : memref<16x16xi32, #tpu.memory_space<smem>>
    %61 = arith.index_cast %60 : i32 to index
    %c0_40 = arith.constant 0 : index
    %62 = vector.load %arg2[%61, %c0_40] : memref<1000x128xf32, #tpu.memory_space<vmem>>, vector<1x128xf32>
    %c0_41 = arith.constant 0 : index
    %c4_42 = arith.constant 4 : index
    %c0_43 = arith.constant 0 : index
    %63 = vector.load %arg11[%c0_41, %c4_42, %c0_43] : memref<8x24x128xf32, #tpu.memory_space<vmem>>, vector<1x1x128xf32>
    %64 = vector.shape_cast %63 : vector<1x1x128xf32> to vector<1x128xf32>
    %65 = vector.shape_cast %62 : vector<1x128xf32> to vector<1x1x128xf32>
    tpu.vector_store %arg11[%c0_41, %c4_42, %c0_43], %65 {strides = array<i32>} : memref<8x24x128xf32, #tpu.memory_space<vmem>>, vector<1x1x128xf32>,
    %c0_i32_44 = arith.constant 0 : i32
    %66 = arith.addi %0, %c0_i32_44 : i32
    %67 = arith.index_cast %66 : i32 to index
    %c5_45 = arith.constant 5 : index
    %68 = memref.load %arg1[%67, %c5_45] : memref<16x16xi32, #tpu.memory_space<smem>>
    %69 = arith.index_cast %68 : i32 to index
    %c0_46 = arith.constant 0 : index
    %70 = vector.load %arg2[%69, %c0_46] : memref<1000x128xf32, #tpu.memory_space<vmem>>, vector<1x128xf32>
    %c0_47 = arith.constant 0 : index
    %c5_48 = arith.constant 5 : index
    %c0_49 = arith.constant 0 : index
    %71 = vector.load %arg11[%c0_47, %c5_48, %c0_49] : memref<8x24x128xf32, #tpu.memory_space<vmem>>, vector<1x1x128xf32>
    %72 = vector.shape_cast %71 : vector<1x1x128xf32> to vector<1x128xf32>
    %73 = vector.shape_cast %70 : vector<1x128xf32> to vector<1x1x128xf32>
    tpu.vector_store %arg11[%c0_47, %c5_48, %c0_49], %73 {strides = array<i32>} : memref<8x24x128xf32, #tpu.memory_space<vmem>>, vector<1x1x128xf32>,
    %c0_i32_50 = arith.constant 0 : i32
    %74 = arith.addi %0, %c0_i32_50 : i32
    %75 = arith.index_cast %74 : i32 to index
    %c6_51 = arith.constant 6 : index
    %76 = memref.load %arg1[%75, %c6_51] : memref<16x16xi32, #tpu.memory_space<smem>>
    %77 = arith.index_cast %76 : i32 to index
    %c0_52 = arith.constant 0 : index
    %78 = vector.load %arg2[%77, %c0_52] : memref<1000x128xf32, #tpu.memory_space<vmem>>, vector<1x128xf32>
    %c0_53 = arith.constant 0 : index
    %c6_54 = arith.constant 6 : index
    %c0_55 = arith.constant 0 : index
    %79 = vector.load %arg11[%c0_53, %c6_54, %c0_55] : memref<8x24x128xf32, #tpu.memory_space<vmem>>, vector<1x1x128xf32>
    %80 = vector.shape_cast %79 : vector<1x1x128xf32> to vector<1x128xf32>
    %81 = vector.shape_cast %78 : vector<1x128xf32> to vector<1x1x128xf32>
    tpu.vector_store %arg11[%c0_53, %c6_54, %c0_55], %81 {strides = array<i32>} : memref<8x24x128xf32, #tpu.memory_space<vmem>>, vector<1x1x128xf32>,
    %c0_i32_56 = arith.constant 0 : i32
    %82 = arith.addi %0, %c0_i32_56 : i32
    %83 = arith.index_cast %82 : i32 to index
    %c7_57 = arith.constant 7 : index
    %84 = memref.load %arg1[%83, %c7_57] : memref<16x16xi32, #tpu.memory_space<smem>>
    %85 = arith.index_cast %84 : i32 to index
    %c0_58 = arith.constant 0 : index
    %86 = vector.load %arg2[%85, %c0_58] : memref<1000x128xf32, #tpu.memory_space<vmem>>, vector<1x128xf32>
    %c0_59 = arith.constant 0 : index
    %c7_60 = arith.constant 7 : index
    %c0_61 = arith.constant 0 : index
    %87 = vector.load %arg11[%c0_59, %c7_60, %c0_61] : memref<8x24x128xf32, #tpu.memory_space<vmem>>, vector<1x1x128xf32>
    %88 = vector.shape_cast %87 : vector<1x1x128xf32> to vector<1x128xf32>
    %89 = vector.shape_cast %86 : vector<1x128xf32> to vector<1x1x128xf32>
    tpu.vector_store %arg11[%c0_59, %c7_60, %c0_61], %89 {strides = array<i32>} : memref<8x24x128xf32, #tpu.memory_space<vmem>>, vector<1x1x128xf32>,
    %c0_i32_62 = arith.constant 0 : i32
    %90 = arith.addi %0, %c0_i32_62 : i32
    %91 = arith.index_cast %90 : i32 to index
    %c8 = arith.constant 8 : index
    %92 = memref.load %arg1[%91, %c8] : memref<16x16xi32, #tpu.memory_space<smem>>
    %93 = arith.index_cast %92 : i32 to index
    %c0_63 = arith.constant 0 : index
    %94 = vector.load %arg2[%93, %c0_63] : memref<1000x128xf32, #tpu.memory_space<vmem>>, vector<1x128xf32>
    %c0_64 = arith.constant 0 : index
    %c8_65 = arith.constant 8 : index
    %c0_66 = arith.constant 0 : index
    %95 = vector.load %arg11[%c0_64, %c8_65, %c0_66] : memref<8x24x128xf32, #tpu.memory_space<vmem>>, vector<1x1x128xf32>
    %96 = vector.shape_cast %95 : vector<1x1x128xf32> to vector<1x128xf32>
    %97 = vector.shape_cast %94 : vector<1x128xf32> to vector<1x1x128xf32>
    tpu.vector_store %arg11[%c0_64, %c8_65, %c0_66], %97 {strides = array<i32>} : memref<8x24x128xf32, #tpu.memory_space<vmem>>, vector<1x1x128xf32>,
    %c0_i32_67 = arith.constant 0 : i32
    %98 = arith.addi %0, %c0_i32_67 : i32
    %99 = arith.index_cast %98 : i32 to index
    %c9 = arith.constant 9 : index
    %100 = memref.load %arg1[%99, %c9] : memref<16x16xi32, #tpu.memory_space<smem>>
    %101 = arith.index_cast %100 : i32 to index
    %c0_68 = arith.constant 0 : index
    %102 = vector.load %arg2[%101, %c0_68] : memref<1000x128xf32, #tpu.memory_space<vmem>>, vector<1x128xf32>
    %c0_69 = arith.constant 0 : index
    %c9_70 = arith.constant 9 : index
    %c0_71 = arith.constant 0 : index
    %103 = vector.load %arg11[%c0_69, %c9_70, %c0_71] : memref<8x24x128xf32, #tpu.memory_space<vmem>>, vector<1x1x128xf32>
    %104 = vector.shape_cast %103 : vector<1x1x128xf32> to vector<1x128xf32>
    %105 = vector.shape_cast %102 : vector<1x128xf32> to vector<1x1x128xf32>
    tpu.vector_store %arg11[%c0_69, %c9_70, %c0_71], %105 {strides = array<i32>} : memref<8x24x128xf32, #tpu.memory_space<vmem>>, vector<1x1x128xf32>,
    %c0_i32_72 = arith.constant 0 : i32
    %106 = arith.addi %0, %c0_i32_72 : i32
    %107 = arith.index_cast %106 : i32 to index
    %c10 = arith.constant 10 : index
    %108 = memref.load %arg1[%107, %c10] : memref<16x16xi32, #tpu.memory_space<smem>>
    %109 = arith.index_cast %108 : i32 to index
    %c0_73 = arith.constant 0 : index
    %110 = vector.load %arg2[%109, %c0_73] : memref<1000x128xf32, #tpu.memory_space<vmem>>, vector<1x128xf32>
    %c0_74 = arith.constant 0 : index
    %c10_75 = arith.constant 10 : index
    %c0_76 = arith.constant 0 : index
    %111 = vector.load %arg11[%c0_74, %c10_75, %c0_76] : memref<8x24x128xf32, #tpu.memory_space<vmem>>, vector<1x1x128xf32>
    %112 = vector.shape_cast %111 : vector<1x1x128xf32> to vector<1x128xf32>
    %113 = vector.shape_cast %110 : vector<1x128xf32> to vector<1x1x128xf32>
    tpu.vector_store %arg11[%c0_74, %c10_75, %c0_76], %113 {strides = array<i32>} : memref<8x24x128xf32, #tpu.memory_space<vmem>>, vector<1x1x128xf32>,
    %c0_i32_77 = arith.constant 0 : i32
    %114 = arith.addi %0, %c0_i32_77 : i32
    %115 = arith.index_cast %114 : i32 to index
    %c11 = arith.constant 11 : index
    %116 = memref.load %arg1[%115, %c11] : memref<16x16xi32, #tpu.memory_space<smem>>
    %117 = arith.index_cast %116 : i32 to index
    %c0_78 = arith.constant 0 : index
    %118 = vector.load %arg2[%117, %c0_78] : memref<1000x128xf32, #tpu.memory_space<vmem>>, vector<1x128xf32>
    %c0_79 = arith.constant 0 : index
    %c11_80 = arith.constant 11 : index
    %c0_81 = arith.constant 0 : index
    %119 = vector.load %arg11[%c0_79, %c11_80, %c0_81] : memref<8x24x128xf32, #tpu.memory_space<vmem>>, vector<1x1x128xf32>
    %120 = vector.shape_cast %119 : vector<1x1x128xf32> to vector<1x128xf32>
    %121 = vector.shape_cast %118 : vector<1x128xf32> to vector<1x1x128xf32>
    tpu.vector_store %arg11[%c0_79, %c11_80, %c0_81], %121 {strides = array<i32>} : memref<8x24x128xf32, #tpu.memory_space<vmem>>, vector<1x1x128xf32>,
    %c0_i32_82 = arith.constant 0 : i32
    %122 = arith.addi %0, %c0_i32_82 : i32
    %123 = arith.index_cast %122 : i32 to index
    %c12 = arith.constant 12 : index
    %124 = memref.load %arg1[%123, %c12] : memref<16x16xi32, #tpu.memory_space<smem>>
    %125 = arith.index_cast %124 : i32 to index
    %c0_83 = arith.constant 0 : index
    %126 = vector.load %arg2[%125, %c0_83] : memref<1000x128xf32, #tpu.memory_space<vmem>>, vector<1x128xf32>
    %c0_84 = arith.constant 0 : index
    %c12_85 = arith.constant 12 : index
    %c0_86 = arith.constant 0 : index
    %127 = vector.load %arg11[%c0_84, %c12_85, %c0_86] : memref<8x24x128xf32, #tpu.memory_space<vmem>>, vector<1x1x128xf32>
    %128 = vector.shape_cast %127 : vector<1x1x128xf32> to vector<1x128xf32>
    %129 = vector.shape_cast %126 : vector<1x128xf32> to vector<1x1x128xf32>
    tpu.vector_store %arg11[%c0_84, %c12_85, %c0_86], %129 {strides = array<i32>} : memref<8x24x128xf32, #tpu.memory_space<vmem>>, vector<1x1x128xf32>,
    %c0_i32_87 = arith.constant 0 : i32
    %130 = arith.addi %0, %c0_i32_87 : i32
    %131 = arith.index_cast %130 : i32 to index
    %c13 = arith.constant 13 : index
    %132 = memref.load %arg1[%131, %c13] : memref<16x16xi32, #tpu.memory_space<smem>>
    %133 = arith.index_cast %132 : i32 to index
    %c0_88 = arith.constant 0 : index
    %134 = vector.load %arg2[%133, %c0_88] : memref<1000x128xf32, #tpu.memory_space<vmem>>, vector<1x128xf32>
    %c0_89 = arith.constant 0 : index
    %c13_90 = arith.constant 13 : index
    %c0_91 = arith.constant 0 : index
    %135 = vector.load %arg11[%c0_89, %c13_90, %c0_91] : memref<8x24x128xf32, #tpu.memory_space<vmem>>, vector<1x1x128xf32>
    %136 = vector.shape_cast %135 : vector<1x1x128xf32> to vector<1x128xf32>
    %137 = vector.shape_cast %134 : vector<1x128xf32> to vector<1x1x128xf32>
    tpu.vector_store %arg11[%c0_89, %c13_90, %c0_91], %137 {strides = array<i32>} : memref<8x24x128xf32, #tpu.memory_space<vmem>>, vector<1x1x128xf32>,
    %c0_i32_92 = arith.constant 0 : i32
    %138 = arith.addi %0, %c0_i32_92 : i32
    %139 = arith.index_cast %138 : i32 to index
    %c14 = arith.constant 14 : index
    %140 = memref.load %arg1[%139, %c14] : memref<16x16xi32, #tpu.memory_space<smem>>
    %141 = arith.index_cast %140 : i32 to index
    %c0_93 = arith.constant 0 : index
    %142 = vector.load %arg2[%141, %c0_93] : memref<1000x128xf32, #tpu.memory_space<vmem>>, vector<1x128xf32>
    %c0_94 = arith.constant 0 : index
    %c14_95 = arith.constant 14 : index
    %c0_96 = arith.constant 0 : index
    %143 = vector.load %arg11[%c0_94, %c14_95, %c0_96] : memref<8x24x128xf32, #tpu.memory_space<vmem>>, vector<1x1x128xf32>
    %144 = vector.shape_cast %143 : vector<1x1x128xf32> to vector<1x128xf32>
    %145 = vector.shape_cast %142 : vector<1x128xf32> to vector<1x1x128xf32>
    tpu.vector_store %arg11[%c0_94, %c14_95, %c0_96], %145 {strides = array<i32>} : memref<8x24x128xf32, #tpu.memory_space<vmem>>, vector<1x1x128xf32>,
    %c0_i32_97 = arith.constant 0 : i32
    %146 = arith.addi %0, %c0_i32_97 : i32
    %147 = arith.index_cast %146 : i32 to index
    %c15 = arith.constant 15 : index
    %148 = memref.load %arg1[%147, %c15] : memref<16x16xi32, #tpu.memory_space<smem>>
    %149 = arith.index_cast %148 : i32 to index
    %c0_98 = arith.constant 0 : index
    %150 = vector.load %arg2[%149, %c0_98] : memref<1000x128xf32, #tpu.memory_space<vmem>>, vector<1x128xf32>
    %c0_99 = arith.constant 0 : index
    %c15_100 = arith.constant 15 : index
    %c0_101 = arith.constant 0 : index
    %151 = vector.load %arg11[%c0_99, %c15_100, %c0_101] : memref<8x24x128xf32, #tpu.memory_space<vmem>>, vector<1x1x128xf32>
    %152 = vector.shape_cast %151 : vector<1x1x128xf32> to vector<1x128xf32>
    %153 = vector.shape_cast %150 : vector<1x128xf32> to vector<1x1x128xf32>
    tpu.vector_store %arg11[%c0_99, %c15_100, %c0_101], %153 {strides = array<i32>} : memref<8x24x128xf32, #tpu.memory_space<vmem>>, vector<1x1x128xf32>,
    %c1_i32 = arith.constant 1 : i32
    %154 = arith.addi %0, %c1_i32 : i32
    %155 = arith.index_cast %154 : i32 to index
    %c0_102 = arith.constant 0 : index
    %156 = memref.load %arg1[%155, %c0_102] : memref<16x16xi32, #tpu.memory_space<smem>>
    %157 = arith.index_cast %156 : i32 to index
    %c0_103 = arith.constant 0 : index
    %158 = vector.load %arg2[%157, %c0_103] : memref<1000x128xf32, #tpu.memory_space<vmem>>, vector<1x128xf32>
    %c1_104 = arith.constant 1 : index
    %c0_105 = arith.constant 0 : index
    %c0_106 = arith.constant 0 : index
    %159 = vector.load %arg11[%c1_104, %c0_105, %c0_106] : memref<8x24x128xf32, #tpu.memory_space<vmem>>, vector<1x1x128xf32>
    %160 = vector.shape_cast %159 : vector<1x1x128xf32> to vector<1x128xf32>
    %161 = vector.shape_cast %158 : vector<1x128xf32> to vector<1x1x128xf32>
    tpu.vector_store %arg11[%c1_104, %c0_105, %c0_106], %161 {strides = array<i32>} : memref<8x24x128xf32, #tpu.memory_space<vmem>>, vector<1x1x128xf32>,
    %c1_i32_107 = arith.constant 1 : i32
    %162 = arith.addi %0, %c1_i32_107 : i32
    %163 = arith.index_cast %162 : i32 to index
    %c1_108 = arith.constant 1 : index
    %164 = memref.load %arg1[%163, %c1_108] : memref<16x16xi32, #tpu.memory_space<smem>>
    %165 = arith.index_cast %164 : i32 to index
    %c0_109 = arith.constant 0 : index
    %166 = vector.load %arg2[%165, %c0_109] : memref<1000x128xf32, #tpu.memory_space<vmem>>, vector<1x128xf32>
    %c1_110 = arith.constant 1 : index
    %c1_111 = arith.constant 1 : index
    %c0_112 = arith.constant 0 : index
    %167 = vector.load %arg11[%c1_110, %c1_111, %c0_112] : memref<8x24x128xf32, #tpu.memory_space<vmem>>, vector<1x1x128xf32>
    %168 = vector.shape_cast %167 : vector<1x1x128xf32> to vector<1x128xf32>
    %169 = vector.shape_cast %166 : vector<1x128xf32> to vector<1x1x128xf32>
    tpu.vector_store %arg11[%c1_110, %c1_111, %c0_112], %169 {strides = array<i32>} : memref<8x24x128xf32, #tpu.memory_space<vmem>>, vector<1x1x128xf32>,
    %c1_i32_113 = arith.constant 1 : i32
    %170 = arith.addi %0, %c1_i32_113 : i32
    %171 = arith.index_cast %170 : i32 to index
    %c2_114 = arith.constant 2 : index
    %172 = memref.load %arg1[%171, %c2_114] : memref<16x16xi32, #tpu.memory_space<smem>>
    %173 = arith.index_cast %172 : i32 to index
    %c0_115 = arith.constant 0 : index
    %174 = vector.load %arg2[%173, %c0_115] : memref<1000x128xf32, #tpu.memory_space<vmem>>, vector<1x128xf32>
    %c1_116 = arith.constant 1 : index
    %c2_117 = arith.constant 2 : index
    %c0_118 = arith.constant 0 : index
    %175 = vector.load %arg11[%c1_116, %c2_117, %c0_118] : memref<8x24x128xf32, #tpu.memory_space<vmem>>, vector<1x1x128xf32>
    %176 = vector.shape_cast %175 : vector<1x1x128xf32> to vector<1x128xf32>
    %177 = vector.shape_cast %174 : vector<1x128xf32> to vector<1x1x128xf32>
    tpu.vector_store %arg11[%c1_116, %c2_117, %c0_118], %177 {strides = array<i32>} : memref<8x24x128xf32, #tpu.memory_space<vmem>>, vector<1x1x128xf32>,
    %c1_i32_119 = arith.constant 1 : i32
    %178 = arith.addi %0, %c1_i32_119 : i32
    %179 = arith.index_cast %178 : i32 to index
    %c3_120 = arith.constant 3 : index
    %180 = memref.load %arg1[%179, %c3_120] : memref<16x16xi32, #tpu.memory_space<smem>>
    %181 = arith.index_cast %180 : i32 to index
    %c0_121 = arith.constant 0 : index
    %182 = vector.load %arg2[%181, %c0_121] : memref<1000x128xf32, #tpu.memory_space<vmem>>, vector<1x128xf32>
    %c1_122 = arith.constant 1 : index
    %c3_123 = arith.constant 3 : index
    %c0_124 = arith.constant 0 : index
    %183 = vector.load %arg11[%c1_122, %c3_123, %c0_124] : memref<8x24x128xf32, #tpu.memory_space<vmem>>, vector<1x1x128xf32>
    %184 = vector.shape_cast %183 : vector<1x1x128xf32> to vector<1x128xf32>
    %185 = vector.shape_cast %182 : vector<1x128xf32> to vector<1x1x128xf32>
    tpu.vector_store %arg11[%c1_122, %c3_123, %c0_124], %185 {strides = array<i32>} : memref<8x24x128xf32, #tpu.memory_space<vmem>>, vector<1x1x128xf32>,
    %c1_i32_125 = arith.constant 1 : i32
    %186 = arith.addi %0, %c1_i32_125 : i32
    %187 = arith.index_cast %186 : i32 to index
    %c4_126 = arith.constant 4 : index
    %188 = memref.load %arg1[%187, %c4_126] : memref<16x16xi32, #tpu.memory_space<smem>>
    %189 = arith.index_cast %188 : i32 to index
    %c0_127 = arith.constant 0 : index
    %190 = vector.load %arg2[%189, %c0_127] : memref<1000x128xf32, #tpu.memory_space<vmem>>, vector<1x128xf32>
    %c1_128 = arith.constant 1 : index
    %c4_129 = arith.constant 4 : index
    %c0_130 = arith.constant 0 : index
    %191 = vector.load %arg11[%c1_128, %c4_129, %c0_130] : memref<8x24x128xf32, #tpu.memory_space<vmem>>, vector<1x1x128xf32>
    %192 = vector.shape_cast %191 : vector<1x1x128xf32> to vector<1x128xf32>
    %193 = vector.shape_cast %190 : vector<1x128xf32> to vector<1x1x128xf32>
    tpu.vector_store %arg11[%c1_128, %c4_129, %c0_130], %193 {strides = array<i32>} : memref<8x24x128xf32, #tpu.memory_space<vmem>>, vector<1x1x128xf32>,
    %c1_i32_131 = arith.constant 1 : i32
    %194 = arith.addi %0, %c1_i32_131 : i32
    %195 = arith.index_cast %194 : i32 to index
    %c5_132 = arith.constant 5 : index
    %196 = memref.load %arg1[%195, %c5_132] : memref<16x16xi32, #tpu.memory_space<smem>>
    %197 = arith.index_cast %196 : i32 to index
    %c0_133 = arith.constant 0 : index
    %198 = vector.load %arg2[%197, %c0_133] : memref<1000x128xf32, #tpu.memory_space<vmem>>, vector<1x128xf32>
    %c1_134 = arith.constant 1 : index
    %c5_135 = arith.constant 5 : index
    %c0_136 = arith.constant 0 : index
    %199 = vector.load %arg11[%c1_134, %c5_135, %c0_136] : memref<8x24x128xf32, #tpu.memory_space<vmem>>, vector<1x1x128xf32>
    %200 = vector.shape_cast %199 : vector<1x1x128xf32> to vector<1x128xf32>
    %201 = vector.shape_cast %198 : vector<1x128xf32> to vector<1x1x128xf32>
    tpu.vector_store %arg11[%c1_134, %c5_135, %c0_136], %201 {strides = array<i32>} : memref<8x24x128xf32, #tpu.memory_space<vmem>>, vector<1x1x128xf32>,
    %c1_i32_137 = arith.constant 1 : i32
    %202 = arith.addi %0, %c1_i32_137 : i32
    %203 = arith.index_cast %202 : i32 to index
    %c6_138 = arith.constant 6 : index
    %204 = memref.load %arg1[%203, %c6_138] : memref<16x16xi32, #tpu.memory_space<smem>>
    %205 = arith.index_cast %204 : i32 to index
    %c0_139 = arith.constant 0 : index
    %206 = vector.load %arg2[%205, %c0_139] : memref<1000x128xf32, #tpu.memory_space<vmem>>, vector<1x128xf32>
    %c1_140 = arith.constant 1 : index
    %c6_141 = arith.constant 6 : index
    %c0_142 = arith.constant 0 : index
    %207 = vector.load %arg11[%c1_140, %c6_141, %c0_142] : memref<8x24x128xf32, #tpu.memory_space<vmem>>, vector<1x1x128xf32>
    %208 = vector.shape_cast %207 : vector<1x1x128xf32> to vector<1x128xf32>
    %209 = vector.shape_cast %206 : vector<1x128xf32> to vector<1x1x128xf32>
    tpu.vector_store %arg11[%c1_140, %c6_141, %c0_142], %209 {strides = array<i32>} : memref<8x24x128xf32, #tpu.memory_space<vmem>>, vector<1x1x128xf32>,
    %c1_i32_143 = arith.constant 1 : i32
    %210 = arith.addi %0, %c1_i32_143 : i32
    %211 = arith.index_cast %210 : i32 to index
    %c7_144 = arith.constant 7 : index
    %212 = memref.load %arg1[%211, %c7_144] : memref<16x16xi32, #tpu.memory_space<smem>>
    %213 = arith.index_cast %212 : i32 to index
    %c0_145 = arith.constant 0 : index
    %214 = vector.load %arg2[%213, %c0_145] : memref<1000x128xf32, #tpu.memory_space<vmem>>, vector<1x128xf32>
    %c1_146 = arith.constant 1 : index
    %c7_147 = arith.constant 7 : index
    %c0_148 = arith.constant 0 : index
    %215 = vector.load %arg11[%c1_146, %c7_147, %c0_148] : memref<8x24x128xf32, #tpu.memory_space<vmem>>, vector<1x1x128xf32>
    %216 = vector.shape_cast %215 : vector<1x1x128xf32> to vector<1x128xf32>
    %217 = vector.shape_cast %214 : vector<1x128xf32> to vector<1x1x128xf32>
    tpu.vector_store %arg11[%c1_146, %c7_147, %c0_148], %217 {strides = array<i32>} : memref<8x24x128xf32, #tpu.memory_space<vmem>>, vector<1x1x128xf32>,
    %c1_i32_149 = arith.constant 1 : i32
    %218 = arith.addi %0, %c1_i32_149 : i32
    %219 = arith.index_cast %218 : i32 to index
    %c8_150 = arith.constant 8 : index
    %220 = memref.load %arg1[%219, %c8_150] : memref<16x16xi32, #tpu.memory_space<smem>>
    %221 = arith.index_cast %220 : i32 to index
    %c0_151 = arith.constant 0 : index
    %222 = vector.load %arg2[%221, %c0_151] : memref<1000x128xf32, #tpu.memory_space<vmem>>, vector<1x128xf32>
    %c1_152 = arith.constant 1 : index
    %c8_153 = arith.constant 8 : index
    %c0_154 = arith.constant 0 : index
    %223 = vector.load %arg11[%c1_152, %c8_153, %c0_154] : memref<8x24x128xf32, #tpu.memory_space<vmem>>, vector<1x1x128xf32>
    %224 = vector.shape_cast %223 : vector<1x1x128xf32> to vector<1x128xf32>
    %225 = vector.shape_cast %222 : vector<1x128xf32> to vector<1x1x128xf32>
    tpu.vector_store %arg11[%c1_152, %c8_153, %c0_154], %225 {strides = array<i32>} : memref<8x24x128xf32, #tpu.memory_space<vmem>>, vector<1x1x128xf32>,
    %c1_i32_155 = arith.constant 1 : i32
    %226 = arith.addi %0, %c1_i32_155 : i32
    %227 = arith.index_cast %226 : i32 to index
    %c9_156 = arith.constant 9 : index
    %228 = memref.load %arg1[%227, %c9_156] : memref<16x16xi32, #tpu.memory_space<smem>>
    %229 = arith.index_cast %228 : i32 to index
    %c0_157 = arith.constant 0 : index
    %230 = vector.load %arg2[%229, %c0_157] : memref<1000x128xf32, #tpu.memory_space<vmem>>, vector<1x128xf32>
    %c1_158 = arith.constant 1 : index
    %c9_159 = arith.constant 9 : index
    %c0_160 = arith.constant 0 : index
    %231 = vector.load %arg11[%c1_158, %c9_159, %c0_160] : memref<8x24x128xf32, #tpu.memory_space<vmem>>, vector<1x1x128xf32>
    %232 = vector.shape_cast %231 : vector<1x1x128xf32> to vector<1x128xf32>
    %233 = vector.shape_cast %230 : vector<1x128xf32> to vector<1x1x128xf32>
    tpu.vector_store %arg11[%c1_158, %c9_159, %c0_160], %233 {strides = array<i32>} : memref<8x24x128xf32, #tpu.memory_space<vmem>>, vector<1x1x128xf32>,
    %c1_i32_161 = arith.constant 1 : i32
    %234 = arith.addi %0, %c1_i32_161 : i32
    %235 = arith.index_cast %234 : i32 to index
    %c10_162 = arith.constant 10 : index
    %236 = memref.load %arg1[%235, %c10_162] : memref<16x16xi32, #tpu.memory_space<smem>>
    %237 = arith.index_cast %236 : i32 to index
    %c0_163 = arith.constant 0 : index
    %238 = vector.load %arg2[%237, %c0_163] : memref<1000x128xf32, #tpu.memory_space<vmem>>, vector<1x128xf32>
    %c1_164 = arith.constant 1 : index
    %c10_165 = arith.constant 10 : index
    %c0_166 = arith.constant 0 : index
    %239 = vector.load %arg11[%c1_164, %c10_165, %c0_166] : memref<8x24x128xf32, #tpu.memory_space<vmem>>, vector<1x1x128xf32>
    %240 = vector.shape_cast %239 : vector<1x1x128xf32> to vector<1x128xf32>
    %241 = vector.shape_cast %238 : vector<1x128xf32> to vector<1x1x128xf32>
    tpu.vector_store %arg11[%c1_164, %c10_165, %c0_166], %241 {strides = array<i32>} : memref<8x24x128xf32, #tpu.memory_space<vmem>>, vector<1x1x128xf32>,
    %c1_i32_167 = arith.constant 1 : i32
    %242 = arith.addi %0, %c1_i32_167 : i32
    %243 = arith.index_cast %242 : i32 to index
    %c11_168 = arith.constant 11 : index
    %244 = memref.load %arg1[%243, %c11_168] : memref<16x16xi32, #tpu.memory_space<smem>>
    %245 = arith.index_cast %244 : i32 to index
    %c0_169 = arith.constant 0 : index
    %246 = vector.load %arg2[%245, %c0_169] : memref<1000x128xf32, #tpu.memory_space<vmem>>, vector<1x128xf32>
    %c1_170 = arith.constant 1 : index
    %c11_171 = arith.constant 11 : index
    %c0_172 = arith.constant 0 : index
    %247 = vector.load %arg11[%c1_170, %c11_171, %c0_172] : memref<8x24x128xf32, #tpu.memory_space<vmem>>, vector<1x1x128xf32>
    %248 = vector.shape_cast %247 : vector<1x1x128xf32> to vector<1x128xf32>
    %249 = vector.shape_cast %246 : vector<1x128xf32> to vector<1x1x128xf32>
    tpu.vector_store %arg11[%c1_170, %c11_171, %c0_172], %249 {strides = array<i32>} : memref<8x24x128xf32, #tpu.memory_space<vmem>>, vector<1x1x128xf32>,
    %c1_i32_173 = arith.constant 1 : i32
    %250 = arith.addi %0, %c1_i32_173 : i32
    %251 = arith.index_cast %250 : i32 to index
    %c12_174 = arith.constant 12 : index
    %252 = memref.load %arg1[%251, %c12_174] : memref<16x16xi32, #tpu.memory_space<smem>>
    %253 = arith.index_cast %252 : i32 to index
    %c0_175 = arith.constant 0 : index
    %254 = vector.load %arg2[%253, %c0_175] : memref<1000x128xf32, #tpu.memory_space<vmem>>, vector<1x128xf32>
    %c1_176 = arith.constant 1 : index
    %c12_177 = arith.constant 12 : index
    %c0_178 = arith.constant 0 : index
    %255 = vector.load %arg11[%c1_176, %c12_177, %c0_178] : memref<8x24x128xf32, #tpu.memory_space<vmem>>, vector<1x1x128xf32>
    %256 = vector.shape_cast %255 : vector<1x1x128xf32> to vector<1x128xf32>
    %257 = vector.shape_cast %254 : vector<1x128xf32> to vector<1x1x128xf32>
    tpu.vector_store %arg11[%c1_176, %c12_177, %c0_178], %257 {strides = array<i32>} : memref<8x24x128xf32, #tpu.memory_space<vmem>>, vector<1x1x128xf32>,
    %c1_i32_179 = arith.constant 1 : i32
    %258 = arith.addi %0, %c1_i32_179 : i32
    %259 = arith.index_cast %258 : i32 to index
    %c13_180 = arith.constant 13 : index
    %260 = memref.load %arg1[%259, %c13_180] : memref<16x16xi32, #tpu.memory_space<smem>>
    %261 = arith.index_cast %260 : i32 to index
    %c0_181 = arith.constant 0 : index
    %262 = vector.load %arg2[%261, %c0_181] : memref<1000x128xf32, #tpu.memory_space<vmem>>, vector<1x128xf32>
    %c1_182 = arith.constant 1 : index
    %c13_183 = arith.constant 13 : index
    %c0_184 = arith.constant 0 : index
    %263 = vector.load %arg11[%c1_182, %c13_183, %c0_184] : memref<8x24x128xf32, #tpu.memory_space<vmem>>, vector<1x1x128xf32>
    %264 = vector.shape_cast %263 : vector<1x1x128xf32> to vector<1x128xf32>
    %265 = vector.shape_cast %262 : vector<1x128xf32> to vector<1x1x128xf32>
    tpu.vector_store %arg11[%c1_182, %c13_183, %c0_184], %265 {strides = array<i32>} : memref<8x24x128xf32, #tpu.memory_space<vmem>>, vector<1x1x128xf32>,
    %c1_i32_185 = arith.constant 1 : i32
    %266 = arith.addi %0, %c1_i32_185 : i32
    %267 = arith.index_cast %266 : i32 to index
    %c14_186 = arith.constant 14 : index
    %268 = memref.load %arg1[%267, %c14_186] : memref<16x16xi32, #tpu.memory_space<smem>>
    %269 = arith.index_cast %268 : i32 to index
    %c0_187 = arith.constant 0 : index
    %270 = vector.load %arg2[%269, %c0_187] : memref<1000x128xf32, #tpu.memory_space<vmem>>, vector<1x128xf32>
    %c1_188 = arith.constant 1 : index
    %c14_189 = arith.constant 14 : index
    %c0_190 = arith.constant 0 : index
    %271 = vector.load %arg11[%c1_188, %c14_189, %c0_190] : memref<8x24x128xf32, #tpu.memory_space<vmem>>, vector<1x1x128xf32>
    %272 = vector.shape_cast %271 : vector<1x1x128xf32> to vector<1x128xf32>
    %273 = vector.shape_cast %270 : vector<1x128xf32> to vector<1x1x128xf32>
    tpu.vector_store %arg11[%c1_188, %c14_189, %c0_190], %273 {strides = array<i32>} : memref<8x24x128xf32, #tpu.memory_space<vmem>>, vector<1x1x128xf32>,
    %c1_i32_191 = arith.constant 1 : i32
    %274 = arith.addi %0, %c1_i32_191 : i32
    %275 = arith.index_cast %274 : i32 to index
    %c15_192 = arith.constant 15 : index
    %276 = memref.load %arg1[%275, %c15_192] : memref<16x16xi32, #tpu.memory_space<smem>>
    %277 = arith.index_cast %276 : i32 to index
    %c0_193 = arith.constant 0 : index
    %278 = vector.load %arg2[%277, %c0_193] : memref<1000x128xf32, #tpu.memory_space<vmem>>, vector<1x128xf32>
    %c1_194 = arith.constant 1 : index
    %c15_195 = arith.constant 15 : index
    %c0_196 = arith.constant 0 : index
    %279 = vector.load %arg11[%c1_194, %c15_195, %c0_196] : memref<8x24x128xf32, #tpu.memory_space<vmem>>, vector<1x1x128xf32>
    %280 = vector.shape_cast %279 : vector<1x1x128xf32> to vector<1x128xf32>
    %281 = vector.shape_cast %278 : vector<1x128xf32> to vector<1x1x128xf32>
    tpu.vector_store %arg11[%c1_194, %c15_195, %c0_196], %281 {strides = array<i32>} : memref<8x24x128xf32, #tpu.memory_space<vmem>>, vector<1x1x128xf32>,
    %c2_i32 = arith.constant 2 : i32
    %282 = arith.addi %0, %c2_i32 : i32
    %283 = arith.index_cast %282 : i32 to index
    %c0_197 = arith.constant 0 : index
    %284 = memref.load %arg1[%283, %c0_197] : memref<16x16xi32, #tpu.memory_space<smem>>
    %285 = arith.index_cast %284 : i32 to index
    %c0_198 = arith.constant 0 : index
    %286 = vector.load %arg2[%285, %c0_198] : memref<1000x128xf32, #tpu.memory_space<vmem>>, vector<1x128xf32>
    %c2_199 = arith.constant 2 : index
    %c0_200 = arith.constant 0 : index
    %c0_201 = arith.constant 0 : index
    %287 = vector.load %arg11[%c2_199, %c0_200, %c0_201] : memref<8x24x128xf32, #tpu.memory_space<vmem>>, vector<1x1x128xf32>
    %288 = vector.shape_cast %287 : vector<1x1x128xf32> to vector<1x128xf32>
    %289 = vector.shape_cast %286 : vector<1x128xf32> to vector<1x1x128xf32>
    tpu.vector_store %arg11[%c2_199, %c0_200, %c0_201], %289 {strides = array<i32>} : memref<8x24x128xf32, #tpu.memory_space<vmem>>, vector<1x1x128xf32>,
    %c2_i32_202 = arith.constant 2 : i32
    %290 = arith.addi %0, %c2_i32_202 : i32
    %291 = arith.index_cast %290 : i32 to index
    %c1_203 = arith.constant 1 : index
    %292 = memref.load %arg1[%291, %c1_203] : memref<16x16xi32, #tpu.memory_space<smem>>
    %293 = arith.index_cast %292 : i32 to index
    %c0_204 = arith.constant 0 : index
    %294 = vector.load %arg2[%293, %c0_204] : memref<1000x128xf32, #tpu.memory_space<vmem>>, vector<1x128xf32>
    %c2_205 = arith.constant 2 : index
    %c1_206 = arith.constant 1 : index
    %c0_207 = arith.constant 0 : index
    %295 = vector.load %arg11[%c2_205, %c1_206, %c0_207] : memref<8x24x128xf32, #tpu.memory_space<vmem>>, vector<1x1x128xf32>
    %296 = vector.shape_cast %295 : vector<1x1x128xf32> to vector<1x128xf32>
    %297 = vector.shape_cast %294 : vector<1x128xf32> to vector<1x1x128xf32>
    tpu.vector_store %arg11[%c2_205, %c1_206, %c0_207], %297 {strides = array<i32>} : memref<8x24x128xf32, #tpu.memory_space<vmem>>, vector<1x1x128xf32>,
    %c2_i32_208 = arith.constant 2 : i32
    %298 = arith.addi %0, %c2_i32_208 : i32
    %299 = arith.index_cast %298 : i32 to index
    %c2_209 = arith.constant 2 : index
    %300 = memref.load %arg1[%299, %c2_209] : memref<16x16xi32, #tpu.memory_space<smem>>
    %301 = arith.index_cast %300 : i32 to index
    %c0_210 = arith.constant 0 : index
    %302 = vector.load %arg2[%301, %c0_210] : memref<1000x128xf32, #tpu.memory_space<vmem>>, vector<1x128xf32>
    %c2_211 = arith.constant 2 : index
    %c2_212 = arith.constant 2 : index
    %c0_213 = arith.constant 0 : index
    %303 = vector.load %arg11[%c2_211, %c2_212, %c0_213] : memref<8x24x128xf32, #tpu.memory_space<vmem>>, vector<1x1x128xf32>
    %304 = vector.shape_cast %303 : vector<1x1x128xf32> to vector<1x128xf32>
    %305 = vector.shape_cast %302 : vector<1x128xf32> to vector<1x1x128xf32>
    tpu.vector_store %arg11[%c2_211, %c2_212, %c0_213], %305 {strides = array<i32>} : memref<8x24x128xf32, #tpu.memory_space<vmem>>, vector<1x1x128xf32>,
    %c2_i32_214 = arith.constant 2 : i32
    %306 = arith.addi %0, %c2_i32_214 : i32
    %307 = arith.index_cast %306 : i32 to index
    %c3_215 = arith.constant 3 : index
    %308 = memref.load %arg1[%307, %c3_215] : memref<16x16xi32, #tpu.memory_space<smem>>
    %309 = arith.index_cast %308 : i32 to index
    %c0_216 = arith.constant 0 : index
    %310 = vector.load %arg2[%309, %c0_216] : memref<1000x128xf32, #tpu.memory_space<vmem>>, vector<1x128xf32>
    %c2_217 = arith.constant 2 : index
    %c3_218 = arith.constant 3 : index
    %c0_219 = arith.constant 0 : index
    %311 = vector.load %arg11[%c2_217, %c3_218, %c0_219] : memref<8x24x128xf32, #tpu.memory_space<vmem>>, vector<1x1x128xf32>
    %312 = vector.shape_cast %311 : vector<1x1x128xf32> to vector<1x128xf32>
    %313 = vector.shape_cast %310 : vector<1x128xf32> to vector<1x1x128xf32>
    tpu.vector_store %arg11[%c2_217, %c3_218, %c0_219], %313 {strides = array<i32>} : memref<8x24x128xf32, #tpu.memory_space<vmem>>, vector<1x1x128xf32>,
    %c2_i32_220 = arith.constant 2 : i32
    %314 = arith.addi %0, %c2_i32_220 : i32
    %315 = arith.index_cast %314 : i32 to index
    %c4_221 = arith.constant 4 : index
    %316 = memref.load %arg1[%315, %c4_221] : memref<16x16xi32, #tpu.memory_space<smem>>
    %317 = arith.index_cast %316 : i32 to index
    %c0_222 = arith.constant 0 : index
    %318 = vector.load %arg2[%317, %c0_222] : memref<1000x128xf32, #tpu.memory_space<vmem>>, vector<1x128xf32>
    %c2_223 = arith.constant 2 : index
    %c4_224 = arith.constant 4 : index
    %c0_225 = arith.constant 0 : index
    %319 = vector.load %arg11[%c2_223, %c4_224, %c0_225] : memref<8x24x128xf32, #tpu.memory_space<vmem>>, vector<1x1x128xf32>
    %320 = vector.shape_cast %319 : vector<1x1x128xf32> to vector<1x128xf32>
    %321 = vector.shape_cast %318 : vector<1x128xf32> to vector<1x1x128xf32>
    tpu.vector_store %arg11[%c2_223, %c4_224, %c0_225], %321 {strides = array<i32>} : memref<8x24x128xf32, #tpu.memory_space<vmem>>, vector<1x1x128xf32>,
    %c2_i32_226 = arith.constant 2 : i32
    %322 = arith.addi %0, %c2_i32_226 : i32
    %323 = arith.index_cast %322 : i32 to index
    %c5_227 = arith.constant 5 : index
    %324 = memref.load %arg1[%323, %c5_227] : memref<16x16xi32, #tpu.memory_space<smem>>
    %325 = arith.index_cast %324 : i32 to index
    %c0_228 = arith.constant 0 : index
    %326 = vector.load %arg2[%325, %c0_228] : memref<1000x128xf32, #tpu.memory_space<vmem>>, vector<1x128xf32>
    %c2_229 = arith.constant 2 : index
    %c5_230 = arith.constant 5 : index
    %c0_231 = arith.constant 0 : index
    %327 = vector.load %arg11[%c2_229, %c5_230, %c0_231] : memref<8x24x128xf32, #tpu.memory_space<vmem>>, vector<1x1x128xf32>
    %328 = vector.shape_cast %327 : vector<1x1x128xf32> to vector<1x128xf32>
    %329 = vector.shape_cast %326 : vector<1x128xf32> to vector<1x1x128xf32>
    tpu.vector_store %arg11[%c2_229, %c5_230, %c0_231], %329 {strides = array<i32>} : memref<8x24x128xf32, #tpu.memory_space<vmem>>, vector<1x1x128xf32>,
    %c2_i32_232 = arith.constant 2 : i32
    %330 = arith.addi %0, %c2_i32_232 : i32
    %331 = arith.index_cast %330 : i32 to index
    %c6_233 = arith.constant 6 : index
    %332 = memref.load %arg1[%331, %c6_233] : memref<16x16xi32, #tpu.memory_space<smem>>
    %333 = arith.index_cast %332 : i32 to index
    %c0_234 = arith.constant 0 : index
    %334 = vector.load %arg2[%333, %c0_234] : memref<1000x128xf32, #tpu.memory_space<vmem>>, vector<1x128xf32>
    %c2_235 = arith.constant 2 : index
    %c6_236 = arith.constant 6 : index
    %c0_237 = arith.constant 0 : index
    %335 = vector.load %arg11[%c2_235, %c6_236, %c0_237] : memref<8x24x128xf32, #tpu.memory_space<vmem>>, vector<1x1x128xf32>
    %336 = vector.shape_cast %335 : vector<1x1x128xf32> to vector<1x128xf32>
    %337 = vector.shape_cast %334 : vector<1x128xf32> to vector<1x1x128xf32>
    tpu.vector_store %arg11[%c2_235, %c6_236, %c0_237], %337 {strides = array<i32>} : memref<8x24x128xf32, #tpu.memory_space<vmem>>, vector<1x1x128xf32>,
    %c2_i32_238 = arith.constant 2 : i32
    %338 = arith.addi %0, %c2_i32_238 : i32
    %339 = arith.index_cast %338 : i32 to index
    %c7_239 = arith.constant 7 : index
    %340 = memref.load %arg1[%339, %c7_239] : memref<16x16xi32, #tpu.memory_space<smem>>
    %341 = arith.index_cast %340 : i32 to index
    %c0_240 = arith.constant 0 : index
    %342 = vector.load %arg2[%341, %c0_240] : memref<1000x128xf32, #tpu.memory_space<vmem>>, vector<1x128xf32>
    %c2_241 = arith.constant 2 : index
    %c7_242 = arith.constant 7 : index
    %c0_243 = arith.constant 0 : index
    %343 = vector.load %arg11[%c2_241, %c7_242, %c0_243] : memref<8x24x128xf32, #tpu.memory_space<vmem>>, vector<1x1x128xf32>
    %344 = vector.shape_cast %343 : vector<1x1x128xf32> to vector<1x128xf32>
    %345 = vector.shape_cast %342 : vector<1x128xf32> to vector<1x1x128xf32>
    tpu.vector_store %arg11[%c2_241, %c7_242, %c0_243], %345 {strides = array<i32>} : memref<8x24x128xf32, #tpu.memory_space<vmem>>, vector<1x1x128xf32>,
    %c2_i32_244 = arith.constant 2 : i32
    %346 = arith.addi %0, %c2_i32_244 : i32
    %347 = arith.index_cast %346 : i32 to index
    %c8_245 = arith.constant 8 : index
    %348 = memref.load %arg1[%347, %c8_245] : memref<16x16xi32, #tpu.memory_space<smem>>
    %349 = arith.index_cast %348 : i32 to index
    %c0_246 = arith.constant 0 : index
    %350 = vector.load %arg2[%349, %c0_246] : memref<1000x128xf32, #tpu.memory_space<vmem>>, vector<1x128xf32>
    %c2_247 = arith.constant 2 : index
    %c8_248 = arith.constant 8 : index
    %c0_249 = arith.constant 0 : index
    %351 = vector.load %arg11[%c2_247, %c8_248, %c0_249] : memref<8x24x128xf32, #tpu.memory_space<vmem>>, vector<1x1x128xf32>
    %352 = vector.shape_cast %351 : vector<1x1x128xf32> to vector<1x128xf32>
    %353 = vector.shape_cast %350 : vector<1x128xf32> to vector<1x1x128xf32>
    tpu.vector_store %arg11[%c2_247, %c8_248, %c0_249], %353 {strides = array<i32>} : memref<8x24x128xf32, #tpu.memory_space<vmem>>, vector<1x1x128xf32>,
    %c2_i32_250 = arith.constant 2 : i32
    %354 = arith.addi %0, %c2_i32_250 : i32
    %355 = arith.index_cast %354 : i32 to index
    %c9_251 = arith.constant 9 : index
    %356 = memref.load %arg1[%355, %c9_251] : memref<16x16xi32, #tpu.memory_space<smem>>
    %357 = arith.index_cast %356 : i32 to index
    %c0_252 = arith.constant 0 : index
    %358 = vector.load %arg2[%357, %c0_252] : memref<1000x128xf32, #tpu.memory_space<vmem>>, vector<1x128xf32>
    %c2_253 = arith.constant 2 : index
    %c9_254 = arith.constant 9 : index
    %c0_255 = arith.constant 0 : index
    %359 = vector.load %arg11[%c2_253, %c9_254, %c0_255] : memref<8x24x128xf32, #tpu.memory_space<vmem>>, vector<1x1x128xf32>
    %360 = vector.shape_cast %359 : vector<1x1x128xf32> to vector<1x128xf32>
    %361 = vector.shape_cast %358 : vector<1x128xf32> to vector<1x1x128xf32>
    tpu.vector_store %arg11[%c2_253, %c9_254, %c0_255], %361 {strides = array<i32>} : memref<8x24x128xf32, #tpu.memory_space<vmem>>, vector<1x1x128xf32>,
    %c2_i32_256 = arith.constant 2 : i32
    %362 = arith.addi %0, %c2_i32_256 : i32
    %363 = arith.index_cast %362 : i32 to index
    %c10_257 = arith.constant 10 : index
    %364 = memref.load %arg1[%363, %c10_257] : memref<16x16xi32, #tpu.memory_space<smem>>
    %365 = arith.index_cast %364 : i32 to index
    %c0_258 = arith.constant 0 : index
    %366 = vector.load %arg2[%365, %c0_258] : memref<1000x128xf32, #tpu.memory_space<vmem>>, vector<1x128xf32>
    %c2_259 = arith.constant 2 : index
    %c10_260 = arith.constant 10 : index
    %c0_261 = arith.constant 0 : index
    %367 = vector.load %arg11[%c2_259, %c10_260, %c0_261] : memref<8x24x128xf32, #tpu.memory_space<vmem>>, vector<1x1x128xf32>
    %368 = vector.shape_cast %367 : vector<1x1x128xf32> to vector<1x128xf32>
    %369 = vector.shape_cast %366 : vector<1x128xf32> to vector<1x1x128xf32>
    tpu.vector_store %arg11[%c2_259, %c10_260, %c0_261], %369 {strides = array<i32>} : memref<8x24x128xf32, #tpu.memory_space<vmem>>, vector<1x1x128xf32>,
    %c2_i32_262 = arith.constant 2 : i32
    %370 = arith.addi %0, %c2_i32_262 : i32
    %371 = arith.index_cast %370 : i32 to index
    %c11_263 = arith.constant 11 : index
    %372 = memref.load %arg1[%371, %c11_263] : memref<16x16xi32, #tpu.memory_space<smem>>
    %373 = arith.index_cast %372 : i32 to index
    %c0_264 = arith.constant 0 : index
    %374 = vector.load %arg2[%373, %c0_264] : memref<1000x128xf32, #tpu.memory_space<vmem>>, vector<1x128xf32>
    %c2_265 = arith.constant 2 : index
    %c11_266 = arith.constant 11 : index
    %c0_267 = arith.constant 0 : index
    %375 = vector.load %arg11[%c2_265, %c11_266, %c0_267] : memref<8x24x128xf32, #tpu.memory_space<vmem>>, vector<1x1x128xf32>
    %376 = vector.shape_cast %375 : vector<1x1x128xf32> to vector<1x128xf32>
    %377 = vector.shape_cast %374 : vector<1x128xf32> to vector<1x1x128xf32>
    tpu.vector_store %arg11[%c2_265, %c11_266, %c0_267], %377 {strides = array<i32>} : memref<8x24x128xf32, #tpu.memory_space<vmem>>, vector<1x1x128xf32>,
    %c2_i32_268 = arith.constant 2 : i32
    %378 = arith.addi %0, %c2_i32_268 : i32
    %379 = arith.index_cast %378 : i32 to index
    %c12_269 = arith.constant 12 : index
    %380 = memref.load %arg1[%379, %c12_269] : memref<16x16xi32, #tpu.memory_space<smem>>
    %381 = arith.index_cast %380 : i32 to index
    %c0_270 = arith.constant 0 : index
    %382 = vector.load %arg2[%381, %c0_270] : memref<1000x128xf32, #tpu.memory_space<vmem>>, vector<1x128xf32>
    %c2_271 = arith.constant 2 : index
    %c12_272 = arith.constant 12 : index
    %c0_273 = arith.constant 0 : index
    %383 = vector.load %arg11[%c2_271, %c12_272, %c0_273] : memref<8x24x128xf32, #tpu.memory_space<vmem>>, vector<1x1x128xf32>
    %384 = vector.shape_cast %383 : vector<1x1x128xf32> to vector<1x128xf32>
    %385 = vector.shape_cast %382 : vector<1x128xf32> to vector<1x1x128xf32>
    tpu.vector_store %arg11[%c2_271, %c12_272, %c0_273], %385 {strides = array<i32>} : memref<8x24x128xf32, #tpu.memory_space<vmem>>, vector<1x1x128xf32>,
    %c2_i32_274 = arith.constant 2 : i32
    %386 = arith.addi %0, %c2_i32_274 : i32
    %387 = arith.index_cast %386 : i32 to index
    %c13_275 = arith.constant 13 : index
    %388 = memref.load %arg1[%387, %c13_275] : memref<16x16xi32, #tpu.memory_space<smem>>
    %389 = arith.index_cast %388 : i32 to index
    %c0_276 = arith.constant 0 : index
    %390 = vector.load %arg2[%389, %c0_276] : memref<1000x128xf32, #tpu.memory_space<vmem>>, vector<1x128xf32>
    %c2_277 = arith.constant 2 : index
    %c13_278 = arith.constant 13 : index
    %c0_279 = arith.constant 0 : index
    %391 = vector.load %arg11[%c2_277, %c13_278, %c0_279] : memref<8x24x128xf32, #tpu.memory_space<vmem>>, vector<1x1x128xf32>
    %392 = vector.shape_cast %391 : vector<1x1x128xf32> to vector<1x128xf32>
    %393 = vector.shape_cast %390 : vector<1x128xf32> to vector<1x1x128xf32>
    tpu.vector_store %arg11[%c2_277, %c13_278, %c0_279], %393 {strides = array<i32>} : memref<8x24x128xf32, #tpu.memory_space<vmem>>, vector<1x1x128xf32>,
    %c2_i32_280 = arith.constant 2 : i32
    %394 = arith.addi %0, %c2_i32_280 : i32
    %395 = arith.index_cast %394 : i32 to index
    %c14_281 = arith.constant 14 : index
    %396 = memref.load %arg1[%395, %c14_281] : memref<16x16xi32, #tpu.memory_space<smem>>
    %397 = arith.index_cast %396 : i32 to index
    %c0_282 = arith.constant 0 : index
    %398 = vector.load %arg2[%397, %c0_282] : memref<1000x128xf32, #tpu.memory_space<vmem>>, vector<1x128xf32>
    %c2_283 = arith.constant 2 : index
    %c14_284 = arith.constant 14 : index
    %c0_285 = arith.constant 0 : index
    %399 = vector.load %arg11[%c2_283, %c14_284, %c0_285] : memref<8x24x128xf32, #tpu.memory_space<vmem>>, vector<1x1x128xf32>
    %400 = vector.shape_cast %399 : vector<1x1x128xf32> to vector<1x128xf32>
    %401 = vector.shape_cast %398 : vector<1x128xf32> to vector<1x1x128xf32>
    tpu.vector_store %arg11[%c2_283, %c14_284, %c0_285], %401 {strides = array<i32>} : memref<8x24x128xf32, #tpu.memory_space<vmem>>, vector<1x1x128xf32>,
    %c2_i32_286 = arith.constant 2 : i32
    %402 = arith.addi %0, %c2_i32_286 : i32
    %403 = arith.index_cast %402 : i32 to index
    %c15_287 = arith.constant 15 : index
    %404 = memref.load %arg1[%403, %c15_287] : memref<16x16xi32, #tpu.memory_space<smem>>
    %405 = arith.index_cast %404 : i32 to index
    %c0_288 = arith.constant 0 : index
    %406 = vector.load %arg2[%405, %c0_288] : memref<1000x128xf32, #tpu.memory_space<vmem>>, vector<1x128xf32>
    %c2_289 = arith.constant 2 : index
    %c15_290 = arith.constant 15 : index
    %c0_291 = arith.constant 0 : index
    %407 = vector.load %arg11[%c2_289, %c15_290, %c0_291] : memref<8x24x128xf32, #tpu.memory_space<vmem>>, vector<1x1x128xf32>
    %408 = vector.shape_cast %407 : vector<1x1x128xf32> to vector<1x128xf32>
    %409 = vector.shape_cast %406 : vector<1x128xf32> to vector<1x1x128xf32>
    tpu.vector_store %arg11[%c2_289, %c15_290, %c0_291], %409 {strides = array<i32>} : memref<8x24x128xf32, #tpu.memory_space<vmem>>, vector<1x1x128xf32>,
    %c3_i32 = arith.constant 3 : i32
    %410 = arith.addi %0, %c3_i32 : i32
    %411 = arith.index_cast %410 : i32 to index
    %c0_292 = arith.constant 0 : index
    %412 = memref.load %arg1[%411, %c0_292] : memref<16x16xi32, #tpu.memory_space<smem>>
    %413 = arith.index_cast %412 : i32 to index
    %c0_293 = arith.constant 0 : index
    %414 = vector.load %arg2[%413, %c0_293] : memref<1000x128xf32, #tpu.memory_space<vmem>>, vector<1x128xf32>
    %c3_294 = arith.constant 3 : index
    %c0_295 = arith.constant 0 : index
    %c0_296 = arith.constant 0 : index
    %415 = vector.load %arg11[%c3_294, %c0_295, %c0_296] : memref<8x24x128xf32, #tpu.memory_space<vmem>>, vector<1x1x128xf32>
    %416 = vector.shape_cast %415 : vector<1x1x128xf32> to vector<1x128xf32>
    %417 = vector.shape_cast %414 : vector<1x128xf32> to vector<1x1x128xf32>
    tpu.vector_store %arg11[%c3_294, %c0_295, %c0_296], %417 {strides = array<i32>} : memref<8x24x128xf32, #tpu.memory_space<vmem>>, vector<1x1x128xf32>,
    %c3_i32_297 = arith.constant 3 : i32
    %418 = arith.addi %0, %c3_i32_297 : i32
    %419 = arith.index_cast %418 : i32 to index
    %c1_298 = arith.constant 1 : index
    %420 = memref.load %arg1[%419, %c1_298] : memref<16x16xi32, #tpu.memory_space<smem>>
    %421 = arith.index_cast %420 : i32 to index
    %c0_299 = arith.constant 0 : index
    %422 = vector.load %arg2[%421, %c0_299] : memref<1000x128xf32, #tpu.memory_space<vmem>>, vector<1x128xf32>
    %c3_300 = arith.constant 3 : index
    %c1_301 = arith.constant 1 : index
    %c0_302 = arith.constant 0 : index
    %423 = vector.load %arg11[%c3_300, %c1_301, %c0_302] : memref<8x24x128xf32, #tpu.memory_space<vmem>>, vector<1x1x128xf32>
    %424 = vector.shape_cast %423 : vector<1x1x128xf32> to vector<1x128xf32>
    %425 = vector.shape_cast %422 : vector<1x128xf32> to vector<1x1x128xf32>
    tpu.vector_store %arg11[%c3_300, %c1_301, %c0_302], %425 {strides = array<i32>} : memref<8x24x128xf32, #tpu.memory_space<vmem>>, vector<1x1x128xf32>,
    %c3_i32_303 = arith.constant 3 : i32
    %426 = arith.addi %0, %c3_i32_303 : i32
    %427 = arith.index_cast %426 : i32 to index
    %c2_304 = arith.constant 2 : index
    %428 = memref.load %arg1[%427, %c2_304] : memref<16x16xi32, #tpu.memory_space<smem>>
    %429 = arith.index_cast %428 : i32 to index
    %c0_305 = arith.constant 0 : index
    %430 = vector.load %arg2[%429, %c0_305] : memref<1000x128xf32, #tpu.memory_space<vmem>>, vector<1x128xf32>
    %c3_306 = arith.constant 3 : index
    %c2_307 = arith.constant 2 : index
    %c0_308 = arith.constant 0 : index
    %431 = vector.load %arg11[%c3_306, %c2_307, %c0_308] : memref<8x24x128xf32, #tpu.memory_space<vmem>>, vector<1x1x128xf32>
    %432 = vector.shape_cast %431 : vector<1x1x128xf32> to vector<1x128xf32>
    %433 = vector.shape_cast %430 : vector<1x128xf32> to vector<1x1x128xf32>
    tpu.vector_store %arg11[%c3_306, %c2_307, %c0_308], %433 {strides = array<i32>} : memref<8x24x128xf32, #tpu.memory_space<vmem>>, vector<1x1x128xf32>,
    %c3_i32_309 = arith.constant 3 : i32
    %434 = arith.addi %0, %c3_i32_309 : i32
    %435 = arith.index_cast %434 : i32 to index
    %c3_310 = arith.constant 3 : index
    %436 = memref.load %arg1[%435, %c3_310] : memref<16x16xi32, #tpu.memory_space<smem>>
    %437 = arith.index_cast %436 : i32 to index
    %c0_311 = arith.constant 0 : index
    %438 = vector.load %arg2[%437, %c0_311] : memref<1000x128xf32, #tpu.memory_space<vmem>>, vector<1x128xf32>
    %c3_312 = arith.constant 3 : index
    %c3_313 = arith.constant 3 : index
    %c0_314 = arith.constant 0 : index
    %439 = vector.load %arg11[%c3_312, %c3_313, %c0_314] : memref<8x24x128xf32, #tpu.memory_space<vmem>>, vector<1x1x128xf32>
    %440 = vector.shape_cast %439 : vector<1x1x128xf32> to vector<1x128xf32>
    %441 = vector.shape_cast %438 : vector<1x128xf32> to vector<1x1x128xf32>
    tpu.vector_store %arg11[%c3_312, %c3_313, %c0_314], %441 {strides = array<i32>} : memref<8x24x128xf32, #tpu.memory_space<vmem>>, vector<1x1x128xf32>,
    %c3_i32_315 = arith.constant 3 : i32
    %442 = arith.addi %0, %c3_i32_315 : i32
    %443 = arith.index_cast %442 : i32 to index
    %c4_316 = arith.constant 4 : index
    %444 = memref.load %arg1[%443, %c4_316] : memref<16x16xi32, #tpu.memory_space<smem>>
    %445 = arith.index_cast %444 : i32 to index
    %c0_317 = arith.constant 0 : index
    %446 = vector.load %arg2[%445, %c0_317] : memref<1000x128xf32, #tpu.memory_space<vmem>>, vector<1x128xf32>
    %c3_318 = arith.constant 3 : index
    %c4_319 = arith.constant 4 : index
    %c0_320 = arith.constant 0 : index
    %447 = vector.load %arg11[%c3_318, %c4_319, %c0_320] : memref<8x24x128xf32, #tpu.memory_space<vmem>>, vector<1x1x128xf32>
    %448 = vector.shape_cast %447 : vector<1x1x128xf32> to vector<1x128xf32>
    %449 = vector.shape_cast %446 : vector<1x128xf32> to vector<1x1x128xf32>
    tpu.vector_store %arg11[%c3_318, %c4_319, %c0_320], %449 {strides = array<i32>} : memref<8x24x128xf32, #tpu.memory_space<vmem>>, vector<1x1x128xf32>,
    %c3_i32_321 = arith.constant 3 : i32
    %450 = arith.addi %0, %c3_i32_321 : i32
    %451 = arith.index_cast %450 : i32 to index
    %c5_322 = arith.constant 5 : index
    %452 = memref.load %arg1[%451, %c5_322] : memref<16x16xi32, #tpu.memory_space<smem>>
    %453 = arith.index_cast %452 : i32 to index
    %c0_323 = arith.constant 0 : index
    %454 = vector.load %arg2[%453, %c0_323] : memref<1000x128xf32, #tpu.memory_space<vmem>>, vector<1x128xf32>
    %c3_324 = arith.constant 3 : index
    %c5_325 = arith.constant 5 : index
    %c0_326 = arith.constant 0 : index
    %455 = vector.load %arg11[%c3_324, %c5_325, %c0_326] : memref<8x24x128xf32, #tpu.memory_space<vmem>>, vector<1x1x128xf32>
    %456 = vector.shape_cast %455 : vector<1x1x128xf32> to vector<1x128xf32>
    %457 = vector.shape_cast %454 : vector<1x128xf32> to vector<1x1x128xf32>
    tpu.vector_store %arg11[%c3_324, %c5_325, %c0_326], %457 {strides = array<i32>} : memref<8x24x128xf32, #tpu.memory_space<vmem>>, vector<1x1x128xf32>,
    %c3_i32_327 = arith.constant 3 : i32
    %458 = arith.addi %0, %c3_i32_327 : i32
    %459 = arith.index_cast %458 : i32 to index
    %c6_328 = arith.constant 6 : index
    %460 = memref.load %arg1[%459, %c6_328] : memref<16x16xi32, #tpu.memory_space<smem>>
    %461 = arith.index_cast %460 : i32 to index
    %c0_329 = arith.constant 0 : index
    %462 = vector.load %arg2[%461, %c0_329] : memref<1000x128xf32, #tpu.memory_space<vmem>>, vector<1x128xf32>
    %c3_330 = arith.constant 3 : index
    %c6_331 = arith.constant 6 : index
    %c0_332 = arith.constant 0 : index
    %463 = vector.load %arg11[%c3_330, %c6_331, %c0_332] : memref<8x24x128xf32, #tpu.memory_space<vmem>>, vector<1x1x128xf32>
    %464 = vector.shape_cast %463 : vector<1x1x128xf32> to vector<1x128xf32>
    %465 = vector.shape_cast %462 : vector<1x128xf32> to vector<1x1x128xf32>
    tpu.vector_store %arg11[%c3_330, %c6_331, %c0_332], %465 {strides = array<i32>} : memref<8x24x128xf32, #tpu.memory_space<vmem>>, vector<1x1x128xf32>,
    %c3_i32_333 = arith.constant 3 : i32
    %466 = arith.addi %0, %c3_i32_333 : i32
    %467 = arith.index_cast %466 : i32 to index
    %c7_334 = arith.constant 7 : index
    %468 = memref.load %arg1[%467, %c7_334] : memref<16x16xi32, #tpu.memory_space<smem>>
    %469 = arith.index_cast %468 : i32 to index
    %c0_335 = arith.constant 0 : index
    %470 = vector.load %arg2[%469, %c0_335] : memref<1000x128xf32, #tpu.memory_space<vmem>>, vector<1x128xf32>
    %c3_336 = arith.constant 3 : index
    %c7_337 = arith.constant 7 : index
    %c0_338 = arith.constant 0 : index
    %471 = vector.load %arg11[%c3_336, %c7_337, %c0_338] : memref<8x24x128xf32, #tpu.memory_space<vmem>>, vector<1x1x128xf32>
    %472 = vector.shape_cast %471 : vector<1x1x128xf32> to vector<1x128xf32>
    %473 = vector.shape_cast %470 : vector<1x128xf32> to vector<1x1x128xf32>
    tpu.vector_store %arg11[%c3_336, %c7_337, %c0_338], %473 {strides = array<i32>} : memref<8x24x128xf32, #tpu.memory_space<vmem>>, vector<1x1x128xf32>,
    %c3_i32_339 = arith.constant 3 : i32
    %474 = arith.addi %0, %c3_i32_339 : i32
    %475 = arith.index_cast %474 : i32 to index
    %c8_340 = arith.constant 8 : index
    %476 = memref.load %arg1[%475, %c8_340] : memref<16x16xi32, #tpu.memory_space<smem>>
    %477 = arith.index_cast %476 : i32 to index
    %c0_341 = arith.constant 0 : index
    %478 = vector.load %arg2[%477, %c0_341] : memref<1000x128xf32, #tpu.memory_space<vmem>>, vector<1x128xf32>
    %c3_342 = arith.constant 3 : index
    %c8_343 = arith.constant 8 : index
    %c0_344 = arith.constant 0 : index
    %479 = vector.load %arg11[%c3_342, %c8_343, %c0_344] : memref<8x24x128xf32, #tpu.memory_space<vmem>>, vector<1x1x128xf32>
    %480 = vector.shape_cast %479 : vector<1x1x128xf32> to vector<1x128xf32>
    %481 = vector.shape_cast %478 : vector<1x128xf32> to vector<1x1x128xf32>
    tpu.vector_store %arg11[%c3_342, %c8_343, %c0_344], %481 {strides = array<i32>} : memref<8x24x128xf32, #tpu.memory_space<vmem>>, vector<1x1x128xf32>,
    %c3_i32_345 = arith.constant 3 : i32
    %482 = arith.addi %0, %c3_i32_345 : i32
    %483 = arith.index_cast %482 : i32 to index
    %c9_346 = arith.constant 9 : index
    %484 = memref.load %arg1[%483, %c9_346] : memref<16x16xi32, #tpu.memory_space<smem>>
    %485 = arith.index_cast %484 : i32 to index
    %c0_347 = arith.constant 0 : index
    %486 = vector.load %arg2[%485, %c0_347] : memref<1000x128xf32, #tpu.memory_space<vmem>>, vector<1x128xf32>
    %c3_348 = arith.constant 3 : index
    %c9_349 = arith.constant 9 : index
    %c0_350 = arith.constant 0 : index
    %487 = vector.load %arg11[%c3_348, %c9_349, %c0_350] : memref<8x24x128xf32, #tpu.memory_space<vmem>>, vector<1x1x128xf32>
    %488 = vector.shape_cast %487 : vector<1x1x128xf32> to vector<1x128xf32>
    %489 = vector.shape_cast %486 : vector<1x128xf32> to vector<1x1x128xf32>
    tpu.vector_store %arg11[%c3_348, %c9_349, %c0_350], %489 {strides = array<i32>} : memref<8x24x128xf32, #tpu.memory_space<vmem>>, vector<1x1x128xf32>,
    %c3_i32_351 = arith.constant 3 : i32
    %490 = arith.addi %0, %c3_i32_351 : i32
    %491 = arith.index_cast %490 : i32 to index
    %c10_352 = arith.constant 10 : index
    %492 = memref.load %arg1[%491, %c10_352] : memref<16x16xi32, #tpu.memory_space<smem>>
    %493 = arith.index_cast %492 : i32 to index
    %c0_353 = arith.constant 0 : index
    %494 = vector.load %arg2[%493, %c0_353] : memref<1000x128xf32, #tpu.memory_space<vmem>>, vector<1x128xf32>
    %c3_354 = arith.constant 3 : index
    %c10_355 = arith.constant 10 : index
    %c0_356 = arith.constant 0 : index
    %495 = vector.load %arg11[%c3_354, %c10_355, %c0_356] : memref<8x24x128xf32, #tpu.memory_space<vmem>>, vector<1x1x128xf32>
    %496 = vector.shape_cast %495 : vector<1x1x128xf32> to vector<1x128xf32>
    %497 = vector.shape_cast %494 : vector<1x128xf32> to vector<1x1x128xf32>
    tpu.vector_store %arg11[%c3_354, %c10_355, %c0_356], %497 {strides = array<i32>} : memref<8x24x128xf32, #tpu.memory_space<vmem>>, vector<1x1x128xf32>,
    %c3_i32_357 = arith.constant 3 : i32
    %498 = arith.addi %0, %c3_i32_357 : i32
    %499 = arith.index_cast %498 : i32 to index
    %c11_358 = arith.constant 11 : index
    %500 = memref.load %arg1[%499, %c11_358] : memref<16x16xi32, #tpu.memory_space<smem>>
    %501 = arith.index_cast %500 : i32 to index
    %c0_359 = arith.constant 0 : index
    %502 = vector.load %arg2[%501, %c0_359] : memref<1000x128xf32, #tpu.memory_space<vmem>>, vector<1x128xf32>
    %c3_360 = arith.constant 3 : index
    %c11_361 = arith.constant 11 : index
    %c0_362 = arith.constant 0 : index
    %503 = vector.load %arg11[%c3_360, %c11_361, %c0_362] : memref<8x24x128xf32, #tpu.memory_space<vmem>>, vector<1x1x128xf32>
    %504 = vector.shape_cast %503 : vector<1x1x128xf32> to vector<1x128xf32>
    %505 = vector.shape_cast %502 : vector<1x128xf32> to vector<1x1x128xf32>
    tpu.vector_store %arg11[%c3_360, %c11_361, %c0_362], %505 {strides = array<i32>} : memref<8x24x128xf32, #tpu.memory_space<vmem>>, vector<1x1x128xf32>,
    %c3_i32_363 = arith.constant 3 : i32
    %506 = arith.addi %0, %c3_i32_363 : i32
    %507 = arith.index_cast %506 : i32 to index
    %c12_364 = arith.constant 12 : index
    %508 = memref.load %arg1[%507, %c12_364] : memref<16x16xi32, #tpu.memory_space<smem>>
    %509 = arith.index_cast %508 : i32 to index
    %c0_365 = arith.constant 0 : index
    %510 = vector.load %arg2[%509, %c0_365] : memref<1000x128xf32, #tpu.memory_space<vmem>>, vector<1x128xf32>
    %c3_366 = arith.constant 3 : index
    %c12_367 = arith.constant 12 : index
    %c0_368 = arith.constant 0 : index
    %511 = vector.load %arg11[%c3_366, %c12_367, %c0_368] : memref<8x24x128xf32, #tpu.memory_space<vmem>>, vector<1x1x128xf32>
    %512 = vector.shape_cast %511 : vector<1x1x128xf32> to vector<1x128xf32>
    %513 = vector.shape_cast %510 : vector<1x128xf32> to vector<1x1x128xf32>
    tpu.vector_store %arg11[%c3_366, %c12_367, %c0_368], %513 {strides = array<i32>} : memref<8x24x128xf32, #tpu.memory_space<vmem>>, vector<1x1x128xf32>,
    %c3_i32_369 = arith.constant 3 : i32
    %514 = arith.addi %0, %c3_i32_369 : i32
    %515 = arith.index_cast %514 : i32 to index
    %c13_370 = arith.constant 13 : index
    %516 = memref.load %arg1[%515, %c13_370] : memref<16x16xi32, #tpu.memory_space<smem>>
    %517 = arith.index_cast %516 : i32 to index
    %c0_371 = arith.constant 0 : index
    %518 = vector.load %arg2[%517, %c0_371] : memref<1000x128xf32, #tpu.memory_space<vmem>>, vector<1x128xf32>
    %c3_372 = arith.constant 3 : index
    %c13_373 = arith.constant 13 : index
    %c0_374 = arith.constant 0 : index
    %519 = vector.load %arg11[%c3_372, %c13_373, %c0_374] : memref<8x24x128xf32, #tpu.memory_space<vmem>>, vector<1x1x128xf32>
    %520 = vector.shape_cast %519 : vector<1x1x128xf32> to vector<1x128xf32>
    %521 = vector.shape_cast %518 : vector<1x128xf32> to vector<1x1x128xf32>
    tpu.vector_store %arg11[%c3_372, %c13_373, %c0_374], %521 {strides = array<i32>} : memref<8x24x128xf32, #tpu.memory_space<vmem>>, vector<1x1x128xf32>,
    %c3_i32_375 = arith.constant 3 : i32
    %522 = arith.addi %0, %c3_i32_375 : i32
    %523 = arith.index_cast %522 : i32 to index
    %c14_376 = arith.constant 14 : index
    %524 = memref.load %arg1[%523, %c14_376] : memref<16x16xi32, #tpu.memory_space<smem>>
    %525 = arith.index_cast %524 : i32 to index
    %c0_377 = arith.constant 0 : index
    %526 = vector.load %arg2[%525, %c0_377] : memref<1000x128xf32, #tpu.memory_space<vmem>>, vector<1x128xf32>
    %c3_378 = arith.constant 3 : index
    %c14_379 = arith.constant 14 : index
    %c0_380 = arith.constant 0 : index
    %527 = vector.load %arg11[%c3_378, %c14_379, %c0_380] : memref<8x24x128xf32, #tpu.memory_space<vmem>>, vector<1x1x128xf32>
    %528 = vector.shape_cast %527 : vector<1x1x128xf32> to vector<1x128xf32>
    %529 = vector.shape_cast %526 : vector<1x128xf32> to vector<1x1x128xf32>
    tpu.vector_store %arg11[%c3_378, %c14_379, %c0_380], %529 {strides = array<i32>} : memref<8x24x128xf32, #tpu.memory_space<vmem>>, vector<1x1x128xf32>,
    %c3_i32_381 = arith.constant 3 : i32
    %530 = arith.addi %0, %c3_i32_381 : i32
    %531 = arith.index_cast %530 : i32 to index
    %c15_382 = arith.constant 15 : index
    %532 = memref.load %arg1[%531, %c15_382] : memref<16x16xi32, #tpu.memory_space<smem>>
    %533 = arith.index_cast %532 : i32 to index
    %c0_383 = arith.constant 0 : index
    %534 = vector.load %arg2[%533, %c0_383] : memref<1000x128xf32, #tpu.memory_space<vmem>>, vector<1x128xf32>
    %c3_384 = arith.constant 3 : index
    %c15_385 = arith.constant 15 : index
    %c0_386 = arith.constant 0 : index
    %535 = vector.load %arg11[%c3_384, %c15_385, %c0_386] : memref<8x24x128xf32, #tpu.memory_space<vmem>>, vector<1x1x128xf32>
    %536 = vector.shape_cast %535 : vector<1x1x128xf32> to vector<1x128xf32>
    %537 = vector.shape_cast %534 : vector<1x128xf32> to vector<1x1x128xf32>
    tpu.vector_store %arg11[%c3_384, %c15_385, %c0_386], %537 {strides = array<i32>} : memref<8x24x128xf32, #tpu.memory_space<vmem>>, vector<1x1x128xf32>,
    %c4_i32 = arith.constant 4 : i32
    %538 = arith.addi %0, %c4_i32 : i32
    %539 = arith.index_cast %538 : i32 to index
    %c0_387 = arith.constant 0 : index
    %540 = memref.load %arg1[%539, %c0_387] : memref<16x16xi32, #tpu.memory_space<smem>>
    %541 = arith.index_cast %540 : i32 to index
    %c0_388 = arith.constant 0 : index
    %542 = vector.load %arg2[%541, %c0_388] : memref<1000x128xf32, #tpu.memory_space<vmem>>, vector<1x128xf32>
    %c4_389 = arith.constant 4 : index
    %c0_390 = arith.constant 0 : index
    %c0_391 = arith.constant 0 : index
    %543 = vector.load %arg11[%c4_389, %c0_390, %c0_391] : memref<8x24x128xf32, #tpu.memory_space<vmem>>, vector<1x1x128xf32>
    %544 = vector.shape_cast %543 : vector<1x1x128xf32> to vector<1x128xf32>
    %545 = vector.shape_cast %542 : vector<1x128xf32> to vector<1x1x128xf32>
    tpu.vector_store %arg11[%c4_389, %c0_390, %c0_391], %545 {strides = array<i32>} : memref<8x24x128xf32, #tpu.memory_space<vmem>>, vector<1x1x128xf32>,
    %c4_i32_392 = arith.constant 4 : i32
    %546 = arith.addi %0, %c4_i32_392 : i32
    %547 = arith.index_cast %546 : i32 to index
    %c1_393 = arith.constant 1 : index
    %548 = memref.load %arg1[%547, %c1_393] : memref<16x16xi32, #tpu.memory_space<smem>>
    %549 = arith.index_cast %548 : i32 to index
    %c0_394 = arith.constant 0 : index
    %550 = vector.load %arg2[%549, %c0_394] : memref<1000x128xf32, #tpu.memory_space<vmem>>, vector<1x128xf32>
    %c4_395 = arith.constant 4 : index
    %c1_396 = arith.constant 1 : index
    %c0_397 = arith.constant 0 : index
    %551 = vector.load %arg11[%c4_395, %c1_396, %c0_397] : memref<8x24x128xf32, #tpu.memory_space<vmem>>, vector<1x1x128xf32>
    %552 = vector.shape_cast %551 : vector<1x1x128xf32> to vector<1x128xf32>
    %553 = vector.shape_cast %550 : vector<1x128xf32> to vector<1x1x128xf32>
    tpu.vector_store %arg11[%c4_395, %c1_396, %c0_397], %553 {strides = array<i32>} : memref<8x24x128xf32, #tpu.memory_space<vmem>>, vector<1x1x128xf32>,
    %c4_i32_398 = arith.constant 4 : i32
    %554 = arith.addi %0, %c4_i32_398 : i32
    %555 = arith.index_cast %554 : i32 to index
    %c2_399 = arith.constant 2 : index
    %556 = memref.load %arg1[%555, %c2_399] : memref<16x16xi32, #tpu.memory_space<smem>>
    %557 = arith.index_cast %556 : i32 to index
    %c0_400 = arith.constant 0 : index
    %558 = vector.load %arg2[%557, %c0_400] : memref<1000x128xf32, #tpu.memory_space<vmem>>, vector<1x128xf32>
    %c4_401 = arith.constant 4 : index
    %c2_402 = arith.constant 2 : index
    %c0_403 = arith.constant 0 : index
    %559 = vector.load %arg11[%c4_401, %c2_402, %c0_403] : memref<8x24x128xf32, #tpu.memory_space<vmem>>, vector<1x1x128xf32>
    %560 = vector.shape_cast %559 : vector<1x1x128xf32> to vector<1x128xf32>
    %561 = vector.shape_cast %558 : vector<1x128xf32> to vector<1x1x128xf32>
    tpu.vector_store %arg11[%c4_401, %c2_402, %c0_403], %561 {strides = array<i32>} : memref<8x24x128xf32, #tpu.memory_space<vmem>>, vector<1x1x128xf32>,
    %c4_i32_404 = arith.constant 4 : i32
    %562 = arith.addi %0, %c4_i32_404 : i32
    %563 = arith.index_cast %562 : i32 to index
    %c3_405 = arith.constant 3 : index
    %564 = memref.load %arg1[%563, %c3_405] : memref<16x16xi32, #tpu.memory_space<smem>>
    %565 = arith.index_cast %564 : i32 to index
    %c0_406 = arith.constant 0 : index
    %566 = vector.load %arg2[%565, %c0_406] : memref<1000x128xf32, #tpu.memory_space<vmem>>, vector<1x128xf32>
    %c4_407 = arith.constant 4 : index
    %c3_408 = arith.constant 3 : index
    %c0_409 = arith.constant 0 : index
    %567 = vector.load %arg11[%c4_407, %c3_408, %c0_409] : memref<8x24x128xf32, #tpu.memory_space<vmem>>, vector<1x1x128xf32>
    %568 = vector.shape_cast %567 : vector<1x1x128xf32> to vector<1x128xf32>
    %569 = vector.shape_cast %566 : vector<1x128xf32> to vector<1x1x128xf32>
    tpu.vector_store %arg11[%c4_407, %c3_408, %c0_409], %569 {strides = array<i32>} : memref<8x24x128xf32, #tpu.memory_space<vmem>>, vector<1x1x128xf32>,
    %c4_i32_410 = arith.constant 4 : i32
    %570 = arith.addi %0, %c4_i32_410 : i32
    %571 = arith.index_cast %570 : i32 to index
    %c4_411 = arith.constant 4 : index
    %572 = memref.load %arg1[%571, %c4_411] : memref<16x16xi32, #tpu.memory_space<smem>>
    %573 = arith.index_cast %572 : i32 to index
    %c0_412 = arith.constant 0 : index
    %574 = vector.load %arg2[%573, %c0_412] : memref<1000x128xf32, #tpu.memory_space<vmem>>, vector<1x128xf32>
    %c4_413 = arith.constant 4 : index
    %c4_414 = arith.constant 4 : index
    %c0_415 = arith.constant 0 : index
    %575 = vector.load %arg11[%c4_413, %c4_414, %c0_415] : memref<8x24x128xf32, #tpu.memory_space<vmem>>, vector<1x1x128xf32>
    %576 = vector.shape_cast %575 : vector<1x1x128xf32> to vector<1x128xf32>
    %577 = vector.shape_cast %574 : vector<1x128xf32> to vector<1x1x128xf32>
    tpu.vector_store %arg11[%c4_413, %c4_414, %c0_415], %577 {strides = array<i32>} : memref<8x24x128xf32, #tpu.memory_space<vmem>>, vector<1x1x128xf32>,
    %c4_i32_416 = arith.constant 4 : i32
    %578 = arith.addi %0, %c4_i32_416 : i32
    %579 = arith.index_cast %578 : i32 to index
    %c5_417 = arith.constant 5 : index
    %580 = memref.load %arg1[%579, %c5_417] : memref<16x16xi32, #tpu.memory_space<smem>>
    %581 = arith.index_cast %580 : i32 to index
    %c0_418 = arith.constant 0 : index
    %582 = vector.load %arg2[%581, %c0_418] : memref<1000x128xf32, #tpu.memory_space<vmem>>, vector<1x128xf32>
    %c4_419 = arith.constant 4 : index
    %c5_420 = arith.constant 5 : index
    %c0_421 = arith.constant 0 : index
    %583 = vector.load %arg11[%c4_419, %c5_420, %c0_421] : memref<8x24x128xf32, #tpu.memory_space<vmem>>, vector<1x1x128xf32>
    %584 = vector.shape_cast %583 : vector<1x1x128xf32> to vector<1x128xf32>
    %585 = vector.shape_cast %582 : vector<1x128xf32> to vector<1x1x128xf32>
    tpu.vector_store %arg11[%c4_419, %c5_420, %c0_421], %585 {strides = array<i32>} : memref<8x24x128xf32, #tpu.memory_space<vmem>>, vector<1x1x128xf32>,
    %c4_i32_422 = arith.constant 4 : i32
    %586 = arith.addi %0, %c4_i32_422 : i32
    %587 = arith.index_cast %586 : i32 to index
    %c6_423 = arith.constant 6 : index
    %588 = memref.load %arg1[%587, %c6_423] : memref<16x16xi32, #tpu.memory_space<smem>>
    %589 = arith.index_cast %588 : i32 to index
    %c0_424 = arith.constant 0 : index
    %590 = vector.load %arg2[%589, %c0_424] : memref<1000x128xf32, #tpu.memory_space<vmem>>, vector<1x128xf32>
    %c4_425 = arith.constant 4 : index
    %c6_426 = arith.constant 6 : index
    %c0_427 = arith.constant 0 : index
    %591 = vector.load %arg11[%c4_425, %c6_426, %c0_427] : memref<8x24x128xf32, #tpu.memory_space<vmem>>, vector<1x1x128xf32>
    %592 = vector.shape_cast %591 : vector<1x1x128xf32> to vector<1x128xf32>
    %593 = vector.shape_cast %590 : vector<1x128xf32> to vector<1x1x128xf32>
    tpu.vector_store %arg11[%c4_425, %c6_426, %c0_427], %593 {strides = array<i32>} : memref<8x24x128xf32, #tpu.memory_space<vmem>>, vector<1x1x128xf32>,
    %c4_i32_428 = arith.constant 4 : i32
    %594 = arith.addi %0, %c4_i32_428 : i32
    %595 = arith.index_cast %594 : i32 to index
    %c7_429 = arith.constant 7 : index
    %596 = memref.load %arg1[%595, %c7_429] : memref<16x16xi32, #tpu.memory_space<smem>>
    %597 = arith.index_cast %596 : i32 to index
    %c0_430 = arith.constant 0 : index
    %598 = vector.load %arg2[%597, %c0_430] : memref<1000x128xf32, #tpu.memory_space<vmem>>, vector<1x128xf32>
    %c4_431 = arith.constant 4 : index
    %c7_432 = arith.constant 7 : index
    %c0_433 = arith.constant 0 : index
    %599 = vector.load %arg11[%c4_431, %c7_432, %c0_433] : memref<8x24x128xf32, #tpu.memory_space<vmem>>, vector<1x1x128xf32>
    %600 = vector.shape_cast %599 : vector<1x1x128xf32> to vector<1x128xf32>
    %601 = vector.shape_cast %598 : vector<1x128xf32> to vector<1x1x128xf32>
    tpu.vector_store %arg11[%c4_431, %c7_432, %c0_433], %601 {strides = array<i32>} : memref<8x24x128xf32, #tpu.memory_space<vmem>>, vector<1x1x128xf32>,
    %c4_i32_434 = arith.constant 4 : i32
    %602 = arith.addi %0, %c4_i32_434 : i32
    %603 = arith.index_cast %602 : i32 to index
    %c8_435 = arith.constant 8 : index
    %604 = memref.load %arg1[%603, %c8_435] : memref<16x16xi32, #tpu.memory_space<smem>>
    %605 = arith.index_cast %604 : i32 to index
    %c0_436 = arith.constant 0 : index
    %606 = vector.load %arg2[%605, %c0_436] : memref<1000x128xf32, #tpu.memory_space<vmem>>, vector<1x128xf32>
    %c4_437 = arith.constant 4 : index
    %c8_438 = arith.constant 8 : index
    %c0_439 = arith.constant 0 : index
    %607 = vector.load %arg11[%c4_437, %c8_438, %c0_439] : memref<8x24x128xf32, #tpu.memory_space<vmem>>, vector<1x1x128xf32>
    %608 = vector.shape_cast %607 : vector<1x1x128xf32> to vector<1x128xf32>
    %609 = vector.shape_cast %606 : vector<1x128xf32> to vector<1x1x128xf32>
    tpu.vector_store %arg11[%c4_437, %c8_438, %c0_439], %609 {strides = array<i32>} : memref<8x24x128xf32, #tpu.memory_space<vmem>>, vector<1x1x128xf32>,
    %c4_i32_440 = arith.constant 4 : i32
    %610 = arith.addi %0, %c4_i32_440 : i32
    %611 = arith.index_cast %610 : i32 to index
    %c9_441 = arith.constant 9 : index
    %612 = memref.load %arg1[%611, %c9_441] : memref<16x16xi32, #tpu.memory_space<smem>>
    %613 = arith.index_cast %612 : i32 to index
    %c0_442 = arith.constant 0 : index
    %614 = vector.load %arg2[%613, %c0_442] : memref<1000x128xf32, #tpu.memory_space<vmem>>, vector<1x128xf32>
    %c4_443 = arith.constant 4 : index
    %c9_444 = arith.constant 9 : index
    %c0_445 = arith.constant 0 : index
    %615 = vector.load %arg11[%c4_443, %c9_444, %c0_445] : memref<8x24x128xf32, #tpu.memory_space<vmem>>, vector<1x1x128xf32>
    %616 = vector.shape_cast %615 : vector<1x1x128xf32> to vector<1x128xf32>
    %617 = vector.shape_cast %614 : vector<1x128xf32> to vector<1x1x128xf32>
    tpu.vector_store %arg11[%c4_443, %c9_444, %c0_445], %617 {strides = array<i32>} : memref<8x24x128xf32, #tpu.memory_space<vmem>>, vector<1x1x128xf32>,
    %c4_i32_446 = arith.constant 4 : i32
    %618 = arith.addi %0, %c4_i32_446 : i32
    %619 = arith.index_cast %618 : i32 to index
    %c10_447 = arith.constant 10 : index
    %620 = memref.load %arg1[%619, %c10_447] : memref<16x16xi32, #tpu.memory_space<smem>>
    %621 = arith.index_cast %620 : i32 to index
    %c0_448 = arith.constant 0 : index
    %622 = vector.load %arg2[%621, %c0_448] : memref<1000x128xf32, #tpu.memory_space<vmem>>, vector<1x128xf32>
    %c4_449 = arith.constant 4 : index
    %c10_450 = arith.constant 10 : index
    %c0_451 = arith.constant 0 : index
    %623 = vector.load %arg11[%c4_449, %c10_450, %c0_451] : memref<8x24x128xf32, #tpu.memory_space<vmem>>, vector<1x1x128xf32>
    %624 = vector.shape_cast %623 : vector<1x1x128xf32> to vector<1x128xf32>
    %625 = vector.shape_cast %622 : vector<1x128xf32> to vector<1x1x128xf32>
    tpu.vector_store %arg11[%c4_449, %c10_450, %c0_451], %625 {strides = array<i32>} : memref<8x24x128xf32, #tpu.memory_space<vmem>>, vector<1x1x128xf32>,
    %c4_i32_452 = arith.constant 4 : i32
    %626 = arith.addi %0, %c4_i32_452 : i32
    %627 = arith.index_cast %626 : i32 to index
    %c11_453 = arith.constant 11 : index
    %628 = memref.load %arg1[%627, %c11_453] : memref<16x16xi32, #tpu.memory_space<smem>>
    %629 = arith.index_cast %628 : i32 to index
    %c0_454 = arith.constant 0 : index
    %630 = vector.load %arg2[%629, %c0_454] : memref<1000x128xf32, #tpu.memory_space<vmem>>, vector<1x128xf32>
    %c4_455 = arith.constant 4 : index
    %c11_456 = arith.constant 11 : index
    %c0_457 = arith.constant 0 : index
    %631 = vector.load %arg11[%c4_455, %c11_456, %c0_457] : memref<8x24x128xf32, #tpu.memory_space<vmem>>, vector<1x1x128xf32>
    %632 = vector.shape_cast %631 : vector<1x1x128xf32> to vector<1x128xf32>
    %633 = vector.shape_cast %630 : vector<1x128xf32> to vector<1x1x128xf32>
    tpu.vector_store %arg11[%c4_455, %c11_456, %c0_457], %633 {strides = array<i32>} : memref<8x24x128xf32, #tpu.memory_space<vmem>>, vector<1x1x128xf32>,
    %c4_i32_458 = arith.constant 4 : i32
    %634 = arith.addi %0, %c4_i32_458 : i32
    %635 = arith.index_cast %634 : i32 to index
    %c12_459 = arith.constant 12 : index
    %636 = memref.load %arg1[%635, %c12_459] : memref<16x16xi32, #tpu.memory_space<smem>>
    %637 = arith.index_cast %636 : i32 to index
    %c0_460 = arith.constant 0 : index
    %638 = vector.load %arg2[%637, %c0_460] : memref<1000x128xf32, #tpu.memory_space<vmem>>, vector<1x128xf32>
    %c4_461 = arith.constant 4 : index
    %c12_462 = arith.constant 12 : index
    %c0_463 = arith.constant 0 : index
    %639 = vector.load %arg11[%c4_461, %c12_462, %c0_463] : memref<8x24x128xf32, #tpu.memory_space<vmem>>, vector<1x1x128xf32>
    %640 = vector.shape_cast %639 : vector<1x1x128xf32> to vector<1x128xf32>
    %641 = vector.shape_cast %638 : vector<1x128xf32> to vector<1x1x128xf32>
    tpu.vector_store %arg11[%c4_461, %c12_462, %c0_463], %641 {strides = array<i32>} : memref<8x24x128xf32, #tpu.memory_space<vmem>>, vector<1x1x128xf32>,
    %c4_i32_464 = arith.constant 4 : i32
    %642 = arith.addi %0, %c4_i32_464 : i32
    %643 = arith.index_cast %642 : i32 to index
    %c13_465 = arith.constant 13 : index
    %644 = memref.load %arg1[%643, %c13_465] : memref<16x16xi32, #tpu.memory_space<smem>>
    %645 = arith.index_cast %644 : i32 to index
    %c0_466 = arith.constant 0 : index
    %646 = vector.load %arg2[%645, %c0_466] : memref<1000x128xf32, #tpu.memory_space<vmem>>, vector<1x128xf32>
    %c4_467 = arith.constant 4 : index
    %c13_468 = arith.constant 13 : index
    %c0_469 = arith.constant 0 : index
    %647 = vector.load %arg11[%c4_467, %c13_468, %c0_469] : memref<8x24x128xf32, #tpu.memory_space<vmem>>, vector<1x1x128xf32>
    %648 = vector.shape_cast %647 : vector<1x1x128xf32> to vector<1x128xf32>
    %649 = vector.shape_cast %646 : vector<1x128xf32> to vector<1x1x128xf32>
    tpu.vector_store %arg11[%c4_467, %c13_468, %c0_469], %649 {strides = array<i32>} : memref<8x24x128xf32, #tpu.memory_space<vmem>>, vector<1x1x128xf32>,
    %c4_i32_470 = arith.constant 4 : i32
    %650 = arith.addi %0, %c4_i32_470 : i32
    %651 = arith.index_cast %650 : i32 to index
    %c14_471 = arith.constant 14 : index
    %652 = memref.load %arg1[%651, %c14_471] : memref<16x16xi32, #tpu.memory_space<smem>>
    %653 = arith.index_cast %652 : i32 to index
    %c0_472 = arith.constant 0 : index
    %654 = vector.load %arg2[%653, %c0_472] : memref<1000x128xf32, #tpu.memory_space<vmem>>, vector<1x128xf32>
    %c4_473 = arith.constant 4 : index
    %c14_474 = arith.constant 14 : index
    %c0_475 = arith.constant 0 : index
    %655 = vector.load %arg11[%c4_473, %c14_474, %c0_475] : memref<8x24x128xf32, #tpu.memory_space<vmem>>, vector<1x1x128xf32>
    %656 = vector.shape_cast %655 : vector<1x1x128xf32> to vector<1x128xf32>
    %657 = vector.shape_cast %654 : vector<1x128xf32> to vector<1x1x128xf32>
    tpu.vector_store %arg11[%c4_473, %c14_474, %c0_475], %657 {strides = array<i32>} : memref<8x24x128xf32, #tpu.memory_space<vmem>>, vector<1x1x128xf32>,
    %c4_i32_476 = arith.constant 4 : i32
    %658 = arith.addi %0, %c4_i32_476 : i32
    %659 = arith.index_cast %658 : i32 to index
    %c15_477 = arith.constant 15 : index
    %660 = memref.load %arg1[%659, %c15_477] : memref<16x16xi32, #tpu.memory_space<smem>>
    %661 = arith.index_cast %660 : i32 to index
    %c0_478 = arith.constant 0 : index
    %662 = vector.load %arg2[%661, %c0_478] : memref<1000x128xf32, #tpu.memory_space<vmem>>, vector<1x128xf32>
    %c4_479 = arith.constant 4 : index
    %c15_480 = arith.constant 15 : index
    %c0_481 = arith.constant 0 : index
    %663 = vector.load %arg11[%c4_479, %c15_480, %c0_481] : memref<8x24x128xf32, #tpu.memory_space<vmem>>, vector<1x1x128xf32>
    %664 = vector.shape_cast %663 : vector<1x1x128xf32> to vector<1x128xf32>
    %665 = vector.shape_cast %662 : vector<1x128xf32> to vector<1x1x128xf32>
    tpu.vector_store %arg11[%c4_479, %c15_480, %c0_481], %665 {strides = array<i32>} : memref<8x24x128xf32, #tpu.memory_space<vmem>>, vector<1x1x128xf32>,
    %c5_i32 = arith.constant 5 : i32
    %666 = arith.addi %0, %c5_i32 : i32
    %667 = arith.index_cast %666 : i32 to index
    %c0_482 = arith.constant 0 : index
    %668 = memref.load %arg1[%667, %c0_482] : memref<16x16xi32, #tpu.memory_space<smem>>
    %669 = arith.index_cast %668 : i32 to index
    %c0_483 = arith.constant 0 : index
    %670 = vector.load %arg2[%669, %c0_483] : memref<1000x128xf32, #tpu.memory_space<vmem>>, vector<1x128xf32>
    %c5_484 = arith.constant 5 : index
    %c0_485 = arith.constant 0 : index
    %c0_486 = arith.constant 0 : index
    %671 = vector.load %arg11[%c5_484, %c0_485, %c0_486] : memref<8x24x128xf32, #tpu.memory_space<vmem>>, vector<1x1x128xf32>
    %672 = vector.shape_cast %671 : vector<1x1x128xf32> to vector<1x128xf32>
    %673 = vector.shape_cast %670 : vector<1x128xf32> to vector<1x1x128xf32>
    tpu.vector_store %arg11[%c5_484, %c0_485, %c0_486], %673 {strides = array<i32>} : memref<8x24x128xf32, #tpu.memory_space<vmem>>, vector<1x1x128xf32>,
    %c5_i32_487 = arith.constant 5 : i32
    %674 = arith.addi %0, %c5_i32_487 : i32
    %675 = arith.index_cast %674 : i32 to index
    %c1_488 = arith.constant 1 : index
    %676 = memref.load %arg1[%675, %c1_488] : memref<16x16xi32, #tpu.memory_space<smem>>
    %677 = arith.index_cast %676 : i32 to index
    %c0_489 = arith.constant 0 : index
    %678 = vector.load %arg2[%677, %c0_489] : memref<1000x128xf32, #tpu.memory_space<vmem>>, vector<1x128xf32>
    %c5_490 = arith.constant 5 : index
    %c1_491 = arith.constant 1 : index
    %c0_492 = arith.constant 0 : index
    %679 = vector.load %arg11[%c5_490, %c1_491, %c0_492] : memref<8x24x128xf32, #tpu.memory_space<vmem>>, vector<1x1x128xf32>
    %680 = vector.shape_cast %679 : vector<1x1x128xf32> to vector<1x128xf32>
    %681 = vector.shape_cast %678 : vector<1x128xf32> to vector<1x1x128xf32>
    tpu.vector_store %arg11[%c5_490, %c1_491, %c0_492], %681 {strides = array<i32>} : memref<8x24x128xf32, #tpu.memory_space<vmem>>, vector<1x1x128xf32>,
    %c5_i32_493 = arith.constant 5 : i32
    %682 = arith.addi %0, %c5_i32_493 : i32
    %683 = arith.index_cast %682 : i32 to index
    %c2_494 = arith.constant 2 : index
    %684 = memref.load %arg1[%683, %c2_494] : memref<16x16xi32, #tpu.memory_space<smem>>
    %685 = arith.index_cast %684 : i32 to index
    %c0_495 = arith.constant 0 : index
    %686 = vector.load %arg2[%685, %c0_495] : memref<1000x128xf32, #tpu.memory_space<vmem>>, vector<1x128xf32>
    %c5_496 = arith.constant 5 : index
    %c2_497 = arith.constant 2 : index
    %c0_498 = arith.constant 0 : index
    %687 = vector.load %arg11[%c5_496, %c2_497, %c0_498] : memref<8x24x128xf32, #tpu.memory_space<vmem>>, vector<1x1x128xf32>
    %688 = vector.shape_cast %687 : vector<1x1x128xf32> to vector<1x128xf32>
    %689 = vector.shape_cast %686 : vector<1x128xf32> to vector<1x1x128xf32>
    tpu.vector_store %arg11[%c5_496, %c2_497, %c0_498], %689 {strides = array<i32>} : memref<8x24x128xf32, #tpu.memory_space<vmem>>, vector<1x1x128xf32>,
    %c5_i32_499 = arith.constant 5 : i32
    %690 = arith.addi %0, %c5_i32_499 : i32
    %691 = arith.index_cast %690 : i32 to index
    %c3_500 = arith.constant 3 : index
    %692 = memref.load %arg1[%691, %c3_500] : memref<16x16xi32, #tpu.memory_space<smem>>
    %693 = arith.index_cast %692 : i32 to index
    %c0_501 = arith.constant 0 : index
    %694 = vector.load %arg2[%693, %c0_501] : memref<1000x128xf32, #tpu.memory_space<vmem>>, vector<1x128xf32>
    %c5_502 = arith.constant 5 : index
    %c3_503 = arith.constant 3 : index
    %c0_504 = arith.constant 0 : index
    %695 = vector.load %arg11[%c5_502, %c3_503, %c0_504] : memref<8x24x128xf32, #tpu.memory_space<vmem>>, vector<1x1x128xf32>
    %696 = vector.shape_cast %695 : vector<1x1x128xf32> to vector<1x128xf32>
    %697 = vector.shape_cast %694 : vector<1x128xf32> to vector<1x1x128xf32>
    tpu.vector_store %arg11[%c5_502, %c3_503, %c0_504], %697 {strides = array<i32>} : memref<8x24x128xf32, #tpu.memory_space<vmem>>, vector<1x1x128xf32>,
    %c5_i32_505 = arith.constant 5 : i32
    %698 = arith.addi %0, %c5_i32_505 : i32
    %699 = arith.index_cast %698 : i32 to index
    %c4_506 = arith.constant 4 : index
    %700 = memref.load %arg1[%699, %c4_506] : memref<16x16xi32, #tpu.memory_space<smem>>
    %701 = arith.index_cast %700 : i32 to index
    %c0_507 = arith.constant 0 : index
    %702 = vector.load %arg2[%701, %c0_507] : memref<1000x128xf32, #tpu.memory_space<vmem>>, vector<1x128xf32>
    %c5_508 = arith.constant 5 : index
    %c4_509 = arith.constant 4 : index
    %c0_510 = arith.constant 0 : index
    %703 = vector.load %arg11[%c5_508, %c4_509, %c0_510] : memref<8x24x128xf32, #tpu.memory_space<vmem>>, vector<1x1x128xf32>
    %704 = vector.shape_cast %703 : vector<1x1x128xf32> to vector<1x128xf32>
    %705 = vector.shape_cast %702 : vector<1x128xf32> to vector<1x1x128xf32>
    tpu.vector_store %arg11[%c5_508, %c4_509, %c0_510], %705 {strides = array<i32>} : memref<8x24x128xf32, #tpu.memory_space<vmem>>, vector<1x1x128xf32>,
    %c5_i32_511 = arith.constant 5 : i32
    %706 = arith.addi %0, %c5_i32_511 : i32
    %707 = arith.index_cast %706 : i32 to index
    %c5_512 = arith.constant 5 : index
    %708 = memref.load %arg1[%707, %c5_512] : memref<16x16xi32, #tpu.memory_space<smem>>
    %709 = arith.index_cast %708 : i32 to index
    %c0_513 = arith.constant 0 : index
    %710 = vector.load %arg2[%709, %c0_513] : memref<1000x128xf32, #tpu.memory_space<vmem>>, vector<1x128xf32>
    %c5_514 = arith.constant 5 : index
    %c5_515 = arith.constant 5 : index
    %c0_516 = arith.constant 0 : index
    %711 = vector.load %arg11[%c5_514, %c5_515, %c0_516] : memref<8x24x128xf32, #tpu.memory_space<vmem>>, vector<1x1x128xf32>
    %712 = vector.shape_cast %711 : vector<1x1x128xf32> to vector<1x128xf32>
    %713 = vector.shape_cast %710 : vector<1x128xf32> to vector<1x1x128xf32>
    tpu.vector_store %arg11[%c5_514, %c5_515, %c0_516], %713 {strides = array<i32>} : memref<8x24x128xf32, #tpu.memory_space<vmem>>, vector<1x1x128xf32>,
    %c5_i32_517 = arith.constant 5 : i32
    %714 = arith.addi %0, %c5_i32_517 : i32
    %715 = arith.index_cast %714 : i32 to index
    %c6_518 = arith.constant 6 : index
    %716 = memref.load %arg1[%715, %c6_518] : memref<16x16xi32, #tpu.memory_space<smem>>
    %717 = arith.index_cast %716 : i32 to index
    %c0_519 = arith.constant 0 : index
    %718 = vector.load %arg2[%717, %c0_519] : memref<1000x128xf32, #tpu.memory_space<vmem>>, vector<1x128xf32>
    %c5_520 = arith.constant 5 : index
    %c6_521 = arith.constant 6 : index
    %c0_522 = arith.constant 0 : index
    %719 = vector.load %arg11[%c5_520, %c6_521, %c0_522] : memref<8x24x128xf32, #tpu.memory_space<vmem>>, vector<1x1x128xf32>
    %720 = vector.shape_cast %719 : vector<1x1x128xf32> to vector<1x128xf32>
    %721 = vector.shape_cast %718 : vector<1x128xf32> to vector<1x1x128xf32>
    tpu.vector_store %arg11[%c5_520, %c6_521, %c0_522], %721 {strides = array<i32>} : memref<8x24x128xf32, #tpu.memory_space<vmem>>, vector<1x1x128xf32>,
    %c5_i32_523 = arith.constant 5 : i32
    %722 = arith.addi %0, %c5_i32_523 : i32
    %723 = arith.index_cast %722 : i32 to index
    %c7_524 = arith.constant 7 : index
    %724 = memref.load %arg1[%723, %c7_524] : memref<16x16xi32, #tpu.memory_space<smem>>
    %725 = arith.index_cast %724 : i32 to index
    %c0_525 = arith.constant 0 : index
    %726 = vector.load %arg2[%725, %c0_525] : memref<1000x128xf32, #tpu.memory_space<vmem>>, vector<1x128xf32>
    %c5_526 = arith.constant 5 : index
    %c7_527 = arith.constant 7 : index
    %c0_528 = arith.constant 0 : index
    %727 = vector.load %arg11[%c5_526, %c7_527, %c0_528] : memref<8x24x128xf32, #tpu.memory_space<vmem>>, vector<1x1x128xf32>
    %728 = vector.shape_cast %727 : vector<1x1x128xf32> to vector<1x128xf32>
    %729 = vector.shape_cast %726 : vector<1x128xf32> to vector<1x1x128xf32>
    tpu.vector_store %arg11[%c5_526, %c7_527, %c0_528], %729 {strides = array<i32>} : memref<8x24x128xf32, #tpu.memory_space<vmem>>, vector<1x1x128xf32>,
    %c5_i32_529 = arith.constant 5 : i32
    %730 = arith.addi %0, %c5_i32_529 : i32
    %731 = arith.index_cast %730 : i32 to index
    %c8_530 = arith.constant 8 : index
    %732 = memref.load %arg1[%731, %c8_530] : memref<16x16xi32, #tpu.memory_space<smem>>
    %733 = arith.index_cast %732 : i32 to index
    %c0_531 = arith.constant 0 : index
    %734 = vector.load %arg2[%733, %c0_531] : memref<1000x128xf32, #tpu.memory_space<vmem>>, vector<1x128xf32>
    %c5_532 = arith.constant 5 : index
    %c8_533 = arith.constant 8 : index
    %c0_534 = arith.constant 0 : index
    %735 = vector.load %arg11[%c5_532, %c8_533, %c0_534] : memref<8x24x128xf32, #tpu.memory_space<vmem>>, vector<1x1x128xf32>
    %736 = vector.shape_cast %735 : vector<1x1x128xf32> to vector<1x128xf32>
    %737 = vector.shape_cast %734 : vector<1x128xf32> to vector<1x1x128xf32>
    tpu.vector_store %arg11[%c5_532, %c8_533, %c0_534], %737 {strides = array<i32>} : memref<8x24x128xf32, #tpu.memory_space<vmem>>, vector<1x1x128xf32>,
    %c5_i32_535 = arith.constant 5 : i32
    %738 = arith.addi %0, %c5_i32_535 : i32
    %739 = arith.index_cast %738 : i32 to index
    %c9_536 = arith.constant 9 : index
    %740 = memref.load %arg1[%739, %c9_536] : memref<16x16xi32, #tpu.memory_space<smem>>
    %741 = arith.index_cast %740 : i32 to index
    %c0_537 = arith.constant 0 : index
    %742 = vector.load %arg2[%741, %c0_537] : memref<1000x128xf32, #tpu.memory_space<vmem>>, vector<1x128xf32>
    %c5_538 = arith.constant 5 : index
    %c9_539 = arith.constant 9 : index
    %c0_540 = arith.constant 0 : index
    %743 = vector.load %arg11[%c5_538, %c9_539, %c0_540] : memref<8x24x128xf32, #tpu.memory_space<vmem>>, vector<1x1x128xf32>
    %744 = vector.shape_cast %743 : vector<1x1x128xf32> to vector<1x128xf32>
    %745 = vector.shape_cast %742 : vector<1x128xf32> to vector<1x1x128xf32>
    tpu.vector_store %arg11[%c5_538, %c9_539, %c0_540], %745 {strides = array<i32>} : memref<8x24x128xf32, #tpu.memory_space<vmem>>, vector<1x1x128xf32>,
    %c5_i32_541 = arith.constant 5 : i32
    %746 = arith.addi %0, %c5_i32_541 : i32
    %747 = arith.index_cast %746 : i32 to index
    %c10_542 = arith.constant 10 : index
    %748 = memref.load %arg1[%747, %c10_542] : memref<16x16xi32, #tpu.memory_space<smem>>
    %749 = arith.index_cast %748 : i32 to index
    %c0_543 = arith.constant 0 : index
    %750 = vector.load %arg2[%749, %c0_543] : memref<1000x128xf32, #tpu.memory_space<vmem>>, vector<1x128xf32>
    %c5_544 = arith.constant 5 : index
    %c10_545 = arith.constant 10 : index
    %c0_546 = arith.constant 0 : index
    %751 = vector.load %arg11[%c5_544, %c10_545, %c0_546] : memref<8x24x128xf32, #tpu.memory_space<vmem>>, vector<1x1x128xf32>
    %752 = vector.shape_cast %751 : vector<1x1x128xf32> to vector<1x128xf32>
    %753 = vector.shape_cast %750 : vector<1x128xf32> to vector<1x1x128xf32>
    tpu.vector_store %arg11[%c5_544, %c10_545, %c0_546], %753 {strides = array<i32>} : memref<8x24x128xf32, #tpu.memory_space<vmem>>, vector<1x1x128xf32>,
    %c5_i32_547 = arith.constant 5 : i32
    %754 = arith.addi %0, %c5_i32_547 : i32
    %755 = arith.index_cast %754 : i32 to index
    %c11_548 = arith.constant 11 : index
    %756 = memref.load %arg1[%755, %c11_548] : memref<16x16xi32, #tpu.memory_space<smem>>
    %757 = arith.index_cast %756 : i32 to index
    %c0_549 = arith.constant 0 : index
    %758 = vector.load %arg2[%757, %c0_549] : memref<1000x128xf32, #tpu.memory_space<vmem>>, vector<1x128xf32>
    %c5_550 = arith.constant 5 : index
    %c11_551 = arith.constant 11 : index
    %c0_552 = arith.constant 0 : index
    %759 = vector.load %arg11[%c5_550, %c11_551, %c0_552] : memref<8x24x128xf32, #tpu.memory_space<vmem>>, vector<1x1x128xf32>
    %760 = vector.shape_cast %759 : vector<1x1x128xf32> to vector<1x128xf32>
    %761 = vector.shape_cast %758 : vector<1x128xf32> to vector<1x1x128xf32>
    tpu.vector_store %arg11[%c5_550, %c11_551, %c0_552], %761 {strides = array<i32>} : memref<8x24x128xf32, #tpu.memory_space<vmem>>, vector<1x1x128xf32>,
    %c5_i32_553 = arith.constant 5 : i32
    %762 = arith.addi %0, %c5_i32_553 : i32
    %763 = arith.index_cast %762 : i32 to index
    %c12_554 = arith.constant 12 : index
    %764 = memref.load %arg1[%763, %c12_554] : memref<16x16xi32, #tpu.memory_space<smem>>
    %765 = arith.index_cast %764 : i32 to index
    %c0_555 = arith.constant 0 : index
    %766 = vector.load %arg2[%765, %c0_555] : memref<1000x128xf32, #tpu.memory_space<vmem>>, vector<1x128xf32>
    %c5_556 = arith.constant 5 : index
    %c12_557 = arith.constant 12 : index
    %c0_558 = arith.constant 0 : index
    %767 = vector.load %arg11[%c5_556, %c12_557, %c0_558] : memref<8x24x128xf32, #tpu.memory_space<vmem>>, vector<1x1x128xf32>
    %768 = vector.shape_cast %767 : vector<1x1x128xf32> to vector<1x128xf32>
    %769 = vector.shape_cast %766 : vector<1x128xf32> to vector<1x1x128xf32>
    tpu.vector_store %arg11[%c5_556, %c12_557, %c0_558], %769 {strides = array<i32>} : memref<8x24x128xf32, #tpu.memory_space<vmem>>, vector<1x1x128xf32>,
    %c5_i32_559 = arith.constant 5 : i32
    %770 = arith.addi %0, %c5_i32_559 : i32
    %771 = arith.index_cast %770 : i32 to index
    %c13_560 = arith.constant 13 : index
    %772 = memref.load %arg1[%771, %c13_560] : memref<16x16xi32, #tpu.memory_space<smem>>
    %773 = arith.index_cast %772 : i32 to index
    %c0_561 = arith.constant 0 : index
    %774 = vector.load %arg2[%773, %c0_561] : memref<1000x128xf32, #tpu.memory_space<vmem>>, vector<1x128xf32>
    %c5_562 = arith.constant 5 : index
    %c13_563 = arith.constant 13 : index
    %c0_564 = arith.constant 0 : index
    %775 = vector.load %arg11[%c5_562, %c13_563, %c0_564] : memref<8x24x128xf32, #tpu.memory_space<vmem>>, vector<1x1x128xf32>
    %776 = vector.shape_cast %775 : vector<1x1x128xf32> to vector<1x128xf32>
    %777 = vector.shape_cast %774 : vector<1x128xf32> to vector<1x1x128xf32>
    tpu.vector_store %arg11[%c5_562, %c13_563, %c0_564], %777 {strides = array<i32>} : memref<8x24x128xf32, #tpu.memory_space<vmem>>, vector<1x1x128xf32>,
    %c5_i32_565 = arith.constant 5 : i32
    %778 = arith.addi %0, %c5_i32_565 : i32
    %779 = arith.index_cast %778 : i32 to index
    %c14_566 = arith.constant 14 : index
    %780 = memref.load %arg1[%779, %c14_566] : memref<16x16xi32, #tpu.memory_space<smem>>
    %781 = arith.index_cast %780 : i32 to index
    %c0_567 = arith.constant 0 : index
    %782 = vector.load %arg2[%781, %c0_567] : memref<1000x128xf32, #tpu.memory_space<vmem>>, vector<1x128xf32>
    %c5_568 = arith.constant 5 : index
    %c14_569 = arith.constant 14 : index
    %c0_570 = arith.constant 0 : index
    %783 = vector.load %arg11[%c5_568, %c14_569, %c0_570] : memref<8x24x128xf32, #tpu.memory_space<vmem>>, vector<1x1x128xf32>
    %784 = vector.shape_cast %783 : vector<1x1x128xf32> to vector<1x128xf32>
    %785 = vector.shape_cast %782 : vector<1x128xf32> to vector<1x1x128xf32>
    tpu.vector_store %arg11[%c5_568, %c14_569, %c0_570], %785 {strides = array<i32>} : memref<8x24x128xf32, #tpu.memory_space<vmem>>, vector<1x1x128xf32>,
    %c5_i32_571 = arith.constant 5 : i32
    %786 = arith.addi %0, %c5_i32_571 : i32
    %787 = arith.index_cast %786 : i32 to index
    %c15_572 = arith.constant 15 : index
    %788 = memref.load %arg1[%787, %c15_572] : memref<16x16xi32, #tpu.memory_space<smem>>
    %789 = arith.index_cast %788 : i32 to index
    %c0_573 = arith.constant 0 : index
    %790 = vector.load %arg2[%789, %c0_573] : memref<1000x128xf32, #tpu.memory_space<vmem>>, vector<1x128xf32>
    %c5_574 = arith.constant 5 : index
    %c15_575 = arith.constant 15 : index
    %c0_576 = arith.constant 0 : index
    %791 = vector.load %arg11[%c5_574, %c15_575, %c0_576] : memref<8x24x128xf32, #tpu.memory_space<vmem>>, vector<1x1x128xf32>
    %792 = vector.shape_cast %791 : vector<1x1x128xf32> to vector<1x128xf32>
    %793 = vector.shape_cast %790 : vector<1x128xf32> to vector<1x1x128xf32>
    tpu.vector_store %arg11[%c5_574, %c15_575, %c0_576], %793 {strides = array<i32>} : memref<8x24x128xf32, #tpu.memory_space<vmem>>, vector<1x1x128xf32>,
    %c6_i32 = arith.constant 6 : i32
    %794 = arith.addi %0, %c6_i32 : i32
    %795 = arith.index_cast %794 : i32 to index
    %c0_577 = arith.constant 0 : index
    %796 = memref.load %arg1[%795, %c0_577] : memref<16x16xi32, #tpu.memory_space<smem>>
    %797 = arith.index_cast %796 : i32 to index
    %c0_578 = arith.constant 0 : index
    %798 = vector.load %arg2[%797, %c0_578] : memref<1000x128xf32, #tpu.memory_space<vmem>>, vector<1x128xf32>
    %c6_579 = arith.constant 6 : index
    %c0_580 = arith.constant 0 : index
    %c0_581 = arith.constant 0 : index
    %799 = vector.load %arg11[%c6_579, %c0_580, %c0_581] : memref<8x24x128xf32, #tpu.memory_space<vmem>>, vector<1x1x128xf32>
    %800 = vector.shape_cast %799 : vector<1x1x128xf32> to vector<1x128xf32>
    %801 = vector.shape_cast %798 : vector<1x128xf32> to vector<1x1x128xf32>
    tpu.vector_store %arg11[%c6_579, %c0_580, %c0_581], %801 {strides = array<i32>} : memref<8x24x128xf32, #tpu.memory_space<vmem>>, vector<1x1x128xf32>,
    %c6_i32_582 = arith.constant 6 : i32
    %802 = arith.addi %0, %c6_i32_582 : i32
    %803 = arith.index_cast %802 : i32 to index
    %c1_583 = arith.constant 1 : index
    %804 = memref.load %arg1[%803, %c1_583] : memref<16x16xi32, #tpu.memory_space<smem>>
    %805 = arith.index_cast %804 : i32 to index
    %c0_584 = arith.constant 0 : index
    %806 = vector.load %arg2[%805, %c0_584] : memref<1000x128xf32, #tpu.memory_space<vmem>>, vector<1x128xf32>
    %c6_585 = arith.constant 6 : index
    %c1_586 = arith.constant 1 : index
    %c0_587 = arith.constant 0 : index
    %807 = vector.load %arg11[%c6_585, %c1_586, %c0_587] : memref<8x24x128xf32, #tpu.memory_space<vmem>>, vector<1x1x128xf32>
    %808 = vector.shape_cast %807 : vector<1x1x128xf32> to vector<1x128xf32>
    %809 = vector.shape_cast %806 : vector<1x128xf32> to vector<1x1x128xf32>
    tpu.vector_store %arg11[%c6_585, %c1_586, %c0_587], %809 {strides = array<i32>} : memref<8x24x128xf32, #tpu.memory_space<vmem>>, vector<1x1x128xf32>,
    %c6_i32_588 = arith.constant 6 : i32
    %810 = arith.addi %0, %c6_i32_588 : i32
    %811 = arith.index_cast %810 : i32 to index
    %c2_589 = arith.constant 2 : index
    %812 = memref.load %arg1[%811, %c2_589] : memref<16x16xi32, #tpu.memory_space<smem>>
    %813 = arith.index_cast %812 : i32 to index
    %c0_590 = arith.constant 0 : index
    %814 = vector.load %arg2[%813, %c0_590] : memref<1000x128xf32, #tpu.memory_space<vmem>>, vector<1x128xf32>
    %c6_591 = arith.constant 6 : index
    %c2_592 = arith.constant 2 : index
    %c0_593 = arith.constant 0 : index
    %815 = vector.load %arg11[%c6_591, %c2_592, %c0_593] : memref<8x24x128xf32, #tpu.memory_space<vmem>>, vector<1x1x128xf32>
    %816 = vector.shape_cast %815 : vector<1x1x128xf32> to vector<1x128xf32>
    %817 = vector.shape_cast %814 : vector<1x128xf32> to vector<1x1x128xf32>
    tpu.vector_store %arg11[%c6_591, %c2_592, %c0_593], %817 {strides = array<i32>} : memref<8x24x128xf32, #tpu.memory_space<vmem>>, vector<1x1x128xf32>,
    %c6_i32_594 = arith.constant 6 : i32
    %818 = arith.addi %0, %c6_i32_594 : i32
    %819 = arith.index_cast %818 : i32 to index
    %c3_595 = arith.constant 3 : index
    %820 = memref.load %arg1[%819, %c3_595] : memref<16x16xi32, #tpu.memory_space<smem>>
    %821 = arith.index_cast %820 : i32 to index
    %c0_596 = arith.constant 0 : index
    %822 = vector.load %arg2[%821, %c0_596] : memref<1000x128xf32, #tpu.memory_space<vmem>>, vector<1x128xf32>
    %c6_597 = arith.constant 6 : index
    %c3_598 = arith.constant 3 : index
    %c0_599 = arith.constant 0 : index
    %823 = vector.load %arg11[%c6_597, %c3_598, %c0_599] : memref<8x24x128xf32, #tpu.memory_space<vmem>>, vector<1x1x128xf32>
    %824 = vector.shape_cast %823 : vector<1x1x128xf32> to vector<1x128xf32>
    %825 = vector.shape_cast %822 : vector<1x128xf32> to vector<1x1x128xf32>
    tpu.vector_store %arg11[%c6_597, %c3_598, %c0_599], %825 {strides = array<i32>} : memref<8x24x128xf32, #tpu.memory_space<vmem>>, vector<1x1x128xf32>,
    %c6_i32_600 = arith.constant 6 : i32
    %826 = arith.addi %0, %c6_i32_600 : i32
    %827 = arith.index_cast %826 : i32 to index
    %c4_601 = arith.constant 4 : index
    %828 = memref.load %arg1[%827, %c4_601] : memref<16x16xi32, #tpu.memory_space<smem>>
    %829 = arith.index_cast %828 : i32 to index
    %c0_602 = arith.constant 0 : index
    %830 = vector.load %arg2[%829, %c0_602] : memref<1000x128xf32, #tpu.memory_space<vmem>>, vector<1x128xf32>
    %c6_603 = arith.constant 6 : index
    %c4_604 = arith.constant 4 : index
    %c0_605 = arith.constant 0 : index
    %831 = vector.load %arg11[%c6_603, %c4_604, %c0_605] : memref<8x24x128xf32, #tpu.memory_space<vmem>>, vector<1x1x128xf32>
    %832 = vector.shape_cast %831 : vector<1x1x128xf32> to vector<1x128xf32>
    %833 = vector.shape_cast %830 : vector<1x128xf32> to vector<1x1x128xf32>
    tpu.vector_store %arg11[%c6_603, %c4_604, %c0_605], %833 {strides = array<i32>} : memref<8x24x128xf32, #tpu.memory_space<vmem>>, vector<1x1x128xf32>,
    %c6_i32_606 = arith.constant 6 : i32
    %834 = arith.addi %0, %c6_i32_606 : i32
    %835 = arith.index_cast %834 : i32 to index
    %c5_607 = arith.constant 5 : index
    %836 = memref.load %arg1[%835, %c5_607] : memref<16x16xi32, #tpu.memory_space<smem>>
    %837 = arith.index_cast %836 : i32 to index
    %c0_608 = arith.constant 0 : index
    %838 = vector.load %arg2[%837, %c0_608] : memref<1000x128xf32, #tpu.memory_space<vmem>>, vector<1x128xf32>
    %c6_609 = arith.constant 6 : index
    %c5_610 = arith.constant 5 : index
    %c0_611 = arith.constant 0 : index
    %839 = vector.load %arg11[%c6_609, %c5_610, %c0_611] : memref<8x24x128xf32, #tpu.memory_space<vmem>>, vector<1x1x128xf32>
    %840 = vector.shape_cast %839 : vector<1x1x128xf32> to vector<1x128xf32>
    %841 = vector.shape_cast %838 : vector<1x128xf32> to vector<1x1x128xf32>
    tpu.vector_store %arg11[%c6_609, %c5_610, %c0_611], %841 {strides = array<i32>} : memref<8x24x128xf32, #tpu.memory_space<vmem>>, vector<1x1x128xf32>,
    %c6_i32_612 = arith.constant 6 : i32
    %842 = arith.addi %0, %c6_i32_612 : i32
    %843 = arith.index_cast %842 : i32 to index
    %c6_613 = arith.constant 6 : index
    %844 = memref.load %arg1[%843, %c6_613] : memref<16x16xi32, #tpu.memory_space<smem>>
    %845 = arith.index_cast %844 : i32 to index
    %c0_614 = arith.constant 0 : index
    %846 = vector.load %arg2[%845, %c0_614] : memref<1000x128xf32, #tpu.memory_space<vmem>>, vector<1x128xf32>
    %c6_615 = arith.constant 6 : index
    %c6_616 = arith.constant 6 : index
    %c0_617 = arith.constant 0 : index
    %847 = vector.load %arg11[%c6_615, %c6_616, %c0_617] : memref<8x24x128xf32, #tpu.memory_space<vmem>>, vector<1x1x128xf32>
    %848 = vector.shape_cast %847 : vector<1x1x128xf32> to vector<1x128xf32>
    %849 = vector.shape_cast %846 : vector<1x128xf32> to vector<1x1x128xf32>
    tpu.vector_store %arg11[%c6_615, %c6_616, %c0_617], %849 {strides = array<i32>} : memref<8x24x128xf32, #tpu.memory_space<vmem>>, vector<1x1x128xf32>,
    %c6_i32_618 = arith.constant 6 : i32
    %850 = arith.addi %0, %c6_i32_618 : i32
    %851 = arith.index_cast %850 : i32 to index
    %c7_619 = arith.constant 7 : index
    %852 = memref.load %arg1[%851, %c7_619] : memref<16x16xi32, #tpu.memory_space<smem>>
    %853 = arith.index_cast %852 : i32 to index
    %c0_620 = arith.constant 0 : index
    %854 = vector.load %arg2[%853, %c0_620] : memref<1000x128xf32, #tpu.memory_space<vmem>>, vector<1x128xf32>
    %c6_621 = arith.constant 6 : index
    %c7_622 = arith.constant 7 : index
    %c0_623 = arith.constant 0 : index
    %855 = vector.load %arg11[%c6_621, %c7_622, %c0_623] : memref<8x24x128xf32, #tpu.memory_space<vmem>>, vector<1x1x128xf32>
    %856 = vector.shape_cast %855 : vector<1x1x128xf32> to vector<1x128xf32>
    %857 = vector.shape_cast %854 : vector<1x128xf32> to vector<1x1x128xf32>
    tpu.vector_store %arg11[%c6_621, %c7_622, %c0_623], %857 {strides = array<i32>} : memref<8x24x128xf32, #tpu.memory_space<vmem>>, vector<1x1x128xf32>,
    %c6_i32_624 = arith.constant 6 : i32
    %858 = arith.addi %0, %c6_i32_624 : i32
    %859 = arith.index_cast %858 : i32 to index
    %c8_625 = arith.constant 8 : index
    %860 = memref.load %arg1[%859, %c8_625] : memref<16x16xi32, #tpu.memory_space<smem>>
    %861 = arith.index_cast %860 : i32 to index
    %c0_626 = arith.constant 0 : index
    %862 = vector.load %arg2[%861, %c0_626] : memref<1000x128xf32, #tpu.memory_space<vmem>>, vector<1x128xf32>
    %c6_627 = arith.constant 6 : index
    %c8_628 = arith.constant 8 : index
    %c0_629 = arith.constant 0 : index
    %863 = vector.load %arg11[%c6_627, %c8_628, %c0_629] : memref<8x24x128xf32, #tpu.memory_space<vmem>>, vector<1x1x128xf32>
    %864 = vector.shape_cast %863 : vector<1x1x128xf32> to vector<1x128xf32>
    %865 = vector.shape_cast %862 : vector<1x128xf32> to vector<1x1x128xf32>
    tpu.vector_store %arg11[%c6_627, %c8_628, %c0_629], %865 {strides = array<i32>} : memref<8x24x128xf32, #tpu.memory_space<vmem>>, vector<1x1x128xf32>,
    %c6_i32_630 = arith.constant 6 : i32
    %866 = arith.addi %0, %c6_i32_630 : i32
    %867 = arith.index_cast %866 : i32 to index
    %c9_631 = arith.constant 9 : index
    %868 = memref.load %arg1[%867, %c9_631] : memref<16x16xi32, #tpu.memory_space<smem>>
    %869 = arith.index_cast %868 : i32 to index
    %c0_632 = arith.constant 0 : index
    %870 = vector.load %arg2[%869, %c0_632] : memref<1000x128xf32, #tpu.memory_space<vmem>>, vector<1x128xf32>
    %c6_633 = arith.constant 6 : index
    %c9_634 = arith.constant 9 : index
    %c0_635 = arith.constant 0 : index
    %871 = vector.load %arg11[%c6_633, %c9_634, %c0_635] : memref<8x24x128xf32, #tpu.memory_space<vmem>>, vector<1x1x128xf32>
    %872 = vector.shape_cast %871 : vector<1x1x128xf32> to vector<1x128xf32>
    %873 = vector.shape_cast %870 : vector<1x128xf32> to vector<1x1x128xf32>
    tpu.vector_store %arg11[%c6_633, %c9_634, %c0_635], %873 {strides = array<i32>} : memref<8x24x128xf32, #tpu.memory_space<vmem>>, vector<1x1x128xf32>,
    %c6_i32_636 = arith.constant 6 : i32
    %874 = arith.addi %0, %c6_i32_636 : i32
    %875 = arith.index_cast %874 : i32 to index
    %c10_637 = arith.constant 10 : index
    %876 = memref.load %arg1[%875, %c10_637] : memref<16x16xi32, #tpu.memory_space<smem>>
    %877 = arith.index_cast %876 : i32 to index
    %c0_638 = arith.constant 0 : index
    %878 = vector.load %arg2[%877, %c0_638] : memref<1000x128xf32, #tpu.memory_space<vmem>>, vector<1x128xf32>
    %c6_639 = arith.constant 6 : index
    %c10_640 = arith.constant 10 : index
    %c0_641 = arith.constant 0 : index
    %879 = vector.load %arg11[%c6_639, %c10_640, %c0_641] : memref<8x24x128xf32, #tpu.memory_space<vmem>>, vector<1x1x128xf32>
    %880 = vector.shape_cast %879 : vector<1x1x128xf32> to vector<1x128xf32>
    %881 = vector.shape_cast %878 : vector<1x128xf32> to vector<1x1x128xf32>
    tpu.vector_store %arg11[%c6_639, %c10_640, %c0_641], %881 {strides = array<i32>} : memref<8x24x128xf32, #tpu.memory_space<vmem>>, vector<1x1x128xf32>,
    %c6_i32_642 = arith.constant 6 : i32
    %882 = arith.addi %0, %c6_i32_642 : i32
    %883 = arith.index_cast %882 : i32 to index
    %c11_643 = arith.constant 11 : index
    %884 = memref.load %arg1[%883, %c11_643] : memref<16x16xi32, #tpu.memory_space<smem>>
    %885 = arith.index_cast %884 : i32 to index
    %c0_644 = arith.constant 0 : index
    %886 = vector.load %arg2[%885, %c0_644] : memref<1000x128xf32, #tpu.memory_space<vmem>>, vector<1x128xf32>
    %c6_645 = arith.constant 6 : index
    %c11_646 = arith.constant 11 : index
    %c0_647 = arith.constant 0 : index
    %887 = vector.load %arg11[%c6_645, %c11_646, %c0_647] : memref<8x24x128xf32, #tpu.memory_space<vmem>>, vector<1x1x128xf32>
    %888 = vector.shape_cast %887 : vector<1x1x128xf32> to vector<1x128xf32>
    %889 = vector.shape_cast %886 : vector<1x128xf32> to vector<1x1x128xf32>
    tpu.vector_store %arg11[%c6_645, %c11_646, %c0_647], %889 {strides = array<i32>} : memref<8x24x128xf32, #tpu.memory_space<vmem>>, vector<1x1x128xf32>,
    %c6_i32_648 = arith.constant 6 : i32
    %890 = arith.addi %0, %c6_i32_648 : i32
    %891 = arith.index_cast %890 : i32 to index
    %c12_649 = arith.constant 12 : index
    %892 = memref.load %arg1[%891, %c12_649] : memref<16x16xi32, #tpu.memory_space<smem>>
    %893 = arith.index_cast %892 : i32 to index
    %c0_650 = arith.constant 0 : index
    %894 = vector.load %arg2[%893, %c0_650] : memref<1000x128xf32, #tpu.memory_space<vmem>>, vector<1x128xf32>
    %c6_651 = arith.constant 6 : index
    %c12_652 = arith.constant 12 : index
    %c0_653 = arith.constant 0 : index
    %895 = vector.load %arg11[%c6_651, %c12_652, %c0_653] : memref<8x24x128xf32, #tpu.memory_space<vmem>>, vector<1x1x128xf32>
    %896 = vector.shape_cast %895 : vector<1x1x128xf32> to vector<1x128xf32>
    %897 = vector.shape_cast %894 : vector<1x128xf32> to vector<1x1x128xf32>
    tpu.vector_store %arg11[%c6_651, %c12_652, %c0_653], %897 {strides = array<i32>} : memref<8x24x128xf32, #tpu.memory_space<vmem>>, vector<1x1x128xf32>,
    %c6_i32_654 = arith.constant 6 : i32
    %898 = arith.addi %0, %c6_i32_654 : i32
    %899 = arith.index_cast %898 : i32 to index
    %c13_655 = arith.constant 13 : index
    %900 = memref.load %arg1[%899, %c13_655] : memref<16x16xi32, #tpu.memory_space<smem>>
    %901 = arith.index_cast %900 : i32 to index
    %c0_656 = arith.constant 0 : index
    %902 = vector.load %arg2[%901, %c0_656] : memref<1000x128xf32, #tpu.memory_space<vmem>>, vector<1x128xf32>
    %c6_657 = arith.constant 6 : index
    %c13_658 = arith.constant 13 : index
    %c0_659 = arith.constant 0 : index
    %903 = vector.load %arg11[%c6_657, %c13_658, %c0_659] : memref<8x24x128xf32, #tpu.memory_space<vmem>>, vector<1x1x128xf32>
    %904 = vector.shape_cast %903 : vector<1x1x128xf32> to vector<1x128xf32>
    %905 = vector.shape_cast %902 : vector<1x128xf32> to vector<1x1x128xf32>
    tpu.vector_store %arg11[%c6_657, %c13_658, %c0_659], %905 {strides = array<i32>} : memref<8x24x128xf32, #tpu.memory_space<vmem>>, vector<1x1x128xf32>,
    %c6_i32_660 = arith.constant 6 : i32
    %906 = arith.addi %0, %c6_i32_660 : i32
    %907 = arith.index_cast %906 : i32 to index
    %c14_661 = arith.constant 14 : index
    %908 = memref.load %arg1[%907, %c14_661] : memref<16x16xi32, #tpu.memory_space<smem>>
    %909 = arith.index_cast %908 : i32 to index
    %c0_662 = arith.constant 0 : index
    %910 = vector.load %arg2[%909, %c0_662] : memref<1000x128xf32, #tpu.memory_space<vmem>>, vector<1x128xf32>
    %c6_663 = arith.constant 6 : index
    %c14_664 = arith.constant 14 : index
    %c0_665 = arith.constant 0 : index
    %911 = vector.load %arg11[%c6_663, %c14_664, %c0_665] : memref<8x24x128xf32, #tpu.memory_space<vmem>>, vector<1x1x128xf32>
    %912 = vector.shape_cast %911 : vector<1x1x128xf32> to vector<1x128xf32>
    %913 = vector.shape_cast %910 : vector<1x128xf32> to vector<1x1x128xf32>
    tpu.vector_store %arg11[%c6_663, %c14_664, %c0_665], %913 {strides = array<i32>} : memref<8x24x128xf32, #tpu.memory_space<vmem>>, vector<1x1x128xf32>,
    %c6_i32_666 = arith.constant 6 : i32
    %914 = arith.addi %0, %c6_i32_666 : i32
    %915 = arith.index_cast %914 : i32 to index
    %c15_667 = arith.constant 15 : index
    %916 = memref.load %arg1[%915, %c15_667] : memref<16x16xi32, #tpu.memory_space<smem>>
    %917 = arith.index_cast %916 : i32 to index
    %c0_668 = arith.constant 0 : index
    %918 = vector.load %arg2[%917, %c0_668] : memref<1000x128xf32, #tpu.memory_space<vmem>>, vector<1x128xf32>
    %c6_669 = arith.constant 6 : index
    %c15_670 = arith.constant 15 : index
    %c0_671 = arith.constant 0 : index
    %919 = vector.load %arg11[%c6_669, %c15_670, %c0_671] : memref<8x24x128xf32, #tpu.memory_space<vmem>>, vector<1x1x128xf32>
    %920 = vector.shape_cast %919 : vector<1x1x128xf32> to vector<1x128xf32>
    %921 = vector.shape_cast %918 : vector<1x128xf32> to vector<1x1x128xf32>
    tpu.vector_store %arg11[%c6_669, %c15_670, %c0_671], %921 {strides = array<i32>} : memref<8x24x128xf32, #tpu.memory_space<vmem>>, vector<1x1x128xf32>,
    %c7_i32 = arith.constant 7 : i32
    %922 = arith.addi %0, %c7_i32 : i32
    %923 = arith.index_cast %922 : i32 to index
    %c0_672 = arith.constant 0 : index
    %924 = memref.load %arg1[%923, %c0_672] : memref<16x16xi32, #tpu.memory_space<smem>>
    %925 = arith.index_cast %924 : i32 to index
    %c0_673 = arith.constant 0 : index
    %926 = vector.load %arg2[%925, %c0_673] : memref<1000x128xf32, #tpu.memory_space<vmem>>, vector<1x128xf32>
    %c7_674 = arith.constant 7 : index
    %c0_675 = arith.constant 0 : index
    %c0_676 = arith.constant 0 : index
    %927 = vector.load %arg11[%c7_674, %c0_675, %c0_676] : memref<8x24x128xf32, #tpu.memory_space<vmem>>, vector<1x1x128xf32>
    %928 = vector.shape_cast %927 : vector<1x1x128xf32> to vector<1x128xf32>
    %929 = vector.shape_cast %926 : vector<1x128xf32> to vector<1x1x128xf32>
    tpu.vector_store %arg11[%c7_674, %c0_675, %c0_676], %929 {strides = array<i32>} : memref<8x24x128xf32, #tpu.memory_space<vmem>>, vector<1x1x128xf32>,
    %c7_i32_677 = arith.constant 7 : i32
    %930 = arith.addi %0, %c7_i32_677 : i32
    %931 = arith.index_cast %930 : i32 to index
    %c1_678 = arith.constant 1 : index
    %932 = memref.load %arg1[%931, %c1_678] : memref<16x16xi32, #tpu.memory_space<smem>>
    %933 = arith.index_cast %932 : i32 to index
    %c0_679 = arith.constant 0 : index
    %934 = vector.load %arg2[%933, %c0_679] : memref<1000x128xf32, #tpu.memory_space<vmem>>, vector<1x128xf32>
    %c7_680 = arith.constant 7 : index
    %c1_681 = arith.constant 1 : index
    %c0_682 = arith.constant 0 : index
    %935 = vector.load %arg11[%c7_680, %c1_681, %c0_682] : memref<8x24x128xf32, #tpu.memory_space<vmem>>, vector<1x1x128xf32>
    %936 = vector.shape_cast %935 : vector<1x1x128xf32> to vector<1x128xf32>
    %937 = vector.shape_cast %934 : vector<1x128xf32> to vector<1x1x128xf32>
    tpu.vector_store %arg11[%c7_680, %c1_681, %c0_682], %937 {strides = array<i32>} : memref<8x24x128xf32, #tpu.memory_space<vmem>>, vector<1x1x128xf32>,
    %c7_i32_683 = arith.constant 7 : i32
    %938 = arith.addi %0, %c7_i32_683 : i32
    %939 = arith.index_cast %938 : i32 to index
    %c2_684 = arith.constant 2 : index
    %940 = memref.load %arg1[%939, %c2_684] : memref<16x16xi32, #tpu.memory_space<smem>>
    %941 = arith.index_cast %940 : i32 to index
    %c0_685 = arith.constant 0 : index
    %942 = vector.load %arg2[%941, %c0_685] : memref<1000x128xf32, #tpu.memory_space<vmem>>, vector<1x128xf32>
    %c7_686 = arith.constant 7 : index
    %c2_687 = arith.constant 2 : index
    %c0_688 = arith.constant 0 : index
    %943 = vector.load %arg11[%c7_686, %c2_687, %c0_688] : memref<8x24x128xf32, #tpu.memory_space<vmem>>, vector<1x1x128xf32>
    %944 = vector.shape_cast %943 : vector<1x1x128xf32> to vector<1x128xf32>
    %945 = vector.shape_cast %942 : vector<1x128xf32> to vector<1x1x128xf32>
    tpu.vector_store %arg11[%c7_686, %c2_687, %c0_688], %945 {strides = array<i32>} : memref<8x24x128xf32, #tpu.memory_space<vmem>>, vector<1x1x128xf32>,
    %c7_i32_689 = arith.constant 7 : i32
    %946 = arith.addi %0, %c7_i32_689 : i32
    %947 = arith.index_cast %946 : i32 to index
    %c3_690 = arith.constant 3 : index
    %948 = memref.load %arg1[%947, %c3_690] : memref<16x16xi32, #tpu.memory_space<smem>>
    %949 = arith.index_cast %948 : i32 to index
    %c0_691 = arith.constant 0 : index
    %950 = vector.load %arg2[%949, %c0_691] : memref<1000x128xf32, #tpu.memory_space<vmem>>, vector<1x128xf32>
    %c7_692 = arith.constant 7 : index
    %c3_693 = arith.constant 3 : index
    %c0_694 = arith.constant 0 : index
    %951 = vector.load %arg11[%c7_692, %c3_693, %c0_694] : memref<8x24x128xf32, #tpu.memory_space<vmem>>, vector<1x1x128xf32>
    %952 = vector.shape_cast %951 : vector<1x1x128xf32> to vector<1x128xf32>
    %953 = vector.shape_cast %950 : vector<1x128xf32> to vector<1x1x128xf32>
    tpu.vector_store %arg11[%c7_692, %c3_693, %c0_694], %953 {strides = array<i32>} : memref<8x24x128xf32, #tpu.memory_space<vmem>>, vector<1x1x128xf32>,
    %c7_i32_695 = arith.constant 7 : i32
    %954 = arith.addi %0, %c7_i32_695 : i32
    %955 = arith.index_cast %954 : i32 to index
    %c4_696 = arith.constant 4 : index
    %956 = memref.load %arg1[%955, %c4_696] : memref<16x16xi32, #tpu.memory_space<smem>>
    %957 = arith.index_cast %956 : i32 to index
    %c0_697 = arith.constant 0 : index
    %958 = vector.load %arg2[%957, %c0_697] : memref<1000x128xf32, #tpu.memory_space<vmem>>, vector<1x128xf32>
    %c7_698 = arith.constant 7 : index
    %c4_699 = arith.constant 4 : index
    %c0_700 = arith.constant 0 : index
    %959 = vector.load %arg11[%c7_698, %c4_699, %c0_700] : memref<8x24x128xf32, #tpu.memory_space<vmem>>, vector<1x1x128xf32>
    %960 = vector.shape_cast %959 : vector<1x1x128xf32> to vector<1x128xf32>
    %961 = vector.shape_cast %958 : vector<1x128xf32> to vector<1x1x128xf32>
    tpu.vector_store %arg11[%c7_698, %c4_699, %c0_700], %961 {strides = array<i32>} : memref<8x24x128xf32, #tpu.memory_space<vmem>>, vector<1x1x128xf32>,
    %c7_i32_701 = arith.constant 7 : i32
    %962 = arith.addi %0, %c7_i32_701 : i32
    %963 = arith.index_cast %962 : i32 to index
    %c5_702 = arith.constant 5 : index
    %964 = memref.load %arg1[%963, %c5_702] : memref<16x16xi32, #tpu.memory_space<smem>>
    %965 = arith.index_cast %964 : i32 to index
    %c0_703 = arith.constant 0 : index
    %966 = vector.load %arg2[%965, %c0_703] : memref<1000x128xf32, #tpu.memory_space<vmem>>, vector<1x128xf32>
    %c7_704 = arith.constant 7 : index
    %c5_705 = arith.constant 5 : index
    %c0_706 = arith.constant 0 : index
    %967 = vector.load %arg11[%c7_704, %c5_705, %c0_706] : memref<8x24x128xf32, #tpu.memory_space<vmem>>, vector<1x1x128xf32>
    %968 = vector.shape_cast %967 : vector<1x1x128xf32> to vector<1x128xf32>
    %969 = vector.shape_cast %966 : vector<1x128xf32> to vector<1x1x128xf32>
    tpu.vector_store %arg11[%c7_704, %c5_705, %c0_706], %969 {strides = array<i32>} : memref<8x24x128xf32, #tpu.memory_space<vmem>>, vector<1x1x128xf32>,
    %c7_i32_707 = arith.constant 7 : i32
    %970 = arith.addi %0, %c7_i32_707 : i32
    %971 = arith.index_cast %970 : i32 to index
    %c6_708 = arith.constant 6 : index
    %972 = memref.load %arg1[%971, %c6_708] : memref<16x16xi32, #tpu.memory_space<smem>>
    %973 = arith.index_cast %972 : i32 to index
    %c0_709 = arith.constant 0 : index
    %974 = vector.load %arg2[%973, %c0_709] : memref<1000x128xf32, #tpu.memory_space<vmem>>, vector<1x128xf32>
    %c7_710 = arith.constant 7 : index
    %c6_711 = arith.constant 6 : index
    %c0_712 = arith.constant 0 : index
    %975 = vector.load %arg11[%c7_710, %c6_711, %c0_712] : memref<8x24x128xf32, #tpu.memory_space<vmem>>, vector<1x1x128xf32>
    %976 = vector.shape_cast %975 : vector<1x1x128xf32> to vector<1x128xf32>
    %977 = vector.shape_cast %974 : vector<1x128xf32> to vector<1x1x128xf32>
    tpu.vector_store %arg11[%c7_710, %c6_711, %c0_712], %977 {strides = array<i32>} : memref<8x24x128xf32, #tpu.memory_space<vmem>>, vector<1x1x128xf32>,
    %c7_i32_713 = arith.constant 7 : i32
    %978 = arith.addi %0, %c7_i32_713 : i32
    %979 = arith.index_cast %978 : i32 to index
    %c7_714 = arith.constant 7 : index
    %980 = memref.load %arg1[%979, %c7_714] : memref<16x16xi32, #tpu.memory_space<smem>>
    %981 = arith.index_cast %980 : i32 to index
    %c0_715 = arith.constant 0 : index
    %982 = vector.load %arg2[%981, %c0_715] : memref<1000x128xf32, #tpu.memory_space<vmem>>, vector<1x128xf32>
    %c7_716 = arith.constant 7 : index
    %c7_717 = arith.constant 7 : index
    %c0_718 = arith.constant 0 : index
    %983 = vector.load %arg11[%c7_716, %c7_717, %c0_718] : memref<8x24x128xf32, #tpu.memory_space<vmem>>, vector<1x1x128xf32>
    %984 = vector.shape_cast %983 : vector<1x1x128xf32> to vector<1x128xf32>
    %985 = vector.shape_cast %982 : vector<1x128xf32> to vector<1x1x128xf32>
    tpu.vector_store %arg11[%c7_716, %c7_717, %c0_718], %985 {strides = array<i32>} : memref<8x24x128xf32, #tpu.memory_space<vmem>>, vector<1x1x128xf32>,
    %c7_i32_719 = arith.constant 7 : i32
    %986 = arith.addi %0, %c7_i32_719 : i32
    %987 = arith.index_cast %986 : i32 to index
    %c8_720 = arith.constant 8 : index
    %988 = memref.load %arg1[%987, %c8_720] : memref<16x16xi32, #tpu.memory_space<smem>>
    %989 = arith.index_cast %988 : i32 to index
    %c0_721 = arith.constant 0 : index
    %990 = vector.load %arg2[%989, %c0_721] : memref<1000x128xf32, #tpu.memory_space<vmem>>, vector<1x128xf32>
    %c7_722 = arith.constant 7 : index
    %c8_723 = arith.constant 8 : index
    %c0_724 = arith.constant 0 : index
    %991 = vector.load %arg11[%c7_722, %c8_723, %c0_724] : memref<8x24x128xf32, #tpu.memory_space<vmem>>, vector<1x1x128xf32>
    %992 = vector.shape_cast %991 : vector<1x1x128xf32> to vector<1x128xf32>
    %993 = vector.shape_cast %990 : vector<1x128xf32> to vector<1x1x128xf32>
    tpu.vector_store %arg11[%c7_722, %c8_723, %c0_724], %993 {strides = array<i32>} : memref<8x24x128xf32, #tpu.memory_space<vmem>>, vector<1x1x128xf32>,
    %c7_i32_725 = arith.constant 7 : i32
    %994 = arith.addi %0, %c7_i32_725 : i32
    %995 = arith.index_cast %994 : i32 to index
    %c9_726 = arith.constant 9 : index
    %996 = memref.load %arg1[%995, %c9_726] : memref<16x16xi32, #tpu.memory_space<smem>>
    %997 = arith.index_cast %996 : i32 to index
    %c0_727 = arith.constant 0 : index
    %998 = vector.load %arg2[%997, %c0_727] : memref<1000x128xf32, #tpu.memory_space<vmem>>, vector<1x128xf32>
    %c7_728 = arith.constant 7 : index
    %c9_729 = arith.constant 9 : index
    %c0_730 = arith.constant 0 : index
    %999 = vector.load %arg11[%c7_728, %c9_729, %c0_730] : memref<8x24x128xf32, #tpu.memory_space<vmem>>, vector<1x1x128xf32>
    %1000 = vector.shape_cast %999 : vector<1x1x128xf32> to vector<1x128xf32>
    %1001 = vector.shape_cast %998 : vector<1x128xf32> to vector<1x1x128xf32>
    tpu.vector_store %arg11[%c7_728, %c9_729, %c0_730], %1001 {strides = array<i32>} : memref<8x24x128xf32, #tpu.memory_space<vmem>>, vector<1x1x128xf32>,
    %c7_i32_731 = arith.constant 7 : i32
    %1002 = arith.addi %0, %c7_i32_731 : i32
    %1003 = arith.index_cast %1002 : i32 to index
    %c10_732 = arith.constant 10 : index
    %1004 = memref.load %arg1[%1003, %c10_732] : memref<16x16xi32, #tpu.memory_space<smem>>
    %1005 = arith.index_cast %1004 : i32 to index
    %c0_733 = arith.constant 0 : index
    %1006 = vector.load %arg2[%1005, %c0_733] : memref<1000x128xf32, #tpu.memory_space<vmem>>, vector<1x128xf32>
    %c7_734 = arith.constant 7 : index
    %c10_735 = arith.constant 10 : index
    %c0_736 = arith.constant 0 : index
    %1007 = vector.load %arg11[%c7_734, %c10_735, %c0_736] : memref<8x24x128xf32, #tpu.memory_space<vmem>>, vector<1x1x128xf32>
    %1008 = vector.shape_cast %1007 : vector<1x1x128xf32> to vector<1x128xf32>
    %1009 = vector.shape_cast %1006 : vector<1x128xf32> to vector<1x1x128xf32>
    tpu.vector_store %arg11[%c7_734, %c10_735, %c0_736], %1009 {strides = array<i32>} : memref<8x24x128xf32, #tpu.memory_space<vmem>>, vector<1x1x128xf32>,
    %c7_i32_737 = arith.constant 7 : i32
    %1010 = arith.addi %0, %c7_i32_737 : i32
    %1011 = arith.index_cast %1010 : i32 to index
    %c11_738 = arith.constant 11 : index
    %1012 = memref.load %arg1[%1011, %c11_738] : memref<16x16xi32, #tpu.memory_space<smem>>
    %1013 = arith.index_cast %1012 : i32 to index
    %c0_739 = arith.constant 0 : index
    %1014 = vector.load %arg2[%1013, %c0_739] : memref<1000x128xf32, #tpu.memory_space<vmem>>, vector<1x128xf32>
    %c7_740 = arith.constant 7 : index
    %c11_741 = arith.constant 11 : index
    %c0_742 = arith.constant 0 : index
    %1015 = vector.load %arg11[%c7_740, %c11_741, %c0_742] : memref<8x24x128xf32, #tpu.memory_space<vmem>>, vector<1x1x128xf32>
    %1016 = vector.shape_cast %1015 : vector<1x1x128xf32> to vector<1x128xf32>
    %1017 = vector.shape_cast %1014 : vector<1x128xf32> to vector<1x1x128xf32>
    tpu.vector_store %arg11[%c7_740, %c11_741, %c0_742], %1017 {strides = array<i32>} : memref<8x24x128xf32, #tpu.memory_space<vmem>>, vector<1x1x128xf32>,
    %c7_i32_743 = arith.constant 7 : i32
    %1018 = arith.addi %0, %c7_i32_743 : i32
    %1019 = arith.index_cast %1018 : i32 to index
    %c12_744 = arith.constant 12 : index
    %1020 = memref.load %arg1[%1019, %c12_744] : memref<16x16xi32, #tpu.memory_space<smem>>
    %1021 = arith.index_cast %1020 : i32 to index
    %c0_745 = arith.constant 0 : index
    %1022 = vector.load %arg2[%1021, %c0_745] : memref<1000x128xf32, #tpu.memory_space<vmem>>, vector<1x128xf32>
    %c7_746 = arith.constant 7 : index
    %c12_747 = arith.constant 12 : index
    %c0_748 = arith.constant 0 : index
    %1023 = vector.load %arg11[%c7_746, %c12_747, %c0_748] : memref<8x24x128xf32, #tpu.memory_space<vmem>>, vector<1x1x128xf32>
    %1024 = vector.shape_cast %1023 : vector<1x1x128xf32> to vector<1x128xf32>
    %1025 = vector.shape_cast %1022 : vector<1x128xf32> to vector<1x1x128xf32>
    tpu.vector_store %arg11[%c7_746, %c12_747, %c0_748], %1025 {strides = array<i32>} : memref<8x24x128xf32, #tpu.memory_space<vmem>>, vector<1x1x128xf32>,
    %c7_i32_749 = arith.constant 7 : i32
    %1026 = arith.addi %0, %c7_i32_749 : i32
    %1027 = arith.index_cast %1026 : i32 to index
    %c13_750 = arith.constant 13 : index
    %1028 = memref.load %arg1[%1027, %c13_750] : memref<16x16xi32, #tpu.memory_space<smem>>
    %1029 = arith.index_cast %1028 : i32 to index
    %c0_751 = arith.constant 0 : index
    %1030 = vector.load %arg2[%1029, %c0_751] : memref<1000x128xf32, #tpu.memory_space<vmem>>, vector<1x128xf32>
    %c7_752 = arith.constant 7 : index
    %c13_753 = arith.constant 13 : index
    %c0_754 = arith.constant 0 : index
    %1031 = vector.load %arg11[%c7_752, %c13_753, %c0_754] : memref<8x24x128xf32, #tpu.memory_space<vmem>>, vector<1x1x128xf32>
    %1032 = vector.shape_cast %1031 : vector<1x1x128xf32> to vector<1x128xf32>
    %1033 = vector.shape_cast %1030 : vector<1x128xf32> to vector<1x1x128xf32>
    tpu.vector_store %arg11[%c7_752, %c13_753, %c0_754], %1033 {strides = array<i32>} : memref<8x24x128xf32, #tpu.memory_space<vmem>>, vector<1x1x128xf32>,
    %c7_i32_755 = arith.constant 7 : i32
    %1034 = arith.addi %0, %c7_i32_755 : i32
    %1035 = arith.index_cast %1034 : i32 to index
    %c14_756 = arith.constant 14 : index
    %1036 = memref.load %arg1[%1035, %c14_756] : memref<16x16xi32, #tpu.memory_space<smem>>
    %1037 = arith.index_cast %1036 : i32 to index
    %c0_757 = arith.constant 0 : index
    %1038 = vector.load %arg2[%1037, %c0_757] : memref<1000x128xf32, #tpu.memory_space<vmem>>, vector<1x128xf32>
    %c7_758 = arith.constant 7 : index
    %c14_759 = arith.constant 14 : index
    %c0_760 = arith.constant 0 : index
    %1039 = vector.load %arg11[%c7_758, %c14_759, %c0_760] : memref<8x24x128xf32, #tpu.memory_space<vmem>>, vector<1x1x128xf32>
    %1040 = vector.shape_cast %1039 : vector<1x1x128xf32> to vector<1x128xf32>
    %1041 = vector.shape_cast %1038 : vector<1x128xf32> to vector<1x1x128xf32>
    tpu.vector_store %arg11[%c7_758, %c14_759, %c0_760], %1041 {strides = array<i32>} : memref<8x24x128xf32, #tpu.memory_space<vmem>>, vector<1x1x128xf32>,
    %c7_i32_761 = arith.constant 7 : i32
    %1042 = arith.addi %0, %c7_i32_761 : i32
    %1043 = arith.index_cast %1042 : i32 to index
    %c15_762 = arith.constant 15 : index
    %1044 = memref.load %arg1[%1043, %c15_762] : memref<16x16xi32, #tpu.memory_space<smem>>
    %1045 = arith.index_cast %1044 : i32 to index
    %c0_763 = arith.constant 0 : index
    %1046 = vector.load %arg2[%1045, %c0_763] : memref<1000x128xf32, #tpu.memory_space<vmem>>, vector<1x128xf32>
    %c7_764 = arith.constant 7 : index
    %c15_765 = arith.constant 15 : index
    %c0_766 = arith.constant 0 : index
    %1047 = vector.load %arg11[%c7_764, %c15_765, %c0_766] : memref<8x24x128xf32, #tpu.memory_space<vmem>>, vector<1x1x128xf32>
    %1048 = vector.shape_cast %1047 : vector<1x1x128xf32> to vector<1x128xf32>
    %1049 = vector.shape_cast %1046 : vector<1x128xf32> to vector<1x1x128xf32>
    tpu.vector_store %arg11[%c7_764, %c15_765, %c0_766], %1049 {strides = array<i32>} : memref<8x24x128xf32, #tpu.memory_space<vmem>>, vector<1x1x128xf32>,
    %c0_767 = arith.constant 0 : index
    %c0_768 = arith.constant 0 : index
    %c0_769 = arith.constant 0 : index
    %1050 = vector.load %arg11[%c0_767, %c0_768, %c0_769] : memref<8x24x128xf32, #tpu.memory_space<vmem>>, vector<1x16x128xf32>
    %1051 = vector.shape_cast %1050 : vector<1x16x128xf32> to vector<16x128xf32>
    %c0_770 = arith.constant 0 : index
    %c1_771 = arith.constant 1 : index
    %c0_772 = arith.constant 0 : index
    %1052 = vector.load %arg11[%c0_770, %c1_771, %c0_772] : memref<8x24x128xf32, #tpu.memory_space<vmem>>, vector<1x16x128xf32>
    %1053 = vector.shape_cast %1052 : vector<1x16x128xf32> to vector<16x128xf32>
    %c0_773 = arith.constant 0 : index
    %c2_774 = arith.constant 2 : index
    %c0_775 = arith.constant 0 : index
    %1054 = vector.load %arg11[%c0_773, %c2_774, %c0_775] : memref<8x24x128xf32, #tpu.memory_space<vmem>>, vector<1x16x128xf32>
    %1055 = vector.shape_cast %1054 : vector<1x16x128xf32> to vector<16x128xf32>
    %c0_776 = arith.constant 0 : index
    %c3_777 = arith.constant 3 : index
    %c0_778 = arith.constant 0 : index
    %1056 = vector.load %arg11[%c0_776, %c3_777, %c0_778] : memref<8x24x128xf32, #tpu.memory_space<vmem>>, vector<1x16x128xf32>
    %1057 = vector.shape_cast %1056 : vector<1x16x128xf32> to vector<16x128xf32>
    %c0_779 = arith.constant 0 : index
    %c4_780 = arith.constant 4 : index
    %c0_781 = arith.constant 0 : index
    %1058 = vector.load %arg11[%c0_779, %c4_780, %c0_781] : memref<8x24x128xf32, #tpu.memory_space<vmem>>, vector<1x16x128xf32>
    %1059 = vector.shape_cast %1058 : vector<1x16x128xf32> to vector<16x128xf32>
    %1060 = tpu.concatenate %1051, %1053, %1055, %1057, %1059 in 1 : vector<16x128xf32>, vector<16x128xf32>, vector<16x128xf32>, vector<16x128xf32>, vector<16x128xf32> -> vector<16x640xf32>
    %c1_782 = arith.constant 1 : index
    %c0_783 = arith.constant 0 : index
    %c0_784 = arith.constant 0 : index
    %1061 = vector.load %arg11[%c1_782, %c0_783, %c0_784] : memref<8x24x128xf32, #tpu.memory_space<vmem>>, vector<1x16x128xf32>
    %1062 = vector.shape_cast %1061 : vector<1x16x128xf32> to vector<16x128xf32>
    %c1_785 = arith.constant 1 : index
    %c1_786 = arith.constant 1 : index
    %c0_787 = arith.constant 0 : index
    %1063 = vector.load %arg11[%c1_785, %c1_786, %c0_787] : memref<8x24x128xf32, #tpu.memory_space<vmem>>, vector<1x16x128xf32>
    %1064 = vector.shape_cast %1063 : vector<1x16x128xf32> to vector<16x128xf32>
    %c1_788 = arith.constant 1 : index
    %c2_789 = arith.constant 2 : index
    %c0_790 = arith.constant 0 : index
    %1065 = vector.load %arg11[%c1_788, %c2_789, %c0_790] : memref<8x24x128xf32, #tpu.memory_space<vmem>>, vector<1x16x128xf32>
    %1066 = vector.shape_cast %1065 : vector<1x16x128xf32> to vector<16x128xf32>
    %c1_791 = arith.constant 1 : index
    %c3_792 = arith.constant 3 : index
    %c0_793 = arith.constant 0 : index
    %1067 = vector.load %arg11[%c1_791, %c3_792, %c0_793] : memref<8x24x128xf32, #tpu.memory_space<vmem>>, vector<1x16x128xf32>
    %1068 = vector.shape_cast %1067 : vector<1x16x128xf32> to vector<16x128xf32>
    %c1_794 = arith.constant 1 : index
    %c4_795 = arith.constant 4 : index
    %c0_796 = arith.constant 0 : index
    %1069 = vector.load %arg11[%c1_794, %c4_795, %c0_796] : memref<8x24x128xf32, #tpu.memory_space<vmem>>, vector<1x16x128xf32>
    %1070 = vector.shape_cast %1069 : vector<1x16x128xf32> to vector<16x128xf32>
    %1071 = tpu.concatenate %1062, %1064, %1066, %1068, %1070 in 1 : vector<16x128xf32>, vector<16x128xf32>, vector<16x128xf32>, vector<16x128xf32>, vector<16x128xf32> -> vector<16x640xf32>
    %c2_797 = arith.constant 2 : index
    %c0_798 = arith.constant 0 : index
    %c0_799 = arith.constant 0 : index
    %1072 = vector.load %arg11[%c2_797, %c0_798, %c0_799] : memref<8x24x128xf32, #tpu.memory_space<vmem>>, vector<1x16x128xf32>
    %1073 = vector.shape_cast %1072 : vector<1x16x128xf32> to vector<16x128xf32>
    %c2_800 = arith.constant 2 : index
    %c1_801 = arith.constant 1 : index
    %c0_802 = arith.constant 0 : index
    %1074 = vector.load %arg11[%c2_800, %c1_801, %c0_802] : memref<8x24x128xf32, #tpu.memory_space<vmem>>, vector<1x16x128xf32>
    %1075 = vector.shape_cast %1074 : vector<1x16x128xf32> to vector<16x128xf32>
    %c2_803 = arith.constant 2 : index
    %c2_804 = arith.constant 2 : index
    %c0_805 = arith.constant 0 : index
    %1076 = vector.load %arg11[%c2_803, %c2_804, %c0_805] : memref<8x24x128xf32, #tpu.memory_space<vmem>>, vector<1x16x128xf32>
    %1077 = vector.shape_cast %1076 : vector<1x16x128xf32> to vector<16x128xf32>
    %c2_806 = arith.constant 2 : index
    %c3_807 = arith.constant 3 : index
    %c0_808 = arith.constant 0 : index
    %1078 = vector.load %arg11[%c2_806, %c3_807, %c0_808] : memref<8x24x128xf32, #tpu.memory_space<vmem>>, vector<1x16x128xf32>
    %1079 = vector.shape_cast %1078 : vector<1x16x128xf32> to vector<16x128xf32>
    %c2_809 = arith.constant 2 : index
    %c4_810 = arith.constant 4 : index
    %c0_811 = arith.constant 0 : index
    %1080 = vector.load %arg11[%c2_809, %c4_810, %c0_811] : memref<8x24x128xf32, #tpu.memory_space<vmem>>, vector<1x16x128xf32>
    %1081 = vector.shape_cast %1080 : vector<1x16x128xf32> to vector<16x128xf32>
    %1082 = tpu.concatenate %1073, %1075, %1077, %1079, %1081 in 1 : vector<16x128xf32>, vector<16x128xf32>, vector<16x128xf32>, vector<16x128xf32>, vector<16x128xf32> -> vector<16x640xf32>
    %c3_812 = arith.constant 3 : index
    %c0_813 = arith.constant 0 : index
    %c0_814 = arith.constant 0 : index
    %1083 = vector.load %arg11[%c3_812, %c0_813, %c0_814] : memref<8x24x128xf32, #tpu.memory_space<vmem>>, vector<1x16x128xf32>
    %1084 = vector.shape_cast %1083 : vector<1x16x128xf32> to vector<16x128xf32>
    %c3_815 = arith.constant 3 : index
    %c1_816 = arith.constant 1 : index
    %c0_817 = arith.constant 0 : index
    %1085 = vector.load %arg11[%c3_815, %c1_816, %c0_817] : memref<8x24x128xf32, #tpu.memory_space<vmem>>, vector<1x16x128xf32>
    %1086 = vector.shape_cast %1085 : vector<1x16x128xf32> to vector<16x128xf32>
    %c3_818 = arith.constant 3 : index
    %c2_819 = arith.constant 2 : index
    %c0_820 = arith.constant 0 : index
    %1087 = vector.load %arg11[%c3_818, %c2_819, %c0_820] : memref<8x24x128xf32, #tpu.memory_space<vmem>>, vector<1x16x128xf32>
    %1088 = vector.shape_cast %1087 : vector<1x16x128xf32> to vector<16x128xf32>
    %c3_821 = arith.constant 3 : index
    %c3_822 = arith.constant 3 : index
    %c0_823 = arith.constant 0 : index
    %1089 = vector.load %arg11[%c3_821, %c3_822, %c0_823] : memref<8x24x128xf32, #tpu.memory_space<vmem>>, vector<1x16x128xf32>
    %1090 = vector.shape_cast %1089 : vector<1x16x128xf32> to vector<16x128xf32>
    %c3_824 = arith.constant 3 : index
    %c4_825 = arith.constant 4 : index
    %c0_826 = arith.constant 0 : index
    %1091 = vector.load %arg11[%c3_824, %c4_825, %c0_826] : memref<8x24x128xf32, #tpu.memory_space<vmem>>, vector<1x16x128xf32>
    %1092 = vector.shape_cast %1091 : vector<1x16x128xf32> to vector<16x128xf32>
    %1093 = tpu.concatenate %1084, %1086, %1088, %1090, %1092 in 1 : vector<16x128xf32>, vector<16x128xf32>, vector<16x128xf32>, vector<16x128xf32>, vector<16x128xf32> -> vector<16x640xf32>
    %c4_827 = arith.constant 4 : index
    %c0_828 = arith.constant 0 : index
    %c0_829 = arith.constant 0 : index
    %1094 = vector.load %arg11[%c4_827, %c0_828, %c0_829] : memref<8x24x128xf32, #tpu.memory_space<vmem>>, vector<1x16x128xf32>
    %1095 = vector.shape_cast %1094 : vector<1x16x128xf32> to vector<16x128xf32>
    %c4_830 = arith.constant 4 : index
    %c1_831 = arith.constant 1 : index
    %c0_832 = arith.constant 0 : index
    %1096 = vector.load %arg11[%c4_830, %c1_831, %c0_832] : memref<8x24x128xf32, #tpu.memory_space<vmem>>, vector<1x16x128xf32>
    %1097 = vector.shape_cast %1096 : vector<1x16x128xf32> to vector<16x128xf32>
    %c4_833 = arith.constant 4 : index
    %c2_834 = arith.constant 2 : index
    %c0_835 = arith.constant 0 : index
    %1098 = vector.load %arg11[%c4_833, %c2_834, %c0_835] : memref<8x24x128xf32, #tpu.memory_space<vmem>>, vector<1x16x128xf32>
    %1099 = vector.shape_cast %1098 : vector<1x16x128xf32> to vector<16x128xf32>
    %c4_836 = arith.constant 4 : index
    %c3_837 = arith.constant 3 : index
    %c0_838 = arith.constant 0 : index
    %1100 = vector.load %arg11[%c4_836, %c3_837, %c0_838] : memref<8x24x128xf32, #tpu.memory_space<vmem>>, vector<1x16x128xf32>
    %1101 = vector.shape_cast %1100 : vector<1x16x128xf32> to vector<16x128xf32>
    %c4_839 = arith.constant 4 : index
    %c4_840 = arith.constant 4 : index
    %c0_841 = arith.constant 0 : index
    %1102 = vector.load %arg11[%c4_839, %c4_840, %c0_841] : memref<8x24x128xf32, #tpu.memory_space<vmem>>, vector<1x16x128xf32>
    %1103 = vector.shape_cast %1102 : vector<1x16x128xf32> to vector<16x128xf32>
    %1104 = tpu.concatenate %1095, %1097, %1099, %1101, %1103 in 1 : vector<16x128xf32>, vector<16x128xf32>, vector<16x128xf32>, vector<16x128xf32>, vector<16x128xf32> -> vector<16x640xf32>
    %c5_842 = arith.constant 5 : index
    %c0_843 = arith.constant 0 : index
    %c0_844 = arith.constant 0 : index
    %1105 = vector.load %arg11[%c5_842, %c0_843, %c0_844] : memref<8x24x128xf32, #tpu.memory_space<vmem>>, vector<1x16x128xf32>
    %1106 = vector.shape_cast %1105 : vector<1x16x128xf32> to vector<16x128xf32>
    %c5_845 = arith.constant 5 : index
    %c1_846 = arith.constant 1 : index
    %c0_847 = arith.constant 0 : index
    %1107 = vector.load %arg11[%c5_845, %c1_846, %c0_847] : memref<8x24x128xf32, #tpu.memory_space<vmem>>, vector<1x16x128xf32>
    %1108 = vector.shape_cast %1107 : vector<1x16x128xf32> to vector<16x128xf32>
    %c5_848 = arith.constant 5 : index
    %c2_849 = arith.constant 2 : index
    %c0_850 = arith.constant 0 : index
    %1109 = vector.load %arg11[%c5_848, %c2_849, %c0_850] : memref<8x24x128xf32, #tpu.memory_space<vmem>>, vector<1x16x128xf32>
    %1110 = vector.shape_cast %1109 : vector<1x16x128xf32> to vector<16x128xf32>
    %c5_851 = arith.constant 5 : index
    %c3_852 = arith.constant 3 : index
    %c0_853 = arith.constant 0 : index
    %1111 = vector.load %arg11[%c5_851, %c3_852, %c0_853] : memref<8x24x128xf32, #tpu.memory_space<vmem>>, vector<1x16x128xf32>
    %1112 = vector.shape_cast %1111 : vector<1x16x128xf32> to vector<16x128xf32>
    %c5_854 = arith.constant 5 : index
    %c4_855 = arith.constant 4 : index
    %c0_856 = arith.constant 0 : index
    %1113 = vector.load %arg11[%c5_854, %c4_855, %c0_856] : memref<8x24x128xf32, #tpu.memory_space<vmem>>, vector<1x16x128xf32>
    %1114 = vector.shape_cast %1113 : vector<1x16x128xf32> to vector<16x128xf32>
    %1115 = tpu.concatenate %1106, %1108, %1110, %1112, %1114 in 1 : vector<16x128xf32>, vector<16x128xf32>, vector<16x128xf32>, vector<16x128xf32>, vector<16x128xf32> -> vector<16x640xf32>
    %c6_857 = arith.constant 6 : index
    %c0_858 = arith.constant 0 : index
    %c0_859 = arith.constant 0 : index
    %1116 = vector.load %arg11[%c6_857, %c0_858, %c0_859] : memref<8x24x128xf32, #tpu.memory_space<vmem>>, vector<1x16x128xf32>
    %1117 = vector.shape_cast %1116 : vector<1x16x128xf32> to vector<16x128xf32>
    %c6_860 = arith.constant 6 : index
    %c1_861 = arith.constant 1 : index
    %c0_862 = arith.constant 0 : index
    %1118 = vector.load %arg11[%c6_860, %c1_861, %c0_862] : memref<8x24x128xf32, #tpu.memory_space<vmem>>, vector<1x16x128xf32>
    %1119 = vector.shape_cast %1118 : vector<1x16x128xf32> to vector<16x128xf32>
    %c6_863 = arith.constant 6 : index
    %c2_864 = arith.constant 2 : index
    %c0_865 = arith.constant 0 : index
    %1120 = vector.load %arg11[%c6_863, %c2_864, %c0_865] : memref<8x24x128xf32, #tpu.memory_space<vmem>>, vector<1x16x128xf32>
    %1121 = vector.shape_cast %1120 : vector<1x16x128xf32> to vector<16x128xf32>
    %c6_866 = arith.constant 6 : index
    %c3_867 = arith.constant 3 : index
    %c0_868 = arith.constant 0 : index
    %1122 = vector.load %arg11[%c6_866, %c3_867, %c0_868] : memref<8x24x128xf32, #tpu.memory_space<vmem>>, vector<1x16x128xf32>
    %1123 = vector.shape_cast %1122 : vector<1x16x128xf32> to vector<16x128xf32>
    %c6_869 = arith.constant 6 : index
    %c4_870 = arith.constant 4 : index
    %c0_871 = arith.constant 0 : index
    %1124 = vector.load %arg11[%c6_869, %c4_870, %c0_871] : memref<8x24x128xf32, #tpu.memory_space<vmem>>, vector<1x16x128xf32>
    %1125 = vector.shape_cast %1124 : vector<1x16x128xf32> to vector<16x128xf32>
    %1126 = tpu.concatenate %1117, %1119, %1121, %1123, %1125 in 1 : vector<16x128xf32>, vector<16x128xf32>, vector<16x128xf32>, vector<16x128xf32>, vector<16x128xf32> -> vector<16x640xf32>
    %c7_872 = arith.constant 7 : index
    %c0_873 = arith.constant 0 : index
    %c0_874 = arith.constant 0 : index
    %1127 = vector.load %arg11[%c7_872, %c0_873, %c0_874] : memref<8x24x128xf32, #tpu.memory_space<vmem>>, vector<1x16x128xf32>
    %1128 = vector.shape_cast %1127 : vector<1x16x128xf32> to vector<16x128xf32>
    %c7_875 = arith.constant 7 : index
    %c1_876 = arith.constant 1 : index
    %c0_877 = arith.constant 0 : index
    %1129 = vector.load %arg11[%c7_875, %c1_876, %c0_877] : memref<8x24x128xf32, #tpu.memory_space<vmem>>, vector<1x16x128xf32>
    %1130 = vector.shape_cast %1129 : vector<1x16x128xf32> to vector<16x128xf32>
    %c7_878 = arith.constant 7 : index
    %c2_879 = arith.constant 2 : index
    %c0_880 = arith.constant 0 : index
    %1131 = vector.load %arg11[%c7_878, %c2_879, %c0_880] : memref<8x24x128xf32, #tpu.memory_space<vmem>>, vector<1x16x128xf32>
    %1132 = vector.shape_cast %1131 : vector<1x16x128xf32> to vector<16x128xf32>
    %c7_881 = arith.constant 7 : index
    %c3_882 = arith.constant 3 : index
    %c0_883 = arith.constant 0 : index
    %1133 = vector.load %arg11[%c7_881, %c3_882, %c0_883] : memref<8x24x128xf32, #tpu.memory_space<vmem>>, vector<1x16x128xf32>
    %1134 = vector.shape_cast %1133 : vector<1x16x128xf32> to vector<16x128xf32>
    %c7_884 = arith.constant 7 : index
    %c4_885 = arith.constant 4 : index
    %c0_886 = arith.constant 0 : index
    %1135 = vector.load %arg11[%c7_884, %c4_885, %c0_886] : memref<8x24x128xf32, #tpu.memory_space<vmem>>, vector<1x16x128xf32>
    %1136 = vector.shape_cast %1135 : vector<1x16x128xf32> to vector<16x128xf32>
    %1137 = tpu.concatenate %1128, %1130, %1132, %1134, %1136 in 1 : vector<16x128xf32>, vector<16x128xf32>, vector<16x128xf32>, vector<16x128xf32>, vector<16x128xf32> -> vector<16x640xf32>
    %1138 = tpu.concatenate %1060, %1071, %1082, %1093, %1104, %1115, %1126, %1137 in 0 : vector<16x640xf32>, vector<16x640xf32>, vector<16x640xf32>, vector<16x640xf32>, vector<16x640xf32>, vector<16x640xf32>, vector<16x640xf32>, vector<16x640xf32> -> vector<128x640xf32>
    %c0_887 = arith.constant 0 : index
    %c0_888 = arith.constant 0 : index
    %1139 = vector.load %arg3[%c0_887, %c0_888] : memref<640x384xf32, #tpu.memory_space<vmem>>, vector<640x384xf32>
    %cst_889 = arith.constant dense<0.000000e+00> : vector<128x384xf32>
    %1140 = tpu.matmul %1138, %1139, %cst_889 {dimension_numbers = #tpu.dot_dimension_numbers<[1], [0], [0], [1], [0, 0, 1, 1], [], []>} : vector<128x640xf32>, vector<640x384xf32>, vector<128x384xf32> -> vector<128x384xf32>
    %c0_890 = arith.constant 0 : index
    %c0_891 = arith.constant 0 : index
    %1141 = vector.load %arg4[%c0_890, %c0_891] : memref<1x384xf32, #tpu.memory_space<vmem>>, vector<1x384xf32>
    %1142 = vector.broadcast %1141 : vector<1x384xf32> to vector<128x384xf32>
    %1143 = arith.addf %1140, %1142 : vector<128x384xf32>
    %cst_892 = arith.constant 0.000000e+00 : f32
    %1144 = vector.broadcast %cst_892 : f32 to vector<128x384xf32>
    %1145 = arith.maximumf %1143, %1144 : vector<128x384xf32>
    %c14_i32 = arith.constant 14 : i32
    %1146 = vector.broadcast %c14_i32 : i32 to vector<1x128xi32>
    %c13_i32 = arith.constant 13 : i32
    %1147 = vector.broadcast %c13_i32 : i32 to vector<1x128xi32>
    %c12_i32 = arith.constant 12 : i32
    %1148 = vector.broadcast %c12_i32 : i32 to vector<1x128xi32>
    %1149 = tpu.concatenate %1146, %1147, %1148 in 1 : vector<1x128xi32>, vector<1x128xi32>, vector<1x128xi32> -> vector<1x384xi32>
    %1150 = tpu.iota {dimensions = array<i32: 0>} : vector<128x384xi32>
    %c16_i32 = arith.constant 16 : i32
    %c0_i32_893 = arith.constant 0 : i32
    %1151 = arith.cmpi eq, %c16_i32, %c0_i32_893 : i32
    %c1_i32_894 = arith.constant 1 : i32
    %1152 = arith.select %1151, %c1_i32_894, %c16_i32 : i32
    %1153 = vector.broadcast %1152 : i32 to vector<128x384xi32>
    %1154 = arith.remsi %1150, %1153 : vector<128x384xi32>
    %c0_i32_895 = arith.constant 0 : i32
    %1155 = vector.broadcast %c0_i32_895 : i32 to vector<128x384xi32>
    %1156 = arith.cmpi ne, %1154, %1155 : vector<128x384xi32>
    %c0_i32_896 = arith.constant 0 : i32
    %1157 = vector.broadcast %c0_i32_896 : i32 to vector<128x384xi32>
    %1158 = arith.cmpi slt, %1154, %1157 : vector<128x384xi32>
    %c0_i32_897 = arith.constant 0 : i32
    %1159 = arith.cmpi slt, %1152, %c0_i32_897 : i32
    %1160 = vector.broadcast %1159 : i1 to vector<128x384xi1>
    %1161 = vector.broadcast %1160 : vector<128x384xi1> to vector<128x384xi1>
    %1162 = arith.xori %1158, %1161 : vector<128x384xi1>
    %1163 = arith.andi %1162, %1156 : vector<128x384xi1>
    %1164 = vector.broadcast %1152 : i32 to vector<128x384xi32>
    %1165 = arith.addi %1154, %1164 : vector<128x384xi32>
    %1166 = arith.select %1163, %1165, %1154 : vector<128x384xi1>, vector<128x384xi32>
    %1167 = vector.broadcast %1149 : vector<1x384xi32> to vector<128x384xi32>
    %1168 = arith.cmpi slt, %1166, %1167 : vector<128x384xi32>
    %cst_898 = arith.constant -1.000000e+00 : f32
    %1169 = vector.broadcast %cst_898 : f32 to vector<128x384xf32>
    %1170 = arith.select %1168, %1145, %1169 : vector<128x384xi1>, vector<128x384xf32>
    %1171 = tpu.iota {dimensions = array<i32: 0>} : vector<16x384xi32>
    %1172 = vector.extract_strided_slice %1170 {offsets = [0, 0], sizes = [16, 384], strides = [1, 1]} : vector<128x384xf32> to vector<16x384xf32>
    %cst_899 = arith.constant dense<0xFF800000> : vector<384xf32>
    %1173 = vector.multi_reduction <maximumf>, %1172, %cst_899 [0] : vector<16x384xf32> to vector<384xf32>
    %1174 = vector.shape_cast %1173 : vector<384xf32> to vector<1x384xf32>
    %1175 = vector.broadcast %1174 : vector<1x384xf32> to vector<16x384xf32>
    %1176 = arith.cmpf oeq, %1172, %1175 : vector<16x384xf32>
    %c16_i32_900 = arith.constant 16 : i32
    %1177 = vector.broadcast %c16_i32_900 : i32 to vector<16x384xi32>
    %1178 = arith.select %1176, %1171, %1177 : vector<16x384xi1>, vector<16x384xi32>
    %cst_901 = arith.constant dense<2147483647> : vector<384xi32>
    %1179 = vector.multi_reduction <minsi>, %1178, %cst_901 [0] : vector<16x384xi32> to vector<384xi32>
    %1180 = vector.shape_cast %1179 : vector<384xi32> to vector<1x384xi32>
    %1181 = vector.extract_strided_slice %1170 {offsets = [16, 0], sizes = [16, 384], strides = [1, 1]} : vector<128x384xf32> to vector<16x384xf32>
    %cst_902 = arith.constant dense<0xFF800000> : vector<384xf32>
    %1182 = vector.multi_reduction <maximumf>, %1181, %cst_902 [0] : vector<16x384xf32> to vector<384xf32>
    %1183 = vector.shape_cast %1182 : vector<384xf32> to vector<1x384xf32>
    %1184 = vector.broadcast %1183 : vector<1x384xf32> to vector<16x384xf32>
    %1185 = arith.cmpf oeq, %1181, %1184 : vector<16x384xf32>
    %c16_i32_903 = arith.constant 16 : i32
    %1186 = vector.broadcast %c16_i32_903 : i32 to vector<16x384xi32>
    %1187 = arith.select %1185, %1171, %1186 : vector<16x384xi1>, vector<16x384xi32>
    %cst_904 = arith.constant dense<2147483647> : vector<384xi32>
    %1188 = vector.multi_reduction <minsi>, %1187, %cst_904 [0] : vector<16x384xi32> to vector<384xi32>
    %1189 = vector.shape_cast %1188 : vector<384xi32> to vector<1x384xi32>
    %1190 = vector.extract_strided_slice %1170 {offsets = [32, 0], sizes = [16, 384], strides = [1, 1]} : vector<128x384xf32> to vector<16x384xf32>
    %cst_905 = arith.constant dense<0xFF800000> : vector<384xf32>
    %1191 = vector.multi_reduction <maximumf>, %1190, %cst_905 [0] : vector<16x384xf32> to vector<384xf32>
    %1192 = vector.shape_cast %1191 : vector<384xf32> to vector<1x384xf32>
    %1193 = vector.broadcast %1192 : vector<1x384xf32> to vector<16x384xf32>
    %1194 = arith.cmpf oeq, %1190, %1193 : vector<16x384xf32>
    %c16_i32_906 = arith.constant 16 : i32
    %1195 = vector.broadcast %c16_i32_906 : i32 to vector<16x384xi32>
    %1196 = arith.select %1194, %1171, %1195 : vector<16x384xi1>, vector<16x384xi32>
    %cst_907 = arith.constant dense<2147483647> : vector<384xi32>
    %1197 = vector.multi_reduction <minsi>, %1196, %cst_907 [0] : vector<16x384xi32> to vector<384xi32>
    %1198 = vector.shape_cast %1197 : vector<384xi32> to vector<1x384xi32>
    %1199 = vector.extract_strided_slice %1170 {offsets = [48, 0], sizes = [16, 384], strides = [1, 1]} : vector<128x384xf32> to vector<16x384xf32>
    %cst_908 = arith.constant dense<0xFF800000> : vector<384xf32>
    %1200 = vector.multi_reduction <maximumf>, %1199, %cst_908 [0] : vector<16x384xf32> to vector<384xf32>
    %1201 = vector.shape_cast %1200 : vector<384xf32> to vector<1x384xf32>
    %1202 = vector.broadcast %1201 : vector<1x384xf32> to vector<16x384xf32>
    %1203 = arith.cmpf oeq, %1199, %1202 : vector<16x384xf32>
    %c16_i32_909 = arith.constant 16 : i32
    %1204 = vector.broadcast %c16_i32_909 : i32 to vector<16x384xi32>
    %1205 = arith.select %1203, %1171, %1204 : vector<16x384xi1>, vector<16x384xi32>
    %cst_910 = arith.constant dense<2147483647> : vector<384xi32>
    %1206 = vector.multi_reduction <minsi>, %1205, %cst_910 [0] : vector<16x384xi32> to vector<384xi32>
    %1207 = vector.shape_cast %1206 : vector<384xi32> to vector<1x384xi32>
    %1208 = vector.extract_strided_slice %1170 {offsets = [64, 0], sizes = [16, 384], strides = [1, 1]} : vector<128x384xf32> to vector<16x384xf32>
    %cst_911 = arith.constant dense<0xFF800000> : vector<384xf32>
    %1209 = vector.multi_reduction <maximumf>, %1208, %cst_911 [0] : vector<16x384xf32> to vector<384xf32>
    %1210 = vector.shape_cast %1209 : vector<384xf32> to vector<1x384xf32>
    %1211 = vector.broadcast %1210 : vector<1x384xf32> to vector<16x384xf32>
    %1212 = arith.cmpf oeq, %1208, %1211 : vector<16x384xf32>
    %c16_i32_912 = arith.constant 16 : i32
    %1213 = vector.broadcast %c16_i32_912 : i32 to vector<16x384xi32>
    %1214 = arith.select %1212, %1171, %1213 : vector<16x384xi1>, vector<16x384xi32>
    %cst_913 = arith.constant dense<2147483647> : vector<384xi32>
    %1215 = vector.multi_reduction <minsi>, %1214, %cst_913 [0] : vector<16x384xi32> to vector<384xi32>
    %1216 = vector.shape_cast %1215 : vector<384xi32> to vector<1x384xi32>
    %1217 = vector.extract_strided_slice %1170 {offsets = [80, 0], sizes = [16, 384], strides = [1, 1]} : vector<128x384xf32> to vector<16x384xf32>
    %cst_914 = arith.constant dense<0xFF800000> : vector<384xf32>
    %1218 = vector.multi_reduction <maximumf>, %1217, %cst_914 [0] : vector<16x384xf32> to vector<384xf32>
    %1219 = vector.shape_cast %1218 : vector<384xf32> to vector<1x384xf32>
    %1220 = vector.broadcast %1219 : vector<1x384xf32> to vector<16x384xf32>
    %1221 = arith.cmpf oeq, %1217, %1220 : vector<16x384xf32>
    %c16_i32_915 = arith.constant 16 : i32
    %1222 = vector.broadcast %c16_i32_915 : i32 to vector<16x384xi32>
    %1223 = arith.select %1221, %1171, %1222 : vector<16x384xi1>, vector<16x384xi32>
    %cst_916 = arith.constant dense<2147483647> : vector<384xi32>
    %1224 = vector.multi_reduction <minsi>, %1223, %cst_916 [0] : vector<16x384xi32> to vector<384xi32>
    %1225 = vector.shape_cast %1224 : vector<384xi32> to vector<1x384xi32>
    %1226 = vector.extract_strided_slice %1170 {offsets = [96, 0], sizes = [16, 384], strides = [1, 1]} : vector<128x384xf32> to vector<16x384xf32>
    %cst_917 = arith.constant dense<0xFF800000> : vector<384xf32>
    %1227 = vector.multi_reduction <maximumf>, %1226, %cst_917 [0] : vector<16x384xf32> to vector<384xf32>
    %1228 = vector.shape_cast %1227 : vector<384xf32> to vector<1x384xf32>
    %1229 = vector.broadcast %1228 : vector<1x384xf32> to vector<16x384xf32>
    %1230 = arith.cmpf oeq, %1226, %1229 : vector<16x384xf32>
    %c16_i32_918 = arith.constant 16 : i32
    %1231 = vector.broadcast %c16_i32_918 : i32 to vector<16x384xi32>
    %1232 = arith.select %1230, %1171, %1231 : vector<16x384xi1>, vector<16x384xi32>
    %cst_919 = arith.constant dense<2147483647> : vector<384xi32>
    %1233 = vector.multi_reduction <minsi>, %1232, %cst_919 [0] : vector<16x384xi32> to vector<384xi32>
    %1234 = vector.shape_cast %1233 : vector<384xi32> to vector<1x384xi32>
    %1235 = vector.extract_strided_slice %1170 {offsets = [112, 0], sizes = [16, 384], strides = [1, 1]} : vector<128x384xf32> to vector<16x384xf32>
    %cst_920 = arith.constant dense<0xFF800000> : vector<384xf32>
    %1236 = vector.multi_reduction <maximumf>, %1235, %cst_920 [0] : vector<16x384xf32> to vector<384xf32>
    %1237 = vector.shape_cast %1236 : vector<384xf32> to vector<1x384xf32>
    %1238 = vector.broadcast %1237 : vector<1x384xf32> to vector<16x384xf32>
    %1239 = arith.cmpf oeq, %1235, %1238 : vector<16x384xf32>
    %c16_i32_921 = arith.constant 16 : i32
    %1240 = vector.broadcast %c16_i32_921 : i32 to vector<16x384xi32>
    %1241 = arith.select %1239, %1171, %1240 : vector<16x384xi1>, vector<16x384xi32>
    %cst_922 = arith.constant dense<2147483647> : vector<384xi32>
    %1242 = vector.multi_reduction <minsi>, %1241, %cst_922 [0] : vector<16x384xi32> to vector<384xi32>
    %1243 = vector.shape_cast %1242 : vector<384xi32> to vector<1x384xi32>
    %1244 = tpu.concatenate %1174, %1183, %1192, %1201, %1210, %1219, %1228, %1237 in 0 : vector<1x384xf32>, vector<1x384xf32>, vector<1x384xf32>, vector<1x384xf32>, vector<1x384xf32>, vector<1x384xf32>, vector<1x384xf32>, vector<1x384xf32> -> vector<8x384xf32>
    %1245 = tpu.concatenate %1180, %1189, %1198, %1207, %1216, %1225, %1234, %1243 in 0 : vector<1x384xi32>, vector<1x384xi32>, vector<1x384xi32>, vector<1x384xi32>, vector<1x384xi32>, vector<1x384xi32>, vector<1x384xi32>, vector<1x384xi32> -> vector<8x384xi32>
    %1246 = vector.extract_strided_slice %1245 {offsets = [0, 0], sizes = [8, 128], strides = [1, 1]} : vector<8x384xi32> to vector<8x128xi32>
    %c0_923 = arith.constant 0 : index
    %c0_924 = arith.constant 0 : index
    %1247 = vector.load %arg8[%c0_923, %c0_924] : memref<8x128xi32, #tpu.memory_space<vmem>>, vector<8x128xi32>
    tpu.vector_store %arg8[%c0_923, %c0_924], %1246 {strides = array<i32>} : memref<8x128xi32, #tpu.memory_space<vmem>>, vector<8x128xi32>,
    %1248 = vector.extract_strided_slice %1245 {offsets = [0, 128], sizes = [8, 128], strides = [1, 1]} : vector<8x384xi32> to vector<8x128xi32>
    %c0_925 = arith.constant 0 : index
    %c0_926 = arith.constant 0 : index
    %1249 = vector.load %arg9[%c0_925, %c0_926] : memref<8x128xi32, #tpu.memory_space<vmem>>, vector<8x128xi32>
    tpu.vector_store %arg9[%c0_925, %c0_926], %1248 {strides = array<i32>} : memref<8x128xi32, #tpu.memory_space<vmem>>, vector<8x128xi32>,
    %1250 = vector.extract_strided_slice %1245 {offsets = [0, 256], sizes = [8, 128], strides = [1, 1]} : vector<8x384xi32> to vector<8x128xi32>
    %c0_927 = arith.constant 0 : index
    %c0_928 = arith.constant 0 : index
    %1251 = vector.load %arg10[%c0_927, %c0_928] : memref<8x128xi32, #tpu.memory_space<vmem>>, vector<8x128xi32>
    tpu.vector_store %arg10[%c0_927, %c0_928], %1250 {strides = array<i32>} : memref<8x128xi32, #tpu.memory_space<vmem>>, vector<8x128xi32>,
    %c0_929 = arith.constant 0 : index
    %c0_930 = arith.constant 0 : index
    %1252 = vector.load %arg5[%c0_929, %c0_930] : memref<384x128xf32, #tpu.memory_space<vmem>>, vector<384x128xf32>
    %cst_931 = arith.constant dense<0.000000e+00> : vector<8x128xf32>
    %1253 = tpu.matmul %1244, %1252, %cst_931 {dimension_numbers = #tpu.dot_dimension_numbers<[1], [0], [0], [1], [0, 0, 1, 1], [], []>} : vector<8x384xf32>, vector<384x128xf32>, vector<8x128xf32> -> vector<8x128xf32>
    %c0_932 = arith.constant 0 : index
    %c0_933 = arith.constant 0 : index
    %1254 = vector.load %arg6[%c0_932, %c0_933] : memref<1x128xf32, #tpu.memory_space<vmem>>, vector<1x128xf32>
    %1255 = vector.broadcast %1254 : vector<1x128xf32> to vector<8x128xf32>
    %1256 = arith.addf %1253, %1255 : vector<8x128xf32>
    %1257 = tpu.iota {dimensions = array<i32: 1>} : vector<8x128xi32>
    %c3_i32_934 = arith.constant 3 : i32
    %1258 = vector.broadcast %c3_i32_934 : i32 to vector<8x128xi32>
    %1259 = arith.cmpi slt, %1257, %1258 : vector<8x128xi32>
    %cst_935 = arith.constant -1.000000e+30 : f32
    %1260 = vector.broadcast %cst_935 : f32 to vector<8x128xf32>
    %1261 = arith.select %1259, %1256, %1260 : vector<8x128xi1>, vector<8x128xf32>
    %cst_936 = arith.constant dense<0xFF800000> : vector<8xf32>
    %1262 = vector.multi_reduction <maximumf>, %1261, %cst_936 [1] : vector<8x128xf32> to vector<8xf32>
    %1263 = vector.shape_cast %1262 : vector<8xf32> to vector<8x1xf32>
    %1264 = vector.broadcast %1263 : vector<8x1xf32> to vector<8x128xf32>
    %1265 = arith.subf %1261, %1264 : vector<8x128xf32>
    %1266 = math.exp %1265 : vector<8x128xf32>
    %cst_937 = arith.constant dense<0.000000e+00> : vector<8xf32>
    %1267 = vector.multi_reduction <add>, %1266, %cst_937 [1] : vector<8x128xf32> to vector<8xf32>
    %1268 = vector.shape_cast %1267 : vector<8xf32> to vector<8x1xf32>
    %1269 = vector.broadcast %1268 : vector<8x1xf32> to vector<8x128xf32>
    %1270 = arith.divf %1266, %1269 : vector<8x128xf32>
    %c0_938 = arith.constant 0 : index
    %c0_939 = arith.constant 0 : index
    %1271 = vector.load %arg7[%c0_938, %c0_939] : memref<8x128xf32, #tpu.memory_space<vmem>>, vector<8x128xf32>
    tpu.vector_store %arg7[%c0_938, %c0_939], %1270 {strides = array<i32>} : memref<8x128xf32, #tpu.memory_space<vmem>>, vector<8x128xf32>,
    return
  }
  func.func @transform_0(%arg0: i32, %arg1: memref<16x16xi32, #tpu.memory_space<smem>>) -> (i32, i32) {
    %c0_i32 = arith.constant 0 : i32
    %c0_i32_0 = arith.constant 0 : i32
    %c0_i32_1 = arith.constant 0 : i32
    return %c0_i32, %c0_i32_0 : i32, i32
  }
  func.func @transform_1(%arg0: i32, %arg1: memref<16x16xi32, #tpu.memory_space<smem>>) -> (i32, i32) {
    %c0_i32 = arith.constant 0 : i32
    %c0_i32_0 = arith.constant 0 : i32
    %c0_i32_1 = arith.constant 0 : i32
    return %c0_i32, %c0_i32_0 : i32, i32
  }
  func.func @transform_2(%arg0: i32, %arg1: memref<16x16xi32, #tpu.memory_space<smem>>) -> (i32, i32) {
    %c0_i32 = arith.constant 0 : i32
    %c0_i32_0 = arith.constant 0 : i32
    %c0_i32_1 = arith.constant 0 : i32
    return %c0_i32, %c0_i32_0 : i32, i32
  }
  func.func @transform_3(%arg0: i32, %arg1: memref<16x16xi32, #tpu.memory_space<smem>>) -> (i32, i32) {
    %c0_i32 = arith.constant 0 : i32
    %c0_i32_0 = arith.constant 0 : i32
    %c0_i32_1 = arith.constant 0 : i32
    return %c0_i32, %c0_i32_0 : i32, i32
  }
  func.func @transform_4(%arg0: i32, %arg1: memref<16x16xi32, #tpu.memory_space<smem>>) -> (i32, i32) {
    %c0_i32 = arith.constant 0 : i32
    %c0_i32_0 = arith.constant 0 : i32
    %c0_i32_1 = arith.constant 0 : i32
    return %c0_i32, %c0_i32_0 : i32, i32
  }
  func.func @transform_5(%arg0: i32, %arg1: memref<16x16xi32, #tpu.memory_space<smem>>) -> (i32, i32) {
    %c0_i32 = arith.constant 0 : i32
    %c0_i32_0 = arith.constant 0 : i32
    return %arg0, %c0_i32 : i32, i32
  }
  func.func @transform_6(%arg0: i32, %arg1: memref<16x16xi32, #tpu.memory_space<smem>>) -> (i32, i32) {
    %c0_i32 = arith.constant 0 : i32
    %c0_i32_0 = arith.constant 0 : i32
    return %arg0, %c0_i32 : i32, i32
  }
  func.func @transform_7(%arg0: i32, %arg1: memref<16x16xi32, #tpu.memory_space<smem>>) -> (i32, i32) {
    %c0_i32 = arith.constant 0 : i32
    %c0_i32_0 = arith.constant 0 : i32
    return %arg0, %c0_i32 : i32, i32
  }
  func.func @transform_8(%arg0: i32, %arg1: memref<16x16xi32, #tpu.memory_space<smem>>) -> (i32, i32) {
    %c0_i32 = arith.constant 0 : i32
    %c0_i32_0 = arith.constant 0 : i32
    return %arg0, %c0_i32 : i32, i32
  }
}

</mosaic_0001>

<bundles_post_ra>
// kernel: emotion_cnn_forward.1
= control target key start
LH: loop header
LB: loop body
LE: loop exit
PB: predicated region body
PF: predicated region fallthrough
CT: control target
= control target key end

     0   :  { %s4033_s12 = smov [#allocation4]   ;;  %s7247_s0 = inlined_call_operand.vmem [shape: s32[16,16], index: 0, kind: input, shape index: {}]   ;;  %s7248_s1 = inlined_call_operand.vmem [shape: f32[1000,128], index: 1, kind: input, shape index: {}]   ;;  %s7249_s2 = inlined_call_operand.vmem [shape: f32[640,384], index: 2, kind: input, shape index: {}]   ;;  %s7250_s3 = inlined_call_operand.vmem [shape: f32[1,384], index: 3, kind: input, shape index: {}]   ;;  %s7251_s4 = inlined_call_operand.vmem [shape: f32[384,128], index: 4, kind: input, shape index: {}]   ;;  %s7252_s5 = inlined_call_operand.vmem [shape: f32[1,128], index: 5, kind: input, shape index: {}]   ;;  %s7253_s6 = inlined_call_operand.vmem [shape: f32[16,128], index: 6, kind: output, shape index: {0}]   ;;  %s7254_s7 = inlined_call_operand.hbm [shape: s32[16,128], index: 7, kind: output, shape index: {1}]   ;;  %s7255_s8 = inlined_call_operand.hbm [shape: s32[16,128], index: 8, kind: output, shape index: {2}]   ;;  %s7256_s9 = inlined_call_operand.hbm [shape: s32[16,128], index: 9, kind: output, shape index: {3}]  }
   0x1   :  { %7311 = sst [smem:[#allocation67_spill]] %s7251_s4  ;;  %s16_s11 = sshll.u32 %s7247_s0, 4  ;;  %s17_s11 = int_to_ptr.vmem [resolvable:$true] %s16_s11 }
   0x2   :  { %7312 = sst [smem:[#allocation68_spill]] %s7252_s5 }
   0x3   :  { %7313 = sst [smem:[#allocation69_spill]] %s7253_s6 }
   0x4   :  { %7314 = sst [smem:[#allocation70_spill]] %s7254_s7 }
   0x5   :  { %7315 = sst [smem:[#allocation71_spill]] %s7255_s8 }
   0x6   :  { %7316 = sst [smem:[#allocation72_spill]] %s7256_s9 }
   0x7   :  { %19 = dma.vmem_to_smem %s17_s11, 256, %s4033_s12, [#allocation3] }
   0x8   :  { %4007 = dma.done.wait [#allocation3], 256 }
   0x9   :  { %4008 = vsyncadd [#allocation3], 4294967040 }
   0xa   :  { %22 = sfence }
   0xb   :  { %23 = vsyncpa [#allocation6], 0 }
   0xc   :  { %25 = vsyncpa [#allocation6 + $0x1], 0 }
   0xd   :  { %26 = vsyncpa [#allocation8], 0 }
   0xe   :  { %28 = vsyncpa [#allocation8 + $0x1], 0  ;;  %s4091_s13 = smov 0   ;;  %s4093_s14 = smov 0  }
   0xf   :  { %s4095_s15 = smov 0   ;;  %s4097_s16 = smov 0  }
  0x10 LB: > { %7317 = sst [smem:[#allocation13_spill]] %s4019_s13  ;;  %s4112_s0 = sadd.s32 4294967295, %s4031_s16   ;;  %s4031_s16 = sphi %s4097_s16, %s7514_s16   ;;  %s4027_s15 = sphi %s4095_s15, %s7517_s15   ;;  %s4023_s14 = sphi %s4093_s14, %s7516_s14   ;;  %s4019_s13 = sphi %s4091_s13, %s7515_s13  }
  0x11   : > { %7318 = sst [smem:[#allocation14_spill]] %s4023_s14  ;;  %s7257_s17 = sadd.s32 4294967294, %s4031_s16  }
  0x12   : > { %7319 = sst [smem:[#allocation15_spill]] %s4027_s15  ;;  %s4116_s18 = sadd.s32 1, %s4031_s16  }
  0x13   : > { %7320 = sst [smem:[#allocation16_spill]] %s4031_s16  ;;  %s172_s19 = sadd.s32 1, %s4027_s15 }
  0x14   : > { %7321 = sst [smem:[#allocation17_spill]] %s4112_s0  ;;  %s169_s20 = ssub.s32 %s4031_s16, %s4116_s18 }
  0x15   : > { %7322 = sst [smem:[#allocation18_spill]] %s4116_s18  ;;  %p182_p0 = scmp.ne.s32.totalorder %s4027_s15, %s4023_s14 }
  0x16   : > { %p170_p1 = scmp.eq.s32.totalorder %s169_s20, 0  ;;  %p183_p2 = scmp.eq.s32.totalorder %s4112_s0, 1 }
  0x17   : > { %p188_p3 = scmp.ne.s32.totalorder %s4023_s14, %s4019_s13  ;;  %p189_p4 = scmp.eq.s32.totalorder %s7257_s17, 1 }
  0x18   : > { %s4129_s21 = scalar_select %p170_p1, %s4027_s15, %s172_s19  }
  0x19   : > { %p4131_p5 = por %p183_p2, %p182_p0  ;;  %p4135_p6 = por %p189_p4, %p188_p3 }
  0x1a   : > { %7323 = sst [smem:[#allocation19_spill]] %s4129_s21  ;;  %p3687_p7 = scmp.ge.s32.totalorder %s4031_s16, 1 }
  0x1b   : > { %s7324_s22 = scalar_select %p4131_p5, 1, 0 }
  0x1c   : > { %s7326_s23 = scalar_select %p4135_p6, 1, 0 }
  0x1d   : > { %7325 = sst [smem:[#allocation20_spill]] %s7324_s22  ;;  %p274_p8 = scmp.lt.s32.totalorder %s4031_s16, 3 }
  0x1e   : > { %7327 = sst [smem:[#allocation21_spill]] %s7326_s23 }
  0x1f   : > { %p275_p9 = pnand %p3687_p7, %p274_p8 }
  0x21   : > { %278 = sbr.rel (%p275_p9) target bundleno = 1184 (0x4a0), region = 40 }
  0x26   : > { %v1109_v0 = vld [vmem:[%s7249_s2 + $0x168] sm:$0xff]  ;;  %v1106_v2 = vld [vmem:[%s7249_s2 + $0x150] sm:$0xff]  ;;  %s4151_s30 = sshll.u32 %s4112_s0, 10  ;;  %v1103_v6 = vld [vmem:[%s7249_s2 + $0x138] sm:$0xff]  ;;  %v4034_v18 = vmov 0.0  }
  0x27   : > { %v1205_v1 = vld [vmem:[%s7249_s2 + $0x468] sm:$0xff]  ;;  %1312 = vmatpush.msra.mxu0 %v1109_v0  ;;  %v1202_v4 = vld [vmem:[%s7249_s2 + $0x450] sm:$0xff]  ;;  %v1199_v8 = vld [vmem:[%s7249_s2 + $0x438] sm:$0xff]  ;;  %s342_s11 = sadd.s32 1, %s4151_s30  ;;  %s4179_s25 = sld [smem:[#allocation4 + %s4151_s30]]  ;;  %322 = vst [vmem:[#allocation2 + $0x10] sm:$0xff] %v4034_v18 }
  0x28   : > { %1442 = vmatpush.msra.mxu2 %v1205_v1  ;;  %v1157_v3 = vld [vmem:[%s7249_s2 + $0x2e8] sm:$0xff]  ;;  %v1154_v7 = vld [vmem:[%s7249_s2 + $0x2d0] sm:$0xff]  ;;  %v1151_v10 = vld [vmem:[%s7249_s2 + $0x2b8] sm:$0xff]  ;;  %s347_s26 = sadd.s32 2, %s4151_s30  ;;  %s352_s20 = sadd.s32 3, %s4151_s30  ;;  %324 = vst [vmem:[#allocation2 + $0x28] sm:$0xff] %v4034_v18 }
  0x29   : > { %v1253_v5 = vld [vmem:[%s7249_s2 + $0x5e8] sm:$0xff]  ;;  %1377 = vmatpush.msra.mxu1 %v1157_v3  ;;  %1313 = vmatpush.msra.mxu0 %v1106_v2  ;;  %v1250_v9 = vld [vmem:[%s7249_s2 + $0x5d0] sm:$0xff]  ;;  %v1100_v11 = vld [vmem:[%s7249_s2 + $0x120] sm:$0xff]  ;;  %s4198_s27 = sld [smem:[#allocation4 + %s342_s11]]  ;;  %s357_s28 = sadd.s32 4, %s4151_s30  ;;  %326 = vst [vmem:[#allocation2 + $0x40] sm:$0xff] %v4034_v18 }
  0x2a   : > { %1507 = vmatpush.msra.mxu3 %v1253_v5  ;;  %1443 = vmatpush.msra.mxu2 %v1202_v4  ;;  %v1196_v12 = vld [vmem:[%s7249_s2 + $0x420] sm:$0xff]  ;;  %v1247_v13 = vld [vmem:[%s7249_s2 + $0x5b8] sm:$0xff]  ;;  %v1097_v16 = vld [vmem:[%s7249_s2 + $0x108] sm:$0xff]  ;;  %s4207_s17 = sld [smem:[#allocation4 + %s347_s26]]  ;;  %s362_s24 = sadd.s32 5, %s4151_s30  ;;  %328 = vst [vmem:[#allocation2 + $0x58] sm:$0xff] %v4034_v18 }
  0x2b   : > { %1378 = vmatpush.msra.mxu1 %v1154_v7  ;;  %1314 = vmatpush.msra.mxu0 %v1103_v6  ;;  %v1148_v14 = vld [vmem:[%s7249_s2 + $0x2a0] sm:$0xff]  ;;  %v1193_v17 = vld [vmem:[%s7249_s2 + $0x408] sm:$0xff]  ;;  %s4216_s29 = sld [smem:[#allocation4 + %s352_s20]]  ;;  %s367_s10 = sadd.s32 6, %s4151_s30  ;;  %v1094_v21 = vld [vmem:[%s7249_s2 + $0xf0] sm:$0xff]  ;;  %330 = vst [vmem:[#allocation2 + $0x70] sm:$0xff] %v4034_v18 }
  0x2c   : > { %1508 = vmatpush.msra.mxu3 %v1250_v9  ;;  %1444 = vmatpush.msra.mxu2 %v1199_v8  ;;  %v1244_v15 = vld [vmem:[%s7249_s2 + $0x5a0] sm:$0xff]  ;;  %v1145_v19 = vld [vmem:[%s7249_s2 + $0x288] sm:$0xff]  ;;  %v1190_v22 = vld [vmem:[%s7249_s2 + $0x3f0] sm:$0xff]  ;;  %s4225_s15 = sld [smem:[#allocation4 + %s357_s28]]  ;;  %s372_s21 = sadd.s32 7, %s4151_s30  ;;  %332 = vst [vmem:[#allocation2 + $0x88] sm:$0xff] %v4034_v18 }
  0x2d   : > { %1379 = vmatpush.msra.mxu1 %v1151_v10  ;;  %1315 = vmatpush.msra.mxu0 %v1100_v11  ;;  %v1241_v20 = vld [vmem:[%s7249_s2 + $0x588] sm:$0xff]  ;;  %v1142_v23 = vld [vmem:[%s7249_s2 + $0x270] sm:$0xff]  ;;  %s4234_s26 = sld [smem:[#allocation4 + %s362_s24]]  ;;  %v1091_v25 = vld [vmem:[%s7249_s2 + $0xd8] sm:$0xff]  ;;  %s377_s20 = sadd.s32 8, %s4151_s30  ;;  %334 = vst [vmem:[#allocation2 + $0xa0] sm:$0xff] %v4034_v18 }
  0x2e   : > { %1509 = vmatpush.msra.mxu3 %v1247_v13  ;;  %1445 = vmatpush.msra.mxu2 %v1196_v12  ;;  %v1238_v24 = vld [vmem:[%s7249_s2 + $0x570] sm:$0xff]  ;;  %v1187_v26 = vld [vmem:[%s7249_s2 + $0x3d8] sm:$0xff]  ;;  %s4242_s18 = sld [smem:[#allocation4 + %s367_s10]]  ;;  %v1088_v29 = vld [vmem:[%s7249_s2 + $0xc0] sm:$0xff]  ;;  %s382_s11 = sadd.s32 9, %s4151_s30  ;;  %336 = vst [vmem:[#allocation2 + $0xb8] sm:$0xff] %v4034_v18 }
  0x2f   : > { %1380 = vmatpush.msra.mxu1 %v1148_v14  ;;  %1316 = vmatpush.msra.mxu0 %v1097_v16  ;;  %v1139_v27 = vld [vmem:[%s7249_s2 + $0x258] sm:$0xff]  ;;  %s4255_s19 = sld [smem:[#allocation4 + %s372_s21]]  ;;  %v1184_v30 = vld [vmem:[%s7249_s2 + $0x3c0] sm:$0xff]  ;;  %v1085_v33 = vld [vmem:[%s7249_s2 + $0xa8] sm:$0xff]  ;;  %s387_s28 = sadd.s32 10, %s4151_s30 }
  0x30   : > { %1510 = vmatpush.msra.mxu3 %v1244_v15  ;;  %1446 = vmatpush.msra.mxu2 %v1193_v17  ;;  %v1235_v28 = vld [vmem:[%s7249_s2 + $0x558] sm:$0xff]  ;;  %s4263_s16 = sld [smem:[#allocation4 + %s377_s20]]  ;;  %v1136_v31 = vld [vmem:[%s7249_s2 + $0x240] sm:$0xff]  ;;  %v1181_v34 = vld [vmem:[%s7249_s2 + $0x3a8] sm:$0xff]  ;;  %s392_s6 = sadd.s32 11, %s4151_s30 }
  0x31   : > { %1381 = vmatpush.msra.mxu1 %v1145_v19  ;;  %1317 = vmatpush.msra.mxu0 %v1094_v21  ;;  %v1232_v32 = vld [vmem:[%s7249_s2 + $0x540] sm:$0xff]  ;;  %s4276_s12 = sld [smem:[#allocation4 + %s382_s11]]  ;;  %v1133_v35 = vld [vmem:[%s7249_s2 + $0x228] sm:$0xff]  ;;  %v1082_v37 = vld [vmem:[%s7249_s2 + $0x90] sm:$0xff]  ;;  %s397_s13 = sadd.s32 12, %s4151_s30 }
  0x32   : > { %1511 = vmatpush.msra.mxu3 %v1241_v20  ;;  %1447 = vmatpush.msra.mxu2 %v1190_v22  ;;  %v1229_v36 = vld [vmem:[%s7249_s2 + $0x528] sm:$0xff]  ;;  %s4296_s8 = sld [smem:[#allocation4 + %s387_s28]]  ;;  %v1178_v38 = vld [vmem:[%s7249_s2 + $0x390] sm:$0xff]  ;;  %v1079_v39 = vld [vmem:[%s7249_s2 + $0x78] sm:$0xff]  ;;  %s402_s23 = sadd.s32 13, %s4151_s30 }
  0x33   : > { %1382 = vmatpush.msra.mxu1 %v1142_v23  ;;  %1318 = vmatpush.msra.mxu0 %v1091_v25  ;;  %s4304_s24 = sld [smem:[#allocation4 + %s392_s6]]  ;;  %v1130_v40 = vld [vmem:[%s7249_s2 + $0x210] sm:$0xff]  ;;  %v1175_v42 = vld [vmem:[%s7249_s2 + $0x378] sm:$0xff]  ;;  %v1076_v43 = vld [vmem:[%s7249_s2 + $0x60] sm:$0xff]  ;;  %s407_s22 = sadd.s32 14, %s4151_s30 }
  0x34   : > { %1512 = vmatpush.msra.mxu3 %v1238_v24  ;;  %1448 = vmatpush.msra.mxu2 %v1187_v26  ;;  %v1226_v41 = vld [vmem:[%s7249_s2 + $0x510] sm:$0xff]  ;;  %s4320_s7 = sld [smem:[#allocation4 + %s397_s13]]  ;;  %v1127_v44 = vld [vmem:[%s7249_s2 + $0x1f8] sm:$0xff]  ;;  %v1172_v45 = vld [vmem:[%s7249_s2 + $0x360] sm:$0xff]  ;;  %s359_s6 = scalar_lea.vmem %s7248_s1, %s4225_s15 }
  0x35   : > { %1383 = vmatpush.msra.mxu1 %v1139_v27  ;;  %1319 = vmatpush.msra.mxu0 %v1088_v29  ;;  %v1223_v46 = vld [vmem:[%s7249_s2 + $0x4f8] sm:$0xff]  ;;  %v1124_v47 = vld [vmem:[%s7249_s2 + $0x1e0] sm:$0xff]  ;;  %s4346_s5 = sld [smem:[#allocation4 + %s402_s23]]  ;;  %v1073_v48 = vld [vmem:[%s7249_s2 + $0x48] sm:$0xff]  ;;  %s7328_s15 = scalar_lea.vmem %s7248_s1, %s4179_s25 }
  0x36   : > { %1513 = vmatpush.msra.mxu3 %v1235_v28  ;;  %1449 = vmatpush.msra.mxu2 %v1184_v30  ;;  %v1169_v49 = vld [vmem:[%s7249_s2 + $0x348] sm:$0xff]  ;;  %v1220_v50 = vld [vmem:[%s7249_s2 + $0x4e0] sm:$0xff]  ;;  %s364_s4 = scalar_lea.vmem %s7248_s1, %s4234_s26  ;;  %s4366_s13 = sld [smem:[#allocation4 + %s407_s22]]  ;;  %v1070_v55 = vld [vmem:[%s7249_s2 + $0x30] sm:$0xff] }
  0x37   : > { %1384 = vmatpush.msra.mxu1 %v1136_v31  ;;  %1320 = vmatpush.msra.mxu0 %v1085_v33  ;;  %v340_v51 = vld [vmem:[%s7328_s15] sm:$0x1]  ;;  %v1121_v52 = vld [vmem:[%s7249_s2 + $0x1c8] sm:$0xff]  ;;  %s7329_s25 = scalar_lea.vmem %s7248_s1, %s4198_s27  ;;  %s7330_s14 = scalar_lea.vmem %s7248_s1, %s4207_s17  ;;  %v1166_v56 = vld [vmem:[%s7249_s2 + $0x330] sm:$0xff] }
  0x38   : > { %1514 = vmatpush.msra.mxu3 %v1232_v32  ;;  %1450 = vmatpush.msra.mxu2 %v1181_v34  ;;  %341 = vst [vmem:[#allocation2] sm:$0x1] %v340_v51  ;;  %v345_v53 = vld [vmem:[%s7329_s25] sm:$0x1]  ;;  %s369_s21 = scalar_lea.vmem %s7248_s1, %s4242_s18  ;;  %s7331_s11 = scalar_lea.vmem %s7248_s1, %s4216_s29  ;;  %v1217_v59 = vld [vmem:[%s7249_s2 + $0x4c8] sm:$0xff]  ;;  %v1118_v60 = vld [vmem:[%s7249_s2 + $0x1b0] sm:$0xff] }
  0x39   : > { %1385 = vmatpush.msra.mxu1 %v1133_v35  ;;  %1321 = vmatpush.msra.mxu0 %v1082_v37  ;;  %v350_v54 = vld [vmem:[%s7330_s14] sm:$0x1]  ;;  %346 = vst [vmem:[#allocation2 + $0x1] sm:$0x1] %v345_v53  ;;  %s374_s25 = scalar_lea.vmem %s7248_s1, %s4255_s19  ;;  %s379_s22 = scalar_lea.vmem %s7248_s1, %s4263_s16  ;;  %v1067_v62 = vld [vmem:[%s7249_s2 + $0x18] sm:$0xff]  ;;  %v1214_v0 = vld [vmem:[%s7249_s2 + $0x4b0] sm:$0xff] }
  0x3a   : > { %1515 = vmatpush.msra.mxu3 %v1229_v36  ;;  %1451 = vmatpush.msra.mxu2 %v1178_v38  ;;  %v355_v57 = vld [vmem:[%s7331_s11] sm:$0x1]  ;;  %351 = vst [vmem:[#allocation2 + $0x2] sm:$0x1] %v350_v54  ;;  %s384_s23 = scalar_lea.vmem %s7248_s1, %s4276_s12  ;;  %v1163_v63 = vld [vmem:[%s7249_s2 + $0x318] sm:$0xff]  ;;  %s389_s12 = scalar_lea.vmem %s7248_s1, %s4296_s8  ;;  %v1158_v9 = vld [vmem:[%s7249_s2 + $0x2f0] sm:$0xff] }
  0x3b   : > { %1386 = vmatpush.msra.mxu1 %v1130_v40  ;;  %1322 = vmatpush.msra.mxu0 %v1079_v39  ;;  %v360_v58 = vld [vmem:[%s359_s6] sm:$0x1]  ;;  %356 = vst [vmem:[#allocation2 + $0x3] sm:$0x1] %v355_v57  ;;  %s412_s18 = sadd.s32 15, %s4151_s30  ;;  %v1115_v2 = vld [vmem:[%s7249_s2 + $0x198] sm:$0xff]  ;;  %s394_s6 = scalar_lea.vmem %s7248_s1, %s4304_s24 }
  0x3c   : > { %1516 = vmatpush.msra.mxu3 %v1226_v41  ;;  %1452 = vmatpush.msra.mxu2 %v1175_v42  ;;  %v365_v61 = vld [vmem:[%s364_s4] sm:$0x1]  ;;  %v1211_v3 = vld [vmem:[%s7249_s2 + $0x498] sm:$0xff]  ;;  %361 = vst [vmem:[#allocation2 + $0x4] sm:$0x1] %v360_v58  ;;  %s399_s0 = scalar_lea.vmem %s7248_s1, %s4320_s7  ;;  %s404_s4 = scalar_lea.vmem %s7248_s1, %s4346_s5  ;;  %v1301_v13 = vld [vmem:[%s7249_s2 + $0x768] sm:$0xff] }
  0x3d   : > { %1387 = vmatpush.msra.mxu1 %v1127_v44  ;;  %1323 = vmatpush.msra.mxu0 %v1076_v43  ;;  %v370_v1 = vld [vmem:[%s369_s21] sm:$0x1]  ;;  %366 = vst [vmem:[#allocation2 + $0x5] sm:$0x1] %v365_v61  ;;  %s409_s7 = scalar_lea.vmem %s7248_s1, %s4366_s13  ;;  %s4462_s20 = sld [smem:[#allocation4 + %s412_s18]]  ;;  %v1110_v17 = vld [vmem:[%s7249_s2 + $0x170] sm:$0xff] }
  0x3e   : > { %1517 = vmatpush.msra.mxu3 %v1223_v46  ;;  %1453 = vmatpush.msra.mxu2 %v1172_v45  ;;  %v375_v4 = vld [vmem:[%s374_s25] sm:$0x1]  ;;  %371 = vst [vmem:[#allocation2 + $0x6] sm:$0x1] %v370_v1  ;;  %s4474_s18 = sadd.s32 128, %s4151_s30  ;;  %v1155_v19 = vld [vmem:[%s7249_s2 + $0x2d8] sm:$0xff] }
  0x3f   : > { %1388 = vmatpush.msra.mxu1 %v1124_v47  ;;  %1324 = vmatpush.msra.mxu0 %v1073_v48  ;;  %v1064_v5 = vld [vmem:[%s7249_s2] sm:$0xff]  ;;  %376 = vst [vmem:[#allocation2 + $0x7] sm:$0x1] %v375_v4  ;;  %v1298_v20 = vld [vmem:[%s7249_s2 + $0x750] sm:$0xff]  ;;  %s4483_s19 = sld [smem:[#allocation4 + %s4474_s18]]  ;;  %s423_s10 = sadd.s32 1, %s4474_s18 }
  0x40   : > { %1518 = vmatpush.msra.mxu3 %v1220_v50  ;;  %1454 = vmatpush.msra.mxu2 %v1169_v49  ;;  %v1160_v6 = vld [vmem:[%s7249_s2 + $0x300] sm:$0xff]  ;;  %s4486_s27 = sld [smem:[#allocation4 + %s423_s10]]  ;;  %s428_s25 = sadd.s32 2, %s4474_s18  ;;  %v1107_v21 = vld [vmem:[%s7249_s2 + $0x158] sm:$0xff]  ;;  %v1149_v29 = vld [vmem:[%s7249_s2 + $0x2a8] sm:$0xff] }
  0x41   : > { %1389 = vmatpush.msra.mxu1 %v1121_v52  ;;  %v380_v7 = vld [vmem:[%s379_s22] sm:$0x1]  ;;  %1325 = vmatpush.msra.mxu0 %v1070_v55  ;;  %s4496_s16 = sld [smem:[#allocation4 + %s428_s25]]  ;;  %s433_s22 = sadd.s32 3, %s4474_s18  ;;  %v1295_v25 = vld [vmem:[%s7249_s2 + $0x738] sm:$0xff]  ;;  %v1101_v33 = vld [vmem:[%s7249_s2 + $0x128] sm:$0xff] }
  0x42   : > { %1519 = vmatpush.msra.mxu3 %v1217_v59  ;;  %v385_v8 = vld [vmem:[%s384_s23] sm:$0x1]  ;;  %1455 = vmatpush.msra.mxu2 %v1166_v56  ;;  %381 = vst [vmem:[#allocation2 + $0x8] sm:$0x1] %v380_v7  ;;  %s438_s23 = sadd.s32 4, %s4474_s18  ;;  %s448_s21 = sadd.s32 6, %s4474_s18 }
  0x43   : > { %v1112_v10 = vld [vmem:[%s7249_s2 + $0x180] sm:$0xff]  ;;  %1390 = vmatpush.msra.mxu1 %v1118_v60  ;;  %1326 = vmatpush.msra.mxu0 %v1067_v62  ;;  %386 = vst [vmem:[#allocation2 + $0x9] sm:$0x1] %v385_v8  ;;  %s414_s24 = scalar_lea.vmem %s7248_s1, %s4462_s20  ;;  %s443_s20 = sadd.s32 5, %s4474_s18  ;;  %v1146_v48 = vld [vmem:[%s7249_s2 + $0x290] sm:$0xff]  ;;  %v1289_v50 = vld [vmem:[%s7249_s2 + $0x708] sm:$0xff] }
  0x44   : > { %v390_v11 = vld [vmem:[%s389_s12] sm:$0x1]  ;;  %1520 = vmatpush.msra.mxu3 %v1214_v0  ;;  %1456 = vmatpush.msra.mxu2 %v1163_v63  ;;  %s4509_s26 = sld [smem:[#allocation4 + %s438_s23]]  ;;  %s453_s5 = sadd.s32 7, %s4474_s18  ;;  %v1098_v51 = vld [vmem:[%s7249_s2 + $0x110] sm:$0xff]  ;;  %v1143_v61 = vld [vmem:[%s7249_s2 + $0x278] sm:$0xff] }
  0x45   : > { %v1208_v12 = vld [vmem:[%s7249_s2 + $0x480] sm:$0xff]  ;;  %1391 = vmatpush.msra.mxu1 %v1115_v2  ;;  %1327 = vmatpush.msra.mxu0 %v1064_v5  ;;  %391 = vst [vmem:[#allocation2 + $0xa] sm:$0x1] %v390_v11  ;;  %s420_s8 = scalar_lea.vmem %s7248_s1, %s4483_s19  ;;  %s4519_s15 = sld [smem:[#allocation4 + %s443_s20]]  ;;  %v1286_v62 = vld [vmem:[%s7249_s2 + $0x6f0] sm:$0xff]  ;;  %v1095_v63 = vld [vmem:[%s7249_s2 + $0xf8] sm:$0xff] }
  0x46   : > { %v395_v14 = vld [vmem:[%s394_s6] sm:$0x1]  ;;  %1521 = vmatpush.msra.mxu3 %v1211_v3  ;;  %1457 = vmatpush.msra.mxu2 %v1160_v6  ;;  %s425_s19 = scalar_lea.vmem %s7248_s1, %s4486_s27  ;;  %s4531_s11 = sld [smem:[#allocation4 + %s448_s21]] }
  0x47   : > { %v400_v15 = vld [vmem:[%s399_s0] sm:$0x1]  ;;  %1392 = vmatpush.msra.mxu1 %v1112_v10  ;;  %396 = vst [vmem:[#allocation2 + $0xb] sm:$0x1] %v395_v14  ;;  %1572 = vmatpush.msrb.mxu0 %v1301_v13  ;;  %s430_s20 = scalar_lea.vmem %s7248_s1, %s4496_s16  ;;  %s4541_s27 = sld [smem:[#allocation4 + %s453_s5]] }
  0x48   : > { %v405_v16 = vld [vmem:[%s404_s4] sm:$0x1]  ;;  %1702 = vmatpush.msrb.mxu2 %v1158_v9  ;;  %1522 = vmatpush.msra.mxu3 %v1208_v12  ;;  %401 = vst [vmem:[#allocation2 + $0xc] sm:$0x1] %v400_v15  ;;  %s458_s14 = sadd.s32 8, %s4474_s18  ;;  %s463_s10 = sadd.s32 9, %s4474_s18 }
  0x49   : > { %v410_v18 = vld [vmem:[%s409_s7] sm:$0x1]  ;;  %1637 = vmatpush.msrb.mxu1 %v1110_v17  ;;  %406 = vst [vmem:[#allocation2 + $0xd] sm:$0x1] %v405_v16  ;;  %1573 = vmatpush.msrb.mxu0 %v1298_v20  ;;  %s4503_s7 = sld [smem:[#allocation4 + %s433_s22]]  ;;  %v986_v26 = vld [vmem:[#allocation2 + $0x1] sm:$0xff] }
  0x4a   : > { %v1152_v22 = vld [vmem:[%s7249_s2 + $0x2c0] sm:$0xff]  ;;  %1703 = vmatpush.msrb.mxu2 %v1155_v19  ;;  %411 = vst [vmem:[#allocation2 + $0xe] sm:$0x1] %v410_v18  ;;  %1393 = vmatmul.f32.vlgmr.msra.gmra.mxu1 %v986_v26  ;;  %s4548_s29 = sld [smem:[#allocation4 + %s458_s14]]  ;;  %s473_s9 = sadd.s32 11, %s4474_s18  ;;  %v1283_v15 = vld [vmem:[%s7249_s2 + $0x6d8] sm:$0xff] }
  0x4b   : > { %v415_v23 = vld [vmem:[%s414_s24] sm:$0x1]  ;;  %1638 = vmatpush.msrb.mxu1 %v1107_v21  ;;  %v988_v28 = vld [vmem:[#allocation2 + $0x2] sm:$0xff]  ;;  %1574 = vmatpush.msrb.mxu0 %v1295_v25  ;;  %s464_s17 = sld [smem:[#allocation4 + %s463_s10]]  ;;  %s478_s21 = sadd.s32 12, %s4474_s18 }
  0x4c   : > { %v984_v24 = vld [vmem:[#allocation2] sm:$0xff]  ;;  %416 = vst [vmem:[#allocation2 + $0xf] sm:$0x1] %v415_v23  ;;  %1704 = vmatpush.msrb.mxu2 %v1152_v22  ;;  %s479_s13 = sld [smem:[#allocation4 + %s478_s21]]  ;;  %s488_s10 = sadd.s32 14, %s4474_s18 }
  0x4d   : > { %1328 = vmatmul.f32.vlgmr.msra.gmra.mxu0 %v984_v24  ;;  %v1104_v27 = vld [vmem:[%s7249_s2 + $0x140] sm:$0xff]  ;;  %1458 = vmatmul.f32.vlgmr.msra.gmra.mxu2 %v988_v28  ;;  %s455_s23 = scalar_lea.vmem %s7248_s1, %s4541_s27  ;;  %s493_s25 = sadd.s32 15, %s4474_s18  ;;  %v1137_v28 = vld [vmem:[%s7249_s2 + $0x248] sm:$0xff] }
  0x4e   : > { %v1292_v30 = vld [vmem:[%s7249_s2 + $0x720] sm:$0xff]  ;;  %1639 = vmatpush.msrb.mxu1 %v1104_v27  ;;  %1705 = vmatpush.msrb.mxu2 %v1149_v29  ;;  %s4585_s24 = sld [smem:[#allocation4 + %s488_s10]]  ;;  %s5080_s0 = sadd.s32 768, %s4151_s30 }
  0x4f   : > { %v990_v31 = vld [vmem:[#allocation2 + $0x3] sm:$0xff]  ;;  %v421_v32 = vld [vmem:[%s420_s8] sm:$0x1]  ;;  %1575 = vmatpush.msrb.mxu0 %v1292_v30  ;;  %s435_s12 = scalar_lea.vmem %s7248_s1, %s4503_s7  ;;  %s440_s8 = scalar_lea.vmem %s7248_s1, %s4509_s26 }
  0x50   : > { %1523 = vmatmul.f32.vlgmr.msra.gmra.mxu3 %v990_v31  ;;  %422 = vst [vmem:[#allocation2 + $0x18] sm:$0x1] %v421_v32  ;;  %v426_v34 = vld [vmem:[%s425_s19] sm:$0x1]  ;;  %1640 = vmatpush.msrb.mxu1 %v1101_v33  ;;  %s445_s7 = scalar_lea.vmem %s7248_s1, %s4519_s15  ;;  %s450_s26 = scalar_lea.vmem %s7248_s1, %s4531_s11  ;;  %v1089_v30 = vld [vmem:[%s7249_s2 + $0xc8] sm:$0xff] }
  0x51   : > { %427 = vst [vmem:[#allocation2 + $0x19] sm:$0x1] %v426_v34  ;;  %v431_v35 = vld [vmem:[%s430_s20] sm:$0x1]  ;;  %s468_s19 = sadd.s32 10, %s4474_s18  ;;  %s474_s20 = sld [smem:[#allocation4 + %s473_s9]]  ;;  %1706 = vmatpush.msrb.mxu2 %v1146_v48  ;;  %1576 = vmatpush.msrb.mxu0 %v1289_v50 }
  0x52   : > { %432 = vst [vmem:[#allocation2 + $0x1a] sm:$0x1] %v431_v35  ;;  %v436_v36 = vld [vmem:[%s435_s12] sm:$0x1]  ;;  %s469_s28 = sld [smem:[#allocation4 + %s468_s19]]  ;;  %s460_s14 = scalar_lea.vmem %s7248_s1, %s4548_s29  ;;  %1641 = vmatpush.msrb.mxu1 %v1098_v51 }
  0x53   : > { %v985_v37 = vld [vmem:[#allocation2 + $0x8] sm:$0xff]  ;;  %437 = vst [vmem:[#allocation2 + $0x1b] sm:$0x1] %v436_v36  ;;  %v441_v41 = vld [vmem:[%s440_s8] sm:$0x1]  ;;  %s483_s12 = sadd.s32 13, %s4474_s18  ;;  %s465_s27 = scalar_lea.vmem %s7248_s1, %s464_s17  ;;  %1707 = vmatpush.msrb.mxu2 %v1143_v61  ;;  %1577 = vmatpush.msrb.mxu0 %v1286_v62 }
  0x54   : > { %v989_v38 = vld [vmem:[#allocation2 + $0xa] sm:$0xff]  ;;  %v446_v42 = vld [vmem:[%s445_s7] sm:$0x1]  ;;  %442 = vst [vmem:[#allocation2 + $0x1c] sm:$0x1] %v441_v41  ;;  %s4578_s8 = sld [smem:[#allocation4 + %s483_s12]]  ;;  %s490_s29 = scalar_lea.vmem %s7248_s1, %s4585_s24  ;;  %1642 = vmatpush.msrb.mxu1 %v1095_v63 }
  0x55   : > { %v987_v39 = vld [vmem:[#allocation2 + $0x9] sm:$0xff]  ;;  %1331 = vmatmul.f32.gmra.mxu0 %v985_v37  ;;  %v451_v43 = vld [vmem:[%s450_s26] sm:$0x1]  ;;  %1461 = vmatmul.f32.gmra.mxu2 %v989_v38  ;;  %447 = vst [vmem:[#allocation2 + $0x1d] sm:$0x1] %v446_v42  ;;  %s4590_s17 = sld [smem:[#allocation4 + %s493_s25]] }
  0x56   : > { %v991_v40 = vld [vmem:[#allocation2 + $0xb] sm:$0xff]  ;;  %1396 = vmatmul.f32.gmra.mxu1 %v987_v39  ;;  %452 = vst [vmem:[#allocation2 + $0x1e] sm:$0x1] %v451_v43  ;;  %v456_v44 = vld [vmem:[%s455_s23] sm:$0x1]  ;;  %s4596_s18 = sadd.s32 256, %s4151_s30  ;;  %1578 = vmatpush.msrb.mxu0 %v1283_v15 }
  0x57   : > { %457 = vst [vmem:[#allocation2 + $0x1f] sm:$0x1] %v456_v44  ;;  %v461_v45 = vld [vmem:[%s460_s14] sm:$0x1]  ;;  %s475_s19 = scalar_lea.vmem %s7248_s1, %s474_s20  ;;  %s480_s20 = scalar_lea.vmem %s7248_s1, %s479_s13  ;;  %v1134_v44 = vld [vmem:[%s7249_s2 + $0x230] sm:$0xff] }
  0x58   : > { %1526 = vmatmul.f32.gmra.mxu3 %v991_v40  ;;  %462 = vst [vmem:[#allocation2 + $0x20] sm:$0x1] %v461_v45  ;;  %v466_v46 = vld [vmem:[%s465_s27] sm:$0x1]  ;;  %s470_s7 = scalar_lea.vmem %s7248_s1, %s469_s28  ;;  %s4599_s28 = sadd.s32 384, %s4151_s30 }
  0x59   : > { %467 = vst [vmem:[#allocation2 + $0x21] sm:$0x1] %v466_v46  ;;  %v471_v47 = vld [vmem:[%s470_s7] sm:$0x1]  ;;  %s4605_s11 = sld [smem:[#allocation4 + %s4596_s18]]  ;;  %s504_s13 = sadd.s32 1, %s4596_s18 }
  0x5a   : > { %472 = vst [vmem:[#allocation2 + $0x22] sm:$0x1] %v471_v47  ;;  %v476_v49 = vld [vmem:[%s475_s19] sm:$0x1]  ;;  %s485_s27 = scalar_lea.vmem %s7248_s1, %s4578_s8  ;;  %s4618_s10 = sld [smem:[#allocation4 + %s504_s13]]  ;;  %v1277_v46 = vld [vmem:[%s7249_s2 + $0x6a8] sm:$0xff] }
  0x5b   : > { %477 = vst [vmem:[#allocation2 + $0x23] sm:$0x1] %v476_v49  ;;  %v481_v53 = vld [vmem:[%s480_s20] sm:$0x1]  ;;  %s509_s7 = sadd.s32 2, %s4596_s18  ;;  %s495_s26 = scalar_lea.vmem %s7248_s1, %s4590_s17  ;;  %v1086_v47 = vld [vmem:[%s7249_s2 + $0xb0] sm:$0xff] }
  0x5c   : > { %482 = vst [vmem:[#allocation2 + $0x24] sm:$0x1] %v481_v53  ;;  %v486_v55 = vld [vmem:[%s485_s27] sm:$0x1]  ;;  %s4629_s19 = sld [smem:[#allocation4 + %s509_s7]]  ;;  %s514_s9 = sadd.s32 3, %s4596_s18 }
  0x5d   : > { %487 = vst [vmem:[#allocation2 + $0x25] sm:$0x1] %v486_v55  ;;  %v491_v57 = vld [vmem:[%s490_s29] sm:$0x1]  ;;  %s519_s15 = sadd.s32 4, %s4596_s18  ;;  %s4637_s20 = sld [smem:[#allocation4 + %s514_s9]] }
  0x5e   : > { %v994_v52 = vld [vmem:[#allocation2 + $0x18] sm:$0xff]  ;;  %492 = vst [vmem:[#allocation2 + $0x26] sm:$0x1] %v491_v57  ;;  %v496_v58 = vld [vmem:[%s495_s26] sm:$0x1]  ;;  %s4639_s17 = sld [smem:[#allocation4 + %s519_s15]] }
  0x5f   : > { %1334 = vmatmul.f32.gmra.mxu0 %v994_v52  ;;  %v996_v54 = vld [vmem:[#allocation2 + $0x19] sm:$0xff]  ;;  %497 = vst [vmem:[#allocation2 + $0x27] sm:$0x1] %v496_v58  ;;  %s501_s23 = scalar_lea.vmem %s7248_s1, %s4605_s11  ;;  %s524_s5 = sadd.s32 5, %s4596_s18  ;;  %v1274_v58 = vld [vmem:[%s7249_s2 + $0x690] sm:$0xff] }
  0x60   : > { %1399 = vmatmul.f32.gmra.mxu1 %v996_v54  ;;  %v998_v56 = vld [vmem:[#allocation2 + $0x1a] sm:$0xff]  ;;  %s506_s6 = scalar_lea.vmem %s7248_s1, %s4618_s10  ;;  %s4649_s27 = sld [smem:[#allocation4 + %s524_s5]] }
  0x61   : > { %1464 = vmatmul.f32.gmra.mxu2 %v998_v56  ;;  %v1000_v59 = vld [vmem:[#allocation2 + $0x1b] sm:$0xff]  ;;  %s529_s29 = sadd.s32 6, %s4596_s18  ;;  %s534_s7 = sadd.s32 7, %s4596_s18 }
  0x62   : > { %1529 = vmatmul.f32.gmra.mxu3 %v1000_v59  ;;  %v502_v60 = vld [vmem:[%s501_s23] sm:$0x1]  ;;  %s511_s4 = scalar_lea.vmem %s7248_s1, %s4629_s19  ;;  %s4663_s26 = sld [smem:[#allocation4 + %s529_s29]]  ;;  %v1131_v57 = vld [vmem:[%s7249_s2 + $0x218] sm:$0xff] }
  0x63   : > { %503 = vst [vmem:[#allocation2 + $0x30] sm:$0x1] %v502_v60  ;;  %v507_v0 = vld [vmem:[%s506_s6] sm:$0x1]  ;;  %s4665_s9 = sld [smem:[#allocation4 + %s534_s7]]  ;;  %s539_s15 = sadd.s32 8, %s4596_s18 }
  0x64   : > { %508 = vst [vmem:[#allocation2 + $0x31] sm:$0x1] %v507_v0  ;;  %v512_v1 = vld [vmem:[%s511_s4] sm:$0x1]  ;;  %s516_s23 = scalar_lea.vmem %s7248_s1, %s4637_s20  ;;  %s4672_s5 = sld [smem:[#allocation4 + %s539_s15]]  ;;  %v1083_v59 = vld [vmem:[%s7249_s2 + $0x98] sm:$0xff] }
  0x65   : > { %513 = vst [vmem:[#allocation2 + $0x32] sm:$0x1] %v512_v1  ;;  %s521_s21 = scalar_lea.vmem %s7248_s1, %s4639_s17  ;;  %s544_s12 = sadd.s32 9, %s4596_s18  ;;  %v517_v6 = vld [vmem:[%s516_s23] sm:$0x1] }
  0x66   : > { %v995_v2 = vld [vmem:[#allocation2 + $0x20] sm:$0xff]  ;;  %s526_s6 = scalar_lea.vmem %s7248_s1, %s4649_s27  ;;  %s545_s11 = sld [smem:[#allocation4 + %s544_s12]]  ;;  %518 = vst [vmem:[#allocation2 + $0x33] sm:$0x1] %v517_v6 }
  0x67   : > { %v999_v3 = vld [vmem:[#allocation2 + $0x22] sm:$0xff]  ;;  %1337 = vmatmul.f32.gmra.mxu0 %v995_v2  ;;  %v522_v7 = vld [vmem:[%s521_s21] sm:$0x1]  ;;  %s549_s17 = sadd.s32 10, %s4596_s18  ;;  %s554_s13 = sadd.s32 11, %s4596_s18 }
  0x68   : > { %v997_v4 = vld [vmem:[#allocation2 + $0x21] sm:$0xff]  ;;  %v527_v8 = vld [vmem:[%s526_s6] sm:$0x1]  ;;  %523 = vst [vmem:[#allocation2 + $0x34] sm:$0x1] %v522_v7  ;;  %s531_s29 = scalar_lea.vmem %s7248_s1, %s4663_s26  ;;  %s550_s7 = sld [smem:[#allocation4 + %s549_s17]] }
  0x69   : > { %1467 = vmatmul.f32.gmra.mxu2 %v999_v3  ;;  %v1001_v5 = vld [vmem:[#allocation2 + $0x23] sm:$0xff]  ;;  %1402 = vmatmul.f32.gmra.mxu1 %v997_v4  ;;  %528 = vst [vmem:[#allocation2 + $0x35] sm:$0x1] %v527_v8  ;;  %v532_v9 = vld [vmem:[%s531_s29] sm:$0x1]  ;;  %s536_s8 = scalar_lea.vmem %s7248_s1, %s4665_s9  ;;  %s555_s4 = sld [smem:[#allocation4 + %s554_s13]] }
  0x6a   : > { %1532 = vmatmul.f32.gmra.mxu3 %v1001_v5  ;;  %533 = vst [vmem:[#allocation2 + $0x36] sm:$0x1] %v532_v9  ;;  %v537_v10 = vld [vmem:[%s536_s8] sm:$0x1]  ;;  %s541_s22 = scalar_lea.vmem %s7248_s1, %s4672_s5  ;;  %s559_s23 = sadd.s32 12, %s4596_s18 }
  0x6b   : > { %538 = vst [vmem:[#allocation2 + $0x37] sm:$0x1] %v537_v10  ;;  %v542_v11 = vld [vmem:[%s541_s22] sm:$0x1]  ;;  %s560_s26 = sld [smem:[#allocation4 + %s559_s23]]  ;;  %s564_s19 = sadd.s32 13, %s4596_s18 }
  0x6c   : > { %543 = vst [vmem:[#allocation2 + $0x38] sm:$0x1] %v542_v11  ;;  %s546_s12 = scalar_lea.vmem %s7248_s1, %s545_s11  ;;  %s4702_s20 = sld [smem:[#allocation4 + %s564_s19]]  ;;  %v1140_v13 = vld [vmem:[%s7249_s2 + $0x260] sm:$0xff]  ;;  %v1271_v11 = vld [vmem:[%s7249_s2 + $0x678] sm:$0xff] }
  0x6d   : > { %v547_v12 = vld [vmem:[%s546_s12] sm:$0x1]  ;;  %s569_s9 = sadd.s32 14, %s4596_s18  ;;  %s574_s16 = sadd.s32 15, %s4596_s18  ;;  %1708 = vmatpush.msrb.mxu2 %v1140_v13 }
  0x6e   : > { %548 = vst [vmem:[#allocation2 + $0x39] sm:$0x1] %v547_v12  ;;  %s551_s17 = scalar_lea.vmem %s7248_s1, %s550_s7  ;;  %s4709_s13 = sld [smem:[#allocation4 + %s569_s9]]  ;;  %v1092_v16 = vld [vmem:[%s7249_s2 + $0xe0] sm:$0xff] }
  0x6f   : > { %v552_v14 = vld [vmem:[%s551_s17] sm:$0x1]  ;;  %s556_s27 = scalar_lea.vmem %s7248_s1, %s555_s4  ;;  %s4717_s10 = sld [smem:[#allocation4 + %s574_s16]]  ;;  %1643 = vmatpush.msrb.mxu1 %v1092_v16  ;;  %1709 = vmatpush.msrb.mxu2 %v1137_v28 }
  0x70   : > { %553 = vst [vmem:[#allocation2 + $0x3a] sm:$0x1] %v552_v14  ;;  %v557_v17 = vld [vmem:[%s556_s27] sm:$0x1]  ;;  %s4726_s24 = sld [smem:[#allocation4 + %s4599_s28]]  ;;  %s585_s22 = sadd.s32 1, %s4599_s28 }
  0x71   : > { %558 = vst [vmem:[#allocation2 + $0x3b] sm:$0x1] %v557_v17  ;;  %s561_s19 = scalar_lea.vmem %s7248_s1, %s560_s26  ;;  %s4732_s14 = sld [smem:[#allocation4 + %s585_s22]]  ;;  %v1280_v29 = vld [vmem:[%s7249_s2 + $0x6c0] sm:$0xff]  ;;  %1644 = vmatpush.msrb.mxu1 %v1089_v30  ;;  %1710 = vmatpush.msrb.mxu2 %v1134_v44  ;;  %v1074_v44 = vld [vmem:[%s7249_s2 + $0x50] sm:$0xff] }
  0x72   : > { %v1004_v18 = vld [vmem:[#allocation2 + $0x30] sm:$0xff]  ;;  %v562_v19 = vld [vmem:[%s561_s19] sm:$0x1]  ;;  %s566_s9 = scalar_lea.vmem %s7248_s1, %s4702_s20  ;;  %s590_s16 = sadd.s32 2, %s4599_s28  ;;  %1579 = vmatpush.msrb.mxu0 %v1280_v29 }
  0x73   : > { %1340 = vmatmul.f32.gmra.mxu0 %v1004_v18  ;;  %v1006_v20 = vld [vmem:[#allocation2 + $0x31] sm:$0xff]  ;;  %563 = vst [vmem:[#allocation2 + $0x3c] sm:$0x1] %v562_v19  ;;  %v567_v21 = vld [vmem:[%s566_s9] sm:$0x1]  ;;  %s4739_s6 = sld [smem:[#allocation4 + %s590_s16]]  ;;  %1645 = vmatpush.msrb.mxu1 %v1086_v47 }
  0x74   : > { %1405 = vmatmul.f32.gmra.mxu1 %v1006_v20  ;;  %568 = vst [vmem:[#allocation2 + $0x3d] sm:$0x1] %v567_v21  ;;  %s571_s17 = scalar_lea.vmem %s7248_s1, %s4709_s13  ;;  %s595_s25 = sadd.s32 3, %s4599_s28  ;;  %1580 = vmatpush.msrb.mxu0 %v1277_v46  ;;  %v1128_v9 = vld [vmem:[%s7249_s2 + $0x200] sm:$0xff] }
  0x75   : > { %v1008_v22 = vld [vmem:[#allocation2 + $0x32] sm:$0xff]  ;;  %v572_v23 = vld [vmem:[%s571_s17] sm:$0x1]  ;;  %s576_s11 = scalar_lea.vmem %s7248_s1, %s4717_s10  ;;  %s4750_s29 = sld [smem:[#allocation4 + %s595_s25]]  ;;  %1711 = vmatpush.msrb.mxu2 %v1131_v57  ;;  %1646 = vmatpush.msrb.mxu1 %v1083_v59  ;;  %v1197_v57 = vld [vmem:[%s7249_s2 + $0x428] sm:$0xff] }
  0x76   : > { %1470 = vmatmul.f32.gmra.mxu2 %v1008_v22  ;;  %573 = vst [vmem:[#allocation2 + $0x3e] sm:$0x1] %v572_v23  ;;  %v577_v24 = vld [vmem:[%s576_s11] sm:$0x1]  ;;  %s582_s8 = scalar_lea.vmem %s7248_s1, %s4726_s24  ;;  %s600_s13 = sadd.s32 4, %s4599_s28  ;;  %1581 = vmatpush.msrb.mxu0 %v1274_v58  ;;  %v1262_v58 = vld [vmem:[%s7249_s2 + $0x630] sm:$0xff] }
  0x77   : > { %v1010_v25 = vld [vmem:[#allocation2 + $0x33] sm:$0xff]  ;;  %578 = vst [vmem:[#allocation2 + $0x3f] sm:$0x1] %v577_v24  ;;  %v583_v26 = vld [vmem:[%s582_s8] sm:$0x1]  ;;  %s587_s10 = scalar_lea.vmem %s7248_s1, %s4732_s14  ;;  %s4761_s22 = sld [smem:[#allocation4 + %s600_s13]]  ;;  %1712 = vmatpush.msrb.mxu2 %v1128_v9 }
  0x78   : > { %1535 = vmatmul.f32.gmra.mxu3 %v1010_v25  ;;  %584 = vst [vmem:[#allocation2 + $0x48] sm:$0x1] %v583_v26  ;;  %v588_v27 = vld [vmem:[%s587_s10] sm:$0x1]  ;;  %s605_s4 = sadd.s32 5, %s4599_s28  ;;  %s610_s23 = sadd.s32 6, %s4599_s28  ;;  %1582 = vmatpush.msrb.mxu0 %v1271_v11 }
  0x79   : > { %589 = vst [vmem:[#allocation2 + $0x49] sm:$0x1] %v588_v27  ;;  %s592_s21 = scalar_lea.vmem %s7248_s1, %s4739_s6  ;;  %s4769_s12 = sld [smem:[#allocation4 + %s605_s4]]  ;;  %v1080_v12 = vld [vmem:[%s7249_s2 + $0x80] sm:$0xff]  ;;  %v1125_v24 = vld [vmem:[%s7249_s2 + $0x1e8] sm:$0xff] }
  0x7a   : > { %v593_v31 = vld [vmem:[%s592_s21] sm:$0x1]  ;;  %s4780_s25 = sld [smem:[#allocation4 + %s610_s23]]  ;;  %s615_s6 = sadd.s32 7, %s4599_s28  ;;  %1647 = vmatpush.msrb.mxu1 %v1080_v12  ;;  %v1077_v26 = vld [vmem:[%s7249_s2 + $0x68] sm:$0xff]  ;;  %1713 = vmatpush.msrb.mxu2 %v1125_v24 }
  0x7b   : > { %594 = vst [vmem:[#allocation2 + $0x4a] sm:$0x1] %v593_v31  ;;  %s597_s11 = scalar_lea.vmem %s7248_s1, %s4750_s29  ;;  %s4787_s27 = sld [smem:[#allocation4 + %s615_s6]]  ;;  %v1268_v25 = vld [vmem:[%s7249_s2 + $0x660] sm:$0xff] }
  0x7c   : > { %v598_v32 = vld [vmem:[%s597_s11] sm:$0x1]  ;;  %s620_s18 = sadd.s32 8, %s4599_s28  ;;  %s625_s8 = sadd.s32 9, %s4599_s28  ;;  %1583 = vmatpush.msrb.mxu0 %v1268_v25  ;;  %1648 = vmatpush.msrb.mxu1 %v1077_v26 }
  0x7d   : > { %599 = vst [vmem:[#allocation2 + $0x4b] sm:$0x1] %v598_v32  ;;  %s602_s15 = scalar_lea.vmem %s7248_s1, %s4761_s22  ;;  %s4795_s10 = sld [smem:[#allocation4 + %s620_s18]]  ;;  %v1176_v24 = vld [vmem:[%s7249_s2 + $0x380] sm:$0xff] }
  0x7e   : > { %v1005_v33 = vld [vmem:[#allocation2 + $0x38] sm:$0xff]  ;;  %s4797_s29 = sld [smem:[#allocation4 + %s625_s8]]  ;;  %s630_s4 = sadd.s32 10, %s4599_s28  ;;  %v603_v37 = vld [vmem:[%s602_s15] sm:$0x1]  ;;  %1649 = vmatpush.msrb.mxu1 %v1074_v44 }
  0x7f   : > { %v1009_v34 = vld [vmem:[#allocation2 + $0x3a] sm:$0xff]  ;;  %1343 = vmatmul.f32.gmra.mxu0 %v1005_v33  ;;  %s607_s22 = scalar_lea.vmem %s7248_s1, %s4769_s12  ;;  %s631_s24 = sld [smem:[#allocation4 + %s630_s4]]  ;;  %604 = vst [vmem:[#allocation2 + $0x4c] sm:$0x1] %v603_v37 }
  0x80   : > { %v1007_v35 = vld [vmem:[#allocation2 + $0x39] sm:$0xff]  ;;  %1473 = vmatmul.f32.gmra.mxu2 %v1009_v34  ;;  %s612_s16 = scalar_lea.vmem %s7248_s1, %s4780_s25  ;;  %s635_s14 = sadd.s32 11, %s4599_s28 }
  0x81   : > { %v1011_v36 = vld [vmem:[#allocation2 + $0x3b] sm:$0xff]  ;;  %1408 = vmatmul.f32.gmra.mxu1 %v1007_v35  ;;  %s617_s17 = scalar_lea.vmem %s7248_s1, %s4787_s27  ;;  %s636_s12 = sld [smem:[#allocation4 + %s635_s14]] }
  0x82   : > { %1538 = vmatmul.f32.gmra.mxu3 %v1011_v36  ;;  %v608_v38 = vld [vmem:[%s607_s22] sm:$0x1]  ;;  %s640_s6 = sadd.s32 12, %s4599_s28  ;;  %s645_s20 = sadd.s32 13, %s4599_s28 }
  0x83   : > { %609 = vst [vmem:[#allocation2 + $0x4d] sm:$0x1] %v608_v38  ;;  %v613_v39 = vld [vmem:[%s612_s16] sm:$0x1]  ;;  %s622_s18 = scalar_lea.vmem %s7248_s1, %s4795_s10  ;;  %s641_s25 = sld [smem:[#allocation4 + %s640_s6]] }
  0x84   : > { %614 = vst [vmem:[#allocation2 + $0x4e] sm:$0x1] %v613_v39  ;;  %v618_v40 = vld [vmem:[%s617_s17] sm:$0x1]  ;;  %s627_s7 = scalar_lea.vmem %s7248_s1, %s4797_s29  ;;  %s4823_s15 = sld [smem:[#allocation4 + %s645_s20]] }
  0x85   : > { %619 = vst [vmem:[#allocation2 + $0x4f] sm:$0x1] %v618_v40  ;;  %v623_v41 = vld [vmem:[%s622_s18] sm:$0x1]  ;;  %s632_s23 = scalar_lea.vmem %s7248_s1, %s631_s24  ;;  %s650_s19 = sadd.s32 14, %s4599_s28  ;;  %v1122_v40 = vld [vmem:[%s7249_s2 + $0x1d0] sm:$0xff] }
  0x86   : > { %624 = vst [vmem:[#allocation2 + $0x50] sm:$0x1] %v623_v41  ;;  %v628_v42 = vld [vmem:[%s627_s7] sm:$0x1]  ;;  %s4829_s10 = sld [smem:[#allocation4 + %s650_s19]]  ;;  %s655_s22 = sadd.s32 15, %s4599_s28  ;;  %1714 = vmatpush.msrb.mxu2 %v1122_v40 }
  0x87   : > { %629 = vst [vmem:[#allocation2 + $0x51] sm:$0x1] %v628_v42  ;;  %v633_v43 = vld [vmem:[%s632_s23] sm:$0x1]  ;;  %s637_s29 = scalar_lea.vmem %s7248_s1, %s636_s12  ;;  %s4835_s16 = sld [smem:[#allocation4 + %s655_s22]]  ;;  %v1265_v41 = vld [vmem:[%s7249_s2 + $0x648] sm:$0xff] }
  0x88   : > { %634 = vst [vmem:[#allocation2 + $0x52] sm:$0x1] %v633_v43  ;;  %v638_v45 = vld [vmem:[%s637_s29] sm:$0x1]  ;;  %s4841_s24 = sadd.s32 512, %s4151_s30  ;;  %s4844_s5 = sadd.s32 640, %s4151_s30  ;;  %1584 = vmatpush.msrb.mxu0 %v1265_v41 }
  0x89   : > { %639 = vst [vmem:[#allocation2 + $0x53] sm:$0x1] %v638_v45  ;;  %s642_s12 = scalar_lea.vmem %s7248_s1, %s641_s25  ;;  %s4850_s6 = sld [smem:[#allocation4 + %s4841_s24]]  ;;  %v1206_v42 = vld [vmem:[%s7249_s2 + $0x470] sm:$0xff]  ;;  %v1203_v45 = vld [vmem:[%s7249_s2 + $0x458] sm:$0xff] }
  0x8a   : > { %v643_v49 = vld [vmem:[%s642_s12] sm:$0x1]  ;;  %s647_s7 = scalar_lea.vmem %s7248_s1, %s4823_s15  ;;  %s666_s27 = sadd.s32 1, %s4841_s24  ;;  %1767 = vmatpush.msrb.mxu3 %v1206_v42  ;;  %1585 = vmatpush.msrb.mxu0 %v1262_v58  ;;  %v1167_v40 = vld [vmem:[%s7249_s2 + $0x338] sm:$0xff]  ;;  %v1302_v58 = vld [vmem:[%s7249_s2 + $0x770] sm:$0xff] }
  0x8b   : > { %644 = vst [vmem:[#allocation2 + $0x54] sm:$0x1] %v643_v49  ;;  %v648_v50 = vld [vmem:[%s647_s7] sm:$0x1]  ;;  %s4863_s25 = sld [smem:[#allocation4 + %s666_s27]]  ;;  %s671_s4 = sadd.s32 2, %s4841_s24 }
  0x8c   : > { %v1014_v48 = vld [vmem:[#allocation2 + $0x48] sm:$0xff]  ;;  %649 = vst [vmem:[#allocation2 + $0x55] sm:$0x1] %v648_v50  ;;  %s652_s22 = scalar_lea.vmem %s7248_s1, %s4829_s10  ;;  %s4870_s15 = sld [smem:[#allocation4 + %s671_s4]]  ;;  %1768 = vmatpush.msrb.mxu3 %v1203_v45  ;;  %v1164_v42 = vld [vmem:[%s7249_s2 + $0x320] sm:$0xff] }
  0x8d   : > { %1346 = vmatmul.f32.gmra.mxu0 %v1014_v48  ;;  %v1016_v51 = vld [vmem:[#allocation2 + $0x49] sm:$0xff]  ;;  %v653_v53 = vld [vmem:[%s652_s22] sm:$0x1]  ;;  %s657_s29 = scalar_lea.vmem %s7248_s1, %s4835_s16  ;;  %s676_s14 = sadd.s32 3, %s4841_s24 }
  0x8e   : > { %v1018_v52 = vld [vmem:[#allocation2 + $0x4a] sm:$0xff]  ;;  %1411 = vmatmul.f32.gmra.mxu1 %v1016_v51  ;;  %654 = vst [vmem:[#allocation2 + $0x56] sm:$0x1] %v653_v53  ;;  %v658_v55 = vld [vmem:[%s657_s29] sm:$0x1]  ;;  %s677_s26 = sld [smem:[#allocation4 + %s676_s14]] }
  0x8f   : > { %1476 = vmatmul.f32.gmra.mxu2 %v1018_v52  ;;  %v1020_v54 = vld [vmem:[#allocation2 + $0x4b] sm:$0xff]  ;;  %659 = vst [vmem:[#allocation2 + $0x57] sm:$0x1] %v658_v55  ;;  %s663_s17 = scalar_lea.vmem %s7248_s1, %s4850_s6  ;;  %s681_s12 = sadd.s32 4, %s4841_s24  ;;  %v1200_v48 = vld [vmem:[%s7249_s2 + $0x440] sm:$0xff] }
  0x90   : > { %1541 = vmatmul.f32.gmra.mxu3 %v1020_v54  ;;  %v664_v56 = vld [vmem:[%s663_s17] sm:$0x1]  ;;  %s4882_s20 = sld [smem:[#allocation4 + %s681_s12]]  ;;  %s686_s16 = sadd.s32 5, %s4841_s24 }
  0x91   : > { %665 = vst [vmem:[#allocation2 + $0x60] sm:$0x1] %v664_v56  ;;  %s668_s13 = scalar_lea.vmem %s7248_s1, %s4863_s25  ;;  %s4892_s7 = sld [smem:[#allocation4 + %s686_s16]]  ;;  %1769 = vmatpush.msrb.mxu3 %v1200_v48  ;;  %v1119_v56 = vld [vmem:[%s7249_s2 + $0x1b8] sm:$0xff] }
  0x92   : > { %v669_v60 = vld [vmem:[%s668_s13] sm:$0x1]  ;;  %s673_s21 = scalar_lea.vmem %s7248_s1, %s4870_s15  ;;  %s691_s9 = sadd.s32 6, %s4841_s24  ;;  %1715 = vmatpush.msrb.mxu2 %v1119_v56  ;;  %v1161_v56 = vld [vmem:[%s7249_s2 + $0x308] sm:$0xff] }
  0x93   : > { %670 = vst [vmem:[#allocation2 + $0x61] sm:$0x1] %v669_v60  ;;  %v674_v61 = vld [vmem:[%s673_s21] sm:$0x1]  ;;  %s4905_s25 = sld [smem:[#allocation4 + %s691_s9]]  ;;  %s696_s29 = sadd.s32 7, %s4841_s24  ;;  %1770 = vmatpush.msrb.mxu3 %v1197_v57 }
  0x94   : > { %675 = vst [vmem:[#allocation2 + $0x62] sm:$0x1] %v674_v61  ;;  %s678_s28 = scalar_lea.vmem %s7248_s1, %s677_s26  ;;  %s4911_s17 = sld [smem:[#allocation4 + %s696_s29]]  ;;  %v1194_v60 = vld [vmem:[%s7249_s2 + $0x410] sm:$0xff]  ;;  %v1071_v61 = vld [vmem:[%s7249_s2 + $0x38] sm:$0xff] }
  0x95   : > { %v679_v62 = vld [vmem:[%s678_s28] sm:$0x1]  ;;  %s701_s12 = sadd.s32 8, %s4841_s24  ;;  %s706_s15 = sadd.s32 9, %s4841_s24  ;;  %1650 = vmatpush.msrb.mxu1 %v1071_v61  ;;  %1771 = vmatpush.msrb.mxu3 %v1194_v60  ;;  %v1254_v57 = vld [vmem:[%s7249_s2 + $0x5f0] sm:$0xff] }
  0x96   : > { %v1015_v63 = vld [vmem:[#allocation2 + $0x50] sm:$0xff]  ;;  %680 = vst [vmem:[#allocation2 + $0x63] sm:$0x1] %v679_v62  ;;  %s683_s11 = scalar_lea.vmem %s7248_s1, %s4882_s20  ;;  %s702_s18 = sld [smem:[#allocation4 + %s701_s12]] }
  0x97   : > { %v1019_v0 = vld [vmem:[#allocation2 + $0x52] sm:$0xff]  ;;  %1349 = vmatmul.f32.gmra.mxu0 %v1015_v63  ;;  %v684_v3 = vld [vmem:[%s683_s11] sm:$0x1]  ;;  %s688_s13 = scalar_lea.vmem %s7248_s1, %s4892_s7  ;;  %s707_s27 = sld [smem:[#allocation4 + %s706_s15]] }
  0x98   : > { %v1017_v1 = vld [vmem:[#allocation2 + $0x51] sm:$0xff]  ;;  %1479 = vmatmul.f32.gmra.mxu2 %v1019_v0  ;;  %685 = vst [vmem:[#allocation2 + $0x64] sm:$0x1] %v684_v3  ;;  %v689_v4 = vld [vmem:[%s688_s13] sm:$0x1]  ;;  %s711_s6 = sadd.s32 10, %s4841_s24 }
  0x99   : > { %v1021_v2 = vld [vmem:[#allocation2 + $0x53] sm:$0xff]  ;;  %1414 = vmatmul.f32.gmra.mxu1 %v1017_v1  ;;  %s716_s4 = sadd.s32 11, %s4841_s24  ;;  %690 = vst [vmem:[#allocation2 + $0x65] sm:$0x1] %v689_v4  ;;  %s693_s19 = scalar_lea.vmem %s7248_s1, %s4905_s25  ;;  %v1188_v1 = vld [vmem:[%s7249_s2 + $0x3e0] sm:$0xff] }
  0x9a   : > { %1544 = vmatmul.f32.gmra.mxu3 %v1021_v2  ;;  %s712_s22 = sld [smem:[#allocation4 + %s711_s6]]  ;;  %v694_v5 = vld [vmem:[%s693_s19] sm:$0x1]  ;;  %s698_s7 = scalar_lea.vmem %s7248_s1, %s4911_s17  ;;  %v1191_v63 = vld [vmem:[%s7249_s2 + $0x3f8] sm:$0xff] }
  0x9b   : > { %s717_s29 = sld [smem:[#allocation4 + %s716_s4]]  ;;  %695 = vst [vmem:[#allocation2 + $0x66] sm:$0x1] %v694_v5  ;;  %v699_v6 = vld [vmem:[%s698_s7] sm:$0x1]  ;;  %s721_s14 = sadd.s32 12, %s4841_s24  ;;  %1772 = vmatpush.msrb.mxu3 %v1191_v63 }
  0x9c   : > { %s726_s10 = sadd.s32 13, %s4841_s24  ;;  %700 = vst [vmem:[#allocation2 + $0x67] sm:$0x1] %v699_v6  ;;  %s703_s15 = scalar_lea.vmem %s7248_s1, %s702_s18 }
  0x9d   : > { %s722_s16 = sld [smem:[#allocation4 + %s721_s14]]  ;;  %v704_v7 = vld [vmem:[%s703_s15] sm:$0x1]  ;;  %s708_s11 = scalar_lea.vmem %s7248_s1, %s707_s27  ;;  %1773 = vmatpush.msrb.mxu3 %v1188_v1 }
  0x9e   : > { %s4941_s26 = sld [smem:[#allocation4 + %s726_s10]]  ;;  %705 = vst [vmem:[#allocation2 + $0x68] sm:$0x1] %v704_v7  ;;  %v709_v8 = vld [vmem:[%s708_s11] sm:$0x1]  ;;  %s731_s17 = sadd.s32 14, %s4841_s24 }
  0x9f   : > { %s736_s8 = sadd.s32 15, %s4841_s24  ;;  %710 = vst [vmem:[#allocation2 + $0x69] sm:$0x1] %v709_v8  ;;  %s4948_s18 = sld [smem:[#allocation4 + %s731_s17]] }
  0xa0   : > { %s713_s4 = scalar_lea.vmem %s7248_s1, %s712_s22  ;;  %s4956_s9 = sld [smem:[#allocation4 + %s736_s8]] }
  0xa1   : > { %v714_v10 = vld [vmem:[%s713_s4] sm:$0x1]  ;;  %s718_s21 = scalar_lea.vmem %s7248_s1, %s717_s29  ;;  %s4965_s10 = sld [smem:[#allocation4 + %s4844_s5]] }
  0xa2   : > { %715 = vst [vmem:[#allocation2 + $0x6a] sm:$0x1] %v714_v10  ;;  %v719_v13 = vld [vmem:[%s718_s21] sm:$0x1]  ;;  %s747_s28 = sadd.s32 1, %s4844_s5  ;;  %s752_s8 = sadd.s32 2, %s4844_s5 }
  0xa3   : > { %720 = vst [vmem:[#allocation2 + $0x6b] sm:$0x1] %v719_v13  ;;  %s723_s15 = scalar_lea.vmem %s7248_s1, %s722_s16  ;;  %s4971_s25 = sld [smem:[#allocation4 + %s747_s28]]  ;;  %v1024_v14 = vld [vmem:[#allocation2 + $0x60] sm:$0xff] }
  0xa4   : > { %v724_v15 = vld [vmem:[%s723_s15] sm:$0x1]  ;;  %s728_s17 = scalar_lea.vmem %s7248_s1, %s4941_s26  ;;  %1352 = vmatmul.f32.gmra.mxu0 %v1024_v14  ;;  %s4978_s13 = sld [smem:[#allocation4 + %s752_s8]]  ;;  %v1185_v14 = vld [vmem:[%s7249_s2 + $0x3c8] sm:$0xff] }
  0xa5   : > { %725 = vst [vmem:[#allocation2 + $0x6c] sm:$0x1] %v724_v15  ;;  %v729_v16 = vld [vmem:[%s728_s17] sm:$0x1]  ;;  %s757_s6 = sadd.s32 3, %s4844_s5  ;;  %v1026_v17 = vld [vmem:[#allocation2 + $0x61] sm:$0xff]  ;;  %s733_s20 = scalar_lea.vmem %s7248_s1, %s4948_s18  ;;  %1774 = vmatpush.msrb.mxu3 %v1185_v14 }
  0xa6   : > { %730 = vst [vmem:[#allocation2 + $0x6d] sm:$0x1] %v729_v16  ;;  %s4985_s23 = sld [smem:[#allocation4 + %s757_s6]]  ;;  %v1028_v18 = vld [vmem:[#allocation2 + $0x62] sm:$0xff]  ;;  %1417 = vmatmul.f32.gmra.mxu1 %v1026_v17  ;;  %v734_v19 = vld [vmem:[%s733_s20] sm:$0x1]  ;;  %s738_s19 = scalar_lea.vmem %s7248_s1, %s4956_s9 }
  0xa7   : > { %s762_s21 = sadd.s32 4, %s4844_s5  ;;  %1482 = vmatmul.f32.gmra.mxu2 %v1028_v18  ;;  %735 = vst [vmem:[#allocation2 + $0x6e] sm:$0x1] %v734_v19  ;;  %v739_v20 = vld [vmem:[%s738_s19] sm:$0x1]  ;;  %s744_s18 = scalar_lea.vmem %s7248_s1, %s4965_s10  ;;  %v1259_v15 = vld [vmem:[%s7249_s2 + $0x618] sm:$0xff] }
  0xa8   : > { %s4996_s22 = sld [smem:[#allocation4 + %s762_s21]]  ;;  %740 = vst [vmem:[#allocation2 + $0x6f] sm:$0x1] %v739_v20  ;;  %v745_v22 = vld [vmem:[%s744_s18] sm:$0x1]  ;;  %s767_s29 = sadd.s32 5, %s4844_s5  ;;  %1586 = vmatpush.msrb.mxu0 %v1259_v15 }
  0xa9   : > { %v1030_v21 = vld [vmem:[#allocation2 + $0x63] sm:$0xff]  ;;  %s749_s9 = scalar_lea.vmem %s7248_s1, %s4971_s25  ;;  %746 = vst [vmem:[#allocation2 + $0x78] sm:$0x1] %v745_v22  ;;  %s5003_s12 = sld [smem:[#allocation4 + %s767_s29]]  ;;  %v1182_v17 = vld [vmem:[%s7249_s2 + $0x3b0] sm:$0xff] }
  0xaa   : > { %1547 = vmatmul.f32.gmra.mxu3 %v1030_v21  ;;  %v750_v23 = vld [vmem:[%s749_s9] sm:$0x1]  ;;  %s772_s15 = sadd.s32 6, %s4844_s5  ;;  %s754_s11 = scalar_lea.vmem %s7248_s1, %s4978_s13  ;;  %v1179_v21 = vld [vmem:[%s7249_s2 + $0x398] sm:$0xff] }
  0xab   : > { %751 = vst [vmem:[#allocation2 + $0x79] sm:$0x1] %v750_v23  ;;  %s5010_s17 = sld [smem:[#allocation4 + %s772_s15]]  ;;  %v755_v27 = vld [vmem:[%s754_s11] sm:$0x1]  ;;  %s777_s19 = sadd.s32 7, %s4844_s5  ;;  %1775 = vmatpush.msrb.mxu3 %v1182_v17 }
  0xac   : > { %s759_s27 = scalar_lea.vmem %s7248_s1, %s4985_s23  ;;  %756 = vst [vmem:[#allocation2 + $0x7a] sm:$0x1] %v755_v27  ;;  %s5026_s21 = sld [smem:[#allocation4 + %s777_s19]]  ;;  %v1116_v13 = vld [vmem:[%s7249_s2 + $0x1a0] sm:$0xff] }
  0xad   : > { %v760_v28 = vld [vmem:[%s759_s27] sm:$0x1]  ;;  %s782_s24 = sadd.s32 8, %s4844_s5  ;;  %s787_s23 = sadd.s32 9, %s4844_s5  ;;  %1716 = vmatpush.msrb.mxu2 %v1116_v13  ;;  %1776 = vmatpush.msrb.mxu3 %v1179_v21 }
  0xae   : > { %761 = vst [vmem:[#allocation2 + $0x7b] sm:$0x1] %v760_v28  ;;  %s764_s14 = scalar_lea.vmem %s7248_s1, %s4996_s22  ;;  %s5033_s28 = sld [smem:[#allocation4 + %s782_s24]]  ;;  %v1068_v18 = vld [vmem:[%s7249_s2 + $0x20] sm:$0xff] }
  0xaf   : > { %v765_v29 = vld [vmem:[%s764_s14] sm:$0x1]  ;;  %s792_s9 = sadd.s32 10, %s4844_s5  ;;  %v5037_v30 = vld [vmem:[#allocation2 + $0x68] sm:$0xff]  ;;  %s769_s10 = scalar_lea.vmem %s7248_s1, %s5003_s12  ;;  %1651 = vmatpush.msrb.mxu1 %v1068_v18  ;;  %1777 = vmatpush.msrb.mxu3 %v1176_v24 }
  0xb0   : > { %v5039_v31 = vld [vmem:[#allocation2 + $0x6a] sm:$0xff]  ;;  %766 = vst [vmem:[#allocation2 + $0x7c] sm:$0x1] %v765_v29  ;;  %s788_s22 = sld [smem:[#allocation4 + %s787_s23]]  ;;  %1355 = vmatmul.f32.gmra.mxu0 %v5037_v30  ;;  %v770_v34 = vld [vmem:[%s769_s10] sm:$0x1] }
  0xb1   : > { %v5041_v32 = vld [vmem:[#allocation2 + $0x69] sm:$0xff]  ;;  %1485 = vmatmul.f32.gmra.mxu2 %v5039_v31  ;;  %s774_s8 = scalar_lea.vmem %s7248_s1, %s5010_s17  ;;  %s793_s6 = sld [smem:[#allocation4 + %s792_s9]]  ;;  %771 = vst [vmem:[#allocation2 + $0x7d] sm:$0x1] %v770_v34  ;;  %v1296_v24 = vld [vmem:[%s7249_s2 + $0x740] sm:$0xff] }
  0xb2   : > { %v1031_v33 = vld [vmem:[#allocation2 + $0x6b] sm:$0xff]  ;;  %1420 = vmatmul.f32.gmra.mxu1 %v5041_v32  ;;  %v775_v35 = vld [vmem:[%s774_s8] sm:$0x1]  ;;  %s797_s12 = sadd.s32 11, %s4844_s5  ;;  %s802_s25 = sadd.s32 12, %s4844_s5 }
  0xb3   : > { %1550 = vmatmul.f32.gmra.mxu3 %v1031_v33  ;;  %776 = vst [vmem:[#allocation2 + $0x7e] sm:$0x1] %v775_v35  ;;  %s779_s20 = scalar_lea.vmem %s7248_s1, %s5026_s21  ;;  %s798_s26 = sld [smem:[#allocation4 + %s797_s12]]  ;;  %v1113_v33 = vld [vmem:[%s7249_s2 + $0x188] sm:$0xff]  ;;  %v1256_v35 = vld [vmem:[%s7249_s2 + $0x600] sm:$0xff] }
  0xb4   : > { %v780_v36 = vld [vmem:[%s779_s20] sm:$0x1]  ;;  %s784_s27 = scalar_lea.vmem %s7248_s1, %s5033_s28  ;;  %s5064_s19 = sld [smem:[#allocation4 + %s802_s25]]  ;;  %v1173_v34 = vld [vmem:[%s7249_s2 + $0x368] sm:$0xff]  ;;  %1717 = vmatpush.msrb.mxu2 %v1113_v33  ;;  %1587 = vmatpush.msrb.mxu0 %v1256_v35  ;;  %v1102_v35 = vld [vmem:[%s7249_s2 + $0x130] sm:$0xff] }
  0xb5   : > { %781 = vst [vmem:[#allocation2 + $0x7f] sm:$0x1] %v780_v36  ;;  %v785_v37 = vld [vmem:[%s784_s27] sm:$0x1]  ;;  %s807_s24 = sadd.s32 13, %s4844_s5  ;;  %s812_s7 = sadd.s32 14, %s4844_s5  ;;  %1778 = vmatpush.msrb.mxu3 %v1173_v34 }
  0xb6   : > { %786 = vst [vmem:[#allocation2 + $0x80] sm:$0x1] %v785_v37  ;;  %s789_s23 = scalar_lea.vmem %s7248_s1, %s788_s22  ;;  %s5071_s21 = sld [smem:[#allocation4 + %s807_s24]]  ;;  %v1170_v37 = vld [vmem:[%s7249_s2 + $0x350] sm:$0xff]  ;;  %1832 = vmatpush.msra.mxu0 %v1254_v57 }
  0xb7   : > { %v790_v38 = vld [vmem:[%s789_s23] sm:$0x1]  ;;  %s794_s15 = scalar_lea.vmem %s7248_s1, %s793_s6  ;;  %s5076_s28 = sld [smem:[#allocation4 + %s812_s7]]  ;;  %1779 = vmatpush.msrb.mxu3 %v1170_v37  ;;  %v1293_v37 = vld [vmem:[%s7249_s2 + $0x728] sm:$0xff] }
  0xb8   : > { %791 = vst [vmem:[#allocation2 + $0x81] sm:$0x1] %v790_v38  ;;  %v795_v39 = vld [vmem:[%s794_s15] sm:$0x1]  ;;  %s817_s10 = sadd.s32 15, %s4844_s5  ;;  %s5101_s27 = sld [smem:[#allocation4 + %s5080_s0]] }
  0xb9   : > { %796 = vst [vmem:[#allocation2 + $0x82] sm:$0x1] %v795_v39  ;;  %s799_s8 = scalar_lea.vmem %s7248_s1, %s798_s26  ;;  %s5085_s12 = sld [smem:[#allocation4 + %s817_s10]]  ;;  %v1065_v38 = vld [vmem:[%s7249_s2 + $0x8] sm:$0xff]  ;;  %1780 = vmatpush.msrb.mxu3 %v1167_v40 }
  0xba   : > { %v800_v43 = vld [vmem:[%s799_s8] sm:$0x1]  ;;  %s804_s26 = scalar_lea.vmem %s7248_s1, %s5064_s19  ;;  %s828_s23 = sadd.s32 1, %s5080_s0  ;;  %1652 = vmatpush.msrb.mxu1 %v1065_v38 }
  0xbb   : > { %801 = vst [vmem:[#allocation2 + $0x83] sm:$0x1] %v800_v43  ;;  %v805_v46 = vld [vmem:[%s804_s26] sm:$0x1]  ;;  %s833_s9 = sadd.s32 2, %s5080_s0  ;;  %s5117_s10 = sld [smem:[#allocation4 + %s828_s23]]  ;;  %1781 = vmatpush.msrb.mxu3 %v1164_v42 }
  0xbc   : > { %v5111_v47 = vld [vmem:[#allocation2 + $0x78] sm:$0xff]  ;;  %806 = vst [vmem:[#allocation2 + $0x84] sm:$0x1] %v805_v46  ;;  %s809_s15 = scalar_lea.vmem %s7248_s1, %s5071_s21  ;;  %s5129_s6 = sld [smem:[#allocation4 + %s833_s9]]  ;;  %1897 = vmatpush.msra.mxu1 %v1302_v58  ;;  %v5540_v58 = vld [vmem:[#allocation2 + $0xc] sm:$0xff] }
  0xbd   : > { %1358 = vmatmul.f32.gmra.mxu0 %v5111_v47  ;;  %v5123_v49 = vld [vmem:[#allocation2 + $0x79] sm:$0xff]  ;;  %s814_s16 = scalar_lea.vmem %s7248_s1, %s5076_s28  ;;  %s838_s21 = sadd.s32 3, %s5080_s0  ;;  %1782 = vmatpush.msrb.mxu3 %v1161_v56  ;;  %v1290_v56 = vld [vmem:[%s7249_s2 + $0x710] sm:$0xff] }
  0xbe   : > { %v810_v50 = vld [vmem:[%s809_s15] sm:$0x1]  ;;  %1423 = vmatmul.f32.gmra.mxu1 %v5123_v49  ;;  %s843_s4 = sadd.s32 4, %s5080_s0  ;;  %s5140_s13 = sld [smem:[#allocation4 + %s838_s21]] }
  0xbf   : > { %811 = vst [vmem:[#allocation2 + $0x85] sm:$0x1] %v810_v50  ;;  %v815_v51 = vld [vmem:[%s814_s16] sm:$0x1]  ;;  %s819_s28 = scalar_lea.vmem %s7248_s1, %s5085_s12  ;;  %s825_s24 = scalar_lea.vmem %s7248_s1, %s5101_s27 }
  0xc0   : > { %v5134_v52 = vld [vmem:[#allocation2 + $0x7a] sm:$0xff]  ;;  %816 = vst [vmem:[#allocation2 + $0x86] sm:$0x1] %v815_v51  ;;  %s5147_s7 = sld [smem:[#allocation4 + %s843_s4]]  ;;  %s848_s18 = sadd.s32 5, %s5080_s0 }
  0xc1   : > { %1488 = vmatmul.f32.gmra.mxu2 %v5134_v52  ;;  %v1040_v53 = vld [vmem:[#allocation2 + $0x7b] sm:$0xff]  ;;  %s853_s14 = sadd.s32 6, %s5080_s0  ;;  %s830_s9 = scalar_lea.vmem %s7248_s1, %s5117_s10 }
  0xc2   : > { %v820_v54 = vld [vmem:[%s819_s28] sm:$0x1]  ;;  %1553 = vmatmul.f32.gmra.mxu3 %v1040_v53  ;;  %s5155_s19 = sld [smem:[#allocation4 + %s848_s18]]  ;;  %s835_s10 = scalar_lea.vmem %s7248_s1, %s5129_s6 }
  0xc3   : > { %821 = vst [vmem:[#allocation2 + $0x87] sm:$0x1] %v820_v54  ;;  %v826_v55 = vld [vmem:[%s825_s24] sm:$0x1]  ;;  %s5170_s21 = sld [smem:[#allocation4 + %s853_s14]]  ;;  %s858_s17 = sadd.s32 7, %s5080_s0 }
  0xc4   : > { %827 = vst [vmem:[#allocation2 + $0x90] sm:$0x1] %v826_v55  ;;  %v831_v59 = vld [vmem:[%s830_s9] sm:$0x1]  ;;  %s863_s26 = sadd.s32 8, %s5080_s0  ;;  %s840_s18 = scalar_lea.vmem %s7248_s1, %s5140_s13  ;;  %v1111_v54 = vld [vmem:[%s7249_s2 + $0x178] sm:$0xff] }
  0xc5   : > { %832 = vst [vmem:[#allocation2 + $0x91] sm:$0x1] %v831_v59  ;;  %v836_v62 = vld [vmem:[%s835_s10] sm:$0x1]  ;;  %s5184_s14 = sld [smem:[#allocation4 + %s858_s17]]  ;;  %s868_s13 = sadd.s32 9, %s5080_s0  ;;  %1962 = vmatpush.msra.mxu2 %v1111_v54 }
  0xc6   : > { %837 = vst [vmem:[#allocation2 + $0x92] sm:$0x1] %v836_v62  ;;  %v841_v0 = vld [vmem:[%s840_s18] sm:$0x1]  ;;  %s845_s15 = scalar_lea.vmem %s7248_s1, %s5147_s7  ;;  %s5193_s27 = sld [smem:[#allocation4 + %s863_s26]]  ;;  %v3792_v54 = vld [vmem:[#allocation2 + $0x2] sm:$0xff] }
  0xc7   : > { %842 = vst [vmem:[#allocation2 + $0x93] sm:$0x1] %v841_v0  ;;  %v846_v2 = vld [vmem:[%s845_s15] sm:$0x1]  ;;  %s873_s8 = sadd.s32 10, %s5080_s0  ;;  %s869_s10 = sld [smem:[#allocation4 + %s868_s13]]  ;;  %v5388_v53 = vpop.f32.mrf.mxu1 }
  0xc8   : > { %847 = vst [vmem:[#allocation2 + $0x94] sm:$0x1] %v846_v2  ;;  %s850_s16 = scalar_lea.vmem %s7248_s1, %s5155_s19  ;;  %s874_s28 = sld [smem:[#allocation4 + %s873_s8]]  ;;  %v1108_v2 = vld [vmem:[%s7249_s2 + $0x160] sm:$0xff] }
  0xc9   : > { %v851_v7 = vld [vmem:[%s850_s16] sm:$0x1]  ;;  %s855_s20 = scalar_lea.vmem %s7248_s1, %s5170_s21  ;;  %s878_s19 = sadd.s32 11, %s5080_s0  ;;  %1963 = vmatpush.msra.mxu2 %v1108_v2 }
  0xca   : > { %v5200_v3 = vld [vmem:[#allocation2 + $0x80] sm:$0xff]  ;;  %852 = vst [vmem:[#allocation2 + $0x95] sm:$0x1] %v851_v7  ;;  %s883_s17 = sadd.s32 12, %s5080_s0  ;;  %s879_s18 = sld [smem:[#allocation4 + %s878_s19]]  ;;  %v5366_v44 = vpop.f32.mrf.mxu0  ;;  %v1251_v7 = vld [vmem:[%s7249_s2 + $0x5d8] sm:$0xff] }
  0xcb   : > { %v5202_v4 = vld [vmem:[#allocation2 + $0x82] sm:$0xff]  ;;  %1361 = vmatmul.f32.gmra.mxu0 %v5200_v3  ;;  %v856_v8 = vld [vmem:[%s855_s20] sm:$0x1]  ;;  %s860_s24 = scalar_lea.vmem %s7248_s1, %s5184_s14  ;;  %s5227_s9 = sld [smem:[#allocation4 + %s883_s17]] }
  0xcc   : > { %v5204_v5 = vld [vmem:[#allocation2 + $0x81] sm:$0xff]  ;;  %1491 = vmatmul.f32.gmra.mxu2 %v5202_v4  ;;  %857 = vst [vmem:[#allocation2 + $0x96] sm:$0x1] %v856_v8  ;;  %v861_v9 = vld [vmem:[%s860_s24] sm:$0x1]  ;;  %s865_s23 = scalar_lea.vmem %s7248_s1, %s5193_s27  ;;  %s888_s29 = sadd.s32 13, %s5080_s0  ;;  %1833 = vmatpush.msra.mxu0 %v1251_v7 }
  0xcd   : > { %v1041_v6 = vld [vmem:[#allocation2 + $0x83] sm:$0xff]  ;;  %1426 = vmatmul.f32.gmra.mxu1 %v5204_v5  ;;  %862 = vst [vmem:[#allocation2 + $0x97] sm:$0x1] %v861_v9  ;;  %v866_v10 = vld [vmem:[%s865_s23] sm:$0x1]  ;;  %s893_s15 = sadd.s32 14, %s5080_s0  ;;  %s870_s14 = scalar_lea.vmem %s7248_s1, %s869_s10 }
  0xce   : > { %1556 = vmatmul.f32.gmra.mxu3 %v1041_v6  ;;  %867 = vst [vmem:[#allocation2 + $0x98] sm:$0x1] %v866_v10  ;;  %s5234_s13 = sld [smem:[#allocation4 + %s888_s29]]  ;;  %v871_v11 = vld [vmem:[%s870_s14] sm:$0x1]  ;;  %s875_s25 = scalar_lea.vmem %s7248_s1, %s874_s28  ;;  %v1299_v8 = vld [vmem:[%s7249_s2 + $0x758] sm:$0xff] }
  0xcf   : > { %s5239_s27 = sld [smem:[#allocation4 + %s893_s15]]  ;;  %872 = vst [vmem:[#allocation2 + $0x99] sm:$0x1] %v871_v11  ;;  %v876_v12 = vld [vmem:[%s875_s25] sm:$0x1]  ;;  %s898_s16 = sadd.s32 15, %s5080_s0  ;;  %1898 = vmatpush.msra.mxu1 %v1299_v8 }
  0xd0   : > { %s5243_s4 = sadd.s32 896, %s4151_s30  ;;  %877 = vst [vmem:[#allocation2 + $0x9a] sm:$0x1] %v876_v12  ;;  %s880_s20 = scalar_lea.vmem %s7248_s1, %s879_s18  ;;  %v5431_v62 = vpop.f32.mrf.mxu2  ;;  %v1096_v2 = vld [vmem:[%s7249_s2 + $0x100] sm:$0xff]  ;;  %v3795_v7 = vld [vmem:[#allocation2 + $0xa] sm:$0xff]  ;;  %v1239_v8 = vld [vmem:[%s7249_s2 + $0x578] sm:$0xff] }
  0xd1   : > { %s5248_s19 = sld [smem:[#allocation4 + %s898_s16]]  ;;  %v881_v16 = vld [vmem:[%s880_s20] sm:$0x1]  ;;  %s885_s18 = scalar_lea.vmem %s7248_s1, %s5227_s9  ;;  %1899 = vmatpush.msra.mxu1 %v1296_v24  ;;  %v5579_v24 = vld [vmem:[#allocation2 + $0x18] sm:$0xff] }
  0xd2   : > { %s5264_s12 = sld [smem:[#allocation4 + %s5243_s4]]  ;;  %882 = vst [vmem:[#allocation2 + $0x9b] sm:$0x1] %v881_v16  ;;  %v886_v19 = vld [vmem:[%s885_s18] sm:$0x1]  ;;  %s909_s22 = sadd.s32 1, %s5243_s4  ;;  %v5440_v1 = vpop.f32.mrf.mxu0 }
  0xd3   : > { %s914_s14 = sadd.s32 2, %s5243_s4  ;;  %887 = vst [vmem:[#allocation2 + $0x9c] sm:$0x1] %v886_v19  ;;  %s5280_s25 = sld [smem:[#allocation4 + %s909_s22]]  ;;  %v5434_v0 = vpop.f32.mrf.mxu3  ;;  %v5455_v10 = vpop.f32.mrf.mxu1  ;;  %v1105_v19 = vld [vmem:[%s7249_s2 + $0x148] sm:$0xff]  ;;  %1900 = vmatpush.msra.mxu1 %v1293_v37 }
  0xd4   : > { %v5274_v20 = vld [vmem:[#allocation2 + $0x90] sm:$0xff]  ;;  %s890_s7 = scalar_lea.vmem %s7248_s1, %s5234_s13  ;;  %s5292_s26 = sld [smem:[#allocation4 + %s914_s14]]  ;;  %7332 = vst [vmem:[#allocation22_spill] sm:$0xff] %v5434_v0  ;;  %1964 = vmatpush.msra.mxu2 %v1105_v19 }
  0xd5   : > { %1364 = vmatmul.f32.gmra.mxu0 %v5274_v20  ;;  %v5286_v22 = vld [vmem:[#allocation2 + $0x91] sm:$0xff]  ;;  %v891_v23 = vld [vmem:[%s890_s7] sm:$0x1]  ;;  %s895_s17 = scalar_lea.vmem %s7248_s1, %s5239_s27  ;;  %s919_s6 = sadd.s32 3, %s5243_s4  ;;  %1901 = vmatpush.msra.mxu1 %v1290_v56 }
  0xd6   : > { %1429 = vmatmul.f32.gmra.mxu1 %v5286_v22  ;;  %892 = vst [vmem:[#allocation2 + $0x9d] sm:$0x1] %v891_v23  ;;  %v896_v25 = vld [vmem:[%s895_s17] sm:$0x1]  ;;  %s924_s30 = sadd.s32 4, %s5243_s4  ;;  %v5300_v26 = vld [vmem:[#allocation2 + $0x92] sm:$0xff]  ;;  %1965 = vmatpush.msra.mxu2 %v1102_v35 }
  0xd7   : > { %897 = vst [vmem:[#allocation2 + $0x9e] sm:$0x1] %v896_v25  ;;  %s900_s24 = scalar_lea.vmem %s7248_s1, %s5248_s19  ;;  %s5306_s21 = sld [smem:[#allocation4 + %s919_s6]]  ;;  %1494 = vmatmul.f32.gmra.mxu2 %v5300_v26  ;;  %v1050_v27 = vld [vmem:[#allocation2 + $0x93] sm:$0xff]  ;;  %v1248_v23 = vld [vmem:[%s7249_s2 + $0x5c0] sm:$0xff] }
  0xd8   : > { %v901_v28 = vld [vmem:[%s900_s24] sm:$0x1]  ;;  %s906_s29 = scalar_lea.vmem %s7248_s1, %s5264_s12  ;;  %s5313_s15 = sld [smem:[#allocation4 + %s924_s30]]  ;;  %1559 = vmatmul.f32.gmra.mxu3 %v1050_v27  ;;  %v5477_v18 = vpop.f32.mrf.mxu2  ;;  %1834 = vmatpush.msra.mxu0 %v1248_v23  ;;  %v1093_v23 = vld [vmem:[%s7249_s2 + $0xe8] sm:$0xff]  ;;  %v1090_v56 = vld [vmem:[%s7249_s2 + $0xd0] sm:$0xff] }
  0xd9   : > { %902 = vst [vmem:[#allocation2 + $0x9f] sm:$0x1] %v901_v28  ;;  %v907_v29 = vld [vmem:[%s906_s29] sm:$0x1]  ;;  %s929_s11 = sadd.s32 5, %s5243_s4  ;;  %s934_s22 = sadd.s32 6, %s5243_s4 }
  0xda   : > { %908 = vst [vmem:[#allocation2 + $0xa8] sm:$0x1] %v907_v29  ;;  %s911_s9 = scalar_lea.vmem %s7248_s1, %s5280_s25  ;;  %s5321_s8 = sld [smem:[#allocation4 + %s929_s11]]  ;;  %v1236_v35 = vld [vmem:[%s7249_s2 + $0x560] sm:$0xff] }
  0xdb   : > { %v912_v36 = vld [vmem:[%s911_s9] sm:$0x1]  ;;  %s916_s25 = scalar_lea.vmem %s7248_s1, %s5292_s26  ;;  %s5336_s28 = sld [smem:[#allocation4 + %s934_s22]]  ;;  %v5482_v21 = vpop.f32.mrf.mxu3 }
  0xdc   : > { %913 = vst [vmem:[#allocation2 + $0xa9] sm:$0x1] %v912_v36  ;;  %v917_v39 = vld [vmem:[%s916_s25] sm:$0x1]  ;;  %s939_s24 = sadd.s32 7, %s5243_s4  ;;  %s944_s18 = sadd.s32 8, %s5243_s4  ;;  %v5490_v25 = vpop.f32.mrf.mxu0 }
  0xdd   : > { %918 = vst [vmem:[#allocation2 + $0xaa] sm:$0x1] %v917_v39  ;;  %s921_s29 = scalar_lea.vmem %s7248_s1, %s5306_s21  ;;  %s5350_s11 = sld [smem:[#allocation4 + %s939_s24]]  ;;  %v5492_v27 = vpop.f32.mrf.mxu1  ;;  %v1245_v36 = vld [vmem:[%s7249_s2 + $0x5a8] sm:$0xff] }
  0xde   : > { %v922_v41 = vld [vmem:[%s921_s29] sm:$0x1]  ;;  %s926_s7 = scalar_lea.vmem %s7248_s1, %s5313_s15  ;;  %s5359_s16 = sld [smem:[#allocation4 + %s944_s18]]  ;;  %1835 = vmatpush.msra.mxu0 %v1245_v36 }
  0xdf   : > { %923 = vst [vmem:[#allocation2 + $0xab] sm:$0x1] %v922_v41  ;;  %v927_v43 = vld [vmem:[%s926_s7] sm:$0x1]  ;;  %s949_s21 = sadd.s32 9, %s5243_s4  ;;  %s954_s10 = sadd.s32 10, %s5243_s4 }
  0xe0   : > { %v5368_v45 = vld [vmem:[#allocation2 + $0x98] sm:$0xff]  ;;  %928 = vst [vmem:[#allocation2 + $0xac] sm:$0x1] %v927_v43  ;;  %s931_s17 = scalar_lea.vmem %s7248_s1, %s5321_s8  ;;  %s5378_s13 = sld [smem:[#allocation4 + %s949_s21]]  ;;  %v5518_v41 = vld [vmem:[#allocation2 + $0x4] sm:$0xff] }
  0xe1   : > { %v5370_v46 = vld [vmem:[#allocation2 + $0x9a] sm:$0xff]  ;;  %1367 = vmatmul.f32.gmra.mxu0 %v5368_v45  ;;  %s936_s30 = scalar_lea.vmem %s7248_s1, %s5336_s28  ;;  %s5386_s27 = sld [smem:[#allocation4 + %s954_s10]] }
  0xe2   : > { %v5372_v48 = vld [vmem:[#allocation2 + $0x99] sm:$0xff]  ;;  %1497 = vmatmul.f32.gmra.mxu2 %v5370_v46  ;;  %s959_s8 = sadd.s32 11, %s5243_s4  ;;  %s964_s18 = sadd.s32 12, %s5243_s4  ;;  %v5523_v43 = vld [vmem:[#allocation2 + $0x1] sm:$0xff] }
  0xe3   : > { %v1051_v50 = vld [vmem:[#allocation2 + $0x9b] sm:$0xff]  ;;  %1432 = vmatmul.f32.gmra.mxu1 %v5372_v48  ;;  %s941_s23 = scalar_lea.vmem %s7248_s1, %s5350_s11  ;;  %s5400_s29 = sld [smem:[#allocation4 + %s959_s8]] }
  0xe4   : > { %v932_v51 = vld [vmem:[%s931_s17] sm:$0x1]  ;;  %1562 = vmatmul.f32.gmra.mxu3 %v1051_v50  ;;  %s946_s21 = scalar_lea.vmem %s7248_s1, %s5359_s16  ;;  %s5415_s10 = sld [smem:[#allocation4 + %s964_s18]]  ;;  %v5512_v38 = vpop.f32.mrf.mxu2  ;;  %v5516_v40 = vpop.f32.mrf.mxu0  ;;  %v1099_v50 = vld [vmem:[%s7249_s2 + $0x118] sm:$0xff] }
  0xe5   : > { %933 = vst [vmem:[#allocation2 + $0xad] sm:$0x1] %v932_v51  ;;  %v937_v55 = vld [vmem:[%s936_s30] sm:$0x1]  ;;  %s969_s15 = sadd.s32 13, %s5243_s4  ;;  %s974_s20 = sadd.s32 14, %s5243_s4  ;;  %v5514_v39 = vpop.f32.mrf.mxu3  ;;  %1966 = vmatpush.msra.mxu2 %v1099_v50 }
  0xe6   : > { %938 = vst [vmem:[#allocation2 + $0xae] sm:$0x1] %v937_v55  ;;  %v942_v59 = vld [vmem:[%s941_s23] sm:$0x1]  ;;  %s951_s6 = scalar_lea.vmem %s7248_s1, %s5378_s13  ;;  %s5423_s30 = sld [smem:[#allocation4 + %s969_s15]]  ;;  %v5520_v42 = vpop.f32.mrf.mxu1  ;;  %v1242_v55 = vld [vmem:[%s7249_s2 + $0x590] sm:$0xff] }
  0xe7   : > { %943 = vst [vmem:[#allocation2 + $0xaf] sm:$0x1] %v942_v59  ;;  %v947_v60 = vld [vmem:[%s946_s21] sm:$0x1]  ;;  %s956_s24 = scalar_lea.vmem %s7248_s1, %s5386_s27  ;;  %s5429_s8 = sld [smem:[#allocation4 + %s974_s20]]  ;;  %1836 = vmatpush.msra.mxu0 %v1242_v55  ;;  %1967 = vmatpush.msra.mxu2 %v1096_v2  ;;  %v5590_v50 = vld [vmem:[#allocation2 + $0x24] sm:$0xff] }
  0xe8   : > { %948 = vst [vmem:[#allocation2 + $0xb0] sm:$0x1] %v947_v60  ;;  %v952_v61 = vld [vmem:[%s951_s6] sm:$0x1]  ;;  %s979_s18 = sadd.s32 15, %s5243_s4  ;;  %s7419_s12 = sld [smem:[#allocation67_spill]] }
  0xe9   : > { %953 = vst [vmem:[#allocation2 + $0xb1] sm:$0x1] %v952_v61  ;;  %v957_v63 = vld [vmem:[%s956_s24] sm:$0x1]  ;;  %s961_s28 = scalar_lea.vmem %s7248_s1, %s5400_s29  ;;  %s980_s23 = sld [smem:[#allocation4 + %s979_s18]]  ;;  %v5547_v61 = vld [vmem:[#allocation2 + $0x9] sm:$0xff]  ;;  %1837 = vmatpush.msra.mxu0 %v1239_v8  ;;  %1968 = vmatpush.msra.mxu2 %v1093_v23 }
  0xea   : > { %958 = vst [vmem:[#allocation2 + $0xb2] sm:$0x1] %v957_v63  ;;  %v962_v6 = vld [vmem:[%s961_s28] sm:$0x1]  ;;  %s966_s4 = scalar_lea.vmem %s7248_s1, %s5415_s10  ;;  %v1281_v23 = vld [vmem:[%s7249_s2 + $0x6c8] sm:$0xff]  ;;  %s7502_s24 = sld [smem:[#allocation68_spill]] }
  0xeb   : > { %963 = vst [vmem:[#allocation2 + $0xb3] sm:$0x1] %v962_v6  ;;  %v967_v9 = vld [vmem:[%s966_s4] sm:$0x1]  ;;  %v5555_v6 = vld [vmem:[#allocation2 + $0x8] sm:$0xff]  ;;  %1838 = vmatpush.msra.mxu0 %v1236_v35  ;;  %1969 = vmatpush.msra.mxu2 %v1090_v56  ;;  %v3804_v56 = vld [vmem:[#allocation2 + $0x32] sm:$0xff] }
  0xec   : > { %968 = vst [vmem:[#allocation2 + $0xb4] sm:$0x1] %v967_v9  ;;  %s971_s21 = scalar_lea.vmem %s7248_s1, %s5423_s30  ;;  %v5529_v51 = vld [vmem:[#allocation2] sm:$0xff]  ;;  %v5538_v57 = vpop.f32.mrf.mxu2  ;;  %v1287_v9 = vld [vmem:[%s7249_s2 + $0x6f8] sm:$0xff]  ;;  %s7507_s29 = sld [smem:[#allocation70_spill]] }
  0xed   : > { %v972_v13 = vld [vmem:[%s971_s21] sm:$0x1]  ;;  %s976_s20 = scalar_lea.vmem %s7248_s1, %s5429_s8  ;;  %7333 = vst [vmem:[#allocation23_spill] sm:$0xff] %v5514_v39  ;;  %v5542_v59 = vpop.f32.mrf.mxu3  ;;  %1902 = vmatpush.msra.mxu1 %v1287_v9  ;;  %v1233_v9 = vld [vmem:[%s7249_s2 + $0x548] sm:$0xff]  ;;  %s7503_s8 = sld [smem:[#allocation17_spill]] }
  0xee   : > { %v5457_v11 = vld [vmem:[#allocation2 + $0xa8] sm:$0xff]  ;;  %973 = vst [vmem:[#allocation2 + $0xb5] sm:$0x1] %v972_v13  ;;  %v977_v14 = vld [vmem:[%s976_s20] sm:$0x1]  ;;  %1839 = vmatpush.msra.mxu0 %v1233_v9  ;;  %v1230_v9 = vld [vmem:[%s7249_s2 + $0x530] sm:$0xff] }
  0xef   : > { %1370 = vmatmul.f32.gmra.mxu0 %v5457_v11  ;;  %v5464_v12 = vld [vmem:[#allocation2 + $0xa9] sm:$0xff]  ;;  %978 = vst [vmem:[#allocation2 + $0xb6] sm:$0x1] %v977_v14  ;;  %s981_s6 = scalar_lea.vmem %s7248_s1, %s980_s23  ;;  %v5564_v13 = vld [vmem:[#allocation2 + $0x1c] sm:$0xff]  ;;  %s7506_s23 = sld [smem:[#allocation71_spill]] }
  0xf0   : > { %1435 = vmatmul.f32.gmra.mxu1 %v5464_v12  ;;  %v5471_v15 = vld [vmem:[#allocation2 + $0xaa] sm:$0xff]  ;;  %v982_v17 = vld [vmem:[%s981_s6] sm:$0x1]  ;;  %7334 = vst [vmem:[#allocation24_spill] sm:$0xff] %v5542_v59  ;;  %v5544_v60 = vpop.f32.mrf.mxu0  ;;  %1840 = vmatpush.msra.mxu0 %v1230_v9  ;;  %v5651_v9 = vld [vmem:[#allocation2 + $0x38] sm:$0xff]  ;;  %s7468_s6 = sld [smem:[#allocation14_spill]] }
  0xf1   : > { %1500 = vmatmul.f32.gmra.mxu2 %v5471_v15  ;;  %v1060_v16 = vld [vmem:[#allocation2 + $0xab] sm:$0xff]  ;;  %983 = vst [vmem:[#allocation2 + $0xb7] sm:$0x1] %v982_v17  ;;  %v5550_v63 = vpop.f32.mrf.mxu1  ;;  %v5571_v17 = vld [vmem:[#allocation2 + $0x19] sm:$0xff] }
  0xf2   : > { %1565 = vmatmul.f32.gmra.mxu3 %v1060_v16  ;;  %7335 = vst [vmem:[#allocation25_spill] sm:$0xff] %v5550_v63  ;;  %v1284_v36 = vld [vmem:[%s7249_s2 + $0x6e0] sm:$0xff] }
  0xf3   : > { %1903 = vmatpush.msra.mxu1 %v1284_v36  ;;  %v5601_v2 = vld [vmem:[#allocation2 + $0x20] sm:$0xff]  ;;  %v5616_v36 = vld [vmem:[#allocation2 + $0x34] sm:$0xff]  ;;  %s7165_s26 = sshll.u32 %s7503_s8, 3  ;;  %s3371_s27 = sand.u32 1, %s7503_s8  }
  0xf4   : > { %v5640_v59 = vld [vmem:[#allocation2 + $0x3c] sm:$0xff]  ;;  %s3390_s11 = scalar_lea.hbm %s7507_s29, %s7165_s26  ;;  %s7178_s5 = scalar_lea.sflag [#allocation8], %s3371_s27 }
  0xf5   : > { %1904 = vmatpush.msra.mxu1 %v1281_v23  ;;  %v1278_v23 = vld [vmem:[%s7249_s2 + $0x6b0] sm:$0xff]  ;;  %v5645_v39 = vld [vmem:[#allocation2 + $0x39] sm:$0xff]  ;;  %s3404_s22 = scalar_lea.hbm %s7506_s23, %s7165_s26 }
  0xf6   : > { %s300_s30 = sand.u32 1, %s7468_s6   ;;  %s3408_s4 = sshll.u32 %s3404_s22, 4  ;;  %s3409_s4 = int_to_ptr.hbm [resolvable:$true] %s3408_s4 }
  0xf7   : > { %1905 = vmatpush.msra.mxu1 %v1278_v23  ;;  %v3807_v23 = vld [vmem:[#allocation2 + $0x3a] sm:$0xff]  ;;  %s6736_s16 = sshll.u32 %s300_s30, 3  ;;  %s3921_s21 = sshra.s32 %s3409_s4, 4  ;;  %s3922_s21 = int_to_ptr.hbm [resolvable:$true] %s3921_s21 }
  0xf8   : > { %v5494_v28 = vld [vmem:[#allocation2 + $0xb0] sm:$0xff]  ;;  %s302_s0 = scalar_lea.vmem [#allocation5], %s6736_s16  ;;  %s309_s19 = scalar_lea.vmem [#allocation7], %s6736_s16 }
  0xf9   : > { %v5496_v29 = vld [vmem:[#allocation2 + $0xb2] sm:$0xff]  ;;  %1373 = vmatmul.f32.gmra.mxu0 %v5494_v28  ;;  %v5566_v14 = vpop.f32.mrf.mxu2  ;;  %s316_s20 = scalar_lea.vmem [#allocation9], %s6736_s16  ;;  %s3406_s14 = sshll.u32 %s309_s19, 4  ;;  %s3407_s14 = int_to_ptr.vmem [resolvable:$true] %s3406_s14 }
  0xfa   : > { %v5498_v33 = vld [vmem:[#allocation2 + $0xb1] sm:$0xff]  ;;  %1503 = vmatmul.f32.gmra.mxu2 %v5496_v29  ;;  %7336 = vst [vmem:[#allocation26_spill] sm:$0xff] %v5566_v14  ;;  %s3923_s10 = scalar_lea.hbm %s3922_s21, 8  ;;  %p3928_p13 = scmp.lt.s32.totalorder %s3922_s21, %s7506_s23 }
  0xfb   : > { %v1061_v34 = vld [vmem:[#allocation2 + $0xb3] sm:$0xff]  ;;  %1438 = vmatmul.f32.gmra.mxu1 %v5498_v33  ;;  %v5568_v16 = vpop.f32.mrf.mxu3  ;;  %p3924_p10 = scmp.ne.s32.totalorder %s3922_s21, %s3923_s10 }
  0xfc   : > { %1568 = vmatmul.f32.gmra.mxu3 %v1061_v34  ;;  %7337 = vst [vmem:[#allocation27_spill] sm:$0xff] %v5568_v16  ;;  %v5574_v19 = vpop.f32.mrf.mxu0  ;;  %v3798_v34 = vld [vmem:[#allocation2 + $0x1a] sm:$0xff] }
  0xfd   : > { %v1087_v16 = vld [vmem:[%s7249_s2 + $0xb8] sm:$0xff]  ;;  %p3925_p11 = pnand %p3924_p10, %p4131_p5 }
  0xfe   : > { %v5588_v37 = vpop.f32.mrf.mxu1  ;;  %1970 = vmatpush.msra.mxu2 %v1087_v16  ;;  %v1084_v16 = vld [vmem:[%s7249_s2 + $0xa0] sm:$0xff] }
  0xff   : > { %p3926_p12 = pneg %p3925_p11 }
 0x100   : > { %1971 = vmatpush.msra.mxu2 %v1084_v16  ;;  %v3810_v16 = vld [vmem:[#allocation2 + $0x4a] sm:$0xff] }
 0x101   : > { %1588 = vmatmul.f32.vlgmr.msrb.gmra.mxu0 %v5518_v41 }
 0x102   : > { %1718 = vmatmul.f32.vlgmr.msrb.gmra.mxu2 %v5523_v43 }
 0x103   : > { %1653 = vmatmul.f32.vlgmr.msrb.gmra.mxu1 %v5529_v51  ;;  %v5596_v55 = vpop.f32.mrf.mxu2 }
 0x104   : > { %1783 = vmatmul.f32.vlgmr.msrb.gmra.mxu3 %v3792_v54  ;;  %v5593_v54 = vld [vmem:[#allocation2 + $0x21] sm:$0xff]  ;;  %7338 = vst [vmem:[#allocation28_spill] sm:$0xff] %v5596_v55 }
 0x105   : > { %v5604_v8 = vpop.f32.mrf.mxu3 }
 0x106   : > { %7339 = vst [vmem:[#allocation29_spill] sm:$0xff] %v5604_v8  ;;  %v5625_v8 = vld [vmem:[#allocation2 + $0x30] sm:$0xff] }
 0x109   : > { %1591 = vmatmul.f32.gmra.mxu0 %v5540_v58 }
 0x10a   : > { %1721 = vmatmul.f32.gmra.mxu2 %v5547_v61 }
 0x10b   : > { %1656 = vmatmul.f32.gmra.mxu1 %v5555_v6  ;;  %v5614_v35 = vpop.f32.mrf.mxu1 }
 0x10c   : > { %1786 = vmatmul.f32.gmra.mxu3 %v3795_v7  ;;  %v3801_v7 = vld [vmem:[#allocation2 + $0x22] sm:$0xff]  ;;  %7341 = vst [vmem:[#allocation31_spill] sm:$0xff] %v5614_v35 }
 0x111   : > { %1594 = vmatmul.f32.gmra.mxu0 %v5564_v13 }
 0x112   : > { %1724 = vmatmul.f32.gmra.mxu2 %v5571_v17  ;;  %v5634_v35 = vpop.f32.mrf.mxu2 }
 0x113   : > { %1659 = vmatmul.f32.gmra.mxu1 %v5579_v24  ;;  %7342 = vst [vmem:[#allocation32_spill] sm:$0xff] %v5634_v35  ;;  %v5636_v14 = vpop.f32.mrf.mxu3  ;;  %v1275_v35 = vld [vmem:[%s7249_s2 + $0x698] sm:$0xff] }
 0x114   : > { %1789 = vmatmul.f32.gmra.mxu3 %v3798_v34  ;;  %v5612_v34 = vpop.f32.mrf.mxu0  ;;  %7343 = vst [vmem:[#allocation33_spill] sm:$0xff] %v5636_v14  ;;  %v1227_v14 = vld [vmem:[%s7249_s2 + $0x518] sm:$0xff]  ;;  %1906 = vmatpush.msra.mxu1 %v1275_v35  ;;  %v5677_v35 = vld [vmem:[#allocation2 + $0x48] sm:$0xff] }
 0x115   : > { %7340 = vst [vmem:[#allocation30_spill] sm:$0xff] %v5612_v34  ;;  %1841 = vmatpush.msra.mxu0 %v1227_v14  ;;  %v1081_v14 = vld [vmem:[%s7249_s2 + $0x88] sm:$0xff] }
 0x116   : > { %7352 = vst [vmem:[#allocation42_spill] sm:$0xff] %v5677_v35  ;;  %1972 = vmatpush.msra.mxu2 %v1081_v14  ;;  %v1078_v14 = vld [vmem:[%s7249_s2 + $0x70] sm:$0xff] }
 0x118   : > { %1973 = vmatpush.msra.mxu2 %v1078_v14  ;;  %v1218_v14 = vld [vmem:[%s7249_s2 + $0x4d0] sm:$0xff] }
 0x119   : > { %1597 = vmatmul.f32.gmra.mxu0 %v5590_v50 }
 0x11a   : > { %1727 = vmatmul.f32.gmra.mxu2 %v5593_v54 }
 0x11b   : > { %1662 = vmatmul.f32.gmra.mxu1 %v5601_v2 }
 0x11c   : > { %1792 = vmatmul.f32.gmra.mxu3 %v3801_v7  ;;  %v5619_v7 = vld [vmem:[#allocation2 + $0x31] sm:$0xff]  ;;  %v5638_v55 = vpop.f32.mrf.mxu0 }
 0x11d   : > { %7344 = vst [vmem:[#allocation34_spill] sm:$0xff] %v5638_v55  ;;  %v5662_v55 = vld [vmem:[#allocation2 + $0x4c] sm:$0xff]  ;;  %v5664_v34 = vpop.f32.mrf.mxu3 }
 0x11e   : > { %7347 = vst [vmem:[#allocation37_spill] sm:$0xff] %v5662_v55 }
 0x11f   : > { %7348 = vst [vmem:[#allocation38_spill] sm:$0xff] %v5664_v34  ;;  %v1224_v34 = vld [vmem:[%s7249_s2 + $0x500] sm:$0xff] }
 0x120   : > { %1842 = vmatpush.msra.mxu0 %v1224_v34  ;;  %v5701_v34 = vld [vmem:[#allocation2 + $0x50] sm:$0xff] }
 0x121   : > { %1600 = vmatmul.f32.gmra.mxu0 %v5616_v36  ;;  %7358 = vst [vmem:[#allocation48_spill] sm:$0xff] %v5701_v34 }
 0x122   : > { %1730 = vmatmul.f32.gmra.mxu2 %v5619_v7 }
 0x123   : > { %1665 = vmatmul.f32.gmra.mxu1 %v5625_v8 }
 0x124   : > { %1795 = vmatmul.f32.gmra.mxu3 %v3804_v56  ;;  %v5642_v56 = vpop.f32.mrf.mxu1  ;;  %v5666_v63 = vpop.f32.mrf.mxu0 }
 0x125   : > { %7345 = vst [vmem:[#allocation35_spill] sm:$0xff] %v5642_v56  ;;  %v5660_v56 = vpop.f32.mrf.mxu2 }
 0x126   : > { %7346 = vst [vmem:[#allocation36_spill] sm:$0xff] %v5660_v56  ;;  %v1272_v56 = vld [vmem:[%s7249_s2 + $0x680] sm:$0xff] }
 0x127   : > { %7349 = vst [vmem:[#allocation39_spill] sm:$0xff] %v5666_v63  ;;  %1907 = vmatpush.msra.mxu1 %v1272_v56  ;;  %v3813_v56 = vld [vmem:[#allocation2 + $0x52] sm:$0xff] }
 0x129   : > { %1603 = vmatmul.f32.gmra.mxu0 %v5640_v59 }
 0x12a   : > { %1733 = vmatmul.f32.gmra.mxu2 %v5645_v39 }
 0x12b   : > { %1668 = vmatmul.f32.gmra.mxu1 %v5651_v9 }
 0x12c   : > { %1798 = vmatmul.f32.gmra.mxu3 %v3807_v23  ;;  %v5669_v23 = vld [vmem:[#allocation2 + $0x49] sm:$0xff]  ;;  %v5672_v0 = vpop.f32.mrf.mxu1 }
 0x12d   : > { %7350 = vst [vmem:[#allocation40_spill] sm:$0xff] %v5669_v23  ;;  %v5688_v63 = vpop.f32.mrf.mxu2 }
 0x12e   : > { %7351 = vst [vmem:[#allocation41_spill] sm:$0xff] %v5672_v0  ;;  %v5686_v0 = vld [vmem:[#allocation2 + $0x54] sm:$0xff] }
 0x12f   : > { %7353 = vst [vmem:[#allocation43_spill] sm:$0xff] %v5686_v0 }
 0x130   : > { %7354 = vst [vmem:[#allocation44_spill] sm:$0xff] %v5688_v63  ;;  %v1269_v63 = vld [vmem:[%s7249_s2 + $0x668] sm:$0xff] }
 0x131   : > { %1606 = vmatmul.f32.gmra.mxu0 %v5662_v55  ;;  %v5696_v55 = vpop.f32.mrf.mxu0  ;;  %1908 = vmatpush.msra.mxu1 %v1269_v63 }
 0x132   : > { %1736 = vmatmul.f32.gmra.mxu2 %v5669_v23  ;;  %v5690_v23 = vpop.f32.mrf.mxu3  ;;  %7357 = vst [vmem:[#allocation47_spill] sm:$0xff] %v5696_v55  ;;  %v1075_v55 = vld [vmem:[%s7249_s2 + $0x58] sm:$0xff] }
 0x133   : > { %1671 = vmatmul.f32.gmra.mxu1 %v5677_v35  ;;  %7355 = vst [vmem:[#allocation45_spill] sm:$0xff] %v5690_v23  ;;  %v1221_v23 = vld [vmem:[%s7249_s2 + $0x4e8] sm:$0xff]  ;;  %v5723_v35 = vld [vmem:[#allocation2 + $0x60] sm:$0xff]  ;;  %1974 = vmatpush.msra.mxu2 %v1075_v55 }
 0x134   : > { %1801 = vmatmul.f32.gmra.mxu3 %v3810_v16  ;;  %v5693_v16 = vld [vmem:[#allocation2 + $0x51] sm:$0xff]  ;;  %1843 = vmatpush.msra.mxu0 %v1221_v23  ;;  %7363 = vst [vmem:[#allocation53_spill] sm:$0xff] %v5723_v35  ;;  %v3816_v23 = vld [vmem:[#allocation2 + $0x62] sm:$0xff] }
 0x135   : > { %7356 = vst [vmem:[#allocation46_spill] sm:$0xff] %v5693_v16  ;;  %v1072_v55 = vld [vmem:[%s7249_s2 + $0x40] sm:$0xff] }
 0x136   : > { %1844 = vmatpush.msra.mxu0 %v1218_v14  ;;  %1975 = vmatpush.msra.mxu2 %v1072_v55  ;;  %v1141_v55 = vld [vmem:[%s7249_s2 + $0x268] sm:$0xff] }
 0x139   : > { %1609 = vmatmul.f32.gmra.mxu0 %v5686_v0  ;;  %v5712_v0 = vld [vmem:[#allocation2 + $0x64] sm:$0xff] }
 0x13a   : > { %1739 = vmatmul.f32.gmra.mxu2 %v5693_v16  ;;  %v5710_v16 = vpop.f32.mrf.mxu1  ;;  %7360 = vst [vmem:[#allocation50_spill] sm:$0xff] %v5712_v0  ;;  %v5726_v63 = vpop.f32.mrf.mxu3 }
 0x13b   : > { %1674 = vmatmul.f32.gmra.mxu1 %v5701_v34  ;;  %7359 = vst [vmem:[#allocation49_spill] sm:$0xff] %v5710_v16  ;;  %v5715_v34 = vld [vmem:[#allocation2 + $0x61] sm:$0xff]  ;;  %v5747_v16 = vld [vmem:[#allocation2 + $0x6c] sm:$0xff] }
 0x13c   : > { %1804 = vmatmul.f32.gmra.mxu3 %v3813_v56  ;;  %7361 = vst [vmem:[#allocation51_spill] sm:$0xff] %v5715_v34  ;;  %v5718_v56 = vpop.f32.mrf.mxu2 }
 0x13d   : > { %7362 = vst [vmem:[#allocation52_spill] sm:$0xff] %v5718_v56  ;;  %v5737_v56 = vpop.f32.mrf.mxu0 }
 0x13e   : > { %7364 = vst [vmem:[#allocation54_spill] sm:$0xff] %v5726_v63 }
 0x13f   : > { %7366 = vst [vmem:[#allocation56_spill] sm:$0xff] %v5747_v16 }
 0x141   : > { %1612 = vmatmul.f32.gmra.mxu0 %v5712_v0  ;;  %v1266_v0 = vld [vmem:[%s7249_s2 + $0x650] sm:$0xff] }
 0x142   : > { %1742 = vmatmul.f32.gmra.mxu2 %v5715_v34  ;;  %v1159_v34 = vld [vmem:[%s7249_s2 + $0x2f8] sm:$0xff]  ;;  %1909 = vmatpush.msra.mxu1 %v1266_v0  ;;  %v5742_v63 = vpop.f32.mrf.mxu1  ;;  %v1150_v0 = vld [vmem:[%s7249_s2 + $0x2b0] sm:$0xff] }
 0x143   : > { %1677 = vmatmul.f32.gmra.mxu1 %v5723_v35  ;;  %2027 = vmatpush.msra.mxu3 %v1159_v34  ;;  %7365 = vst [vmem:[#allocation55_spill] sm:$0xff] %v5742_v63  ;;  %v1153_v35 = vld [vmem:[%s7249_s2 + $0x2c8] sm:$0xff]  ;;  %v1263_v34 = vld [vmem:[%s7249_s2 + $0x638] sm:$0xff] }
 0x144   : > { %1807 = vmatmul.f32.gmra.mxu3 %v3816_v23  ;;  %v1156_v23 = vld [vmem:[%s7249_s2 + $0x2e0] sm:$0xff]  ;;  %v5768_v14 = vpop.f32.mrf.mxu2  ;;  %1910 = vmatpush.msra.mxu1 %v1263_v34 }
 0x145   : > { %2028 = vmatpush.msra.mxu3 %v1156_v23  ;;  %v5770_v23 = vpop.f32.mrf.mxu3  ;;  %v5805_v34 = vld [vmem:[#allocation2 + $0x84] sm:$0xff] }
 0x146   : > { %7368 = vst [vmem:[#allocation58_spill] sm:$0xff] %v5805_v34 }
 0x147   : > { %2029 = vmatpush.msra.mxu3 %v1153_v35  ;;  %v1215_v35 = vld [vmem:[%s7249_s2 + $0x4b8] sm:$0xff] }
 0x148   : > { %1845 = vmatpush.msra.mxu0 %v1215_v35  ;;  %v1138_v35 = vld [vmem:[%s7249_s2 + $0x250] sm:$0xff] }
 0x149   : > { %1615 = vmatmul.f32.gmra.mxu0 %v5747_v16  ;;  %2030 = vmatpush.msra.mxu3 %v1150_v0  ;;  %v5777_v16 = vld [vmem:[#allocation2 + $0x7c] sm:$0xff]  ;;  %v1069_v0 = vld [vmem:[%s7249_s2 + $0x28] sm:$0xff] }
 0x14a   : > { %1745 = vmatmul.f32.gmra.mxu2 %v5041_v32  ;;  %v1147_v32 = vld [vmem:[%s7249_s2 + $0x298] sm:$0xff]  ;;  %7367 = vst [vmem:[#allocation57_spill] sm:$0xff] %v5777_v16  ;;  %v5779_v63 = vpop.f32.mrf.mxu1 }
 0x14b   : > { %1680 = vmatmul.f32.gmra.mxu1 %v5037_v30  ;;  %v1144_v30 = vld [vmem:[%s7249_s2 + $0x280] sm:$0xff]  ;;  %2031 = vmatpush.msra.mxu3 %v1147_v32 }
 0x14c   : > { %1810 = vmatmul.f32.gmra.mxu3 %v5039_v31  ;;  %v5775_v31 = vpop.f32.mrf.mxu0  ;;  %v1212_v32 = vld [vmem:[%s7249_s2 + $0x4a0] sm:$0xff]  ;;  %1976 = vmatpush.msra.mxu2 %v1069_v0 }
 0x14d   : > { %2032 = vmatpush.msra.mxu3 %v1144_v30  ;;  %1846 = vmatpush.msra.mxu0 %v1212_v32  ;;  %v1129_v32 = vld [vmem:[%s7249_s2 + $0x208] sm:$0xff] }
 0x14f   : > { %2033 = vmatpush.msra.mxu3 %v1141_v55  ;;  %v1132_v55 = vld [vmem:[%s7249_s2 + $0x220] sm:$0xff] }
 0x151   : > { %1618 = vmatmul.f32.gmra.mxu0 %v5777_v16  ;;  %2034 = vmatpush.msra.mxu3 %v1138_v35  ;;  %v5807_v30 = vpop.f32.mrf.mxu3  ;;  %v1066_v35 = vld [vmem:[%s7249_s2 + $0x10] sm:$0xff] }
 0x152   : > { %1748 = vmatmul.f32.gmra.mxu2 %v5123_v49  ;;  %v1135_v49 = vld [vmem:[%s7249_s2 + $0x238] sm:$0xff] }
 0x153   : > { %1683 = vmatmul.f32.gmra.mxu1 %v5111_v47  ;;  %v1260_v47 = vld [vmem:[%s7249_s2 + $0x620] sm:$0xff]  ;;  %2035 = vmatpush.msra.mxu3 %v1135_v49  ;;  %v5816_v0 = vpop.f32.mrf.mxu1  ;;  %v1209_v49 = vld [vmem:[%s7249_s2 + $0x488] sm:$0xff] }
 0x154   : > { %1813 = vmatmul.f32.gmra.mxu3 %v5134_v52  ;;  %v5803_v52 = vpop.f32.mrf.mxu2  ;;  %1911 = vmatpush.msra.mxu1 %v1260_v47  ;;  %v5809_v16 = vpop.f32.mrf.mxu0 }
 0x155   : > { %2036 = vmatpush.msra.mxu3 %v1132_v55  ;;  %1977 = vmatpush.msra.mxu2 %v1066_v35  ;;  %v1123_v55 = vld [vmem:[%s7249_s2 + $0x1d8] sm:$0xff] }
 0x156   : > { %1847 = vmatpush.msra.mxu0 %v1209_v49 }
 0x157   : > { %2037 = vmatpush.msra.mxu3 %v1129_v32  ;;  %v1120_v32 = vld [vmem:[%s7249_s2 + $0x1c0] sm:$0xff] }
 0x159   : > { %1621 = vmatmul.f32.gmra.mxu0 %v5805_v34 }
 0x15a   : > { %1751 = vmatmul.f32.gmra.mxu2 %v5204_v5  ;;  %v1126_v5 = vld [vmem:[%s7249_s2 + $0x1f0] sm:$0xff] }
 0x15b   : > { %1686 = vmatmul.f32.gmra.mxu1 %v5200_v3  ;;  %v1257_v3 = vld [vmem:[%s7249_s2 + $0x608] sm:$0xff]  ;;  %2038 = vmatpush.msra.mxu3 %v1126_v5  ;;  %v5839_v34 = vpop.f32.mrf.mxu3  ;;  %v1303_v5 = vld [vmem:[%s7249_s2 + $0x778] sm:$0xff] }
 0x15c   : > { %1816 = vmatmul.f32.gmra.mxu3 %v5202_v4  ;;  %v5835_v4 = vld [vmem:[#allocation2 + $0x94] sm:$0xff]  ;;  %1912 = vmatpush.msra.mxu1 %v1257_v3  ;;  %v5837_v47 = vpop.f32.mrf.mxu2  ;;  %7371 = vst [vmem:[#allocation61_spill] sm:$0xff] %v5839_v34  ;;  %v5867_v3 = vld [vmem:[#allocation2 + $0x9c] sm:$0xff] }
 0x15d   : > { %7369 = vst [vmem:[#allocation59_spill] sm:$0xff] %v5835_v4  ;;  %2039 = vmatpush.msra.mxu3 %v1123_v55  ;;  %2222 = vmatpush.msrb.mxu2 %v1303_v5  ;;  %v1304_v55 = vld [vmem:[%s7250_s3] sm:$0x7] }
 0x15e   : > { %7370 = vst [vmem:[#allocation60_spill] sm:$0xff] %v5837_v47  ;;  %v5846_v35 = vpop.f32.mrf.mxu0  ;;  %v5879_v5 = vperm.slane %v1304_v55, 0 }
 0x15f   : > { %2040 = vmatpush.msra.mxu3 %v1120_v32  ;;  %7373 = vst [vmem:[#allocation63_spill] sm:$0xff] %v5867_v3 }
 0x160   : > { %v5853_v49 = vpop.f32.mrf.mxu1 }
 0x161   : > { %1624 = vmatmul.f32.gmra.mxu0 %v5835_v4  ;;  %7372 = vst [vmem:[#allocation62_spill] sm:$0xff] %v5853_v49  ;;  %v1114_v4 = vld [vmem:[%s7249_s2 + $0x190] sm:$0xff] }
 0x162   : > { %1754 = vmatmul.f32.gmra.mxu2 %v5286_v22  ;;  %v1207_v22 = vld [vmem:[%s7249_s2 + $0x478] sm:$0xff]  ;;  %v1062_v49 = vld [vmem:[#allocation2 + $0xac] sm:$0xff] }
 0x163   : > { %1689 = vmatmul.f32.gmra.mxu1 %v5274_v20  ;;  %v1117_v20 = vld [vmem:[%s7249_s2 + $0x1a8] sm:$0xff]  ;;  %2092 = vmatpush.msrb.mxu0 %v1207_v22 }
 0x164   : > { %1819 = vmatmul.f32.gmra.mxu3 %v5300_v26  ;;  %v1255_v26 = vld [vmem:[%s7249_s2 + $0x5f8] sm:$0xff] }
 0x165   : > { %2157 = vmatpush.msrb.mxu1 %v1255_v26  ;;  %2041 = vmatpush.msra.mxu3 %v1117_v20  ;;  %v5877_v32 = vpop.f32.mrf.mxu2 }
 0x166   : > { %7374 = vst [vmem:[#allocation64_spill] sm:$0xff] %v5877_v32 }
 0x167   : > { %v5883_v22 = vpop.f32.mrf.mxu3  ;;  %2042 = vmatpush.msra.mxu3 %v1114_v4  ;;  %v1063_v4 = vld [vmem:[#allocation2 + $0xb4] sm:$0xff] }
 0x168   : > { %7375 = vst [vmem:[#allocation65_spill] sm:$0xff] %v5883_v22 }
 0x169   : > { %1627 = vmatmul.f32.gmra.mxu0 %v5867_v3 }
 0x16a   : > { %1757 = vmatmul.f32.gmra.mxu2 %v5372_v48 }
 0x16b   : > { %1692 = vmatmul.f32.gmra.mxu1 %v5368_v45 }
 0x16c   : > { %1822 = vmatmul.f32.gmra.mxu3 %v5370_v46  ;;  %v1371_v26 = vpop.f32.mrf.mxu0 }
 0x16d   : > { %v1372_v20 = vadd.f32 %v1371_v26, %v5879_v5  ;;  %v1436_v34 = vpop.f32.mrf.mxu1 }
 0x16f   : > { %v1437_v47 = vadd.f32 %v1436_v34, %v1372_v20 }
 0x171   : > { %1630 = vmatmul.f32.gmra.mxu0 %v1062_v49 }
 0x172   : > { %1760 = vmatmul.f32.gmra.mxu2 %v5464_v12 }
 0x173   : > { %1695 = vmatmul.f32.gmra.mxu1 %v5457_v11 }
 0x174   : > { %1825 = vmatmul.f32.gmra.mxu3 %v5471_v15  ;;  %v1501_v48 = vpop.f32.mrf.mxu2  ;;  %v5902_v15 = vperm.slane %v1304_v55, 1 }
 0x175   : > { %v1502_v45 = vadd.f32 %v1501_v48, %v1437_v47  ;;  %v1566_v3 = vpop.f32.mrf.mxu3 }
 0x176   : > { %v5889_v46 = vpop.f32.mrf.mxu0  ;;  %7376 = vst [vmem:[#allocation66_spill] sm:$0xff] %v5902_v15 }
 0x177   : > { %v5891_v22 = vadd.f32 %v1566_v3, %v1502_v45  ;;  %v3817_v3 = vld [vmem:[#allocation2 + $0x3] sm:$0xff]  ;;  %v3818_v45 = vld [vmem:[#allocation2 + $0xb] sm:$0xff] }
 0x178   : > { %v5893_v32 = vpop.f32.mrf.mxu1 }
 0x179   : > { %1633 = vmatmul.f32.gmra.mxu0 %v1063_v4  ;;  %v1297_v4 = vld [vmem:[%s7249_s2 + $0x748] sm:$0xff] }
 0x17a   : > { %1763 = vmatmul.f32.gmra.mxu2 %v5498_v33 }
 0x17b   : > { %1698 = vmatmul.f32.gmra.mxu1 %v5494_v28 }
 0x17c   : > { %1828 = vmatmul.f32.gmra.mxu3 %v5496_v29 }
 0x17d   : > { %v5898_v11 = vpop.f32.mrf.mxu2 }
 0x17e   : > { %v5904_v34 = vpop.f32.mrf.mxu0 }
 0x17f   : > { %v5900_v12 = vpop.f32.mrf.mxu3 }
 0x180   : > { %v1654_v47 = vpop.f32.mrf.mxu1 }
 0x181   : > { %v1655_v49 = vadd.f32 %v1654_v47, %v5902_v15  ;;  %1848 = vmatmul.f32.vlgmr.msra.gmra.mxu0 %v3817_v3  ;;  %v1249_v47 = vld [vmem:[%s7249_s2 + $0x5c8] sm:$0xff] }
 0x182   : > { %1978 = vmatmul.f32.vlgmr.msra.gmra.mxu2 %v5529_v51  ;;  %v1252_v51 = vld [vmem:[%s7249_s2 + $0x5e0] sm:$0xff] }
 0x183   : > { %1913 = vmatmul.f32.vlgmr.msra.gmra.mxu1 %v5518_v41  ;;  %v1300_v41 = vld [vmem:[%s7249_s2 + $0x760] sm:$0xff] }
 0x184   : > { %2043 = vmatmul.f32.vlgmr.msra.gmra.mxu3 %v5523_v43  ;;  %v1204_v43 = vld [vmem:[%s7249_s2 + $0x460] sm:$0xff]  ;;  %2223 = vmatpush.msrb.mxu2 %v1300_v41 }
 0x185   : > { %v1719_v28 = vpop.f32.mrf.mxu2  ;;  %2093 = vmatpush.msrb.mxu0 %v1204_v43  ;;  %2158 = vmatpush.msrb.mxu1 %v1252_v51 }
 0x186   : > { %v1720_v29 = vadd.f32 %v1719_v28, %v1655_v49  ;;  %v5910_v26 = vpop.f32.mrf.mxu0  ;;  %2224 = vmatpush.msrb.mxu2 %v1297_v4 }
 0x187   : > { %v1784_v33 = vpop.f32.mrf.mxu3  ;;  %2159 = vmatpush.msrb.mxu1 %v1249_v47  ;;  %v3820_v47 = vld [vmem:[#allocation2 + $0x23] sm:$0xff] }
 0x188   : > { %v5912_v55 = vadd.f32 %v1784_v33, %v1720_v29  ;;  %v1657_v20 = vpop.f32.mrf.mxu1 }
 0x189   : > { %v1658_v48 = vadd.f32 %v1657_v20, %v5902_v15  ;;  %1851 = vmatmul.f32.gmra.mxu0 %v3818_v45 }
 0x18a   : > { %1981 = vmatmul.f32.gmra.mxu2 %v5555_v6  ;;  %v1201_v6 = vld [vmem:[%s7249_s2 + $0x448] sm:$0xff] }
 0x18b   : > { %1916 = vmatmul.f32.gmra.mxu1 %v5540_v58  ;;  %2094 = vmatpush.msrb.mxu0 %v1201_v6 }
 0x18c   : > { %2046 = vmatmul.f32.gmra.mxu3 %v5547_v61  ;;  %v3819_v61 = vld [vmem:[#allocation2 + $0x1b] sm:$0xff] }
 0x18d   : > { %v1722_v49 = vpop.f32.mrf.mxu2 }
 0x18e   : > { %v1723_v3 = vadd.f32 %v1722_v49, %v1658_v48  ;;  %v5936_v28 = vpop.f32.mrf.mxu0  ;;  %v1195_v49 = vld [vmem:[%s7249_s2 + $0x418] sm:$0xff] }
 0x18f   : > { %v1787_v58 = vpop.f32.mrf.mxu3 }
 0x190   : > { %v5938_v29 = vadd.f32 %v1787_v58, %v1723_v3  ;;  %v1660_v33 = vpop.f32.mrf.mxu1 }
 0x191   : > { %v1661_v20 = vadd.f32 %v1660_v33, %v5902_v15  ;;  %1854 = vmatmul.f32.gmra.mxu0 %v3819_v61 }
 0x192   : > { %1984 = vmatmul.f32.gmra.mxu2 %v5579_v24  ;;  %v1246_v24 = vld [vmem:[%s7249_s2 + $0x5b0] sm:$0xff] }
 0x193   : > { %1919 = vmatmul.f32.gmra.mxu1 %v5564_v13  ;;  %v1294_v13 = vld [vmem:[%s7249_s2 + $0x730] sm:$0xff] }
 0x194   : > { %2049 = vmatmul.f32.gmra.mxu3 %v5571_v17  ;;  %v1198_v17 = vld [vmem:[%s7249_s2 + $0x430] sm:$0xff]  ;;  %2225 = vmatpush.msrb.mxu2 %v1294_v13 }
 0x195   : > { %v1725_v45 = vpop.f32.mrf.mxu2  ;;  %2095 = vmatpush.msrb.mxu0 %v1198_v17  ;;  %2160 = vmatpush.msrb.mxu1 %v1246_v24 }
 0x196   : > { %v1726_v48 = vadd.f32 %v1725_v45, %v1661_v20  ;;  %v5944_v43 = vpop.f32.mrf.mxu0 }
 0x197   : > { %v1790_v41 = vpop.f32.mrf.mxu3  ;;  %2096 = vmatpush.msrb.mxu0 %v1195_v49  ;;  %v7289_v49 = vlaneseq }
 0x198   : > { %v5946_v51 = vadd.f32 %v1790_v41, %v1726_v48  ;;  %v1663_v4 = vpop.f32.mrf.mxu1  ;;  %v3821_v48 = vld [vmem:[#allocation2 + $0x33] sm:$0xff]  ;;  %v1333_v41 = vadd.f32 %v5440_v1, %v5879_v5  ;;  %v1339_v1 = vadd.f32 %v5516_v40, %v5879_v5  ;;  %v1240_v40 = vld [vmem:[%s7249_s2 + $0x580] sm:$0xff] }
 0x199   : > { %v1664_v6 = vadd.f32 %v1663_v4, %v5902_v15  ;;  %1857 = vmatmul.f32.gmra.mxu0 %v3820_v47 }
 0x19a   : > { %1987 = vmatmul.f32.gmra.mxu2 %v5601_v2  ;;  %v1291_v2 = vld [vmem:[%s7249_s2 + $0x718] sm:$0xff]  ;;  %v1398_v24 = vadd.f32 %v5455_v10, %v1333_v41  ;;  %v1288_v10 = vld [vmem:[%s7249_s2 + $0x700] sm:$0xff] }
 0x19b   : > { %1922 = vmatmul.f32.gmra.mxu1 %v5590_v50  ;;  %v1243_v50 = vld [vmem:[%s7249_s2 + $0x598] sm:$0xff]  ;;  %2226 = vmatpush.msrb.mxu2 %v1291_v2 }
 0x19c   : > { %2052 = vmatmul.f32.gmra.mxu3 %v5593_v54  ;;  %2161 = vmatpush.msrb.mxu1 %v1243_v50  ;;  %v3822_v50 = vld [vmem:[#allocation2 + $0x3b] sm:$0xff] }
 0x19d   : > { %v1728_v3 = vpop.f32.mrf.mxu2  ;;  %2227 = vmatpush.msrb.mxu2 %v1288_v10  ;;  %v7380_v10 = vld [vmem:[#allocation30_spill] sm:$0xff] }
 0x19e   : > { %v1729_v58 = vadd.f32 %v1728_v3, %v1664_v6  ;;  %v5970_v20 = vpop.f32.mrf.mxu0  ;;  %v1330_v6 = vadd.f32 %v5366_v44, %v5879_v5  ;;  %v1463_v3 = vadd.f32 %v5477_v18, %v1398_v24  ;;  %2162 = vmatpush.msrb.mxu1 %v1240_v40  ;;  %v6021_v18 = vshrl.u32 %v7289_v49, 7 }
 0x19f   : > { %v1793_v33 = vpop.f32.mrf.mxu3 }
 0x1a0   : > { %v5972_v54 = vadd.f32 %v1793_v33, %v1729_v58  ;;  %v1666_v61 = vpop.f32.mrf.mxu1  ;;  %v1237_v58 = vld [vmem:[%s7249_s2 + $0x568] sm:$0xff] }
 0x1a1   : > { %v1667_v45 = vadd.f32 %v1666_v61, %v5902_v15  ;;  %1860 = vmatmul.f32.gmra.mxu0 %v3821_v48  ;;  %v1345_v61 = vadd.f32 %v5574_v19, %v5879_v5  ;;  %2163 = vmatpush.msrb.mxu1 %v1237_v58  ;;  %v7385_v58 = vld [vmem:[#allocation24_spill] sm:$0xff] }
 0x1a2   : > { %1990 = vmatmul.f32.gmra.mxu2 %v5625_v8 }
 0x1a3   : > { %1925 = vmatmul.f32.gmra.mxu1 %v5616_v36  ;;  %v1336_v36 = vadd.f32 %v5490_v25, %v5879_v5  ;;  %v1192_v25 = vld [vmem:[%s7249_s2 + $0x400] sm:$0xff]  ;;  %v1410_v24 = vadd.f32 %v5588_v37, %v1345_v61 }
 0x1a4   : > { %2055 = vmatmul.f32.gmra.mxu3 %v5619_v7  ;;  %v1395_v7 = vadd.f32 %v5388_v53, %v1330_v6  ;;  %v1285_v53 = vld [vmem:[%s7249_s2 + $0x6e8] sm:$0xff]  ;;  %2097 = vmatpush.msrb.mxu0 %v1192_v25  ;;  %v1348_v25 = vadd.f32 %v7380_v10, %v5879_v5 }
 0x1a5   : > { %v1731_v4 = vpop.f32.mrf.mxu2  ;;  %v1401_v33 = vadd.f32 %v5492_v27, %v1336_v36  ;;  %2228 = vmatpush.msrb.mxu2 %v1285_v53  ;;  %v7383_v53 = vld [vmem:[#allocation40_spill] sm:$0xff] }
 0x1a6   : > { %v1732_v47 = vadd.f32 %v1731_v4, %v1667_v45  ;;  %v5982_v17 = vpop.f32.mrf.mxu0  ;;  %v1460_v48 = vadd.f32 %v5431_v62, %v1395_v7  ;;  %v1342_v4 = vadd.f32 %v5544_v60, %v5879_v5  ;;  %v1528_v62 = vadd.f32 %v5482_v21, %v1463_v3  ;;  %v7378_v7 = vld [vmem:[#allocation42_spill] sm:$0xff] }
 0x1a7   : > { %v1796_v13 = vpop.f32.mrf.mxu3 }
 0x1a8   : > { %v5985_v2 = vadd.f32 %v1796_v13, %v1732_v47  ;;  %v1669_v8 = vpop.f32.mrf.mxu1  ;;  %v1466_v47 = vadd.f32 %v5512_v38, %v1401_v33  ;;  %v1593_v21 = vadd.f32 %v5910_v26, %v1528_v62  ;;  %v7381_v38 = vld [vmem:[#allocation37_spill] sm:$0xff]  ;;  %v6055_v26 = vand.u32 15, %v6021_v18 }
 0x1a9   : > { %v1670_v44 = vadd.f32 %v1669_v8, %v5902_v15  ;;  %1863 = vmatmul.f32.gmra.mxu0 %v3822_v50  ;;  %v7377_v8 = vld [vmem:[#allocation22_spill] sm:$0xff] }
 0x1aa   : > { %1993 = vmatmul.f32.gmra.mxu2 %v5651_v9  ;;  %v1189_v9 = vld [vmem:[%s7249_s2 + $0x3e8] sm:$0xff]  ;;  %v1525_v36 = vadd.f32 %v7377_v8, %v1460_v48  ;;  %v7387_v8 = vld [vmem:[#allocation26_spill] sm:$0xff] }
 0x1ab   : > { %1928 = vmatmul.f32.gmra.mxu1 %v5640_v59  ;;  %v1404_v59 = vadd.f32 %v5520_v42, %v1339_v1  ;;  %2098 = vmatpush.msrb.mxu0 %v1189_v9  ;;  %v6028_v42 = vadd.s32 8, %v6021_v18  ;;  %v3823_v1 = vld [vmem:[#allocation2 + $0x4b] sm:$0xff]  ;;  %v7384_v9 = vld [vmem:[#allocation23_spill] sm:$0xff] }
 0x1ac   : > { %2058 = vmatmul.f32.gmra.mxu3 %v5645_v39  ;;  %v1531_v3 = vadd.f32 %v7384_v9, %v1466_v47  ;;  %v7388_v47 = vld [vmem:[#allocation31_spill] sm:$0xff] }
 0x1ad   : > { %v1734_v45 = vpop.f32.mrf.mxu2  ;;  %v1469_v13 = vadd.f32 %v5538_v57, %v1404_v59  ;;  %v7382_v57 = vld [vmem:[#allocation34_spill] sm:$0xff]  ;;  %v6047_v40 = vand.u32 15, %v6028_v42  ;;  %v7386_v59 = vld [vmem:[#allocation28_spill] sm:$0xff] }
 0x1ae   : > { %v1735_v39 = vadd.f32 %v1734_v45, %v1670_v44  ;;  %v6025_v27 = vpop.f32.mrf.mxu0  ;;  %v7379_v44 = vld [vmem:[#allocation25_spill] sm:$0xff]  ;;  %v1351_v37 = vadd.f32 %v7382_v57, %v5879_v5  ;;  %v1475_v61 = vadd.f32 %v7386_v59, %v1410_v24  ;;  %v1590_v45 = vadd.f32 %v5904_v34, %v1525_v36  ;;  %v7390_v36 = vld [vmem:[#allocation35_spill] sm:$0xff] }
 0x1af   : > { %v1799_v41 = vpop.f32.mrf.mxu3  ;;  %v1407_v50 = vadd.f32 %v7379_v44, %v1342_v4  ;;  %v1534_v33 = vadd.f32 %v7385_v58, %v1469_v13  ;;  %v2339_v4 = vadd.s32 24, %v6021_v18  ;;  %v7389_v13 = vld [vmem:[#allocation39_spill] sm:$0xff]  ;;  %v2290_v44 = vmax.f32 %v1593_v21, 0.0 }
 0x1b0   : > { %v6030_v19 = vadd.f32 %v1799_v41, %v1735_v39  ;;  %v1672_v6 = vpop.f32.mrf.mxu1  ;;  %v4035_v39 = vmov 14   ;;  %v1354_v24 = vadd.f32 %v7389_v13, %v5879_v5  ;;  %v1416_v10 = vadd.f32 %v7390_v36, %v1351_v37  ;;  %v1279_v36 = vld [vmem:[%s7249_s2 + $0x6b8] sm:$0xff] }
 0x1b1   : > { %v1673_v60 = vadd.f32 %v1672_v6, %v5902_v15  ;;  %1866 = vmatmul.f32.gmra.mxu0 %v3823_v1  ;;  %v6057_v41 = vperm.slane %v4035_v39, 0  ;;  %v1472_v1 = vadd.f32 %v7387_v8, %v1407_v50  ;;  %v2287_v58 = vmax.f32 %v1590_v45, 0.0  ;;  %v3824_v39 = vld [vmem:[#allocation2 + $0x53] sm:$0xff]  ;;  %v7395_v45 = vld [vmem:[#allocation32_spill] sm:$0xff] }
 0x1b2   : > { %1996 = vmatmul.f32.gmra.mxu2 %v7378_v7  ;;  %v1413_v7 = vadd.f32 %v7388_v47, %v1348_v25  ;;  %v7393_v25 = vld [vmem:[#allocation47_spill] sm:$0xff]  ;;  %v1599_v21 = vadd.f32 %v5944_v43, %v1534_v33  ;;  %v6078_v37 = vand.u32 15, %v2339_v4  ;;  %v2341_v59 = vadd.s32 40, %v6021_v18  ;;  %v1186_v43 = vld [vmem:[%s7249_s2 + $0x3d0] sm:$0xff] }
 0x1b3   : > { %1931 = vmatmul.f32.gmra.mxu1 %v7381_v38  ;;  %vm2550_vm0 = vcmp.lt.s32.totalorder %v6047_v40, %v6057_v41  ;;  %v2338_v38 = vadd.s32 16, %v6021_v18  ;;  %v1357_v9 = vadd.f32 %v7393_v25, %v5879_v5  ;;  %vm2547_vm1 = vcmp.lt.s32.totalorder %v6055_v26, %v6057_v41  ;;  %v1234_v33 = vld [vmem:[%s7249_s2 + $0x550] sm:$0xff]  ;;  %v7398_v25 = vld [vmem:[#allocation36_spill] sm:$0xff]  ;;  %2099 = vmatpush.msrb.mxu0 %v1186_v43 }
 0x1b4   : > { %2061 = vmatmul.f32.gmra.mxu3 %v7383_v53  ;;  %v7392_v53 = vld [vmem:[#allocation29_spill] sm:$0xff]  ;;  %v1478_v4 = vadd.f32 %v7395_v45, %v1413_v7  ;;  %v6097_v47 = vsel %vm2550_vm0, %v2290_v44, -1.0  ;;  %v1596_v13 = vadd.f32 %v5936_v28, %v1531_v3  ;;  %v2340_v7 = vadd.s32 32, %v6021_v18  ;;  %v7400_v45 = vld [vmem:[#allocation46_spill] sm:$0xff]  ;;  %v1183_v28 = vld [vmem:[%s7249_s2 + $0x3b8] sm:$0xff]  ;;  %2164 = vmatpush.msrb.mxu1 %v1234_v33 }
 0x1b5   : > { %v1737_v48 = vpop.f32.mrf.mxu2  ;;  %v1540_v50 = vadd.f32 %v7392_v53, %v1475_v61  ;;  %v1282_v61 = vld [vmem:[%s7249_s2 + $0x6d0] sm:$0xff]  ;;  %v1231_v3 = vld [vmem:[%s7249_s2 + $0x538] sm:$0xff]  ;;  %v7401_v44 = vld [vmem:[#allocation49_spill] sm:$0xff]  ;;  %vm2556_vm2 = vcmp.lt.s32.totalorder %v6078_v37, %v6057_v41  ;;  %2100 = vmatpush.msrb.mxu0 %v1183_v28 }
 0x1b6   : > { %v1738_v6 = vadd.f32 %v1737_v48, %v1673_v60  ;;  %v6064_v34 = vpop.f32.mrf.mxu0  ;;  %2229 = vmatpush.msrb.mxu2 %v1282_v61  ;;  %v2293_v49 = vmax.f32 %v1596_v13, 0.0  ;;  %2165 = vmatpush.msrb.mxu1 %v1231_v3  ;;  %v6134_v43 = vand.u32 15, %v2340_v7  ;;  %v2345_v13 = vadd.s32 72, %v6021_v18 }
 0x1b7   : > { %v1802_v62 = vpop.f32.mrf.mxu3  ;;  %v1605_v61 = vadd.f32 %v5982_v17, %v1540_v50  ;;  %v2342_v3 = vadd.s32 48, %v6021_v18 }
 0x1b8   : > { %v6070_v57 = vadd.f32 %v1802_v62, %v1738_v6  ;;  %v1675_v60 = vpop.f32.mrf.mxu1  ;;  %v7394_v6 = vld [vmem:[#allocation48_spill] sm:$0xff]  ;;  %v7396_v62 = vld [vmem:[#allocation41_spill] sm:$0xff]  ;;  %2230 = vmatpush.msrb.mxu2 %v1279_v36  ;;  %vm2559_vm5 = vcmp.lt.s32.totalorder %v6134_v43, %v6057_v41 }
 0x1b9   : > { %v1676_v48 = vadd.f32 %v1675_v60, %v5902_v15  ;;  %1869 = vmatmul.f32.gmra.mxu0 %v3824_v39  ;;  %v1419_v8 = vadd.f32 %v7396_v62, %v1354_v24  ;;  %v7397_v60 = vld [vmem:[#allocation27_spill] sm:$0xff]  ;;  %v1481_v39 = vadd.f32 %v7398_v25, %v1416_v10  ;;  %v6120_v10 = vsel %vm2547_vm1, %v2287_v58, -1.0 }
 0x1ba   : > { %7391 = vst [vmem:[#allocation22_spill] sm:$0xff] %v6070_v57  ;;  %1999 = vmatmul.f32.gmra.mxu2 %v7394_v6  ;;  %v1537_v53 = vadd.f32 %v7397_v60, %v1472_v1  ;;  %v6105_v6 = vand.u32 15, %v2338_v38  ;;  %v7399_v24 = vld [vmem:[#allocation43_spill] sm:$0xff]  ;;  %v1422_v1 = vadd.f32 %v7401_v44, %v1357_v9  ;;  %v2296_v38 = vmax.f32 %v1599_v21, 0.0  ;;  %v7403_v44 = vld [vmem:[#allocation44_spill] sm:$0xff] }
 0x1bb   : > { %1934 = vmatmul.f32.gmra.mxu1 %v7399_v24  ;;  %v2643_v60 = vmax.f32 %v6120_v10, %v6097_v47  ;;  %v6127_v25 = vand.u32 15, %v2341_v59  ;;  %v1484_v21 = vadd.f32 %v7403_v44, %v1419_v8  ;;  %v2343_v59 = vadd.s32 56, %v6021_v18 }
 0x1bc   : > { %2064 = vmatmul.f32.gmra.mxu3 %v7400_v45  ;;  %v7402_v45 = vld [vmem:[#allocation33_spill] sm:$0xff]  ;;  %v1602_v17 = vadd.f32 %v5970_v20, %v1537_v53  ;;  %vm2553_vm3 = vcmp.lt.s32.totalorder %v6105_v6, %v6057_v41  ;;  %v6145_v20 = vsel %vm2556_vm2, %v2296_v38, -1.0  ;;  %v2302_v8 = vmax.f32 %v1605_v61, 0.0  ;;  %v7407_v53 = vld [vmem:[#allocation52_spill] sm:$0xff] }
 0x1bd   : > { %v1740_v62 = vpop.f32.mrf.mxu2  ;;  %v1543_v58 = vadd.f32 %v7402_v45, %v1478_v4  ;;  %v7406_v4 = vld [vmem:[#allocation38_spill] sm:$0xff]  ;;  %v1487_v28 = vadd.f32 %v7407_v53, %v1422_v1  ;;  %v2644_v7 = vrot.slane %v2643_v60, 4  ;;  %vm2562_vm4 = vcmp.lt.s32.totalorder %v6127_v25, %v6057_v41 }
 0x1be   : > { %v1741_v9 = vadd.f32 %v1740_v62, %v1676_v48  ;;  %v1613_v50 = vpop.f32.mrf.mxu0  ;;  %v1546_v36 = vadd.f32 %v7406_v4, %v1481_v39  ;;  %v3825_v62 = vld [vmem:[#allocation2 + $0x63] sm:$0xff]  ;;  %v6156_v39 = vsel %vm2553_vm3, %v2293_v49, -1.0  ;;  %v2299_v38 = vmax.f32 %v1602_v17, 0.0  ;;  %v7410_v53 = vld [vmem:[#allocation50_spill] sm:$0xff] }
 0x1bf   : > { %v1805_v24 = vpop.f32.mrf.mxu3  ;;  %v2344_v1 = vadd.s32 64, %v6021_v18  ;;  %v2709_v44 = vmax.f32 %v6156_v39, %v6145_v20  ;;  %v6165_v4 = vand.u32 15, %v2343_v59  ;;  %v1360_v49 = vadd.f32 %v5737_v56, %v5879_v5  ;;  %v7413_v59 = vld [vmem:[#allocation54_spill] sm:$0xff] }
 0x1c0   : > { %v6137_v48 = vadd.f32 %v1805_v24, %v1741_v9  ;;  %v6139_v33 = vpop.f32.mrf.mxu1  ;;  %v7408_v9 = vld [vmem:[#allocation53_spill] sm:$0xff]  ;;  %v1611_v61 = vadd.f32 %v6064_v34, %v1546_v36  ;;  %v6174_v34 = vsel %vm2562_vm4, %v2302_v8, -1.0  ;;  %v6179_v36 = vand.u32 15, %v2345_v13 }
 0x1c1   : > { %7405 = vst [vmem:[#allocation25_spill] sm:$0xff] %v6139_v33  ;;  %1872 = vmatmul.f32.gmra.mxu0 %v3825_v62  ;;  %v7409_v24 = vld [vmem:[#allocation45_spill] sm:$0xff]  ;;  %v7411_v62 = vld [vmem:[#allocation51_spill] sm:$0xff]  ;;  %v6186_v56 = vsel %vm2559_vm5, %v2299_v38, -1.0  ;;  %v6188_v15 = vand.u32 15, %v2344_v1  ;;  %v2710_v57 = vrot.slane %v2709_v44, 4  ;;  %vm2568_vm6 = vcmp.lt.s32.totalorder %v6165_v4, %v6057_v41 }
 0x1c2   : > { %7404 = vst [vmem:[#allocation42_spill] sm:$0xff] %v6137_v48  ;;  %2002 = vmatmul.f32.gmra.mxu2 %v7408_v9  ;;  %v1549_v45 = vadd.f32 %v7409_v24, %v1484_v21  ;;  %v1608_v21 = vadd.f32 %v6025_v27, %v1543_v58  ;;  %v1552_v9 = vadd.f32 %v7413_v59, %v1487_v28  ;;  %v6182_v24 = vand.u32 15, %v2342_v3  ;;  %v1273_v59 = vld [vmem:[%s7249_s2 + $0x688] sm:$0xff] }
 0x1c3   : > { %1937 = vmatmul.f32.gmra.mxu1 %v7410_v53  ;;  %7412 = vst [vmem:[#allocation30_spill] sm:$0xff] %v6179_v36  ;;  %v2645_v48 = vmax.f32 %v2643_v60, %v2644_v7  ;;  %v2308_v33 = vmax.f32 %v1611_v61, 0.0  ;;  %v2775_v27 = vmax.f32 %v6186_v56, %v6174_v34  ;;  %vm2574_vm7 = vcmp.lt.s32.totalorder %v6179_v36, %v6057_v41  ;;  %v1276_v60 = vld [vmem:[%s7249_s2 + $0x6a0] sm:$0xff] }
 0x1c4   : > { %2067 = vmatmul.f32.gmra.mxu3 %v7411_v62  ;;  %v1614_v53 = vadd.f32 %v1613_v50, %v1549_v45  ;;  %7415 = vst [vmem:[#allocation34_spill] sm:$0xff] %v6188_v15  ;;  %v7417_v50 = vld [vmem:[#allocation55_spill] sm:$0xff]  ;;  %v2305_v3 = vmax.f32 %v1608_v21, 0.0  ;;  %v1180_v7 = vld [vmem:[%s7249_s2 + $0x3a0] sm:$0xff]  ;;  %v1363_v38 = vadd.f32 %v5775_v31, %v5879_v5  ;;  %vm2565_vm8 = vcmp.lt.s32.totalorder %v6182_v24, %v6057_v41  ;;  %v3826_v45 = vld [vmem:[#allocation2 + $0x6b] sm:$0xff] }
 0x1c5   : > { %v6177_v17 = vpop.f32.mrf.mxu2  ;;  %v1425_v28 = vadd.f32 %v7417_v50, %v1360_v49  ;;  %v3827_v49 = vld [vmem:[#allocation2 + $0x68] sm:$0xff]  ;;  %v1228_v21 = vld [vmem:[%s7249_s2 + $0x520] sm:$0xff]  ;;  %v6218_v31 = vsel %vm2568_vm6, %v2308_v33, -1.0  ;;  %vm2571_vm9 = vcmp.lt.s32.totalorder %v6188_v15, %v6057_v41  ;;  %2231 = vmatpush.msrb.mxu2 %v1276_v60  ;;  %2101 = vmatpush.msrb.mxu0 %v1180_v7  ;;  %v3238_v7 = vld [vmem:[%s7419_s12 + $0x78] sm:$0xff] }
 0x1c6   : > { %v1616_v8 = vpop.f32.mrf.mxu0  ;;  %v2311_v61 = vmax.f32 %v1614_v53, 0.0  ;;  %v1177_v53 = vld [vmem:[%s7249_s2 + $0x388] sm:$0xff]  ;;  %2166 = vmatpush.msrb.mxu1 %v1228_v21  ;;  %3275 = vmatpush.msrb.mxu3 %v3238_v7  ;;  %v2347_v7 = vadd.s32 88, %v6021_v18 }
 0x1c7   : > { %v6184_v62 = vpop.f32.mrf.mxu3  ;;  %v1617_v58 = vadd.f32 %v1616_v8, %v1552_v9  ;;  %v2646_v9 = vrot.slane %v2645_v48, 2  ;;  %v2711_v8 = vmax.f32 %v2709_v44, %v2710_v57  ;;  %v3828_v33 = vld [vmem:[#allocation2 + $0x69] sm:$0xff]  ;;  %v6240_v57 = vsel %vm2565_vm8, %v2305_v3, -1.0  ;;  %2232 = vmatpush.msrb.mxu2 %v1273_v59  ;;  %2102 = vmatpush.msrb.mxu0 %v1177_v53 }
 0x1c8   : > { %7414 = vst [vmem:[#allocation37_spill] sm:$0xff] %v6184_v62  ;;  %v6194_v13 = vpop.f32.mrf.mxu1  ;;  %v1225_v60 = vld [vmem:[%s7249_s2 + $0x508] sm:$0xff]  ;;  %v3237_v3 = vld [vmem:[%s7419_s12 + $0x70] sm:$0xff]  ;;  %v2346_v53 = vadd.s32 80, %v6021_v18 }
 0x1c9   : > { %7416 = vst [vmem:[#allocation40_spill] sm:$0xff] %v6194_v13  ;;  %v2314_v1 = vmax.f32 %v1617_v58, 0.0  ;;  %1875 = vmatmul.f32.gmra.mxu0 %v3826_v45  ;;  %v2776_v58 = vrot.slane %v2775_v27, 4  ;;  %v7418_v45 = vld [vmem:[#allocation56_spill] sm:$0xff]  ;;  %v2647_v21 = vmax.f32 %v2645_v48, %v2646_v9  ;;  %2167 = vmatpush.msrb.mxu1 %v1225_v60  ;;  %v3830_v60 = vld [vmem:[#allocation2 + $0x78] sm:$0xff]  ;;  %v7423_v13 = vld [vmem:[#allocation57_spill] sm:$0xff] }
 0x1ca   : > { %2005 = vmatmul.f32.gmra.mxu2 %v3827_v49  ;;  %v1428_v49 = vadd.f32 %v5779_v63, %v1363_v38  ;;  %3276 = vmatpush.msrb.mxu3 %v3237_v3 }
 0x1cb   : > { %v6228_v50 = vsel %vm2574_vm7, %v2314_v1, -1.0  ;;  %1940 = vmatmul.f32.gmra.mxu1 %v7418_v45  ;;  %v1490_v1 = vadd.f32 %v5768_v14, %v1425_v28  ;;  %v2841_v45 = vmax.f32 %v6240_v57, %v6218_v31  ;;  %v2712_v28 = vrot.slane %v2711_v8, 2 }
 0x1cc   : > { %2070 = vmatmul.f32.gmra.mxu3 %v3828_v33  ;;  %v6251_v33 = vsel %vm2571_vm9, %v2311_v61, -1.0  ;;  %v2777_v38 = vmax.f32 %v2775_v27, %v2776_v58  ;;  %v3236_v61 = vld [vmem:[%s7419_s12 + $0x68] sm:$0xff]  ;;  %v1493_v9 = vadd.f32 %v5803_v52, %v1428_v49  ;;  %v3235_v27 = vld [vmem:[%s7419_s12 + $0x60] sm:$0xff]  ;;  %v2648_v58 = vrot.slane %v2647_v21, 1  ;;  %v3234_v52 = vld [vmem:[%s7419_s12 + $0x58] sm:$0xff] }
 0x1cd   : > { %v6242_v44 = vpop.f32.mrf.mxu2  ;;  %v2907_v63 = vmax.f32 %v6251_v33, %v6228_v50  ;;  %v1555_v48 = vadd.f32 %v5770_v23, %v1490_v1  ;;  %v2842_v15 = vrot.slane %v2841_v45, 4  ;;  %3277 = vmatpush.msrb.mxu3 %v3236_v61  ;;  %v3831_v23 = vld [vmem:[#allocation2 + $0x79] sm:$0xff]  ;;  %v6280_v49 = vand.u32 15, %v2347_v7  ;;  %v3233_v61 = vld [vmem:[%s7419_s12 + $0x50] sm:$0xff] }
 0x1ce   : > { %7420 = vst [vmem:[#allocation23_spill] sm:$0xff] %v6242_v44  ;;  %v1619_v14 = vpop.f32.mrf.mxu0  ;;  %v2778_v44 = vrot.slane %v2777_v38, 2  ;;  %v1270_v7 = vld [vmem:[%s7249_s2 + $0x670] sm:$0xff] }
 0x1cf   : > { %v6253_v36 = vpop.f32.mrf.mxu3  ;;  %v2908_v3 = vrot.slane %v2907_v63, 4  ;;  %v1620_v62 = vadd.f32 %v1619_v14, %v1555_v48  ;;  %7425 = vst [vmem:[#allocation31_spill] sm:$0xff] %v6280_v49  ;;  %3278 = vmatpush.msrb.mxu3 %v3235_v27  ;;  %v1558_v14 = vadd.f32 %v5807_v30, %v1493_v9  ;;  %v6290_v48 = vmax.f32 %v2647_v21, %v2648_v58  ;;  %v1222_v30 = vld [vmem:[%s7249_s2 + $0x4f0] sm:$0xff]  ;;  %v1171_v58 = vld [vmem:[%s7249_s2 + $0x358] sm:$0xff] }
 0x1d0   : > { %7421 = vst [vmem:[#allocation24_spill] sm:$0xff] %v6253_v36  ;;  %v6260_v59 = vpop.f32.mrf.mxu1  ;;  %v3829_v36 = vld [vmem:[#allocation2 + $0x7b] sm:$0xff]  ;;  %2233 = vmatpush.msrb.mxu2 %v1270_v7  ;;  %vm2580_vm11 = vcmp.lt.s32.totalorder %v6280_v49, %v6057_v41  ;;  %2168 = vmatpush.msrb.mxu1 %v1222_v30 }
 0x1d1   : > { %7422 = vst [vmem:[#allocation28_spill] sm:$0xff] %v6260_v59  ;;  %1878 = vmatmul.f32.gmra.mxu0 %v3829_v36  ;;  %v2713_v59 = vmax.f32 %v2711_v8, %v2712_v28  ;;  %v6276_v36 = vand.u32 15, %v2346_v53  ;;  %v1366_v8 = vadd.f32 %v5809_v16, %v5879_v5  ;;  %v2843_v28 = vmax.f32 %v2841_v45, %v2842_v15  ;;  %v1174_v16 = vld [vmem:[%s7249_s2 + $0x370] sm:$0xff]  ;;  %v3834_v30 = vld [vmem:[#allocation2 + $0x81] sm:$0xff] }
 0x1d2   : > { %2008 = vmatmul.f32.gmra.mxu2 %v3830_v60  ;;  %v2909_v53 = vmax.f32 %v2907_v63, %v2908_v3  ;;  %3279 = vmatpush.msrb.mxu3 %v3234_v52  ;;  %v2779_v45 = vmax.f32 %v2777_v38, %v2778_v44  ;;  %v2317_v9 = vmax.f32 %v1620_v62, 0.0  ;;  %v1267_v63 = vld [vmem:[%s7249_s2 + $0x658] sm:$0xff]  ;;  %v1369_v44 = vadd.f32 %v5846_v35, %v5879_v5  ;;  %v3833_v52 = vld [vmem:[#allocation2 + $0x80] sm:$0xff]  ;;  %v3232_v35 = vld [vmem:[%s7419_s12 + $0x48] sm:$0xff] }
 0x1d3   : > { %1943 = vmatmul.f32.gmra.mxu1 %v7423_v13  ;;  %7424 = vst [vmem:[#allocation26_spill] sm:$0xff] %v6276_v36  ;;  %v2714_v15 = vrot.slane %v2713_v59, 1  ;;  %2103 = vmatpush.msrb.mxu0 %v1174_v16  ;;  %vm2577_vm10 = vcmp.lt.s32.totalorder %v6276_v36, %v6057_v41  ;;  %v1431_v62 = vadd.f32 %v5816_v0, %v1366_v8  ;;  %v2844_v38 = vrot.slane %v2843_v28, 2  ;;  %v7426_v16 = vld [vmem:[#allocation58_spill] sm:$0xff]  ;;  %v1216_v49 = vld [vmem:[%s7249_s2 + $0x4c0] sm:$0xff] }
 0x1d4   : > { %2073 = vmatmul.f32.gmra.mxu3 %v3831_v23  ;;  %v3832_v23 = vld [vmem:[#allocation2 + $0x83] sm:$0xff]  ;;  %vm2664_vm12 = vcmp.eq.f32.partialorder %v6120_v10, %v6290_v48  ;;  %vm2667_vm13 = vcmp.eq.f32.partialorder %v6097_v47, %v6290_v48  ;;  %v2910_v0 = vrot.slane %v2909_v53, 2  ;;  %2234 = vmatpush.msrb.mxu2 %v1267_v63 }
 0x1d5   : > { %v6278_v1 = vpop.f32.mrf.mxu2  ;;  %3280 = vmatpush.msrb.mxu3 %v3233_v61  ;;  %2104 = vmatpush.msrb.mxu0 %v1171_v58  ;;  %v6326_v8 = vmax.f32 %v2713_v59, %v2714_v15  ;;  %v2780_v61 = vrot.slane %v2779_v45, 1  ;;  %v1264_v59 = vld [vmem:[%s7249_s2 + $0x640] sm:$0xff]  ;;  %v1213_v47 = vld [vmem:[%s7249_s2 + $0x4a8] sm:$0xff] }
 0x1d6   : > { %v1622_v60 = vpop.f32.mrf.mxu0  ;;  %v1168_v15 = vld [vmem:[%s7249_s2 + $0x340] sm:$0xff]  ;;  %2235 = vmatpush.msrb.mxu2 %v1264_v59  ;;  %v1165_v59 = vld [vmem:[%s7249_s2 + $0x328] sm:$0xff] }
 0x1d7   : > { %v6285_v13 = vpop.f32.mrf.mxu3  ;;  %v1623_v21 = vadd.f32 %v1622_v60, %v1558_v14  ;;  %v1219_v14 = vld [vmem:[%s7249_s2 + $0x4d8] sm:$0xff]  ;;  %v6331_v60 = vsel %vm2577_vm10, %v2317_v9, -1.0  ;;  %v3231_v63 = vld [vmem:[%s7419_s12 + $0x40] sm:$0xff]  ;;  %2105 = vmatpush.msrb.mxu0 %v1168_v15  ;;  %3281 = vmatpush.msrb.mxu3 %v3232_v35  ;;  %vm2730_vm14 = vcmp.eq.f32.partialorder %v6156_v39, %v6326_v8  ;;  %vm2733_vm15 = vcmp.eq.f32.partialorder %v6145_v20, %v6326_v8  ;;  %v3228_v20 = vld [vmem:[%s7419_s12 + $0x28] sm:$0xff] }
 0x1d8   : > { %v6301_v27 = vpop.f32.mrf.mxu1  ;;  %2169 = vmatpush.msrb.mxu1 %v1219_v14  ;;  %v7428_v58 = vld [vmem:[#allocation60_spill] sm:$0xff]  ;;  %v1261_v14 = vld [vmem:[%s7249_s2 + $0x628] sm:$0xff]  ;;  %v6380_v10 = vmax.f32 %v2779_v45, %v2780_v61  ;;  %v2348_v45 = vadd.s32 96, %v6021_v18  ;;  %v2349_v61 = vadd.s32 104, %v6021_v18  ;;  %v3837_v39 = vld [vmem:[#allocation2 + $0x91] sm:$0xff] }
 0x1d9   : > { %v2320_v3 = vmax.f32 %v1623_v21, 0.0  ;;  %1881 = vmatmul.f32.gmra.mxu0 %v3832_v23  ;;  %v7429_v23 = vld [vmem:[#allocation62_spill] sm:$0xff]  ;;  %2236 = vmatpush.msrb.mxu2 %v1261_v14 }
 0x1da   : > { %2011 = vmatmul.f32.gmra.mxu2 %v3833_v52  ;;  %v1434_v52 = vadd.f32 %v7429_v23, %v1369_v44  ;;  %v2911_v44 = vmax.f32 %v2909_v53, %v2910_v0  ;;  %2170 = vmatpush.msrb.mxu1 %v1216_v49  ;;  %v1258_v49 = vld [vmem:[%s7249_s2 + $0x610] sm:$0xff]  ;;  %v7432_v23 = vld [vmem:[#allocation61_spill] sm:$0xff]  ;;  %vm2796_vm1 = vcmp.eq.f32.partialorder %v6186_v56, %v6380_v10  ;;  %v3226_v56 = vld [vmem:[%s7419_s12 + $0x18] sm:$0xff] }
 0x1db   : > { %v6336_v7 = vsel %vm2580_vm11, %v2320_v3, -1.0  ;;  %1946 = vmatmul.f32.gmra.mxu1 %v7426_v16  ;;  %v1496_v3 = vadd.f32 %v7428_v58, %v1431_v62  ;;  %v2845_v16 = vmax.f32 %v2843_v28, %v2844_v38  ;;  %v2670_v28 = vsel %vm2664_vm12, %v6021_v18, 16  ;;  %v3230_v58 = vld [vmem:[%s7419_s12 + $0x38] sm:$0xff]  ;;  %2106 = vmatpush.msrb.mxu0 %v1165_v59  ;;  %v1162_v53 = vld [vmem:[%s7249_s2 + $0x310] sm:$0xff]  ;;  %v7433_v59 = vld [vmem:[#allocation64_spill] sm:$0xff] }
 0x1dc   : > { %2076 = vmatmul.f32.gmra.mxu3 %v3834_v30  ;;  %v2973_v9 = vmax.f32 %v6331_v60, %v6336_v7  ;;  %v2673_v62 = vsel %vm2667_vm13, %v6028_v42, 16  ;;  %2171 = vmatpush.msrb.mxu1 %v1213_v47  ;;  %v1499_v36 = vadd.f32 %v7433_v59, %v1434_v52  ;;  %v2739_v52 = vsel %vm2733_vm15, %v6028_v42, 16 }
 0x1dd   : > { %v6347_v21 = vpop.f32.mrf.mxu2  ;;  %3282 = vmatpush.msrb.mxu3 %v3231_v63  ;;  %2237 = vmatpush.msrb.mxu2 %v1258_v49  ;;  %v1561_v14 = vadd.f32 %v7432_v23, %v1496_v3  ;;  %vm2676_vm0 = vcmp.lt.s32.totalorder %v2670_v28, %v2673_v62  ;;  %v3836_v63 = vld [vmem:[#allocation2 + $0x90] sm:$0xff]  ;;  %v2736_v3 = vsel %vm2730_vm14, %v6021_v18, 16  ;;  %vm2799_vm2 = vcmp.eq.f32.partialorder %v6174_v34, %v6380_v10  ;;  %v7434_v23 = vld [vmem:[#allocation59_spill] sm:$0xff] }
 0x1de   : > { %7427 = vst [vmem:[#allocation39_spill] sm:$0xff] %v6347_v21  ;;  %v2974_v38 = vrot.slane %v2973_v9, 4  ;;  %v1625_v15 = vpop.f32.mrf.mxu0  ;;  %2107 = vmatpush.msrb.mxu0 %v1162_v53  ;;  %v2677_v59 = vsel %vm2676_vm0, %v2670_v28, %v2673_v62  ;;  %v6420_v53 = vand.u32 15, %v2348_v45  ;;  %v6424_v21 = vand.u32 15, %v2349_v61  ;;  %v3227_v28 = vld [vmem:[%s7419_s12 + $0x20] sm:$0xff] }
 0x1df   : > { %v6354_v30 = vpop.f32.mrf.mxu3  ;;  %3283 = vmatpush.msrb.mxu3 %v3230_v58  ;;  %v1626_v49 = vadd.f32 %v1625_v15, %v1561_v14  ;;  %v7437_v15 = vld [vmem:[#allocation65_spill] sm:$0xff]  ;;  %vm2742_vm3 = vcmp.lt.s32.totalorder %v2736_v3, %v2739_v52  ;;  %v2802_v62 = vsel %vm2796_vm1, %v6021_v18, 16  ;;  %v2678_v45 = vrot.slane %v2677_v59, 4 }
 0x1e0   : > { %7430 = vst [vmem:[#allocation35_spill] sm:$0xff] %v6354_v30  ;;  %v6382_v35 = vpop.f32.mrf.mxu1  ;;  %v2975_v0 = vmax.f32 %v2973_v9, %v2974_v38  ;;  %v3835_v30 = vld [vmem:[#allocation2 + $0x93] sm:$0xff]  ;;  %v1564_v14 = vadd.f32 %v7437_v15, %v1499_v36  ;;  %v2743_v34 = vsel %vm2742_vm3, %v2736_v3, %v2739_v52  ;;  %vm2583_vm4 = vcmp.lt.s32.totalorder %v6420_v53, %v6057_v41 }
 0x1e1   : > { %7431 = vst [vmem:[#allocation29_spill] sm:$0xff] %v6382_v35  ;;  %v2846_v35 = vrot.slane %v2845_v16, 1  ;;  %1884 = vmatmul.f32.gmra.mxu0 %v3835_v30  ;;  %v1210_v9 = vld [vmem:[%s7249_s2 + $0x490] sm:$0xff]  ;;  %v2912_v30 = vrot.slane %v2911_v44, 1  ;;  %v2323_v61 = vmax.f32 %v1626_v49, 0.0  ;;  %vm2586_vm5 = vcmp.lt.s32.totalorder %v6424_v21, %v6057_v41 }
 0x1e2   : > { %2014 = vmatmul.f32.gmra.mxu2 %v3836_v63  ;;  %v3229_v38 = vld [vmem:[%s7419_s12 + $0x30] sm:$0xff]  ;;  %v2976_v47 = vrot.slane %v2975_v0, 2  ;;  %7435 = vst [vmem:[#allocation47_spill] sm:$0xff] %v6420_v53  ;;  %2172 = vmatpush.msrb.mxu1 %v1210_v9  ;;  %vm6469_vm11 = vcmp.lt.s32.totalorder %v2677_v59, %v2678_v45  ;;  %v2744_v49 = vrot.slane %v2743_v34, 4 }
 0x1e3   : > { %1949 = vmatmul.f32.gmra.mxu1 %v7434_v23  ;;  %7436 = vst [vmem:[#allocation48_spill] sm:$0xff] %v6424_v21  ;;  %3284 = vmatpush.msrb.mxu3 %v3229_v38  ;;  %v6427_v23 = vmax.f32 %v2845_v16, %v2846_v35  ;;  %v6442_v36 = vmax.f32 %v2911_v44, %v2912_v30  ;;  %v3838_v30 = vld [vmem:[#allocation2 + $0x9b] sm:$0xff]  ;;  %v3841_v21 = vld [vmem:[#allocation2 + $0xab] sm:$0xff] }
 0x1e4   : > { %2079 = vmatmul.f32.gmra.mxu3 %v3837_v39  ;;  %v2977_v63 = vmax.f32 %v2975_v0, %v2976_v47  ;;  %v2805_v0 = vsel %vm2799_vm2, %v6028_v42, 16  ;;  %v1375_v47 = vadd.f32 %v5889_v46, %v5879_v5  ;;  %v3839_v5 = vld [vmem:[#allocation2 + $0x98] sm:$0xff]  ;;  %v3225_v46 = vld [vmem:[%s7419_s12 + $0x10] sm:$0xff]  ;;  %vm6520_vm14 = vcmp.lt.s32.totalorder %v2743_v34, %v2744_v49 }
 0x1e5   : > { %v6422_v58 = vpop.f32.mrf.mxu2  ;;  %3285 = vmatpush.msrb.mxu3 %v3228_v20  ;;  %vm2808_vm6 = vcmp.lt.s32.totalorder %v2802_v62, %v2805_v0  ;;  %vm2862_vm7 = vcmp.eq.f32.partialorder %v6240_v57, %v6427_v23  ;;  %vm2865_vm8 = vcmp.eq.f32.partialorder %v6218_v31, %v6427_v23  ;;  %vm2928_vm9 = vcmp.eq.f32.partialorder %v6251_v33, %v6442_v36 }
 0x1e6   : > { %v2978_v16 = vrot.slane %v2977_v63, 1  ;;  %v1628_v35 = vpop.f32.mrf.mxu0  ;;  %vm2931_vm10 = vcmp.eq.f32.partialorder %v6228_v50, %v6442_v36  ;;  %v6476_v20 = vsel %vm2583_vm4, %v2323_v61, -1.0  ;;  %v2871_v61 = vsel %vm2865_vm8, %v6028_v42, 16 }
 0x1e7   : > { %v6429_v39 = vpop.f32.mrf.mxu3  ;;  %v1629_v9 = vadd.f32 %v1628_v35, %v1564_v14  ;;  %3286 = vmatpush.msrb.mxu3 %v3227_v28  ;;  %v7440_v14 = vld [vmem:[#allocation63_spill] sm:$0xff]  ;;  %v3224_v28 = vld [vmem:[%s7419_s12 + $0x8] sm:$0xff]  ;;  %v2868_v35 = vsel %vm2862_vm7, %v6021_v18, 16  ;;  %v2937_v57 = vsel %vm2931_vm10, %v6028_v42, 16 }
 0x1e8   : > { %v6444_v38 = vpop.f32.mrf.mxu1  ;;  %v6467_v3 = vmax.f32 %v2977_v63, %v2978_v16  ;;  %v3840_v63 = vld [vmem:[#allocation2 + $0x99] sm:$0xff]  ;;  %v2809_v16 = vsel %vm2808_vm6, %v2802_v62, %v2805_v0  ;;  %v2934_v62 = vsel %vm2928_vm9, %v6021_v18, 16  ;;  %vm2874_vm15 = vcmp.lt.s32.totalorder %v2868_v35, %v2871_v61 }
 0x1e9   : > { %v2326_v44 = vmax.f32 %v1629_v9, 0.0  ;;  %1887 = vmatmul.f32.gmra.mxu0 %v3838_v30  ;;  %3287 = vmatpush.msrb.mxu3 %v3226_v56  ;;  %v3223_v0 = vld [vmem:[%s7419_s12] sm:$0xff]  ;;  %v2680_v30 = vsel %vm6469_vm11, %v2677_v59, %v2678_v45  ;;  %vm2940_vm0 = vcmp.lt.s32.totalorder %v2934_v62, %v2937_v57  ;;  %v2350_v59 = vadd.s32 112, %v6021_v18 }
 0x1ea   : > { %2017 = vmatmul.f32.gmra.mxu2 %v3839_v5  ;;  %vm2994_vm12 = vcmp.eq.f32.partialorder %v6331_v60, %v6467_v3  ;;  %vm2997_vm13 = vcmp.eq.f32.partialorder %v6336_v7, %v6467_v3  ;;  %v2351_v45 = vadd.s32 120, %v6021_v18  ;;  %v2941_v60 = vsel %vm2940_vm0, %v2934_v62, %v2937_v57  ;;  %v6546_v7 = vld [vmem:[#allocation2 + $0xac] sm:$0xff] }
 0x1eb   : > { %v6481_v15 = vsel %vm2586_vm5, %v2326_v44, -1.0  ;;  %1952 = vmatmul.f32.gmra.mxu1 %v7440_v14  ;;  %3288 = vmatpush.msrb.mxu3 %v3225_v46  ;;  %v1440_v44 = vadd.f32 %v5893_v32, %v1375_v47  ;;  %v2810_v47 = vrot.slane %v2809_v16, 4  ;;  %v2681_v14 = vrot.slane %v2680_v30, 2  ;;  %7446 = vst [vmem:[#allocation41_spill] sm:$0xff] %v6546_v7 }
 0x1ec   : > { %2082 = vmatmul.f32.gmra.mxu3 %v3840_v63  ;;  %v3039_v9 = vmax.f32 %v6476_v20, %v6481_v15  ;;  %v3000_v63 = vsel %vm2994_vm12, %v6021_v18, 16  ;;  %vm3171_vm12 = vcmask 1040384   ;;  %vm3179_vm0 = vcmask 1042432  }
 0x1ed   : > { %v6498_v56 = vpop.f32.mrf.mxu2  ;;  %3289 = vmatpush.msrb.mxu3 %v3224_v28  ;;  %v1505_v52 = vadd.f32 %v5898_v11, %v1440_v44  ;;  %v3003_v28 = vsel %vm2997_vm13, %v6028_v42, 16  ;;  %v2875_v11 = vsel %vm2874_vm15, %v2868_v35, %v2871_v61  ;;  %vm6540_vm1 = vcmp.lt.s32.totalorder %v2809_v16, %v2810_v47 }
 0x1ee   : > { %v3040_v32 = vrot.slane %v3039_v9, 4  ;;  %v1631_v33 = vpop.f32.mrf.mxu0  ;;  %vm3006_vm2 = vcmp.lt.s32.totalorder %v3000_v63, %v3003_v28  ;;  %v6553_v35 = vand.u32 15, %v2351_v45  ;;  %vm2682_vm3 = vcmp.lt.s32.totalorder %v2680_v30, %v2681_v14 }
 0x1ef   : > { %v6509_v31 = vpop.f32.mrf.mxu3  ;;  %3290 = vmatpush.msrb.mxu3 %v3223_v0  ;;  %v2746_v0 = vsel %vm6520_vm14, %v2743_v34, %v2744_v49  ;;  %v1632_v53 = vadd.f32 %v1631_v33, %v5891_v22  ;;  %v6549_v34 = vand.u32 15, %v2350_v59  ;;  %v1570_v61 = vadd.f32 %v5900_v12, %v1505_v52  ;;  %v3846_v52 = vld [vmem:[#allocation2 + $0xb0] sm:$0xff] }
 0x1f0   : > { %v6524_v5 = vpop.f32.mrf.mxu1  ;;  %v3041_v46 = vmax.f32 %v3039_v9, %v3040_v32  ;;  %v3842_v9 = vld [vmem:[#allocation2 + $0xa8] sm:$0xff]  ;;  %7449 = vst [vmem:[#allocation43_spill] sm:$0xff] %v6553_v35  ;;  %v2747_v62 = vrot.slane %v2746_v0, 2  ;;  %v2876_v57 = vrot.slane %v2875_v11, 4  ;;  %v2812_v33 = vsel %vm6540_vm1, %v2809_v16, %v2810_v47 }
 0x1f1   : > { %7443 = vst [vmem:[#allocation32_spill] sm:$0xff] %v6524_v5  ;;  %1890 = vmatmul.f32.gmra.mxu0 %v3841_v21  ;;  %v3844_v21 = vld [vmem:[#allocation2 + $0xa9] sm:$0xff]  ;;  %v2329_v59 = vmax.f32 %v1632_v53, 0.0  ;;  %v6562_v45 = vsel %vm2682_vm3, %v2680_v30, %v2681_v14  ;;  %vm2589_vm4 = vcmp.lt.s32.totalorder %v6549_v34, %v6057_v41  ;;  %vm2592_vm5 = vcmp.lt.s32.totalorder %v6553_v35, %v6057_v41  ;;  %v6578_v30 = vld [vmem:[#allocation2 + $0xb3] sm:$0xff] }
 0x1f2   : > { %2020 = vmatmul.f32.gmra.mxu2 %v3842_v9  ;;  %v3042_v44 = vrot.slane %v3041_v46, 2  ;;  %7447 = vst [vmem:[#allocation27_spill] sm:$0xff] %v6549_v34  ;;  %v2942_v9 = vrot.slane %v2941_v60, 4  ;;  %vm6570_vm6 = vcmp.lt.s32.totalorder %v2746_v0, %v2747_v62  ;;  %v2813_v16 = vrot.slane %v2812_v33, 2 }
 0x1f3   : > { %1955 = vmatmul.f32.gmra.mxu1 %v6546_v7  ;;  %vm6574_vm7 = vcmp.lt.s32.totalorder %v2875_v11, %v2876_v57  ;;  %7454 = vst [vmem:[#allocation46_spill] sm:$0xff] %v6578_v30  ;;  %vm3175_vm14 = vcmask 1041408  }
 0x1f4   : > { %2085 = vmatmul.f32.gmra.mxu3 %v3844_v21  ;;  %v3043_v50 = vmax.f32 %v3041_v46, %v3042_v44  ;;  %v3007_v46 = vsel %vm3006_vm2, %v3000_v63, %v3003_v28  ;;  %vm6581_vm8 = vcmp.lt.s32.totalorder %v2941_v60, %v2942_v9  ;;  %vm2814_vm13 = vcmp.lt.s32.totalorder %v2812_v33, %v2813_v16 }
 0x1f5   : > { %v6551_v49 = vpop.f32.mrf.mxu2  ;;  %v3008_v63 = vrot.slane %v3007_v46, 4  ;;  %v2944_v12 = vsel %vm6581_vm8, %v2941_v60, %v2942_v9  ;;  %v3849_v60 = vld [vmem:[#allocation2 + $0x2] sm:$0xff]  ;;  %vm3183_vm2 = vcmask 1043456  }
 0x1f6   : > { %7448 = vst [vmem:[#allocation36_spill] sm:$0xff] %v6551_v49  ;;  %v3044_v21 = vrot.slane %v3043_v50, 1  ;;  %v1634_v7 = vpop.f32.mrf.mxu0  ;;  %v3850_v9 = vld [vmem:[#allocation2 + $0x4] sm:$0xff] }
 0x1f7   : > { %v6556_v22 = vpop.f32.mrf.mxu3  ;;  %v1635_v44 = vadd.f32 %v1634_v7, %v1570_v61  ;;  %v6594_v7 = vsel %vm2589_vm4, %v2329_v59, -1.0  ;;  %v6601_v61 = vld [vmem:[#allocation2 + $0xb4] sm:$0xff]  ;;  %vm3009_vm15 = vcmp.lt.s32.totalorder %v3007_v46, %v3008_v63 }
 0x1f8   : > { %v6560_v5 = vpop.f32.mrf.mxu1  ;;  %v6564_v49 = vmax.f32 %v3043_v50, %v3044_v21  ;;  %7457 = vst [vmem:[#allocation49_spill] sm:$0xff] %v6601_v61  ;;  %v2878_v21 = vsel %vm6574_vm7, %v2875_v11, %v2876_v57  ;;  %v3010_v35 = vsel %vm3009_vm15, %v3007_v46, %v3008_v63  ;;  %v3851_v11 = vld [vmem:[%s7250_s3] sm:$0x7]  ;;  %vm3191_vm7 = vcmask 1045504   ;;  %v3853_v63 = vld [vmem:[#allocation2 + $0xa] sm:$0xff] }
 0x1f9   : > { %v2332_v47 = vmax.f32 %v1635_v44, 0.0  ;;  %1893 = vmatmul.f32.gmra.mxu0 %v6578_v30  ;;  %v6620_v30 = vsel %vm2814_vm13, %v2812_v33, %v2813_v16  ;;  %v6626_v57 = vperm.slane %v3851_v11, 2  ;;  %v3172_v33 = vsel %vm3171_vm12, %v6290_v48, %v6326_v8  ;;  %v3852_v11 = vld [vmem:[#allocation2 + $0x3] sm:$0xff] }
 0x1fa   : > { %2023 = vmatmul.f32.gmra.mxu2 %v3846_v52  ;;  %vm3060_vm9 = vcmp.eq.f32.partialorder %v6476_v20, %v6564_v49  ;;  %vm3063_vm10 = vcmp.eq.f32.partialorder %v6481_v15, %v6564_v49  ;;  %v3848_v20 = vld [vmem:[#allocation2 + $0xb1] sm:$0xff]  ;;  %v6606_v15 = vsel %vm6570_vm6, %v2746_v0, %v2747_v62  ;;  %v2879_v52 = vrot.slane %v2878_v21, 2 }
 0x1fb   : > { %v3066_v28 = vsel %vm3060_vm9, %v6021_v18, 16  ;;  %v3069_v32 = vsel %vm3063_vm10, %v6028_v42, 16  ;;  %v6599_v50 = vsel %vm2592_vm5, %v2332_v47, -1.0  ;;  %1958 = vmatmul.f32.gmra.mxu1 %v6601_v61  ;;  %vm3187_vm5 = vcmask 1044480  }
 0x1fc   : > { %2088 = vmatmul.f32.gmra.mxu3 %v3848_v20  ;;  %vm3072_vm11 = vcmp.lt.s32.totalorder %v3066_v28, %v3069_v32  ;;  %v3105_v59 = vmax.f32 %v6594_v7, %v6599_v50  ;;  %vm6634_vm3 = vcmp.lt.s32.totalorder %v2878_v21, %v2879_v52  ;;  %vm3195_vm9 = vcmask 1046528  }
 0x1fd   : > { %v6612_v41 = vpop.f32.mrf.mxu2  ;;  %v3073_v44 = vsel %vm3072_vm11, %v3066_v28, %v3069_v32  ;;  %v2945_v32 = vrot.slane %v2944_v12, 2  ;;  %v6652_v46 = vsel %vm6634_vm3, %v2878_v21, %v2879_v52 }
 0x1fe   : > { %v3074_v0 = vrot.slane %v3073_v44, 4  ;;  %v3106_v62 = vrot.slane %v3105_v59, 4  ;;  %v1849_v53 = vpop.f32.mrf.mxu0 }
 0x1ff   : > { %v6614_v47 = vpop.f32.mrf.mxu3  ;;  %v1850_v14 = vadd.f32 %v1849_v53, %v5912_v55  ;;  %v3176_v55 = vsel %vm3175_vm14, %v3172_v33, %v6380_v10  ;;  %v3011_v10 = vrot.slane %v3010_v35, 2  ;;  %vm2946_vm6 = vcmp.lt.s32.totalorder %v2944_v12, %v2945_v32 }
 0x200   : > { %v1914_v20 = vpop.f32.mrf.mxu1  ;;  %vm3075_vm1 = vcmp.lt.s32.totalorder %v3073_v44, %v3074_v0  ;;  %v3107_v28 = vmax.f32 %v3105_v59, %v3106_v62  ;;  %v4036_v62 = vmov 13   ;;  %v3180_v8 = vsel %vm3179_vm0, %v3176_v55, %v6427_v23 }
 0x201   : > { %2108 = vmatmul.f32.vlgmr.msrb.gmra.mxu0 %v3849_v60  ;;  %v3076_v16 = vsel %vm3075_vm1, %v3073_v44, %v3074_v0  ;;  %v6638_v53 = vperm.slane %v4036_v62, 0  ;;  %v7460_v60 = vrot.slane %v6606_v15, 1  ;;  %v1915_v33 = vadd.f32 %v1914_v20, %v1850_v14 }
 0x202   : > { %2238 = vmatmul.f32.vlgmr.msrb.gmra.mxu2 %v3850_v9  ;;  %v3108_v59 = vrot.slane %v3107_v28, 2  ;;  %v3077_v9 = vrot.slane %v3076_v16, 2  ;;  %v3184_v61 = vsel %vm3183_vm2, %v3180_v8, %v6442_v36  ;;  %v6661_v14 = vsel %vm2946_vm6, %v2944_v12, %v2945_v32 }
 0x203   : > { %2173 = vmatmul.f32.vlgmr.msrb.gmra.mxu1 %v3852_v11  ;;  %vm6643_vm4 = vcmp.lt.s32.totalorder %v6606_v15, %v7460_v60  ;;  %vm2548_vm8 = vcmp.lt.s32.totalorder %v6055_v26, %v6638_v53  ;;  %vm3012_vm10 = vcmp.lt.s32.totalorder %v3010_v35, %v3011_v10  ;;  %v3188_v52 = vsel %vm3187_vm5, %v3184_v61, %v6467_v3 }
 0x204   : > { %v3109_v44 = vmax.f32 %v3107_v28, %v3108_v59  ;;  %vm6665_vm11 = vcmp.lt.s32.totalorder %v3076_v16, %v3077_v9  ;;  %v2288_v36 = vmax.f32 %v1915_v33, 0.0  ;;  %vm2551_vm1 = vcmp.lt.s32.totalorder %v6047_v40, %v6638_v53 }
 0x205   : > { %v1979_v0 = vpop.f32.mrf.mxu2  ;;  %v3013_v61 = vsel %vm3012_vm10, %v3010_v35, %v3011_v10  ;;  %v7467_v59 = vrot.slane %v6620_v30, 1 }
 0x206   : > { %v1980_v62 = vadd.f32 %v1979_v0, %v6626_v57  ;;  %v3110_v60 = vrot.slane %v3109_v44, 1  ;;  %v1852_v34 = vpop.f32.mrf.mxu0  ;;  %v3079_v0 = vsel %vm6665_vm11, %v3076_v16, %v3077_v9  ;;  %v6685_v35 = vsel %vm2548_vm8, %v2288_v36, -1.0 }
 0x207   : > { %v2044_v11 = vpop.f32.mrf.mxu3  ;;  %v1853_v23 = vadd.f32 %v1852_v34, %v5938_v29  ;;  %v3854_v29 = vld [vmem:[#allocation2 + $0xc] sm:$0xff]  ;;  %v3192_v34 = vsel %vm3191_vm7, %v3188_v52, %v6564_v49  ;;  %v2882_v49 = vrot.slane %v6652_v46, 1  ;;  %vm2817_vm8 = vcmp.lt.s32.totalorder %v6620_v30, %v7467_v59 }
 0x208   : > { %v6659_v28 = vadd.f32 %v2044_v11, %v1980_v62  ;;  %v1917_v20 = vpop.f32.mrf.mxu1  ;;  %v3111_v21 = vmax.f32 %v3109_v44, %v3110_v60  ;;  %v3855_v44 = vld [vmem:[#allocation2 + $0xb] sm:$0xff]  ;;  %v7465_v11 = vrot.slane %v6562_v45, 1  ;;  %v3014_v60 = vrot.slane %v3013_v61, 1 }
 0x209   : > { %v1918_v55 = vadd.f32 %v1917_v20, %v1853_v23  ;;  %2111 = vmatmul.f32.gmra.mxu0 %v3853_v63  ;;  %v3080_v63 = vrot.slane %v3079_v0, 1  ;;  %vm6709_vm10 = vcmp.lt.s32.totalorder %v6652_v46, %v2882_v49 }
 0x20a   : > { %2241 = vmatmul.f32.gmra.mxu2 %v3854_v29  ;;  %vm3126_vm13 = vcmp.eq.f32.partialorder %v6594_v7, %v3111_v21  ;;  %vm3129_vm15 = vcmp.eq.f32.partialorder %v6599_v50, %v3111_v21  ;;  %v3196_v3 = vsel %vm3195_vm9, %v3192_v34, %v3111_v21  ;;  %v2948_v7 = vrot.slane %v6661_v14, 1 }
 0x20b   : > { %v3132_v12 = vsel %vm3126_vm13, %v6021_v18, 16  ;;  %v3135_v32 = vsel %vm3129_vm15, %v6028_v42, 16  ;;  %v2291_v8 = vmax.f32 %v1918_v55, 0.0  ;;  %2176 = vmatmul.f32.gmra.mxu1 %v3855_v44  ;;  %3291 = vmatmul.f32.vlgmr.msrb.gmra.mxu3 %v3196_v3  ;;  %vm2685_vm6 = vcmp.lt.s32.totalorder %v6562_v45, %v7465_v11  ;;  %v3857_v44 = vld [vmem:[#allocation2 + $0x1c] sm:$0xff] }
 0x20c   : > { %vm3138_vm3 = vcmp.lt.s32.totalorder %v3132_v12, %v3135_v32  ;;  %v7466_v21 = vrot.slane %v6606_v15, 1  ;;  %vm3015_vm13 = vcmp.lt.s32.totalorder %v3013_v61, %v3014_v60  ;;  %vm3081_vm15 = vcmp.lt.s32.totalorder %v3079_v0, %v3080_v63 }
 0x20d   : > { %v1982_v50 = vpop.f32.mrf.mxu2  ;;  %v3139_v33 = vsel %vm3138_vm3, %v3132_v12, %v3135_v32  ;;  %v6690_v10 = vsel %vm2551_vm1, %v2291_v8, -1.0  ;;  %v3856_v8 = vld [vmem:[#allocation2 + $0x1a] sm:$0xff]  ;;  %vm2554_vm3 = vcmp.lt.s32.totalorder %v6105_v6, %v6638_v53 }
 0x20e   : > { %v1983_v62 = vadd.f32 %v1982_v50, %v6626_v57  ;;  %v3140_v23 = vrot.slane %v3139_v33, 4  ;;  %v2650_v16 = vmax.f32 %v6685_v35, %v6690_v10  ;;  %v1855_v9 = vpop.f32.mrf.mxu0  ;;  %v2752_v52 = vsel %vm6643_vm4, %v6606_v15, %v7466_v21 }
 0x20f   : > { %v2047_v20 = vpop.f32.mrf.mxu3  ;;  %v1856_v3 = vadd.f32 %v1855_v9, %v5946_v51  ;;  %v7471_v15 = vmov %v7465_v11  ;;  %vm6718_vm4 = vcmp.lt.s32.totalorder %v6661_v14, %v2948_v7  ;;  %v7474_v50 = vmov %v7467_v59 }
 0x210   : > { %v6706_v36 = vadd.f32 %v2047_v20, %v1983_v62  ;;  %v1920_v55 = vpop.f32.mrf.mxu1  ;;  %vm3141_vm11 = vcmp.lt.s32.totalorder %v3139_v33, %v3140_v23  ;;  %v2651_v34 = vrot.slane %v2650_v16, 4  ;;  %v2686_v48 = vsel %vm2685_vm6, %v6562_v45, %v7471_v15 }
 0x211   : > { %v3142_v32 = vsel %vm3141_vm11, %v3139_v33, %v3140_v23  ;;  %2114 = vmatmul.f32.gmra.mxu0 %v3856_v8  ;;  %v2818_v62 = vsel %vm2817_vm8, %v6620_v30, %v7474_v50  ;;  %v3199_v45 = vsel %vm3171_vm12, %v2686_v48, %v2752_v52  ;;  %v2884_v9 = vsel %vm6709_vm10, %v6652_v46, %v2882_v49  ;;  %v3858_v33 = vld [vmem:[#allocation2 + $0x1b] sm:$0xff]  ;;  %v3860_v8 = vld [vmem:[#allocation2 + $0x24] sm:$0xff] }
 0x212   : > { %2244 = vmatmul.f32.gmra.mxu2 %v3857_v44  ;;  %v3143_v51 = vrot.slane %v3142_v32, 2  ;;  %v2652_v11 = vmax.f32 %v2650_v16, %v2651_v34  ;;  %v1921_v20 = vadd.f32 %v1920_v55, %v1856_v3  ;;  %v2950_v30 = vsel %vm6718_vm4, %v6661_v14, %v2948_v7 }
 0x213   : > { %2179 = vmatmul.f32.gmra.mxu1 %v3858_v33  ;;  %v3016_v52 = vsel %vm3015_vm13, %v3013_v61, %v3014_v60  ;;  %v3202_v46 = vsel %vm3175_vm14, %v3199_v45, %v2818_v62  ;;  %v3082_v15 = vsel %vm3081_vm15, %v3079_v0, %v3080_v63  ;;  %vm2557_vm8 = vcmp.lt.s32.totalorder %v6078_v37, %v6638_v53 }
 0x214   : > { %v2653_v23 = vrot.slane %v2652_v11, 2  ;;  %vm3144_vm1 = vcmp.lt.s32.totalorder %v3142_v32, %v3143_v51  ;;  %v3205_v3 = vsel %vm3179_vm0, %v3202_v46, %v2884_v9  ;;  %v2294_v12 = vmax.f32 %v1921_v20, 0.0 }
 0x215   : > { %v1985_v21 = vpop.f32.mrf.mxu2  ;;  %v3145_v59 = vsel %vm3144_vm1, %v3142_v32, %v3143_v51  ;;  %v3208_v61 = vsel %vm3183_vm2, %v3205_v3, %v2950_v30  ;;  %v3859_v32 = vld [vmem:[#allocation2 + $0x22] sm:$0xff]  ;;  %v3864_v3 = vld [vmem:[#allocation2 + $0x33] sm:$0xff]  ;;  %vm2560_vm15 = vcmp.lt.s32.totalorder %v6134_v43, %v6638_v53  ;;  %vm2563_vm1 = vcmp.lt.s32.totalorder %v6127_v25, %v6638_v53 }
 0x216   : > { %v1986_v16 = vadd.f32 %v1985_v21, %v6626_v57  ;;  %v2654_v49 = vmax.f32 %v2652_v11, %v2653_v23  ;;  %v1858_v29 = vpop.f32.mrf.mxu0  ;;  %v3146_v55 = vrot.slane %v3145_v59, 1  ;;  %v3211_v0 = vsel %vm3187_vm5, %v3208_v61, %v3016_v52  ;;  %v3861_v11 = vld [vmem:[#allocation2 + $0x23] sm:$0xff] }
 0x217   : > { %v2050_v34 = vpop.f32.mrf.mxu3  ;;  %v1859_v14 = vadd.f32 %v1858_v29, %v5972_v54  ;;  %v3214_v54 = vsel %vm3191_vm7, %v3211_v0, %v3082_v15  ;;  %v2602_v45 = vsel %vm2554_vm3, %v2294_v12, -1.0  ;;  %v3863_v15 = vld [vmem:[#allocation2 + $0x34] sm:$0xff] }
 0x218   : > { %v6743_v7 = vadd.f32 %v2050_v34, %v1986_v16  ;;  %v1923_v48 = vpop.f32.mrf.mxu1  ;;  %v2655_v60 = vrot.slane %v2654_v49, 1  ;;  %vm3147_vm6 = vcmp.lt.s32.totalorder %v3145_v59, %v3146_v55  ;;  %v3862_v34 = vld [vmem:[#allocation2 + $0x32] sm:$0xff] }
 0x219   : > { %v1924_v63 = vadd.f32 %v1923_v48, %v1859_v14  ;;  %2117 = vmatmul.f32.gmra.mxu0 %v3859_v32  ;;  %v3148_v44 = vsel %vm3147_vm6, %v3145_v59, %v3146_v55 }
 0x21a   : > { %2247 = vmatmul.f32.gmra.mxu2 %v3860_v8  ;;  %v2656_v50 = vmax.f32 %v2654_v49, %v2655_v60  ;;  %v3217_v62 = vsel %vm3195_vm9, %v3214_v54, %v3148_v44 }
 0x21b   : > { %v2297_v51 = vmax.f32 %v1924_v63, 0.0  ;;  %2182 = vmatmul.f32.gmra.mxu1 %v3861_v11  ;;  %3220 = vst [vmem:[%s302_s0] sm:$0xff] %v3217_v62  ;;  %v3865_v11 = vld [vmem:[#allocation2 + $0x3a] sm:$0xff] }
 0x21c   : > { %vm2665_vm10 = vcmp.eq.f32.partialorder %v6685_v35, %v2656_v50  ;;  %vm2668_vm11 = vcmp.eq.f32.partialorder %v6690_v10, %v2656_v50 }
 0x21d   : > { %v1988_v9 = vpop.f32.mrf.mxu2  ;;  %v2671_v33 = vsel %vm2665_vm10, %v6021_v18, 16  ;;  %v2674_v23 = vsel %vm2668_vm11, %v6028_v42, 16  ;;  %v2605_v20 = vsel %vm2557_vm8, %v2297_v51, -1.0 }
 0x21e   : > { %v1989_v21 = vadd.f32 %v1988_v9, %v6626_v57  ;;  %vm2687_vm4 = vcmp.lt.s32.totalorder %v2671_v33, %v2674_v23  ;;  %v2716_v30 = vmax.f32 %v2602_v45, %v2605_v20  ;;  %v1861_v16 = vpop.f32.mrf.mxu0  ;;  %v3866_v9 = vld [vmem:[#allocation2 + $0x3c] sm:$0xff] }
 0x21f   : > { %v2053_v52 = vpop.f32.mrf.mxu3  ;;  %v2688_v59 = vsel %vm2687_vm4, %v2671_v33, %v2674_v23  ;;  %v1862_v29 = vadd.f32 %v1861_v16, %v5985_v2 }
 0x220   : > { %v6762_v35 = vadd.f32 %v2053_v52, %v1989_v21  ;;  %v1926_v10 = vpop.f32.mrf.mxu1  ;;  %v2689_v46 = vrot.slane %v2688_v59, 4  ;;  %v2717_v49 = vrot.slane %v2716_v30, 4 }
 0x221   : > { %2120 = vmatmul.f32.gmra.mxu0 %v3862_v34  ;;  %v1927_v48 = vadd.f32 %v1926_v10, %v1862_v29  ;;  %v7475_v34 = vld [vmem:[#allocation22_spill] sm:$0xff] }
 0x222   : > { %2250 = vmatmul.f32.gmra.mxu2 %v3863_v15  ;;  %v2718_v55 = vmax.f32 %v2716_v30, %v2717_v49  ;;  %vm2690_vm13 = vcmp.lt.s32.totalorder %v2688_v59, %v2689_v46 }
 0x223   : > { %2185 = vmatmul.f32.gmra.mxu1 %v3864_v3  ;;  %v2691_v32 = vsel %vm2690_vm13, %v2688_v59, %v2689_v46  ;;  %v2300_v62 = vmax.f32 %v1927_v48, 0.0 }
 0x224   : > { %v2719_v14 = vrot.slane %v2718_v55, 2  ;;  %v2692_v33 = vrot.slane %v2691_v32, 2 }
 0x225   : > { %v1991_v61 = vpop.f32.mrf.mxu2  ;;  %v6776_v16 = vsel %vm2560_vm15, %v2300_v62, -1.0 }
 0x226   : > { %v1992_v60 = vadd.f32 %v1991_v61, %v6626_v57  ;;  %v2720_v12 = vmax.f32 %v2718_v55, %v2719_v14  ;;  %v1864_v0 = vpop.f32.mrf.mxu0  ;;  %vm2693_vm8 = vcmp.lt.s32.totalorder %v2691_v32, %v2692_v33 }
 0x227   : > { %v2056_v63 = vpop.f32.mrf.mxu3  ;;  %v1865_v8 = vadd.f32 %v1864_v0, %v6030_v19  ;;  %v3867_v19 = vld [vmem:[#allocation2 + $0x3b] sm:$0xff]  ;;  %v2694_v61 = vsel %vm2693_vm8, %v2691_v32, %v2692_v33  ;;  %v3869_v0 = vld [vmem:[#allocation2 + $0x4c] sm:$0xff] }
 0x228   : > { %v6767_v2 = vadd.f32 %v2056_v63, %v1992_v60  ;;  %v1929_v44 = vpop.f32.mrf.mxu1  ;;  %v2721_v54 = vrot.slane %v2720_v12, 1 }
 0x229   : > { %v1930_v51 = vadd.f32 %v1929_v44, %v1865_v8  ;;  %2123 = vmatmul.f32.gmra.mxu0 %v3865_v11  ;;  %v3870_v44 = vld [vmem:[#allocation2 + $0x4b] sm:$0xff] }
 0x22a   : > { %2253 = vmatmul.f32.gmra.mxu2 %v3866_v9  ;;  %v2722_v23 = vmax.f32 %v2720_v12, %v2721_v54  ;;  %v3868_v12 = vld [vmem:[#allocation2 + $0x4a] sm:$0xff]  ;;  %v2695_v54 = vrot.slane %v2694_v61, 1 }
 0x22b   : > { %v2303_v21 = vmax.f32 %v1930_v51, 0.0  ;;  %2188 = vmatmul.f32.gmra.mxu1 %v3867_v19  ;;  %v7476_v9 = vld [vmem:[#allocation66_spill] sm:$0xff] }
 0x22c   : > { %vm2731_vm3 = vcmp.eq.f32.partialorder %v2602_v45, %v2722_v23  ;;  %vm2734_vm6 = vcmp.eq.f32.partialorder %v2605_v20, %v2722_v23  ;;  %v6774_v30 = vsel %vm3171_vm12, %v2656_v50, %v2722_v23  ;;  %v7477_v23 = vld [vmem:[#allocation25_spill] sm:$0xff]  ;;  %vm6794_vm13 = vcmp.lt.s32.totalorder %v2694_v61, %v2695_v54 }
 0x22d   : > { %v1994_v52 = vpop.f32.mrf.mxu2  ;;  %v2737_v59 = vsel %vm2731_vm3, %v6021_v18, 16  ;;  %v2740_v10 = vsel %vm2734_vm6, %v6028_v42, 16  ;;  %v6780_v46 = vsel %vm2563_vm1, %v2303_v21, -1.0  ;;  %v1679_v21 = vadd.f32 %v7477_v23, %v7476_v9 }
 0x22e   : > { %v1995_v49 = vadd.f32 %v1994_v52, %v6626_v57  ;;  %vm2753_vm10 = vcmp.lt.s32.totalorder %v2737_v59, %v2740_v10  ;;  %v2782_v45 = vmax.f32 %v6776_v16, %v6780_v46  ;;  %v1867_v20 = vpop.f32.mrf.mxu0  ;;  %vm2566_vm1 = vcmp.lt.s32.totalorder %v6182_v24, %v6638_v53 }
 0x22f   : > { %v2059_v29 = vpop.f32.mrf.mxu3  ;;  %v2754_v50 = vsel %vm2753_vm10, %v2737_v59, %v2740_v10  ;;  %v1868_v15 = vadd.f32 %v1867_v20, %v7475_v34  ;;  %v7478_v10 = vld [vmem:[#allocation42_spill] sm:$0xff]  ;;  %vm2569_vm3 = vcmp.lt.s32.totalorder %v6165_v4, %v6638_v53  ;;  %v7483_v20 = vld [vmem:[#allocation23_spill] sm:$0xff] }
 0x230   : > { %v6786_v55 = vadd.f32 %v2059_v29, %v1995_v49  ;;  %v1932_v3 = vpop.f32.mrf.mxu1  ;;  %v2755_v14 = vrot.slane %v2754_v50, 4  ;;  %v2783_v48 = vrot.slane %v2782_v45, 4 }
 0x231   : > { %v1933_v60 = vadd.f32 %v1932_v3, %v1868_v15  ;;  %2126 = vmatmul.f32.gmra.mxu0 %v3868_v12  ;;  %v1744_v15 = vadd.f32 %v6177_v17, %v1679_v21  ;;  %v3872_v12 = vld [vmem:[#allocation2 + $0x54] sm:$0xff]  ;;  %v2697_v17 = vsel %vm6794_vm13, %v2694_v61, %v2695_v54 }
 0x232   : > { %2256 = vmatmul.f32.gmra.mxu2 %v3869_v0  ;;  %vm2756_vm11 = vcmp.lt.s32.totalorder %v2754_v50, %v2755_v14  ;;  %v2784_v63 = vmax.f32 %v2782_v45, %v2783_v48  ;;  %v3871_v48 = vld [vmem:[#allocation2 + $0x52] sm:$0xff] }
 0x233   : > { %v2757_v8 = vsel %vm2756_vm11, %v2754_v50, %v2755_v14  ;;  %2191 = vmatmul.f32.gmra.mxu1 %v3870_v44  ;;  %v2306_v3 = vmax.f32 %v1933_v60, 0.0 }
 0x234   : > { %v2758_v62 = vrot.slane %v2757_v8, 2  ;;  %v2785_v51 = vrot.slane %v2784_v63, 2 }
 0x235   : > { %v1997_v11 = vpop.f32.mrf.mxu2  ;;  %v2614_v54 = vsel %vm2566_vm1, %v2306_v3, -1.0 }
 0x236   : > { %v1998_v19 = vadd.f32 %v1997_v11, %v6626_v57  ;;  %vm2759_vm4 = vcmp.lt.s32.totalorder %v2757_v8, %v2758_v62  ;;  %v2786_v32 = vmax.f32 %v2784_v63, %v2785_v51  ;;  %v1870_v33 = vpop.f32.mrf.mxu0  ;;  %v7481_v63 = vld [vmem:[#allocation40_spill] sm:$0xff] }
 0x237   : > { %v2062_v52 = vpop.f32.mrf.mxu3  ;;  %v2760_v59 = vsel %vm2759_vm4, %v2757_v8, %v2758_v62  ;;  %v1871_v49 = vadd.f32 %v1870_v33, %v7478_v10  ;;  %v1682_v8 = vadd.f32 %v7481_v63, %v7476_v9  ;;  %v3873_v62 = vld [vmem:[#allocation2 + $0x53] sm:$0xff] }
 0x238   : > { %v6792_v45 = vadd.f32 %v2062_v52, %v1998_v19  ;;  %v2761_v29 = vrot.slane %v2760_v59, 1  ;;  %v2787_v50 = vrot.slane %v2786_v32, 1  ;;  %v1935_v34 = vpop.f32.mrf.mxu1  ;;  %v7482_v52 = vld [vmem:[#allocation37_spill] sm:$0xff] }
 0x239   : > { %v1936_v14 = vadd.f32 %v1935_v34, %v1871_v49  ;;  %2129 = vmatmul.f32.gmra.mxu0 %v3871_v48  ;;  %v3875_v34 = vld [vmem:[#allocation2 + $0x64] sm:$0xff] }
 0x23a   : > { %2259 = vmatmul.f32.gmra.mxu2 %v3872_v12  ;;  %vm2762_vm15 = vcmp.lt.s32.totalorder %v2760_v59, %v2761_v29  ;;  %v2788_v0 = vmax.f32 %v2786_v32, %v2787_v50  ;;  %v3874_v50 = vld [vmem:[#allocation2 + $0x62] sm:$0xff] }
 0x23b   : > { %v2763_v60 = vsel %vm2762_vm15, %v2760_v59, %v2761_v29  ;;  %v2309_v44 = vmax.f32 %v1936_v14, 0.0  ;;  %2194 = vmatmul.f32.gmra.mxu1 %v3873_v62  ;;  %v1809_v59 = vadd.f32 %v7482_v52, %v1744_v15  ;;  %v1747_v29 = vadd.f32 %v7483_v20, %v1682_v8  ;;  %v3876_v48 = vld [vmem:[#allocation2 + $0x63] sm:$0xff]  ;;  %v3878_v20 = vld [vmem:[#allocation2 + $0x6c] sm:$0xff] }
 0x23c   : > { %v6808_v51 = vsel %vm3171_vm12, %v2697_v17, %v2763_v60  ;;  %vm2797_vm6 = vcmp.eq.f32.partialorder %v6776_v16, %v2788_v0  ;;  %vm2800_vm8 = vcmp.eq.f32.partialorder %v6780_v46, %v2788_v0  ;;  %v3177_v11 = vsel %vm3175_vm14, %v6774_v30, %v2788_v0  ;;  %v7484_v15 = vld [vmem:[#allocation24_spill] sm:$0xff] }
 0x23d   : > { %v6814_v23 = vpop.f32.mrf.mxu2  ;;  %v2803_v21 = vsel %vm2797_vm6, %v6021_v18, 16  ;;  %v2806_v61 = vsel %vm2800_vm8, %v6028_v42, 16  ;;  %v2617_v19 = vsel %vm2569_vm3, %v2309_v44, -1.0  ;;  %v1812_v17 = vadd.f32 %v7484_v15, %v1747_v29  ;;  %v7485_v62 = vld [vmem:[#allocation28_spill] sm:$0xff] }
 0x23e   : > { %vm2819_vm10 = vcmp.lt.s32.totalorder %v2803_v21, %v2806_v61  ;;  %v2848_v32 = vmax.f32 %v2614_v54, %v2617_v19  ;;  %v1873_v33 = vpop.f32.mrf.mxu0 }
 0x23f   : > { %v2820_v10 = vsel %vm2819_vm10, %v2803_v21, %v2806_v61  ;;  %v1874_v30 = vadd.f32 %v1873_v33, %v1809_v59  ;;  %v1685_v21 = vadd.f32 %v7485_v62, %v7476_v9 }
 0x240   : > { %v2821_v16 = vrot.slane %v2820_v10, 4  ;;  %v2849_v49 = vrot.slane %v2848_v32, 4  ;;  %v1938_v46 = vpop.f32.mrf.mxu1 }
 0x241   : > { %2132 = vmatmul.f32.gmra.mxu0 %v3874_v50  ;;  %v1939_v60 = vadd.f32 %v1938_v46, %v1874_v30  ;;  %v7486_v46 = vld [vmem:[#allocation34_spill] sm:$0xff]  ;;  %v1750_v50 = vadd.f32 %v6278_v1, %v1685_v21 }
 0x242   : > { %2262 = vmatmul.f32.gmra.mxu2 %v3875_v34  ;;  %vm2822_vm11 = vcmp.lt.s32.totalorder %v2820_v10, %v2821_v16  ;;  %v2850_v14 = vmax.f32 %v2848_v32, %v2849_v49  ;;  %v3877_v49 = vld [vmem:[#allocation2 + $0x6a] sm:$0xff]  ;;  %vm2572_vm15 = vcmp.lt.s32.totalorder %v7486_v46, %v6638_v53  ;;  %v1688_v34 = vadd.f32 %v6301_v27, %v7476_v9 }
 0x243   : > { %v2823_v3 = vsel %vm2822_vm11, %v2820_v10, %v2821_v16  ;;  %2197 = vmatmul.f32.gmra.mxu1 %v3876_v48  ;;  %v2312_v10 = vmax.f32 %v1939_v60, 0.0  ;;  %v7487_v30 = vld [vmem:[#allocation30_spill] sm:$0xff] }
 0x244   : > { %v2824_v12 = vrot.slane %v2823_v3, 2  ;;  %v2851_v0 = vrot.slane %v2850_v14, 2  ;;  %vm2575_vm1 = vcmp.lt.s32.totalorder %v7487_v30, %v6638_v53  ;;  %v3879_v48 = vld [vmem:[#allocation2 + $0x6b] sm:$0xff] }
 0x245   : > { %v6820_v63 = vpop.f32.mrf.mxu2  ;;  %v6843_v27 = vsel %vm2572_vm15, %v2312_v10, -1.0  ;;  %v3881_v10 = vld [vmem:[#allocation2 + $0x7c] sm:$0xff] }
 0x246   : > { %vm2825_vm4 = vcmp.lt.s32.totalorder %v2823_v3, %v2824_v12  ;;  %v2852_v44 = vmax.f32 %v2850_v14, %v2851_v0  ;;  %v1876_v8 = vpop.f32.mrf.mxu0 }
 0x247   : > { %v2826_v61 = vsel %vm2825_vm4, %v2823_v3, %v2824_v12  ;;  %v1877_v33 = vadd.f32 %v1876_v8, %v1812_v17 }
 0x248   : > { %v2827_v52 = vrot.slane %v2826_v61, 1  ;;  %v2853_v32 = vrot.slane %v2852_v44, 1  ;;  %v1941_v59 = vpop.f32.mrf.mxu1 }
 0x249   : > { %v1942_v16 = vadd.f32 %v1941_v59, %v1877_v33  ;;  %2135 = vmatmul.f32.gmra.mxu0 %v3877_v49  ;;  %v7488_v33 = vld [vmem:[#allocation39_spill] sm:$0xff] }
 0x24a   : > { %2265 = vmatmul.f32.gmra.mxu2 %v3878_v20  ;;  %vm2828_vm13 = vcmp.lt.s32.totalorder %v2826_v61, %v2827_v52  ;;  %v2854_v29 = vmax.f32 %v2852_v44, %v2853_v32  ;;  %v3880_v59 = vld [vmem:[#allocation2 + $0x7a] sm:$0xff] }
 0x24b   : > { %v2829_v14 = vsel %vm2828_vm13, %v2826_v61, %v2827_v52  ;;  %v2315_v3 = vmax.f32 %v1942_v16, 0.0  ;;  %2200 = vmatmul.f32.gmra.mxu1 %v3879_v48  ;;  %v3253_v61 = vld [vmem:[%s7419_s12 + $0xf0] sm:$0xff]  ;;  %v1753_v52 = vadd.f32 %v7488_v33, %v1688_v34  ;;  %v3882_v20 = vld [vmem:[#allocation2 + $0x7b] sm:$0xff] }
 0x24c   : > { %vm2863_vm3 = vcmp.eq.f32.partialorder %v2614_v54, %v2854_v29  ;;  %vm2866_vm6 = vcmp.eq.f32.partialorder %v2617_v19, %v2854_v29  ;;  %v6833_v12 = vsel %vm3179_vm0, %v3177_v11, %v2854_v29  ;;  %v6839_v15 = vsel %vm3175_vm14, %v6808_v51, %v2829_v14  ;;  %v3254_v19 = vld [vmem:[%s7419_s12 + $0xf8] sm:$0xff]  ;;  %v3251_v34 = vld [vmem:[%s7419_s12 + $0xe0] sm:$0xff] }
 0x24d   : > { %v6835_v0 = vpop.f32.mrf.mxu2  ;;  %v2869_v1 = vsel %vm2863_vm3, %v6021_v18, 16  ;;  %v2872_v17 = vsel %vm2866_vm6, %v6028_v42, 16  ;;  %v6845_v60 = vsel %vm2575_vm1, %v2315_v3, -1.0  ;;  %v1815_v51 = vadd.f32 %v6285_v13, %v1750_v50  ;;  %3295 = vmatpush.msra.mxu3 %v3254_v19  ;;  %v3252_v13 = vld [vmem:[%s7419_s12 + $0xe8] sm:$0xff]  ;;  %v7489_v3 = vld [vmem:[#allocation35_spill] sm:$0xff] }
 0x24e   : > { %vm2885_vm8 = vcmp.lt.s32.totalorder %v2869_v1, %v2872_v17  ;;  %v2914_v54 = vmax.f32 %v6843_v27, %v6845_v60  ;;  %v1879_v11 = vpop.f32.mrf.mxu0  ;;  %v1818_v48 = vadd.f32 %v7489_v3, %v1753_v52  ;;  %v7490_v19 = vld [vmem:[#allocation29_spill] sm:$0xff] }
 0x24f   : > { %v2886_v44 = vsel %vm2885_vm8, %v2869_v1, %v2872_v17  ;;  %v1880_v32 = vadd.f32 %v1879_v11, %v1815_v51  ;;  %3296 = vmatpush.msra.mxu3 %v3253_v61  ;;  %v3250_v11 = vld [vmem:[%s7419_s12 + $0xd8] sm:$0xff]  ;;  %v1691_v51 = vadd.f32 %v7490_v19, %v7476_v9 }
 0x250   : > { %v2887_v8 = vrot.slane %v2886_v44, 4  ;;  %v2915_v62 = vrot.slane %v2914_v54, 4  ;;  %v1944_v21 = vpop.f32.mrf.mxu1  ;;  %v3246_v19 = vld [vmem:[%s7419_s12 + $0xb8] sm:$0xff] }
 0x251   : > { %2138 = vmatmul.f32.gmra.mxu0 %v3880_v59  ;;  %3297 = vmatpush.msra.mxu3 %v3252_v13  ;;  %v1945_v1 = vadd.f32 %v1944_v21, %v1880_v32  ;;  %v3249_v21 = vld [vmem:[%s7419_s12 + $0xd0] sm:$0xff]  ;;  %v3883_v59 = vld [vmem:[#allocation2 + $0x82] sm:$0xff] }
 0x252   : > { %2268 = vmatmul.f32.gmra.mxu2 %v3881_v10  ;;  %vm2888_vm10 = vcmp.lt.s32.totalorder %v2886_v44, %v2887_v8  ;;  %v2916_v16 = vmax.f32 %v2914_v54, %v2915_v62  ;;  %v3884_v10 = vld [vmem:[#allocation2 + $0x84] sm:$0xff]  ;;  %v7491_v13 = vld [vmem:[#allocation26_spill] sm:$0xff] }
 0x253   : > { %v2889_v49 = vsel %vm2888_vm10, %v2886_v44, %v2887_v8  ;;  %2203 = vmatmul.f32.gmra.mxu1 %v3882_v20  ;;  %3298 = vmatpush.msra.mxu3 %v3251_v34  ;;  %v2318_v52 = vmax.f32 %v1945_v1, 0.0  ;;  %vm2578_vm13 = vcmp.lt.s32.totalorder %v7491_v13, %v6638_v53  ;;  %v3248_v20 = vld [vmem:[%s7419_s12 + $0xc8] sm:$0xff] }
 0x254   : > { %v2890_v29 = vrot.slane %v2889_v49, 2  ;;  %v2917_v50 = vrot.slane %v2916_v16, 2 }
 0x255   : > { %v6860_v14 = vpop.f32.mrf.mxu2  ;;  %3299 = vmatpush.msra.mxu3 %v3250_v11 }
 0x256   : > { %vm2891_vm11 = vcmp.lt.s32.totalorder %v2889_v49, %v2890_v29  ;;  %v2918_v17 = vmax.f32 %v2916_v16, %v2917_v50  ;;  %v1882_v54 = vpop.f32.mrf.mxu0  ;;  %v1694_v50 = vadd.f32 %v6444_v38, %v7476_v9 }
 0x257   : > { %v2892_v44 = vsel %vm2891_vm11, %v2889_v49, %v2890_v29  ;;  %v1883_v8 = vadd.f32 %v1882_v54, %v1818_v48  ;;  %v7492_v49 = vld [vmem:[#allocation31_spill] sm:$0xff]  ;;  %3300 = vmatpush.msra.mxu3 %v3249_v21  ;;  %v1756_v29 = vadd.f32 %v6422_v58, %v1691_v51  ;;  %v3885_v48 = vld [vmem:[#allocation2 + $0x83] sm:$0xff] }
 0x258   : > { %v2893_v62 = vrot.slane %v2892_v44, 1  ;;  %v2919_v61 = vrot.slane %v2918_v17, 1  ;;  %v1947_v33 = vpop.f32.mrf.mxu1  ;;  %vm2581_vm15 = vcmp.lt.s32.totalorder %v7492_v49, %v6638_v53  ;;  %v1759_v21 = vadd.f32 %v6498_v56, %v1694_v50  ;;  %v3243_v56 = vld [vmem:[%s7419_s12 + $0xa0] sm:$0xff] }
 0x259   : > { %v1948_v32 = vadd.f32 %v1947_v33, %v1883_v8  ;;  %2141 = vmatmul.f32.gmra.mxu0 %v3883_v59  ;;  %3301 = vmatpush.msra.mxu3 %v3248_v20  ;;  %v1821_v51 = vadd.f32 %v6429_v39, %v1756_v29  ;;  %v3245_v33 = vld [vmem:[%s7419_s12 + $0xb0] sm:$0xff]  ;;  %v3244_v39 = vld [vmem:[%s7419_s12 + $0xa8] sm:$0xff] }
 0x25a   : > { %2271 = vmatmul.f32.gmra.mxu2 %v3884_v10  ;;  %vm2894_vm4 = vcmp.lt.s32.totalorder %v2892_v44, %v2893_v62  ;;  %v2920_v16 = vmax.f32 %v2918_v17, %v2919_v61  ;;  %v3247_v17 = vld [vmem:[%s7419_s12 + $0xc0] sm:$0xff]  ;;  %v3887_v59 = vld [vmem:[#allocation2 + $0x94] sm:$0xff]  ;;  %v1824_v50 = vadd.f32 %v6509_v31, %v1759_v21 }
 0x25b   : > { %v2895_v34 = vsel %vm2894_vm4, %v2892_v44, %v2893_v62  ;;  %v2321_v3 = vmax.f32 %v1948_v32, 0.0  ;;  %2206 = vmatmul.f32.gmra.mxu1 %v3885_v48  ;;  %3302 = vmatpush.msra.mxu3 %v3247_v17  ;;  %v3886_v32 = vld [vmem:[#allocation2 + $0x92] sm:$0xff]  ;;  %v3889_v21 = vld [vmem:[#allocation2 + $0x9a] sm:$0xff] }
 0x25c   : > { %vm2929_vm1 = vcmp.eq.f32.partialorder %v6843_v27, %v2920_v16  ;;  %vm2932_vm3 = vcmp.eq.f32.partialorder %v6845_v60, %v2920_v16  ;;  %v6893_v58 = vsel %vm3183_vm2, %v6833_v12, %v2920_v16  ;;  %v6897_v38 = vsel %vm3179_vm0, %v6839_v15, %v2895_v34  ;;  %v3888_v20 = vld [vmem:[#allocation2 + $0x93] sm:$0xff] }
 0x25d   : > { %v6886_v1 = vpop.f32.mrf.mxu2  ;;  %v2935_v54 = vsel %vm2929_vm1, %v6021_v18, 16  ;;  %v2938_v27 = vsel %vm2932_vm3, %v6028_v42, 16  ;;  %v6904_v60 = vsel %vm2578_vm13, %v2318_v52, -1.0  ;;  %v6909_v11 = vsel %vm2581_vm15, %v2321_v3, -1.0  ;;  %3303 = vmatpush.msra.mxu3 %v3246_v19  ;;  %v3241_v31 = vld [vmem:[%s7419_s12 + $0x90] sm:$0xff] }
 0x25e   : > { %vm2951_vm6 = vcmp.lt.s32.totalorder %v2935_v54, %v2938_v27  ;;  %v2980_v12 = vmax.f32 %v6904_v60, %v6909_v11  ;;  %v1885_v15 = vpop.f32.mrf.mxu0 }
 0x25f   : > { %v2952_v44 = vsel %vm2951_vm6, %v2935_v54, %v2938_v27  ;;  %v1886_v52 = vadd.f32 %v1885_v15, %v1821_v51  ;;  %3304 = vmatpush.msra.mxu3 %v3245_v33  ;;  %v3242_v27 = vld [vmem:[%s7419_s12 + $0x98] sm:$0xff] }
 0x260   : > { %v2953_v8 = vrot.slane %v2952_v44, 4  ;;  %v2981_v62 = vrot.slane %v2980_v12, 4  ;;  %v1950_v61 = vpop.f32.mrf.mxu1 }
 0x261   : > { %2144 = vmatmul.f32.gmra.mxu0 %v3886_v32  ;;  %3305 = vmatpush.msra.mxu3 %v3244_v39  ;;  %v1951_v48 = vadd.f32 %v1950_v61, %v1886_v52  ;;  %v3890_v52 = vld [vmem:[#allocation2 + $0x9c] sm:$0xff]  ;;  %v3240_v39 = vld [vmem:[%s7419_s12 + $0x88] sm:$0xff] }
 0x262   : > { %2274 = vmatmul.f32.gmra.mxu2 %v3887_v59  ;;  %vm2954_vm8 = vcmp.lt.s32.totalorder %v2952_v44, %v2953_v8  ;;  %v2982_v10 = vmax.f32 %v2980_v12, %v2981_v62  ;;  %v7493_v12 = vld [vmem:[#allocation32_spill] sm:$0xff]  ;;  %v7494_v59 = vld [vmem:[#allocation47_spill] sm:$0xff] }
 0x263   : > { %v2955_v16 = vsel %vm2954_vm8, %v2952_v44, %v2953_v8  ;;  %2209 = vmatmul.f32.gmra.mxu1 %v3888_v20  ;;  %3306 = vmatpush.msra.mxu3 %v3243_v56  ;;  %v1697_v15 = vadd.f32 %v7493_v12, %v7476_v9  ;;  %v2324_v61 = vmax.f32 %v1951_v48, 0.0  ;;  %vm2584_vm4 = vcmp.lt.s32.totalorder %v7494_v59, %v6638_v53  ;;  %v3891_v56 = vld [vmem:[#allocation2 + $0x9b] sm:$0xff] }
 0x264   : > { %v2956_v29 = vrot.slane %v2955_v16, 2  ;;  %v2983_v34 = vrot.slane %v2982_v10, 2 }
 0x265   : > { %v6924_v3 = vpop.f32.mrf.mxu2  ;;  %3307 = vmatpush.msra.mxu3 %v3242_v27 }
 0x266   : > { %vm2957_vm10 = vcmp.lt.s32.totalorder %v2955_v16, %v2956_v29  ;;  %v2984_v17 = vmax.f32 %v2982_v10, %v2983_v34  ;;  %v1888_v54 = vpop.f32.mrf.mxu0  ;;  %v7495_v10 = vld [vmem:[#allocation48_spill] sm:$0xff] }
 0x267   : > { %v2958_v19 = vsel %vm2957_vm10, %v2955_v16, %v2956_v29  ;;  %v1889_v51 = vadd.f32 %v1888_v54, %v1824_v50  ;;  %vm2587_vm13 = vcmp.lt.s32.totalorder %v7495_v10, %v6638_v53  ;;  %3308 = vmatpush.msra.mxu3 %v3241_v31  ;;  %v7496_v16 = vld [vmem:[#allocation36_spill] sm:$0xff]  ;;  %v1700_v29 = vadd.f32 %v6560_v5, %v7476_v9  ;;  %v3892_v31 = vld [vmem:[#allocation2 + $0xaa] sm:$0xff] }
 0x268   : > { %v2959_v44 = vrot.slane %v2958_v19, 1  ;;  %v2985_v8 = vrot.slane %v2984_v17, 1  ;;  %v1953_v62 = vpop.f32.mrf.mxu1  ;;  %v1762_v20 = vadd.f32 %v7496_v16, %v1697_v15 }
 0x269   : > { %v1954_v33 = vadd.f32 %v1953_v62, %v1889_v51  ;;  %2147 = vmatmul.f32.gmra.mxu0 %v3889_v21  ;;  %3309 = vmatpush.msra.mxu3 %v3240_v39 }
 0x26a   : > { %2277 = vmatmul.f32.gmra.mxu2 %v3890_v52  ;;  %vm2960_vm11 = vcmp.lt.s32.totalorder %v2958_v19, %v2959_v44  ;;  %v2986_v32 = vmax.f32 %v2984_v17, %v2985_v8  ;;  %v3239_v17 = vld [vmem:[%s7419_s12 + $0x80] sm:$0xff]  ;;  %v1765_v8 = vadd.f32 %v6612_v41, %v1700_v29  ;;  %v3893_v52 = vld [vmem:[#allocation2 + $0xab] sm:$0xff] }
 0x26b   : > { %v2327_v34 = vmax.f32 %v1954_v33, 0.0  ;;  %2212 = vmatmul.f32.gmra.mxu1 %v3891_v56  ;;  %v2961_v50 = vsel %vm2960_vm11, %v2958_v19, %v2959_v44  ;;  %3310 = vmatpush.msra.mxu3 %v3239_v17 }
 0x26c   : > { %vm2995_vm15 = vcmp.eq.f32.partialorder %v6904_v60, %v2986_v32  ;;  %vm2998_vm1 = vcmp.eq.f32.partialorder %v6909_v11, %v2986_v32  ;;  %v3189_v54 = vsel %vm3187_vm5, %v6893_v58, %v2986_v32  ;;  %v3209_v5 = vsel %vm3183_vm2, %v6897_v38, %v2961_v50 }
 0x26d   : > { %v6950_v48 = vpop.f32.mrf.mxu2  ;;  %v3001_v9 = vsel %vm2995_vm15, %v6021_v18, 16  ;;  %v3004_v27 = vsel %vm2998_vm1, %v6028_v42, 16  ;;  %v2632_v60 = vsel %vm2584_vm4, %v2324_v61, -1.0  ;;  %v2635_v11 = vsel %vm2587_vm13, %v2327_v34, -1.0  ;;  %v7497_v61 = vld [vmem:[#allocation41_spill] sm:$0xff] }
 0x26e   : > { %vm3017_vm3 = vcmp.lt.s32.totalorder %v3001_v9, %v3004_v27  ;;  %v3046_v12 = vmax.f32 %v2632_v60, %v2635_v11  ;;  %v1891_v15 = vpop.f32.mrf.mxu0  ;;  %v1827_v58 = vadd.f32 %v6556_v22, %v1762_v20  ;;  %v1830_v22 = vadd.f32 %v6614_v47, %v1765_v8  ;;  %v7500_v47 = vld [vmem:[#allocation43_spill] sm:$0xff] }
 0x26f   : > { %v3018_v19 = vsel %vm3017_vm3, %v3001_v9, %v3004_v27  ;;  %vm2593_vm11 = vcmp.lt.s32.totalorder %v7500_v47, %v6638_v53 }
 0x270   : > { %v3019_v38 = vrot.slane %v3018_v19, 4  ;;  %v3047_v51 = vrot.slane %v3046_v12, 4  ;;  %v1956_v44 = vpop.f32.mrf.mxu1  ;;  %v1892_v62 = vadd.f32 %v1891_v15, %v1827_v58  ;;  %v3894_v15 = vld [vmem:[#allocation2 + $0xb2] sm:$0xff]  ;;  %v7498_v58 = vld [vmem:[#allocation49_spill] sm:$0xff] }
 0x271   : > { %2150 = vmatmul.f32.gmra.mxu0 %v3892_v31 }
 0x272   : > { %2280 = vmatmul.f32.gmra.mxu2 %v7497_v61  ;;  %vm3020_vm6 = vcmp.lt.s32.totalorder %v3018_v19, %v3019_v38  ;;  %v3048_v33 = vmax.f32 %v3046_v12, %v3047_v51  ;;  %v1957_v20 = vadd.f32 %v1956_v44, %v1892_v62  ;;  %v7501_v44 = vld [vmem:[#allocation46_spill] sm:$0xff] }
 0x273   : > { %v3021_v21 = vsel %vm3020_vm6, %v3018_v19, %v3019_v38  ;;  %2215 = vmatmul.f32.gmra.mxu1 %v3893_v52  ;;  %v7499_v38 = vld [vmem:[#allocation27_spill] sm:$0xff] }
 0x274   : > { %v3022_v32 = vrot.slane %v3021_v21, 2  ;;  %v3049_v39 = vrot.slane %v3048_v33, 2  ;;  %v2330_v27 = vmax.f32 %v1957_v20, 0.0  ;;  %vm2590_vm10 = vcmp.lt.s32.totalorder %v7499_v38, %v6638_v53 }
 0x275   : > { %v6970_v16 = vpop.f32.mrf.mxu2 }
 0x276   : > { %vm3023_vm8 = vcmp.lt.s32.totalorder %v3021_v21, %v3022_v32  ;;  %v3050_v34 = vmax.f32 %v3048_v33, %v3049_v39  ;;  %v1894_v41 = vpop.f32.mrf.mxu0  ;;  %v2638_v52 = vsel %vm2590_vm10, %v2330_v27, -1.0 }
 0x277   : > { %v3024_v29 = vsel %vm3023_vm8, %v3021_v21, %v3022_v32  ;;  %v1895_v56 = vadd.f32 %v1894_v41, %v1830_v22 }
 0x278   : > { %v3025_v50 = vrot.slane %v3024_v29, 1  ;;  %v3051_v17 = vrot.slane %v3050_v34, 1  ;;  %v1959_v9 = vpop.f32.mrf.mxu1 }
 0x279   : > { %v1960_v12 = vadd.f32 %v1959_v9, %v1895_v56  ;;  %2153 = vmatmul.f32.gmra.mxu0 %v3894_v15 }
 0x27a   : > { %2283 = vmatmul.f32.gmra.mxu2 %v7498_v58  ;;  %v3052_v19 = vmax.f32 %v3050_v34, %v3051_v17  ;;  %vm3026_vm4 = vcmp.lt.s32.totalorder %v3024_v29, %v3025_v50 }
 0x27b   : > { %v2333_v51 = vmax.f32 %v1960_v12, 0.0  ;;  %2218 = vmatmul.f32.gmra.mxu1 %v7501_v44  ;;  %v3027_v8 = vsel %vm3026_vm4, %v3024_v29, %v3025_v50 }
 0x27c   : > { %vm3061_vm13 = vcmp.eq.f32.partialorder %v2632_v60, %v3052_v19  ;;  %vm3064_vm15 = vcmp.eq.f32.partialorder %v2635_v11, %v3052_v19  ;;  %v3193_v31 = vsel %vm3191_vm7, %v3189_v54, %v3052_v19  ;;  %v3212_v61 = vsel %vm3187_vm5, %v3209_v5, %v3027_v8 }
 0x27d   : > { %v6979_v62 = vpop.f32.mrf.mxu2  ;;  %v3067_v33 = vsel %vm3061_vm13, %v6021_v18, 16  ;;  %v3070_v21 = vsel %vm3064_vm15, %v6028_v42, 16  ;;  %v2641_v32 = vsel %vm2593_vm11, %v2333_v51, -1.0  ;;  %v4037_v8 = vmov 12  }
 0x27e   : > { %vm3083_vm1 = vcmp.lt.s32.totalorder %v3067_v33, %v3070_v21  ;;  %v3112_v53 = vmax.f32 %v2638_v52, %v2641_v32  ;;  %v2109_v39 = vpop.f32.mrf.mxu0 }
 0x27f   : > { %v3084_v22 = vsel %vm3083_vm1, %v3067_v33, %v3070_v21  ;;  %v2110_v20 = vadd.f32 %v2109_v39, %v6659_v28  ;;  %v6987_v33 = vperm.slane %v4037_v8, 0 }
 0x280   : > { %v3085_v60 = vrot.slane %v3084_v22, 4  ;;  %v3113_v11 = vrot.slane %v3112_v53, 4  ;;  %v2174_v34 = vpop.f32.mrf.mxu1 }
 0x281   : > { %v2175_v41 = vadd.f32 %v2174_v34, %v2110_v20  ;;  %vm2549_vm13 = vcmp.lt.s32.totalorder %v6055_v26, %v6987_v33  ;;  %vm2552_vm15 = vcmp.lt.s32.totalorder %v6047_v40, %v6987_v33 }
 0x282   : > { %vm3086_vm3 = vcmp.lt.s32.totalorder %v3084_v22, %v3085_v60  ;;  %v3114_v54 = vmax.f32 %v3112_v53, %v3113_v11 }
 0x283   : > { %v3087_v29 = vsel %vm3086_vm3, %v3084_v22, %v3085_v60 }
 0x284   : > { %v3088_v5 = vrot.slane %v3087_v29, 2  ;;  %v3115_v56 = vrot.slane %v3114_v54, 2 }
 0x285   : > { %v2239_v50 = vpop.f32.mrf.mxu2 }
 0x286   : > { %v2240_v17 = vadd.f32 %v2239_v50, %v2175_v41  ;;  %vm3089_vm6 = vcmp.lt.s32.totalorder %v3087_v29, %v3088_v5  ;;  %v3116_v9 = vmax.f32 %v3114_v54, %v3115_v56  ;;  %v2112_v27 = vpop.f32.mrf.mxu0 }
 0x287   : > { %v2113_v12 = vadd.f32 %v2112_v27, %v6706_v36  ;;  %v3090_v15 = vsel %vm3089_vm6, %v3087_v29, %v3088_v5 }
 0x288   : > { %v3117_v58 = vrot.slane %v3116_v9, 1  ;;  %v2177_v19 = vpop.f32.mrf.mxu1  ;;  %v3091_v28 = vrot.slane %v3090_v15, 1  ;;  %v2289_v60 = vmax.f32 %v2240_v17, 0.0 }
 0x289   : > { %v2178_v51 = vadd.f32 %v2177_v19, %v2113_v12 }
 0x28a   : > { %v3118_v44 = vmax.f32 %v3116_v9, %v3117_v58  ;;  %vm3092_vm8 = vcmp.lt.s32.totalorder %v3090_v15, %v3091_v28  ;;  %v2597_v54 = vsel %vm2549_vm13, %v2289_v60, -1.0 }
 0x28b   : > { %v3093_v21 = vsel %vm3092_vm8, %v3090_v15, %v3091_v28  ;;  %vm2555_vm8 = vcmp.lt.s32.totalorder %v6105_v6, %v6987_v33 }
 0x28c   : > { %vm3127_vm10 = vcmp.eq.f32.partialorder %v2638_v52, %v3118_v44  ;;  %vm3130_vm11 = vcmp.eq.f32.partialorder %v2641_v32, %v3118_v44  ;;  %v3197_v39 = vsel %vm3195_vm9, %v3193_v31, %v3118_v44  ;;  %v3215_v22 = vsel %vm3191_vm7, %v3212_v61, %v3093_v21 }
 0x28d   : > { %v2242_v53 = vpop.f32.mrf.mxu2  ;;  %v3133_v36 = vsel %vm3127_vm10, %v6021_v18, 16  ;;  %v3136_v20 = vsel %vm3130_vm11, %v6028_v42, 16  ;;  %3311 = vmatmul.f32.vlgmr.msra.gmra.mxu3 %v3197_v39  ;;  %vm2558_vm10 = vcmp.lt.s32.totalorder %v6078_v37, %v6987_v33 }
 0x28e   : > { %v2243_v11 = vadd.f32 %v2242_v53, %v2178_v51  ;;  %vm3149_vm4 = vcmp.lt.s32.totalorder %v3133_v36, %v3136_v20  ;;  %v2115_v52 = vpop.f32.mrf.mxu0 }
 0x28f   : > { %v3150_v32 = vsel %vm3149_vm4, %v3133_v36, %v3136_v20  ;;  %v2116_v31 = vadd.f32 %v2115_v52, %v6743_v7 }
 0x290   : > { %v2292_v34 = vmax.f32 %v2243_v11, 0.0  ;;  %v3151_v61 = vrot.slane %v3150_v32, 4  ;;  %v2180_v41 = vpop.f32.mrf.mxu1 }
 0x291   : > { %v2181_v5 = vadd.f32 %v2180_v41, %v2116_v31  ;;  %v2065_v41 = vpop.f32.mrf.mxu3 }
 0x292   : > { %v2600_v29 = vsel %vm2552_vm15, %v2292_v34, -1.0  ;;  %vm3152_vm1 = vcmp.lt.s32.totalorder %v3150_v32, %v3151_v61 }
 0x293   : > { %v2657_v56 = vmax.f32 %v2597_v54, %v2600_v29  ;;  %v3153_v50 = vsel %vm3152_vm1, %v3150_v32, %v3151_v61  ;;  %vm2561_vm1 = vcmp.lt.s32.totalorder %v6134_v43, %v6987_v33 }
 0x294   : > { %v3154_v17 = vrot.slane %v3153_v50, 2 }
 0x295   : > { %v2658_v9 = vrot.slane %v2657_v56, 4  ;;  %v2245_v27 = vpop.f32.mrf.mxu2 }
 0x296   : > { %v2246_v26 = vadd.f32 %v2245_v27, %v2181_v5  ;;  %v2118_v15 = vpop.f32.mrf.mxu0  ;;  %vm3155_vm3 = vcmp.lt.s32.totalorder %v3153_v50, %v3154_v17 }
 0x297   : > { %v2659_v12 = vmax.f32 %v2657_v56, %v2658_v9  ;;  %v2119_v40 = vadd.f32 %v2118_v15, %v6762_v35  ;;  %v3156_v7 = vsel %vm3155_vm3, %v3153_v50, %v3154_v17  ;;  %vm2564_vm3 = vcmp.lt.s32.totalorder %v6127_v25, %v6987_v33 }
 0x298   : > { %v2183_v19 = vpop.f32.mrf.mxu1  ;;  %v3157_v28 = vrot.slane %v3156_v7, 1  ;;  %v2295_v53 = vmax.f32 %v2246_v26, 0.0 }
 0x299   : > { %v2660_v58 = vrot.slane %v2659_v12, 2  ;;  %v2184_v51 = vadd.f32 %v2183_v19, %v2119_v40 }
 0x29a   : > { %vm3158_vm6 = vcmp.lt.s32.totalorder %v3156_v7, %v3157_v28  ;;  %v2603_v32 = vsel %vm2555_vm8, %v2295_v53, -1.0 }
 0x29b   : > { %v2661_v44 = vmax.f32 %v2659_v12, %v2660_v58  ;;  %v3159_v8 = vsel %vm3158_vm6, %v3156_v7, %v3157_v28  ;;  %v2068_v7 = vpop.f32.mrf.mxu3 }
 0x29c   : > { %v3218_v36 = vsel %vm3195_vm9, %v3215_v22, %v3159_v8 }
 0x29d   : > { %v2662_v21 = vrot.slane %v2661_v44, 1  ;;  %v2248_v39 = vpop.f32.mrf.mxu2  ;;  %3221 = vst [vmem:[%s309_s19] sm:$0xff] %v3218_v36  ;;  %s3927_s19 = scalar_lea.hbm %s7506_s23, 16 }
 0x29e   : > { %v2249_v20 = vadd.f32 %v2248_v39, %v2184_v51  ;;  %v2121_v60 = vpop.f32.mrf.mxu0  ;;  %p3929_p0 = scmp.lt.s32.totalorder %s3927_s19, %s3923_s10 }
 0x29f   : > { %v2663_v35 = vmax.f32 %v2661_v44, %v2662_v21  ;;  %v2122_v52 = vadd.f32 %v2121_v60, %v6767_v2  ;;  %v2001_v21 = vadd.f32 %v6814_v23, %v6626_v57 }
 0x2a0   : > { %v2298_v11 = vmax.f32 %v2249_v20, 0.0  ;;  %v2186_v34 = vpop.f32.mrf.mxu1  ;;  %p3930_p1 = por %p3929_p0, %p3928_p13 }
 0x2a1   : > { %vm2666_vm11 = vcmp.eq.f32.partialorder %v2597_v54, %v2663_v35  ;;  %vm2669_vm4 = vcmp.eq.f32.partialorder %v2600_v29, %v2663_v35  ;;  %v2187_v61 = vadd.f32 %v2186_v34, %v2122_v52 }
 0x2a2   : > { %v2672_v22 = vsel %vm2666_vm11, %v6021_v18, 16  ;;  %v2675_v6 = vsel %vm2669_vm4, %v6028_v42, 16  ;;  %v2606_v31 = vsel %vm2558_vm10, %v2298_v11, -1.0  ;;  %p3931_p2 = pnand %p3930_p1, %p3926_p12 }
 0x2a3   : > { %vm2698_vm13 = vcmp.lt.s32.totalorder %v2672_v22, %v2675_v6  ;;  %v2723_v5 = vmax.f32 %v2603_v32, %v2606_v31 }
 0x2a4   : > { %v2699_v56 = vsel %vm2698_vm13, %v2672_v22, %v2675_v6 }
 0x2a5   : > { %v2700_v50 = vrot.slane %v2699_v56, 4  ;;  %v2724_v37 = vrot.slane %v2723_v5, 4  ;;  %v2251_v17 = vpop.f32.mrf.mxu2 }
 0x2a6   : > { %v2252_v9 = vadd.f32 %v2251_v17, %v2187_v61  ;;  %v2124_v2 = vpop.f32.mrf.mxu0 }
 0x2a7   : > { %v2725_v27 = vmax.f32 %v2723_v5, %v2724_v37  ;;  %v2125_v54 = vadd.f32 %v2124_v2, %v6786_v55  ;;  %vm2701_vm15 = vcmp.lt.s32.totalorder %v2699_v56, %v2700_v50  ;;  %v2071_v5 = vpop.f32.mrf.mxu3 }
 0x2a8   : > { %v2189_v26 = vpop.f32.mrf.mxu1  ;;  %v2702_v40 = vsel %vm2701_vm15, %v2699_v56, %v2700_v50  ;;  %v2301_v19 = vmax.f32 %v2252_v9, 0.0 }
 0x2a9   : > { %v2726_v29 = vrot.slane %v2725_v27, 2  ;;  %v2190_v12 = vadd.f32 %v2189_v26, %v2125_v54  ;;  %v2703_v44 = vrot.slane %v2702_v40, 2  ;;  %v2004_v54 = vadd.f32 %v6820_v63, %v6626_v57 }
 0x2aa   : > { %v2609_v20 = vsel %vm2561_vm1, %v2301_v19, -1.0 }
 0x2ab   : > { %v2727_v15 = vmax.f32 %v2725_v27, %v2726_v29  ;;  %vm2704_vm10 = vcmp.lt.s32.totalorder %v2702_v40, %v2703_v44 }
 0x2ad   : > { %v2728_v58 = vrot.slane %v2727_v15, 1  ;;  %v2254_v28 = vpop.f32.mrf.mxu2 }
 0x2ae   : > { %v2255_v51 = vadd.f32 %v2254_v28, %v2190_v12  ;;  %v2127_v55 = vpop.f32.mrf.mxu0 }
 0x2af   : > { %v2729_v8 = vmax.f32 %v2727_v15, %v2728_v58  ;;  %v2128_v39 = vadd.f32 %v2127_v55, %v6792_v45  ;;  %v2066_v45 = vadd.f32 %v2065_v41, %v2001_v21  ;;  %v2069_v58 = vadd.f32 %v2068_v7, %v2004_v54 }
 0x2b0   : > { %v2304_v53 = vmax.f32 %v2255_v51, 0.0  ;;  %v2192_v60 = vpop.f32.mrf.mxu1 }
 0x2b1   : > { %vm2732_vm6 = vcmp.eq.f32.partialorder %v2603_v32, %v2729_v8  ;;  %vm2735_vm8 = vcmp.eq.f32.partialorder %v2606_v31, %v2729_v8  ;;  %v3174_v36 = vsel %vm3171_vm12, %v2663_v35, %v2729_v8  ;;  %v2193_v34 = vadd.f32 %v2192_v60, %v2128_v39 }
 0x2b2   : > { %v2738_v43 = vsel %vm2732_vm6, %v6021_v18, 16  ;;  %v2741_v11 = vsel %vm2735_vm8, %v6028_v42, 16  ;;  %v2612_v52 = vsel %vm2564_vm3, %v2304_v53, -1.0  ;;  %v2705_v32 = vsel %vm2704_vm10, %v2702_v40, %v2703_v44  ;;  %v2074_v53 = vpop.f32.mrf.mxu3 }
 0x2b3   : > { %vm2764_vm11 = vcmp.lt.s32.totalorder %v2738_v43, %v2741_v11  ;;  %v2789_v25 = vmax.f32 %v2609_v20, %v2612_v52  ;;  %v2706_v17 = vrot.slane %v2705_v32, 1  ;;  %vm2567_vm3 = vcmp.lt.s32.totalorder %v6182_v24, %v6987_v33 }
 0x2b4   : > { %v2765_v22 = vsel %vm2764_vm11, %v2738_v43, %v2741_v11  ;;  %vm2570_vm6 = vcmp.lt.s32.totalorder %v6165_v4, %v6987_v33  ;;  %v2007_v44 = vadd.f32 %v6835_v0, %v6626_v57 }
 0x2b5   : > { %v2766_v23 = vrot.slane %v2765_v22, 4  ;;  %v2790_v6 = vrot.slane %v2789_v25, 4  ;;  %v2257_v61 = vpop.f32.mrf.mxu2  ;;  %vm2707_vm15 = vcmp.lt.s32.totalorder %v2705_v32, %v2706_v17 }
 0x2b6   : > { %v2258_v31 = vadd.f32 %v2257_v61, %v2193_v34  ;;  %v2130_v56 = vpop.f32.mrf.mxu0  ;;  %v2708_v8 = vsel %vm2707_vm15, %v2705_v32, %v2706_v17  ;;  %v2072_v61 = vadd.f32 %v2071_v5, %v2007_v44  ;;  %vm2573_vm15 = vcmp.lt.s32.totalorder %v7486_v46, %v6987_v33 }
 0x2b7   : > { %vm2767_vm4 = vcmp.lt.s32.totalorder %v2765_v22, %v2766_v23  ;;  %v2791_v35 = vmax.f32 %v2789_v25, %v2790_v6  ;;  %v2131_v37 = vadd.f32 %v2130_v56, %v2066_v45 }
 0x2b8   : > { %v2768_v50 = vsel %vm2767_vm4, %v2765_v22, %v2766_v23  ;;  %v2195_v2 = vpop.f32.mrf.mxu1  ;;  %v2307_v19 = vmax.f32 %v2258_v31, 0.0 }
 0x2b9   : > { %v2769_v9 = vrot.slane %v2768_v50, 2  ;;  %v2792_v27 = vrot.slane %v2791_v35, 2  ;;  %v2196_v12 = vadd.f32 %v2195_v2, %v2131_v37 }
 0x2ba   : > { %v2615_v4 = vsel %vm2567_vm3, %v2307_v19, -1.0  ;;  %v2077_v37 = vpop.f32.mrf.mxu3 }
 0x2bb   : > { %vm2770_vm13 = vcmp.lt.s32.totalorder %v2768_v50, %v2769_v9  ;;  %v2793_v29 = vmax.f32 %v2791_v35, %v2792_v27 }
 0x2bc   : > { %v2771_v26 = vsel %vm2770_vm13, %v2768_v50, %v2769_v9  ;;  %v2010_v9 = vadd.f32 %v6860_v14, %v6626_v57  ;;  %v2013_v14 = vadd.f32 %v6886_v1, %v6626_v57  ;;  %v3270_v1 = vld [vmem:[%s7419_s12 + $0x178] sm:$0xff] }
 0x2bd   : > { %v2772_v41 = vrot.slane %v2771_v26, 1  ;;  %v2794_v15 = vrot.slane %v2793_v29, 1  ;;  %v2260_v40 = vpop.f32.mrf.mxu2  ;;  %3315 = vmatpush.msrb.mxu3 %v3270_v1 }
 0x2be   : > { %v2261_v28 = vadd.f32 %v2260_v40, %v2196_v12  ;;  %v2133_v63 = vpop.f32.mrf.mxu0  ;;  %v2075_v40 = vadd.f32 %v2074_v53, %v2010_v9  ;;  %v3265_v9 = vld [vmem:[%s7419_s12 + $0x150] sm:$0xff] }
 0x2bf   : > { %vm2773_vm1 = vcmp.lt.s32.totalorder %v2771_v26, %v2772_v41  ;;  %v2795_v51 = vmax.f32 %v2793_v29, %v2794_v15  ;;  %v2134_v25 = vadd.f32 %v2133_v63, %v2069_v58 }
 0x2c0   : > { %v2774_v55 = vsel %vm2773_vm1, %v2771_v26, %v2772_v41  ;;  %v2310_v21 = vmax.f32 %v2261_v28, 0.0  ;;  %v2198_v60 = vpop.f32.mrf.mxu1  ;;  %vm2576_vm1 = vcmp.lt.s32.totalorder %v7487_v30, %v6987_v33 }
 0x2c1   : > { %v3201_v7 = vsel %vm3171_vm12, %v2708_v8, %v2774_v55  ;;  %vm2798_vm8 = vcmp.eq.f32.partialorder %v2609_v20, %v2795_v51  ;;  %vm2801_vm10 = vcmp.eq.f32.partialorder %v2612_v52, %v2795_v51  ;;  %v3178_v39 = vsel %vm3175_vm14, %v3174_v36, %v2795_v51 }
 0x2c2   : > { %v2804_v24 = vsel %vm2798_vm8, %v6021_v18, 16  ;;  %v2807_v43 = vsel %vm2801_vm10, %v6028_v42, 16  ;;  %v2618_v11 = vsel %vm2570_vm6, %v2310_v21, -1.0  ;;  %v2199_v36 = vadd.f32 %v2198_v60, %v2134_v25 }
 0x2c3   : > { %vm2830_vm11 = vcmp.lt.s32.totalorder %v2804_v24, %v2807_v43  ;;  %v2855_v34 = vmax.f32 %v2615_v4, %v2618_v11 }
 0x2c4   : > { %v2831_v0 = vsel %vm2830_vm11, %v2804_v24, %v2807_v43  ;;  %v3269_v43 = vld [vmem:[%s7419_s12 + $0x170] sm:$0xff] }
 0x2c5   : > { %v2832_v22 = vrot.slane %v2831_v0, 4  ;;  %v2856_v23 = vrot.slane %v2855_v34, 4  ;;  %v2263_v6 = vpop.f32.mrf.mxu2  ;;  %3316 = vmatpush.msrb.mxu3 %v3269_v43 }
 0x2c6   : > { %v2136_v52 = vpop.f32.mrf.mxu0  ;;  %v2264_v50 = vadd.f32 %v2263_v6, %v2199_v36 }
 0x2c7   : > { %vm2833_vm12 = vcmp.lt.s32.totalorder %v2831_v0, %v2832_v22  ;;  %v2857_v20 = vmax.f32 %v2855_v34, %v2856_v23  ;;  %v2137_v32 = vadd.f32 %v2136_v52, %v2072_v61  ;;  %v3267_v52 = vld [vmem:[%s7419_s12 + $0x160] sm:$0xff] }
 0x2c8   : > { %v2834_v45 = vsel %vm2833_vm12, %v2831_v0, %v2832_v22  ;;  %v2201_v56 = vpop.f32.mrf.mxu1  ;;  %v2313_v26 = vmax.f32 %v2264_v50, 0.0  ;;  %v3268_v0 = vld [vmem:[%s7419_s12 + $0x168] sm:$0xff]  ;;  %vm2579_vm12 = vcmp.lt.s32.totalorder %v7491_v13, %v6987_v33  ;;  %v3261_v13 = vld [vmem:[%s7419_s12 + $0x130] sm:$0xff] }
 0x2c9   : > { %v2835_v31 = vrot.slane %v2834_v45, 2  ;;  %v2858_v35 = vrot.slane %v2857_v20, 2  ;;  %v2202_v2 = vadd.f32 %v2201_v56, %v2137_v32  ;;  %3317 = vmatpush.msrb.mxu3 %v3268_v0  ;;  %v3266_v32 = vld [vmem:[%s7419_s12 + $0x158] sm:$0xff] }
 0x2ca   : > { %v2621_v44 = vsel %vm2573_vm15, %v2313_v26, -1.0 }
 0x2cb   : > { %vm2836_vm4 = vcmp.lt.s32.totalorder %v2834_v45, %v2835_v31  ;;  %v2859_v17 = vmax.f32 %v2857_v20, %v2858_v35  ;;  %3318 = vmatpush.msrb.mxu3 %v3267_v52 }
 0x2cc   : > { %v2837_v27 = vsel %vm2836_vm4, %v2834_v45, %v2835_v31  ;;  %v2016_v31 = vadd.f32 %v6924_v3, %v6626_v57  ;;  %vm2582_vm4 = vcmp.lt.s32.totalorder %v7492_v49, %v6987_v33 }
 0x2cd   : > { %v2838_v54 = vrot.slane %v2837_v27, 1  ;;  %v2860_v5 = vrot.slane %v2859_v17, 1  ;;  %v2266_v29 = vpop.f32.mrf.mxu2  ;;  %3319 = vmatpush.msrb.mxu3 %v3266_v32 }
 0x2ce   : > { %v2267_v12 = vadd.f32 %v2266_v29, %v2202_v2  ;;  %v2139_v15 = vpop.f32.mrf.mxu0  ;;  %v3264_v29 = vld [vmem:[%s7419_s12 + $0x148] sm:$0xff] }
 0x2cf   : > { %vm2839_vm13 = vcmp.lt.s32.totalorder %v2837_v27, %v2838_v54  ;;  %v2861_v41 = vmax.f32 %v2859_v17, %v2860_v5  ;;  %v2140_v53 = vadd.f32 %v2139_v15, %v2075_v40  ;;  %3320 = vmatpush.msrb.mxu3 %v3265_v9  ;;  %v2025_v9 = vadd.f32 %v6979_v62, %v6626_v57 }
 0x2d0   : > { %v2840_v58 = vsel %vm2839_vm13, %v2837_v27, %v2838_v54  ;;  %v2316_v19 = vmax.f32 %v2267_v12, 0.0  ;;  %v2204_v63 = vpop.f32.mrf.mxu1  ;;  %v2019_v12 = vadd.f32 %v6950_v48, %v6626_v57 }
 0x2d1   : > { %v7042_v28 = vsel %vm3175_vm14, %v3201_v7, %v2840_v58  ;;  %vm2864_vm3 = vcmp.eq.f32.partialorder %v2615_v4, %v2861_v41  ;;  %vm2867_vm6 = vcmp.eq.f32.partialorder %v2618_v11, %v2861_v41  ;;  %v7045_v51 = vsel %vm3179_vm0, %v3178_v39, %v2861_v41  ;;  %v2080_v7 = vpop.f32.mrf.mxu3  ;;  %3321 = vmatpush.msrb.mxu3 %v3264_v29 }
 0x2d2   : > { %v2870_v46 = vsel %vm2864_vm3, %v6021_v18, 16  ;;  %v2873_v30 = vsel %vm2867_vm6, %v6028_v42, 16  ;;  %v2624_v8 = vsel %vm2576_vm1, %v2316_v19, -1.0  ;;  %v2078_v4 = vadd.f32 %v2077_v37, %v2013_v14  ;;  %v3263_v14 = vld [vmem:[%s7419_s12 + $0x140] sm:$0xff] }
 0x2d3   : > { %vm2896_vm8 = vcmp.lt.s32.totalorder %v2870_v46, %v2873_v30  ;;  %v2921_v55 = vmax.f32 %v2621_v44, %v2624_v8  ;;  %v2205_v22 = vadd.f32 %v2204_v63, %v2140_v53  ;;  %v2081_v26 = vadd.f32 %v2080_v7, %v2016_v31  ;;  %3322 = vmatpush.msrb.mxu3 %v3263_v14  ;;  %v3257_v31 = vld [vmem:[%s7419_s12 + $0x110] sm:$0xff] }
 0x2d4   : > { %v2897_v21 = vsel %vm2896_vm8, %v2870_v46, %v2873_v30  ;;  %vm2585_vm8 = vcmp.lt.s32.totalorder %v7494_v59, %v6987_v33 }
 0x2d5   : > { %v2898_v60 = vrot.slane %v2897_v21, 4  ;;  %v2922_v39 = vrot.slane %v2921_v55, 4  ;;  %v2269_v24 = vpop.f32.mrf.mxu2 }
 0x2d6   : > { %v2142_v34 = vpop.f32.mrf.mxu0  ;;  %v2270_v45 = vadd.f32 %v2269_v24, %v2205_v22 }
 0x2d7   : > { %vm2899_vm14 = vcmp.lt.s32.totalorder %v2897_v21, %v2898_v60  ;;  %v2923_v11 = vmax.f32 %v2921_v55, %v2922_v39  ;;  %v2143_v23 = vadd.f32 %v2142_v34, %v2078_v4 }
 0x2d8   : > { %v2900_v25 = vsel %vm2899_vm14, %v2897_v21, %v2898_v60  ;;  %v2207_v20 = vpop.f32.mrf.mxu1  ;;  %v2319_v27 = vmax.f32 %v2270_v45, 0.0  ;;  %v3260_v60 = vld [vmem:[%s7419_s12 + $0x128] sm:$0xff]  ;;  %vm2588_vm14 = vcmp.lt.s32.totalorder %v7495_v10, %v6987_v33 }
 0x2d9   : > { %v2901_v6 = vrot.slane %v2900_v25, 2  ;;  %v2924_v61 = vrot.slane %v2923_v11, 2  ;;  %v2208_v56 = vadd.f32 %v2207_v20, %v2143_v23  ;;  %v2083_v54 = vpop.f32.mrf.mxu3 }
 0x2da   : > { %v2627_v46 = vsel %vm2579_vm12, %v2319_v27, -1.0  ;;  %v2084_v53 = vadd.f32 %v2083_v54, %v2019_v12 }
 0x2db   : > { %vm2902_vm10 = vcmp.lt.s32.totalorder %v2900_v25, %v2901_v6  ;;  %v2925_v36 = vmax.f32 %v2923_v11, %v2924_v61  ;;  %v2022_v61 = vadd.f32 %v6970_v16, %v6626_v57 }
 0x2dc   : > { %v2903_v35 = vsel %vm2902_vm10, %v2900_v25, %v2901_v6  ;;  %v3259_v25 = vld [vmem:[%s7419_s12 + $0x120] sm:$0xff]  ;;  %v3258_v6 = vld [vmem:[%s7419_s12 + $0x118] sm:$0xff] }
 0x2dd   : > { %v2904_v50 = vrot.slane %v2903_v35, 1  ;;  %v2926_v37 = vrot.slane %v2925_v36, 1  ;;  %v2272_v17 = vpop.f32.mrf.mxu2 }
 0x2de   : > { %v2273_v2 = vadd.f32 %v2272_v17, %v2208_v56  ;;  %v2145_v3 = vpop.f32.mrf.mxu0 }
 0x2df   : > { %vm2905_vm11 = vcmp.lt.s32.totalorder %v2903_v35, %v2904_v50  ;;  %v2927_v5 = vmax.f32 %v2925_v36, %v2926_v37  ;;  %v3256_v37 = vld [vmem:[%s7419_s12 + $0x108] sm:$0xff] }
 0x2e0   : > { %v2906_v41 = vsel %vm2905_vm11, %v2903_v35, %v2904_v50  ;;  %v2322_v15 = vmax.f32 %v2273_v2, 0.0  ;;  %v2210_v40 = vpop.f32.mrf.mxu1 }
 0x2e1   : > { %vm2930_vm13 = vcmp.eq.f32.partialorder %v2621_v44, %v2927_v5  ;;  %vm2933_vm15 = vcmp.eq.f32.partialorder %v2624_v8, %v2927_v5  ;;  %v7083_v58 = vsel %vm3183_vm2, %v7045_v51, %v2927_v5  ;;  %v7087_v19 = vsel %vm3179_vm0, %v7042_v28, %v2906_v41  ;;  %v3262_v28 = vld [vmem:[%s7419_s12 + $0x138] sm:$0xff]  ;;  %v2086_v4 = vpop.f32.mrf.mxu3  ;;  %v3255_v5 = vld [vmem:[%s7419_s12 + $0x100] sm:$0xff] }
 0x2e2   : > { %v2936_v48 = vsel %vm2930_vm13, %v6021_v18, 16  ;;  %v2939_v63 = vsel %vm2933_vm15, %v6028_v42, 16  ;;  %v2630_v30 = vsel %vm2582_vm4, %v2322_v15, -1.0  ;;  %v2146_v8 = vadd.f32 %v2145_v3, %v2081_v26  ;;  %3323 = vmatpush.msrb.mxu3 %v3262_v28 }
 0x2e3   : > { %vm2962_vm1 = vcmp.lt.s32.totalorder %v2936_v48, %v2939_v63  ;;  %v2987_v51 = vmax.f32 %v2627_v46, %v2630_v30  ;;  %v2087_v17 = vadd.f32 %v2086_v4, %v2022_v61  ;;  %vm2591_vm15 = vcmp.lt.s32.totalorder %v7499_v38, %v6987_v33 }
 0x2e4   : > { %v2963_v44 = vsel %vm2962_vm1, %v2936_v48, %v2939_v63  ;;  %3324 = vmatpush.msrb.mxu3 %v3261_v13  ;;  %v2211_v24 = vadd.f32 %v2210_v40, %v2146_v8  ;;  %vm2594_vm1 = vcmp.lt.s32.totalorder %v7500_v47, %v6987_v33 }
 0x2e5   : > { %v2964_v55 = vrot.slane %v2963_v44, 4  ;;  %v2988_v1 = vrot.slane %v2987_v51, 4  ;;  %v2275_v21 = vpop.f32.mrf.mxu2 }
 0x2e6   : > { %v2148_v7 = vpop.f32.mrf.mxu0  ;;  %3325 = vmatpush.msrb.mxu3 %v3260_v60  ;;  %v2276_v22 = vadd.f32 %v2275_v21, %v2211_v24 }
 0x2e7   : > { %vm2965_vm0 = vcmp.lt.s32.totalorder %v2963_v44, %v2964_v55  ;;  %v2989_v49 = vmax.f32 %v2987_v51, %v2988_v1  ;;  %v2149_v43 = vadd.f32 %v2148_v7, %v2084_v53 }
 0x2e8   : > { %v2966_v39 = vsel %vm2965_vm0, %v2963_v44, %v2964_v55  ;;  %v2213_v0 = vpop.f32.mrf.mxu1  ;;  %3326 = vmatpush.msrb.mxu3 %v3259_v25  ;;  %v2325_v35 = vmax.f32 %v2276_v22, 0.0 }
 0x2e9   : > { %v2967_v11 = vrot.slane %v2966_v39, 2  ;;  %v2990_v34 = vrot.slane %v2989_v49, 2  ;;  %v2214_v52 = vadd.f32 %v2213_v0, %v2149_v43  ;;  %v2089_v41 = vpop.f32.mrf.mxu3 }
 0x2ea   : > { %3327 = vmatpush.msrb.mxu3 %v3258_v6  ;;  %v2633_v62 = vsel %vm2585_vm8, %v2325_v35, -1.0  ;;  %v2090_v63 = vadd.f32 %v2089_v41, %v2025_v9 }
 0x2eb   : > { %vm2968_vm3 = vcmp.lt.s32.totalorder %v2966_v39, %v2967_v11  ;;  %v2991_v23 = vmax.f32 %v2989_v49, %v2990_v34 }
 0x2ec   : > { %v2969_v20 = vsel %vm2968_vm3, %v2966_v39, %v2967_v11  ;;  %3328 = vmatpush.msrb.mxu3 %v3257_v31 }
 0x2ed   : > { %v2970_v45 = vrot.slane %v2969_v20, 1  ;;  %v2992_v36 = vrot.slane %v2991_v23, 1  ;;  %v2278_v32 = vpop.f32.mrf.mxu2 }
 0x2ee   : > { %v2279_v56 = vadd.f32 %v2278_v32, %v2214_v52  ;;  %v2151_v16 = vpop.f32.mrf.mxu0  ;;  %3329 = vmatpush.msrb.mxu3 %v3256_v37 }
 0x2ef   : > { %vm2971_vm6 = vcmp.lt.s32.totalorder %v2969_v20, %v2970_v45  ;;  %v2993_v50 = vmax.f32 %v2991_v23, %v2992_v36  ;;  %v2152_v14 = vadd.f32 %v2151_v16, %v2087_v17 }
 0x2f0   : > { %v2972_v27 = vsel %vm2971_vm6, %v2969_v20, %v2970_v45  ;;  %v2328_v2 = vmax.f32 %v2279_v56, 0.0  ;;  %v2216_v54 = vpop.f32.mrf.mxu1  ;;  %3330 = vmatpush.msrb.mxu3 %v3255_v5 }
 0x2f1   : > { %vm2996_vm10 = vcmp.eq.f32.partialorder %v2627_v46, %v2993_v50  ;;  %vm2999_vm11 = vcmp.eq.f32.partialorder %v2630_v30, %v2993_v50  ;;  %v3190_v3 = vsel %vm3187_vm5, %v7083_v58, %v2993_v50  ;;  %v3210_v29 = vsel %vm3183_vm2, %v7087_v19, %v2972_v27 }
 0x2f2   : > { %v3002_v26 = vsel %vm2996_vm10, %v6021_v18, 16  ;;  %v3005_v57 = vsel %vm2999_vm11, %v6028_v42, 16  ;;  %v2636_v12 = vsel %vm2588_vm14, %v2328_v2, -1.0  ;;  %v2217_v59 = vadd.f32 %v2216_v54, %v2152_v14 }
 0x2f3   : > { %vm3028_vm12 = vcmp.lt.s32.totalorder %v3002_v26, %v3005_v57  ;;  %v3053_v15 = vmax.f32 %v2633_v62, %v2636_v12 }
 0x2f4   : > { %v3029_v40 = vsel %vm3028_vm12, %v3002_v26, %v3005_v57 }
 0x2f5   : > { %v3030_v58 = vrot.slane %v3029_v40, 4  ;;  %v3054_v19 = vrot.slane %v3053_v15, 4  ;;  %v2281_v48 = vpop.f32.mrf.mxu2 }
 0x2f6   : > { %v2154_v30 = vpop.f32.mrf.mxu0  ;;  %v2282_v55 = vadd.f32 %v2281_v48, %v2217_v59 }
 0x2f7   : > { %vm3031_vm2 = vcmp.lt.s32.totalorder %v3029_v40, %v3030_v58  ;;  %v3055_v46 = vmax.f32 %v3053_v15, %v3054_v19  ;;  %v2155_v28 = vadd.f32 %v2154_v30, %v2090_v63 }
 0x2f8   : > { %v3032_v51 = vsel %vm3031_vm2, %v3029_v40, %v3030_v58  ;;  %v2219_v10 = vpop.f32.mrf.mxu1  ;;  %v2331_v60 = vmax.f32 %v2282_v55, 0.0 }
 0x2f9   : > { %v3033_v44 = vrot.slane %v3032_v51, 2  ;;  %v3056_v8 = vrot.slane %v3055_v46, 2  ;;  %v2220_v13 = vadd.f32 %v2219_v10, %v2155_v28 }
 0x2fa   : > { %v2639_v22 = vsel %vm2591_vm15, %v2331_v60, -1.0 }
 0x2fb   : > { %vm3034_vm4 = vcmp.lt.s32.totalorder %v3032_v51, %v3033_v44  ;;  %v3057_v1 = vmax.f32 %v3055_v46, %v3056_v8 }
 0x2fc   : > { %v3035_v21 = vsel %vm3034_vm4, %v3032_v51, %v3033_v44 }
 0x2fd   : > { %v3036_v53 = vrot.slane %v3035_v21, 1  ;;  %v3058_v49 = vrot.slane %v3057_v1, 1  ;;  %v2284_v7 = vpop.f32.mrf.mxu2 }
 0x2fe   : > { %v2285_v39 = vadd.f32 %v2284_v7, %v2220_v13 }
 0x2ff   : > { %vm3037_vm13 = vcmp.lt.s32.totalorder %v3035_v21, %v3036_v53  ;;  %v3059_v24 = vmax.f32 %v3057_v1, %v3058_v49 }
 0x300   : > { %v2334_v43 = vmax.f32 %v2285_v39, 0.0  ;;  %v3038_v4 = vsel %vm3037_vm13, %v3035_v21, %v3036_v53 }
 0x301   : > { %vm3062_vm0 = vcmp.eq.f32.partialorder %v2633_v62, %v3059_v24  ;;  %vm3065_vm3 = vcmp.eq.f32.partialorder %v2636_v12, %v3059_v24  ;;  %v3194_v11 = vsel %vm3191_vm7, %v3190_v3, %v3059_v24  ;;  %v3213_v34 = vsel %vm3187_vm5, %v3210_v29, %v3038_v4 }
 0x302   : > { %v3068_v0 = vsel %vm3062_vm0, %v6021_v18, 16  ;;  %v3071_v25 = vsel %vm3065_vm3, %v6028_v42, 16  ;;  %v2642_v23 = vsel %vm2594_vm1, %v2334_v43, -1.0  ;;  %v7504_v12 = vlaneseq }
 0x303   : > { %vm3094_vm6 = vcmp.lt.s32.totalorder %v3068_v0, %v3071_v25  ;;  %v3119_v6 = vmax.f32 %v2639_v22, %v2642_v23 }
 0x304   : > { %v3095_v38 = vsel %vm3094_vm6, %v3068_v0, %v3071_v25  ;;  %v3336_v41 = vand.u32 127, %v7504_v12 }
 0x305   : > { %v3096_v61 = vrot.slane %v3095_v38, 4  ;;  %v3120_v20 = vrot.slane %v3119_v6, 4 }
 0x307   : > { %vm3097_vm8 = vcmp.lt.s32.totalorder %v3095_v38, %v3096_v61  ;;  %v3121_v47 = vmax.f32 %v3119_v6, %v3120_v20 }
 0x308   : > { %v3098_v33 = vsel %vm3097_vm8, %v3095_v38, %v3096_v61 }
 0x309   : > { %v3099_v52 = vrot.slane %v3098_v33, 2  ;;  %v3122_v45 = vrot.slane %v3121_v47, 2 }
 0x30b   : > { %vm3100_vm14 = vcmp.lt.s32.totalorder %v3098_v33, %v3099_v52  ;;  %v3123_v36 = vmax.f32 %v3121_v47, %v3122_v45 }
 0x30c   : > { %v3101_v32 = vsel %vm3100_vm14, %v3098_v33, %v3099_v52 }
 0x30d   : > { %v3102_v31 = vrot.slane %v3101_v32, 1  ;;  %v3124_v35 = vrot.slane %v3123_v36, 1 }
 0x30f   : > { %v3125_v56 = vmax.f32 %v3123_v36, %v3124_v35  ;;  %vm3103_vm5 = vcmp.lt.s32.totalorder %v3101_v32, %v3102_v31 }
 0x310   : > { %v3104_v50 = vsel %vm3103_vm5, %v3101_v32, %v3102_v31 }
 0x311   : > { %vm3128_vm10 = vcmp.eq.f32.partialorder %v2639_v22, %v3125_v56  ;;  %vm3131_vm11 = vcmp.eq.f32.partialorder %v2642_v23, %v3125_v56  ;;  %v3198_v16 = vsel %vm3195_vm9, %v3194_v11, %v3125_v56  ;;  %v3216_v37 = vsel %vm3191_vm7, %v3213_v34, %v3104_v50 }
 0x312   : > { %v3134_v17 = vsel %vm3128_vm10, %v6021_v18, 16  ;;  %v3137_v9 = vsel %vm3131_vm11, %v6028_v42, 16  ;;  %3331 = vmatmul.f32.vlgmr.msrb.gmra.mxu3 %v3198_v16  ;;  %v3292_v18 = vpop.f32.mrf.mxu3  ;;  %v3785_v42 = vld [vmem:[%s7502_s24] ss:$0 sm:$0xff]  ;;  %vm3337_vm7 = vcmp.lt.s32.totalorder %v3336_v41, 3 }
 0x313   : > { %vm3160_vm12 = vcmp.lt.s32.totalorder %v3134_v17, %v3137_v9  ;;  %v3293_v15 = vadd.f32 %v3785_v42, %v3292_v18 }
 0x314   : > { %v3161_v27 = vsel %vm3160_vm12, %v3134_v17, %v3137_v9 }
 0x315   : > { %v3162_v2 = vrot.slane %v3161_v27, 4 }
 0x317   : > { %vm3163_vm2 = vcmp.lt.s32.totalorder %v3161_v27, %v3162_v2 }
 0x318   : > { %v3164_v54 = vsel %vm3163_vm2, %v3161_v27, %v3162_v2 }
 0x319   : > { %v3165_v5 = vrot.slane %v3164_v54, 2 }
 0x31a   : > { %v3312_v62 = vpop.f32.mrf.mxu3 }
 0x31b   : > { %vm3166_vm4 = vcmp.lt.s32.totalorder %v3164_v54, %v3165_v5  ;;  %v3313_v40 = vadd.f32 %v3312_v62, %v3293_v15 }
 0x31c   : > { %v3167_v3 = vsel %vm3166_vm4, %v3164_v54, %v3165_v5 }
 0x31d   : > { %v3168_v29 = vrot.slane %v3167_v3, 1 }
 0x31f   : > { %vm3169_vm13 = vcmp.lt.s32.totalorder %v3167_v3, %v3168_v29 }
 0x320   : > { %v3170_v26 = vsel %vm3169_vm13, %v3167_v3, %v3168_v29 }
 0x321   : > { %v3219_v57 = vsel %vm3195_vm9, %v3216_v37, %v3170_v26 }
 0x322   : > { %3222 = vst [vmem:[%s316_s20] sm:$0xff] %v3219_v57 }
 0x395   : > { %v3332_v14 = vpop.f32.mrf.mxu3 }
 0x396   : > { %v3333_v58 = vadd.f32 %v3332_v14, %v3313_v40 }
 0x398   : > { %v3338_v19 = vsel %vm3337_vm7, %v3333_v58, -1e+30 }
 0x399   : > { %3339 = vmax.xlane.f32.xlu0 %v3338_v19 }
 0x40c   : > { %v3340_v48 = vpop.xlane.xlu0 %3339 }
 0x40d   : > { %v3341_v63 = vsub.f32 %v3338_v19, %v3340_v48 }
 0x40f   : > { %v3342_v46 = vmul.f32 1.442695, %v3341_v63 }
 0x411   : > { %3786 = vpow2.f32 %v3342_v46 }
 0x417   : > { %v7161_v30 = vpop.eup %3786 }
 0x418   : > { %3344 = vadd.xlane.f32.xlu0 %v7161_v30 }
 0x419   : > { %3934 = shalt.err (!%p3931_p2)
}
 0x41a   : > { %3732 = dma.vmem_to_hbm [thread:$0]  (%p4131_p5), %s3407_s14, 128, %s3409_s4, %s7178_s5  }
 0x41b   : > { %s3392_s13 = sshll.u32 %s302_s0, 4  ;;  %s3394_s28 = sshll.u32 %s3390_s11, 4  ;;  %s3393_s13 = int_to_ptr.vmem [resolvable:$true] %s3392_s13  ;;  %s3395_s28 = int_to_ptr.hbm [resolvable:$true] %s3394_s28 }
 0x41c   : > { %s3367_s22 = scalar_lea.sflag [#allocation6], %s300_s30  ;;  %s3949_s27 = sshra.s32 %s3395_s28, 4  ;;  %s3950_s27 = int_to_ptr.hbm [resolvable:$true] %s3949_s27 }
 0x41d   : > { %s3951_s9 = scalar_lea.hbm %s3950_s27, 8  ;;  %s3955_s10 = scalar_lea.hbm %s7507_s29, 16 }
 0x41e   : > { %p3952_p3 = scmp.ne.s32.totalorder %s3950_s27, %s3951_s9  ;;  %p3956_p8 = scmp.lt.s32.totalorder %s3950_s27, %s7507_s29 }
 0x41f   : > { %p3957_p9 = scmp.lt.s32.totalorder %s3955_s10, %s3951_s9 }
 0x420   : > { %p3953_p4 = pnand %p3952_p3, %p4131_p5 }
 0x421   : > { %p3958_p10 = por %p3957_p9, %p3956_p8 }
 0x422   : > { %p3954_p7 = pneg %p3953_p4 }
 0x424   : > { %p3959_p11 = pnand %p3958_p10, %p3954_p7 }
 0x426   : > { %3962 = shalt.err (!%p3959_p11)
}
 0x427   : > { %3731 = dma.vmem_to_hbm [thread:$0]  (%p4131_p5), %s3393_s13, 128, %s3395_s28, %s3367_s22  }
 0x428   : > { %s7508_s0 = sld [smem:[#allocation72_spill]]  ;;  %s3420_s11 = sshll.u32 %s316_s20, 4  ;;  %s3421_s11 = int_to_ptr.vmem [resolvable:$true] %s3420_s11 }
 0x42e   : > { %s3418_s4 = scalar_lea.hbm %s7508_s0, %s7165_s26  ;;  %s3983_s13 = scalar_lea.hbm %s7508_s0, 16 }
 0x42f   : > { %s3422_s17 = sshll.u32 %s3418_s4, 4  ;;  %s3423_s17 = int_to_ptr.hbm [resolvable:$true] %s3422_s17 }
 0x430   : > { %s3977_s19 = sshra.s32 %s3423_s17, 4  ;;  %s3978_s19 = int_to_ptr.hbm [resolvable:$true] %s3977_s19 }
 0x431   : > { %s3979_s25 = scalar_lea.hbm %s3978_s19, 8  ;;  %p3984_p1 = scmp.lt.s32.totalorder %s3978_s19, %s7508_s0 }
 0x432   : > { %p3980_p12 = scmp.ne.s32.totalorder %s3978_s19, %s3979_s25  ;;  %p3985_p2 = scmp.lt.s32.totalorder %s3983_s13, %s3979_s25 }
 0x434   : > { %p3981_p13 = pnand %p3980_p12, %p4131_p5  ;;  %p3986_p3 = por %p3985_p2, %p3984_p1 }
 0x436   : > { %p3982_p0 = pneg %p3981_p13 }
 0x438   : > { %p3987_p4 = pnand %p3986_p3, %p3982_p0 }
 0x43a   : > { %3990 = shalt.err (!%p3987_p4)
}
 0x43b   : > { %3733 = dma.vmem_to_hbm [thread:$0]  (%p4131_p5), %s3421_s11, 128, %s3423_s17, %s7178_s5  }
 0x43c   : > { %p317_p7 = scmp.lt.s32.totalorder %s7503_s8, 1  ;;  %s7509_s26 = sld [smem:[#allocation69_spill]] }
 0x43e   : > { %s7519_s8 = smov (!%p317_p7, %s7503_s8), 1 }
 0x43f   : > { %s3691_s16 = sshll.u32 %s7519_s8, 3 }
 0x442   : > { %s320_s5 = scalar_lea.vmem %s7509_s26, %s3691_s16 }
 0x48b   : > { %v3345_v51 = vpop.xlane.xlu0 %3344 }
 0x48c   : > { %3788 = vrcp.f32 %v3345_v51  ;;  %v3357_v8 = vand.u32 2147483648, %v3345_v51  ;;  %v3355_v55 = vand.u32 2147483647, %v3345_v51  ;;  %vm3351_vm15 = vweird.f32 %v3345_v51 }
 0x48e   : > { %v3358_v21 = vor.u32 1.1754944e-38, %v3357_v8  ;;  %vm3356_vm0 = vcmp.eq.f32.partialorder %v3355_v55, 8.507059e+37 }
 0x492   : > { %v3789_v59 = vpop.eup %3788 }
 0x493   : > { %v3347_v28 = vmul.f32 %v3789_v59, %v3345_v51  ;;  %vm3352_vm9 = vweird.f32 %v3789_v59 }
 0x494   : > { %vm3353_vm1 = vmor %vm3351_vm15, %vm3352_vm9 }
 0x495   : > { %v3348_v44 = vsub.f32 1.0, %v3347_v28 }
 0x497   : > { %v3349_v10 = vmul.f32 %v3789_v59, %v3348_v44 }
 0x499   : > { %v3350_v1 = vadd.f32 %v3789_v59, %v3349_v10 }
 0x49b   : > { %v3354_v13 = vsel %vm3353_vm1, %v3789_v59, %v3350_v1 }
 0x49c   : > { %v3359_v53 = vsel %vm3356_vm0, %v3358_v21, %v3354_v13 }
 0x49d   : > { %v3360_v49 = vmul.f32 %v7161_v30, %v3359_v53 }
 0x49f   : > { %3361 = vst [vmem:[%s320_s5] sm:$0xff] %v3360_v49 }
 0x4a0 PF: > { %s7510_s9 = sld [smem:[#allocation16_spill]] }
 0x4a1   : > { %s7511_s7 = sld [smem:[#allocation13_spill]] }
 0x4a6   : > { %p3747_p5 = scmp.ge.s32.totalorder %s7510_s9, 2 }
 0x4a7   : > { %s3441_s8 = sand.u32 1, %s7511_s7  }
 0x4a8   : > { %p3738_p8 = pnand %p3747_p5, %p4135_p6  ;;  %s3442_s10 = scalar_lea.sflag [#allocation6], %s3441_s8 }
 0x4aa   : > { %p3739_p9 = pneg %p3738_p8 }
 0x4ac   : > { %4010 = dma.done.wait (%p3739_p9), %s3442_s10, 128  }
 0x4ad   : > { %4012 = vsyncadd (%p3739_p9), %s3442_s10, 4294967168  ;;  %s7513_s15 = sadd.s32 4294967294, %s7510_s9  }
 0x4ae   : > { %s3451_s14 = sand.u32 1, %s7513_s15  }
 0x4af   : > { %s3452_s6 = scalar_lea.sflag [#allocation8], %s3451_s14 }
 0x4b0   : > { %4014 = dma.done.wait (%p3739_p9), %s3452_s6, 256  }
 0x4b1   : > { %4016 = vsyncadd (%p3739_p9), %s3452_s6, 4294967040  ;;  %s7514_s16 = sld [smem:[#allocation18_spill]] }
 0x4b2   : > { %s7515_s13 = sld [smem:[#allocation14_spill]] }
 0x4b3   : > { %s7516_s14 = sld [smem:[#allocation15_spill]] }
 0x4b4   : > { %s7517_s15 = sld [smem:[#allocation19_spill]] }
 0x4b7   : > { %p31_p10 = scmp.ge.s32.totalorder %s7514_s16, 4  }
 0x4b9   :  { %33 = sbr.rel (!%p31_p10) target bundleno = 16 (0x10), region = 251 }
 0x4be   :  { %3468 = vsyncpa [#allocation6], 1 }
 0x4bf   :  { %3470 = vsyncpa [#allocation6 + $0x1], 1 }
 0x4c0   :  { %3471 = vsyncpa [#allocation8], 1 }
 0x4c1   :  { %3473 = vsyncpa [#allocation8 + $0x1], 1 }

</bundles_post_ra>
